<compile_context>
chip_gen: v7x
topology: tpu7x:2x2x1
jax: 0.10.0
libtpu: 0.0.40
codegen_flags: <defaults>
</compile_context>

<pallas_src>
import jax
import jax.numpy as jnp
from jax.experimental import pallas as pl
from jax.experimental.pallas import tpu as pltpu

IN_FEATURES = 48000
H1 = 200
H2 = 100
OUT_FEATURES = 27

# K split: 48128 = NC * NK_PER_CORE * TK, with TK a multiple of 128.
NC = 2            # leading "parallel" grid axis -> both TensorCores on v7x
NK_PER_CORE = 2   # K tiles per core (keeps per-buffer VMEM ~6 MB)
K_PAD = 48128     # 48000 padded up to 128 * 376
TK = K_PAD // (NC * NK_PER_CORE)   # 12032 = 94 * 128


def _l1_partial_kernel(x_ref, w1_ref, o_ref):
    """Per-core partial of x @ W1 over half of the (padded) K reduction."""
    k = pl.program_id(1)

    @pl.when(k == 0)
    def _():
        o_ref[...] = jnp.zeros_like(o_ref)

    # bf16 x bf16 -> f32 on the MXU; accumulate into the f32 output block,
    # which stays VMEM-resident across the "arbitrary" K axis.
    o_ref[...] += jnp.dot(
        x_ref[...].astype(jnp.bfloat16),
        w1_ref[...],
        preferred_element_type=jnp.float32,
    )[None]


def _epilogue_kernel(p_ref, b1_ref, w2_ref, b2_ref, w3_ref, b3_ref, o_ref):
    """Sum the two per-core partials, then b1 + ReLU + L2 + ReLU + L3."""
    # ReLU is nonlinear, so partials MUST be summed before adding b1.
    h1 = jnp.maximum(p_ref[0] + p_ref[1] + b1_ref[...], 0.0)
    h2 = jnp.maximum(
        jnp.dot(h1, w2_ref[...], preferred_element_type=jnp.float32)
        + b2_ref[...],
        0.0,
    )
    y = (
        jnp.dot(h2, w3_ref[...], preferred_element_type=jnp.float32)
        + b3_ref[...]
    )
    o_ref[...] = y.astype(o_ref.dtype)


def pallas_net(x, w1_padded_bf16, b1, w2, b2, w3, b3):
    """Fused forward pass of the 3-layer MLP.

    w1_padded_bf16 must be the [K_PAD, H1] bfloat16, zero-padded L1 weight
    produced by `prepare_params` (cast/pad happens once, not per call).
    """
    B, K = x.shape
    assert K == IN_FEATURES
    assert w1_padded_bf16.shape == (K_PAD, H1)
    assert w1_padded_bf16.dtype == jnp.bfloat16
    assert w2.shape == (H1, H2) and w3.shape == (H2, OUT_FEATURES)

    # Zero-pad x along K to match the padded W1 (padding rows of W1 are zero,
    # so the result is unchanged).  ~0.4 MB of extra traffic vs ~19 MB of W1.
    x_p = jnp.pad(x, ((0, 0), (0, K_PAD - K)))

    flops = 2 * B * K_PAD * H1
    bytes_accessed = (
        B * K_PAD * 4        # x  (f32)
        + K_PAD * H1 * 2     # W1 (bf16) — dominant ~19.3 MB
        + NC * B * H1 * 4    # partial outputs
    )

    partials = pl.pallas_call(
        _l1_partial_kernel,
        out_shape=jax.ShapeDtypeStruct((NC, B, H1), jnp.float32),
        grid_spec=pltpu.PrefetchScalarGridSpec(
            num_scalar_prefetch=0,
            grid=(NC, NK_PER_CORE),
            in_specs=[
                # x tile [B, TK]; K block index = c * NK_PER_CORE + k
                pl.BlockSpec((B, TK), lambda c, k: (0, c * NK_PER_CORE + k)),
                # W1 tile [TK, H1] (bf16)
                pl.BlockSpec((TK, H1), lambda c, k: (c * NK_PER_CORE + k, 0)),
            ],
            # Each core owns its own partial [1, B, H1], revisited across k.
            out_specs=pl.BlockSpec((1, B, H1), lambda c, k: (c, 0, 0)),
        ),
        compiler_params=pltpu.CompilerParams(
            dimension_semantics=("parallel", "arbitrary"),
            vmem_limit_bytes=32 << 20,  # ~13 MB used; safe on v5e/v6e/v7x
        ),
        cost_estimate=pl.CostEstimate(
            flops=flops, transcendentals=0, bytes_accessed=bytes_accessed
        ),
    )(x_p, w1_padded_bf16)

    # Tiny epilogue (~90 KB of f32 weights, <4 KB partials): one grid-less
    # pallas_call with everything resident in VMEM.
    return pl.pallas_call(
        _epilogue_kernel,
        out_shape=jax.ShapeDtypeStruct((B, OUT_FEATURES), x.dtype),
    )(
        partials,
        b1.reshape(1, H1),
        w2,
        b2.reshape(1, H2),
        w3,
        b3.reshape(1, OUT_FEATURES),
    )


def init_params(key):
    """PyTorch nn.Linear default init: U(-1/sqrt(fan_in), 1/sqrt(fan_in))."""
    dims = [(IN_FEATURES, H1), (H1, H2), (H2, OUT_FEATURES)]
    params = {}
    for i, (fan_in, fan_out) in enumerate(dims, start=1):
        key, kw, kb = jax.random.split(key, 3)
        bound = 1.0 / jnp.sqrt(jnp.float32(fan_in))
        params[f"w{i}"] = jax.random.uniform(
            kw, (fan_in, fan_out), jnp.float32, minval=-bound, maxval=bound
        )
        params[f"b{i}"] = jax.random.uniform(
            kb, (fan_out,), jnp.float32, minval=-bound, maxval=bound
        )
    return params


def prepare_params(params):
    """One-time prep: W1 -> bfloat16, zero-padded along K to K_PAD."""
    w1p = jnp.pad(
        params["w1"].astype(jnp.bfloat16),
        ((0, K_PAD - IN_FEATURES), (0, 0)),
    )
    return {**params, "w1p": w1p}


@jax.jit
def net_forward(x, params):
    return pallas_net(
        x,
        params["w1p"],
        params["b1"],
        params["w2"], params["b2"],
        params["w3"], params["b3"],
    )


if __name__ == "__main__":
    key = jax.random.PRNGKey(0)
    key, kx = jax.random.split(key)
    # batch=2; in_features=48000 is fixed by the module definition.
    x = jax.random.normal(kx, (2, IN_FEATURES), dtype=jnp.float32)
    params = prepare_params(init_params(key))

    out = jax.block_until_ready(net_forward(x, params))
    assert out.shape == (2, OUT_FEATURES)

    HI = jax.lax.Precision.HIGHEST

    # bf16-faithful reference: exactly what the kernel computes (x and W1
    # rounded to bf16, f32 accumulation, f32 L2/L3) modulo summation order.
    x_bf = x.astype(jnp.bfloat16).astype(jnp.float32)
    w1_bf = params["w1"].astype(jnp.bfloat16).astype(jnp.float32)
    h = jnp.maximum(jnp.dot(x_bf, w1_bf, precision=HI) + params["b1"], 0.0)
    h = jnp.maximum(jnp.dot(h, params["w2"], precision=HI) + params["b2"], 0.0)
    ref_bf16 = jnp.dot(h, params["w3"], precision=HI) + params["b3"]
    assert jnp.allclose(out, ref_bf16, atol=2e-3, rtol=2e-3), "mismatch vs bf16-faithful reference"

    # Full-f32 reference: bf16 W1/x only perturbs the result slightly, so a
    # modestly looser tolerance applies here.
    h = jnp.maximum(jnp.dot(x, params["w1"], precision=HI) + params["b1"], 0.0)
    h = jnp.maximum(jnp.dot(h, params["w2"], precision=HI) + params["b2"], 0.0)
    ref_f32 = jnp.dot(h, params["w3"], precision=HI) + params["b3"]
    assert jnp.allclose(out, ref_f32, atol=2e-2, rtol=2e-2), "mismatch vs f32 reference"

    print("KERNEL_OK")
</pallas_src>

<mosaic_0001>
module attributes {stable_mosaic.version = 11 : i64} {
  func.func @_l1_partial_kernel(%arg0: i32, %arg1: i32, %arg2: memref<2x12032xf32, #tpu.memory_space<vmem>>, %arg3: memref<12032x200xbf16, #tpu.memory_space<vmem>>, %arg4: memref<1x2x200xf32, #tpu.memory_space<vmem>>) attributes {dimension_semantics = [#tpu.dimension_semantics<parallel>, #tpu.dimension_semantics<arbitrary>], iteration_bounds = array<i64: 2, 2>, scalar_prefetch = 0 : i64, scratch_operands = 0 : i64, tpu.core_type = #tpu.core_type<tc>, window_params = [{transform_indices = @transform_0, window_bounds = array<i64: 2, 12032>}, {transform_indices = @transform_1, window_bounds = array<i64: 12032, 200>}, {transform_indices = @transform_2, window_bounds = array<i64: 1, 2, 200>}]} {
    %c0_i32 = arith.constant 0 : i32
    %0 = arith.cmpi eq, %arg1, %c0_i32 : i32
    %1 = arith.extui %0 : i1 to i32
    %c0_i32_0 = arith.constant 0 : i32
    %2 = arith.cmpi ne, %1, %c0_i32_0 : i32
    scf.if %2 {
      %cst_10 = arith.constant 0.000000e+00 : f32
      %11 = vector.broadcast %cst_10 : f32 to vector<1x2x200xf32>
      %c0_11 = arith.constant 0 : index
      %c0_12 = arith.constant 0 : index
      %c0_13 = arith.constant 0 : index
      %12 = vector.load %arg4[%c0_11, %c0_12, %c0_13] : memref<1x2x200xf32, #tpu.memory_space<vmem>>, vector<1x2x200xf32>
      tpu.vector_store %arg4[%c0_11, %c0_12, %c0_13], %11 {strides = array<i32>} : memref<1x2x200xf32, #tpu.memory_space<vmem>>, vector<1x2x200xf32>,
    } else {
    }
    %c0 = arith.constant 0 : index
    %c0_1 = arith.constant 0 : index
    %c0_2 = arith.constant 0 : index
    %3 = vector.load %arg4[%c0, %c0_1, %c0_2] : memref<1x2x200xf32, #tpu.memory_space<vmem>>, vector<1x2x200xf32>
    %c0_3 = arith.constant 0 : index
    %c0_4 = arith.constant 0 : index
    %4 = vector.load %arg2[%c0_3, %c0_4] : memref<2x12032xf32, #tpu.memory_space<vmem>>, vector<2x12032xf32>
    %5 = arith.truncf %4 : vector<2x12032xf32> to vector<2x12032xbf16>
    %c0_5 = arith.constant 0 : index
    %c0_6 = arith.constant 0 : index
    %6 = vector.load %arg3[%c0_5, %c0_6] : memref<12032x200xbf16, #tpu.memory_space<vmem>>, vector<12032x200xbf16>
    %cst = arith.constant dense<0.000000e+00> : vector<2x200xf32>
    %7 = tpu.matmul %5, %6, %cst {dimension_numbers = #tpu.dot_dimension_numbers<[1], [0], [0], [1], [0, 0, 1, 1], [], []>} : vector<2x12032xbf16>, vector<12032x200xbf16>, vector<2x200xf32> -> vector<2x200xf32>
    %8 = vector.shape_cast %7 : vector<2x200xf32> to vector<1x2x200xf32>
    %9 = arith.addf %3, %8 : vector<1x2x200xf32>
    %c0_7 = arith.constant 0 : index
    %c0_8 = arith.constant 0 : index
    %c0_9 = arith.constant 0 : index
    %10 = vector.load %arg4[%c0_7, %c0_8, %c0_9] : memref<1x2x200xf32, #tpu.memory_space<vmem>>, vector<1x2x200xf32>
    tpu.vector_store %arg4[%c0_7, %c0_8, %c0_9], %9 {strides = array<i32>} : memref<1x2x200xf32, #tpu.memory_space<vmem>>, vector<1x2x200xf32>,
    return
  }
  func.func @transform_0(%arg0: i32, %arg1: i32) -> (i32, i32) {
    %c2_i32 = arith.constant 2 : i32
    %0 = arith.muli %arg0, %c2_i32 : i32
    %1 = arith.addi %0, %arg1 : i32
    %c0_i32 = arith.constant 0 : i32
    %c0_i32_0 = arith.constant 0 : i32
    return %c0_i32, %1 : i32, i32
  }
  func.func @transform_1(%arg0: i32, %arg1: i32) -> (i32, i32) {
    %c2_i32 = arith.constant 2 : i32
    %0 = arith.muli %arg0, %c2_i32 : i32
    %1 = arith.addi %0, %arg1 : i32
    %c0_i32 = arith.constant 0 : i32
    %c0_i32_0 = arith.constant 0 : i32
    return %1, %c0_i32 : i32, i32
  }
  func.func @transform_2(%arg0: i32, %arg1: i32) -> (i32, i32, i32) {
    %c0_i32 = arith.constant 0 : i32
    %c0_i32_0 = arith.constant 0 : i32
    %c0_i32_1 = arith.constant 0 : i32
    return %arg0, %c0_i32, %c0_i32_0 : i32, i32, i32
  }
}

module attributes {stable_mosaic.version = 11 : i64} {
  func.func @_epilogue_kernel(%arg0: memref<2x2x200xf32, #tpu.memory_space<vmem>>, %arg1: memref<1x200xf32, #tpu.memory_space<vmem>>, %arg2: memref<200x100xf32, #tpu.memory_space<vmem>>, %arg3: memref<1x100xf32, #tpu.memory_space<vmem>>, %arg4: memref<100x27xf32, #tpu.memory_space<vmem>>, %arg5: memref<1x27xf32, #tpu.memory_space<vmem>>, %arg6: memref<2x27xf32, #tpu.memory_space<vmem>>) attributes {dimension_semantics = [], scalar_prefetch = 0 : i64, scratch_operands = 0 : i64, tpu.core_type = #tpu.core_type<tc>} {
    %c0 = arith.constant 0 : index
    %c0_0 = arith.constant 0 : index
    %c0_1 = arith.constant 0 : index
    %0 = vector.load %arg0[%c0, %c0_0, %c0_1] : memref<2x2x200xf32, #tpu.memory_space<vmem>>, vector<1x2x200xf32>
    %1 = vector.shape_cast %0 : vector<1x2x200xf32> to vector<2x200xf32>
    %c1 = arith.constant 1 : index
    %c0_2 = arith.constant 0 : index
    %c0_3 = arith.constant 0 : index
    %2 = vector.load %arg0[%c1, %c0_2, %c0_3] : memref<2x2x200xf32, #tpu.memory_space<vmem>>, vector<1x2x200xf32>
    %3 = vector.shape_cast %2 : vector<1x2x200xf32> to vector<2x200xf32>
    %4 = arith.addf %1, %3 : vector<2x200xf32>
    %c0_4 = arith.constant 0 : index
    %c0_5 = arith.constant 0 : index
    %5 = vector.load %arg1[%c0_4, %c0_5] : memref<1x200xf32, #tpu.memory_space<vmem>>, vector<1x200xf32>
    %6 = vector.broadcast %5 : vector<1x200xf32> to vector<2x200xf32>
    %7 = arith.addf %4, %6 : vector<2x200xf32>
    %cst = arith.constant 0.000000e+00 : f32
    %8 = vector.broadcast %cst : f32 to vector<2x200xf32>
    %9 = arith.maximumf %7, %8 : vector<2x200xf32>
    %c0_6 = arith.constant 0 : index
    %c0_7 = arith.constant 0 : index
    %10 = vector.load %arg2[%c0_6, %c0_7] : memref<200x100xf32, #tpu.memory_space<vmem>>, vector<200x100xf32>
    %cst_8 = arith.constant dense<0.000000e+00> : vector<2x100xf32>
    %11 = tpu.matmul %9, %10, %cst_8 {dimension_numbers = #tpu.dot_dimension_numbers<[1], [0], [0], [1], [0, 0, 1, 1], [], []>} : vector<2x200xf32>, vector<200x100xf32>, vector<2x100xf32> -> vector<2x100xf32>
    %c0_9 = arith.constant 0 : index
    %c0_10 = arith.constant 0 : index
    %12 = vector.load %arg3[%c0_9, %c0_10] : memref<1x100xf32, #tpu.memory_space<vmem>>, vector<1x100xf32>
    %13 = vector.broadcast %12 : vector<1x100xf32> to vector<2x100xf32>
    %14 = arith.addf %11, %13 : vector<2x100xf32>
    %cst_11 = arith.constant 0.000000e+00 : f32
    %15 = vector.broadcast %cst_11 : f32 to vector<2x100xf32>
    %16 = arith.maximumf %14, %15 : vector<2x100xf32>
    %c0_12 = arith.constant 0 : index
    %c0_13 = arith.constant 0 : index
    %17 = vector.load %arg4[%c0_12, %c0_13] : memref<100x27xf32, #tpu.memory_space<vmem>>, vector<100x27xf32>
    %cst_14 = arith.constant dense<0.000000e+00> : vector<2x27xf32>
    %18 = tpu.matmul %16, %17, %cst_14 {dimension_numbers = #tpu.dot_dimension_numbers<[1], [0], [0], [1], [0, 0, 1, 1], [], []>} : vector<2x100xf32>, vector<100x27xf32>, vector<2x27xf32> -> vector<2x27xf32>
    %c0_15 = arith.constant 0 : index
    %c0_16 = arith.constant 0 : index
    %19 = vector.load %arg5[%c0_15, %c0_16] : memref<1x27xf32, #tpu.memory_space<vmem>>, vector<1x27xf32>
    %20 = vector.broadcast %19 : vector<1x27xf32> to vector<2x27xf32>
    %21 = arith.addf %18, %20 : vector<2x27xf32>
    %c0_17 = arith.constant 0 : index
    %c0_18 = arith.constant 0 : index
    %22 = vector.load %arg6[%c0_17, %c0_18] : memref<2x27xf32, #tpu.memory_space<vmem>>, vector<2x27xf32>
    tpu.vector_store %arg6[%c0_17, %c0_18], %21 {strides = array<i32>} : memref<2x27xf32, #tpu.memory_space<vmem>>, vector<2x27xf32>,
    return
  }
}

</mosaic_0001>

<bundles_post_ra>
// kernel: net_forward.3
= control target key start
LH: loop header
LB: loop body
LE: loop exit
PB: predicated region body
PF: predicated region fallthrough
CT: control target
= control target key end

     0   :  { %v30_v3 = vlaneseq  ;;  %v411_v4 = vmov 0.0|0.0   ;;  %v412_v8 = vmov 1983009808   ;;  %s610_s0 = inlined_call_operand.vmem [shape: f32[2,2,200], index: 0, kind: input, shape index: {}]   ;;  %s611_s1 = inlined_call_operand.vmem [shape: f32[1,200], index: 1, kind: input, shape index: {}]   ;;  %s612_s2 = inlined_call_operand.vmem [shape: f32[200,100], index: 2, kind: input, shape index: {}]   ;;  %s613_s3 = inlined_call_operand.vmem [shape: f32[1,100], index: 3, kind: input, shape index: {}]   ;;  %s614_s4 = inlined_call_operand.vmem [shape: f32[100,27], index: 4, kind: input, shape index: {}]   ;;  %s615_s5 = inlined_call_operand.vmem [shape: f32[1,27], index: 5, kind: input, shape index: {}]   ;;  %s616_s6 = inlined_call_operand.hbm [shape: f32[2,27], index: 6, kind: output, shape index: {}]  }
   0x1   :  { %v49_v0 = vld [vmem:[%s612_s2] sm:$0xff]  ;;  %v50_v1 = vld [vmem:[%s612_s2 + $0x8] sm:$0xff]  ;;  %v51_v2 = vld [vmem:[%s612_s2 + $0x10] sm:$0xff]  ;;  %328 = vmatprep.subr.bf16.mxu0 %v411_v4  ;;  %364 = vmatprep.subr.bf16.mxu1 %v411_v4  ;;  %v40_v9 = vunpack.c.l.s4 %v412_v8 }
   0x2   :  { %v329_v5 = vpack.c.bf16 %v50_v1, %v49_v0  ;;  %v52_v6 = vld [vmem:[%s612_s2 + $0x18] sm:$0xff]  ;;  %v31_v7 = vshrl.u32 %v30_v3, 7  ;;  %v53_v11 = vld [vmem:[%s612_s2 + $0x20] sm:$0xff]  ;;  %v54_v12 = vld [vmem:[%s612_s2 + $0x28] sm:$0xff] }
   0x3   :  { %v332_v10 = vpack.c.bf16 %v52_v6, %v51_v2  ;;  %v41_v15 = vunpack.c.0.s8 %v40_v9  ;;  %v335_v16 = vpack.c.bf16 %v54_v12, %v53_v11  ;;  %v55_v17 = vld [vmem:[%s612_s2 + $0x30] sm:$0xff]  ;;  %v56_v18 = vld [vmem:[%s612_s2 + $0x38] sm:$0xff]  ;;  %v24_v19 = vld [vmem:[%s610_s0] sm:$0xf] }
   0x4   :  { %330 = vmatpush1.bf16.msra.mxu0 %v329_v5  ;;  %v32_v13 = vsub.s32 0, %v31_v7  ;;  %v36_v14 = vsub.s32 1, %v31_v7  ;;  %v279_v20 = vld [vmem:[%s610_s0 + $0x4] sm:$0xf]  ;;  %v28_v21 = vld [vmem:[%s611_s1] sm:$0x3]  ;;  %v338_v30 = vpack.c.bf16 %v56_v18, %v55_v17 }
   0x5   :  { %331 = vmatprep.subr.bf16.mxu0 %v411_v4  ;;  %v165_v22 = vld [vmem:[%s614_s4] sm:$0xff]  ;;  %v166_v23 = vld [vmem:[%s614_s4 + $0x8] sm:$0xff]  ;;  %v44_v26 = vsub.s32 %v41_v15, %v31_v7  ;;  %v167_v28 = vld [vmem:[%s614_s4 + $0x10] sm:$0xff]  ;;  %v27_v33 = vadd.f32 %v279_v20, %v24_v19 }
   0x6   :  { %v33_v24 = vrot.slane %v28_v21, %v32_v13  ;;  %v37_v25 = vrot.slane %v28_v21, %v36_v14  ;;  %v365_v27 = vpack.c.bf16 %v166_v23, %v165_v22  ;;  %v168_v29 = vld [vmem:[%s614_s4 + $0x18] sm:$0xff]  ;;  %v57_v31 = vld [vmem:[%s612_s2 + $0x40] sm:$0xff]  ;;  %v58_v32 = vld [vmem:[%s612_s2 + $0x48] sm:$0xff] }
   0x7   :  { %v368_v35 = vpack.c.bf16 %v168_v29, %v167_v28  ;;  %v169_v36 = vld [vmem:[%s614_s4 + $0x20] sm:$0xff]  ;;  %v170_v37 = vld [vmem:[%s614_s4 + $0x28] sm:$0xff] }
   0x8   :  { %333 = vmatpush1.bf16.msra.mxu0 %v332_v10  ;;  %v38_v34 = vcombine.low %v33_v24, %v37_v25  ;;  %366 = vmatpush3.bf16.msra.mxu1 %v365_v27 }
   0x9   :  { %334 = vmatprep.subr.bf16.mxu0 %v411_v4  ;;  %367 = vmatprep.subr.bf16.mxu1 %v411_v4 }
   0xc   :  { %336 = vmatpush1.bf16.msra.mxu0 %v335_v16 }
   0xd   :  { %337 = vmatprep.subr.bf16.mxu0 %v411_v4 }
   0xe   :  { %11 = vsyncpa [#allocation3], 0  ;;  %v45_v38 = vrot.slane %v38_v34, %v44_v26  ;;  %v341_v39 = vpack.c.bf16 %v58_v32, %v57_v31  ;;  %v59_v40 = vld [vmem:[%s612_s2 + $0x50] sm:$0xff]  ;;  %v60_v41 = vld [vmem:[%s612_s2 + $0x58] sm:$0xff]  ;;  %369 = vmatpush3.bf16.msra.mxu1 %v368_v35  ;;  %v371_v43 = vpack.c.bf16 %v170_v37, %v169_v36  ;;  %vm91_vm0 = vcmask 588800   ;;  %s415_s28 = smov [#allocation2]  }
   0xf   :  { %370 = vmatprep.subr.bf16.mxu1 %v411_v4  ;;  %v171_v45 = vld [vmem:[%s614_s4 + $0x30] sm:$0xff]  ;;  %v172_v46 = vld [vmem:[%s614_s4 + $0x38] sm:$0xff]  ;;  %v344_v47 = vpack.c.bf16 %v60_v41, %v59_v40  ;;  %v61_v48 = vld [vmem:[%s612_s2 + $0x60] sm:$0xff]  ;;  %v413_v9 = vmov 0.0   ;;  %vm189_vm1 = vcmask 1043456   ;;  %vm414_vm2 = vmmov 0  }
  0x10   :  { %339 = vmatpush1.bf16.msra.mxu0 %v338_v30  ;;  %v47_v42 = vadd.f32 %v45_v38, %v27_v33  ;;  %v62_v49 = vld [vmem:[%s612_s2 + $0x68] sm:$0xff]  ;;  %v374_v51 = vpack.c.bf16 %v172_v46, %v171_v45  ;;  %v173_v53 = vld [vmem:[%s614_s4 + $0x40] sm:$0xff]  ;;  %v63_v56 = vld [vmem:[%s612_s2 + $0x70] sm:$0xff]  ;;  %325 = vmatprep.mubr.msk.f32.mxu1 %vm414_vm2, %v413_v9  ;;  %vm185_vm3 = vcmask 818176   ;;  %vm263_vm4 = vcmask 214016  }
  0x11   :  { %340 = vmatprep.subr.bf16.mxu0 %v411_v4  ;;  %v174_v54 = vld [vmem:[%s614_s4 + $0x48] sm:$0xff]  ;;  %v347_v55 = vpack.c.bf16 %v62_v49, %v61_v48  ;;  %v64_v57 = vld [vmem:[%s612_s2 + $0x78] sm:$0xff]  ;;  %v65_v60 = vld [vmem:[%s612_s2 + $0x80] sm:$0xff] }
  0x12   :  { %v48_v44 = vmax.f32 %v47_v42, 0.0  ;;  %372 = vmatpush3.bf16.msra.mxu1 %v371_v43  ;;  %v377_v58 = vpack.c.bf16 %v174_v54, %v173_v53  ;;  %v350_v59 = vpack.c.bf16 %v64_v57, %v63_v56  ;;  %v66_v61 = vld [vmem:[%s612_s2 + $0x88] sm:$0xff]  ;;  %v67_v63 = vld [vmem:[%s612_s2 + $0x90] sm:$0xff]  ;;  %v68_v0 = vld [vmem:[%s612_s2 + $0x98] sm:$0xff] }
  0x13   :  { %373 = vmatprep.subr.bf16.mxu1 %v411_v4  ;;  %v353_v62 = vpack.c.bf16 %v66_v61, %v65_v60  ;;  %v356_v1 = vpack.c.bf16 %v68_v0, %v67_v63  ;;  %v69_v2 = vld [vmem:[%s612_s2 + $0xa0] sm:$0xff]  ;;  %v70_v3 = vld [vmem:[%s612_s2 + $0xa8] sm:$0xff]  ;;  %v71_v6 = vld [vmem:[%s612_s2 + $0xb0] sm:$0xff] }
  0x14   :  { %342 = vmatpush1.bf16.msra.mxu0 %v341_v39  ;;  %v88_v50 = vrot.slane %v48_v44, %v44_v26  ;;  %v359_v5 = vpack.c.bf16 %v70_v3, %v69_v2  ;;  %v72_v7 = vld [vmem:[%s612_s2 + $0xb8] sm:$0xff]  ;;  %v73_v10 = vld [vmem:[%s612_s2 + $0xc0] sm:$0xff]  ;;  %v175_v11 = vld [vmem:[%s614_s4 + $0x50] sm:$0xff] }
  0x15   :  { %343 = vmatprep.subr.bf16.mxu0 %v411_v4  ;;  %v362_v8 = vpack.c.bf16 %v72_v7, %v71_v6  ;;  %v176_v12 = vld [vmem:[%s614_s4 + $0x58] sm:$0xff]  ;;  %v280_v14 = vld [vmem:[%s613_s3] ss:$0 sm:$0xff] }
  0x16   :  { %v89_v52 = vcombine.high %v88_v50, %v88_v50  ;;  %375 = vmatpush3.bf16.msra.mxu1 %v374_v51  ;;  %v380_v13 = vpack.c.bf16 %v176_v12, %v175_v11  ;;  %v282_v19 = vld [vmem:[%s615_s5] ss:$0 sm:$0xff] }
  0x17   :  { %376 = vmatprep.subr.bf16.mxu1 %v411_v4 }
  0x18   :  { %345 = vmatpush1.bf16.msra.mxu0 %v344_v47  ;;  %281 = vmatprep.mubr.msk.f32.mxu0 %vm91_vm0, %v89_v52 }
  0x19   :  { %346 = vmatprep.subr.bf16.mxu0 %v411_v4 }
  0x1a   :  { %378 = vmatpush3.bf16.msra.mxu1 %v377_v58 }
  0x1b   :  { %379 = vmatprep.subr.bf16.mxu1 %v411_v4 }
  0x1c   :  { %348 = vmatpush1.bf16.msra.mxu0 %v347_v55 }
  0x1d   :  { %349 = vmatprep.subr.bf16.mxu0 %v411_v4 }
  0x1e   :  { %381 = vmatpush3.bf16.msra.mxu1 %v380_v13 }
  0x1f   :  { %323 = vmatprep.subr.mxu1 %v413_v9 }
  0x20   :  { %351 = vmatpush1.bf16.msra.mxu0 %v350_v59 }
  0x21   :  { %352 = vmatprep.subr.bf16.mxu0 %v411_v4 }
  0x24   :  { %354 = vmatpush1.bf16.msra.mxu0 %v353_v62 }
  0x25   :  { %355 = vmatprep.subr.bf16.mxu0 %v411_v4 }
  0x28   :  { %357 = vmatpush1.bf16.msra.mxu0 %v356_v1 }
  0x29   :  { %358 = vmatprep.subr.bf16.mxu0 %v411_v4 }
  0x2c   :  { %360 = vmatpush1.bf16.msra.mxu0 %v359_v5 }
  0x2d   :  { %361 = vmatprep.subr.bf16.mxu0 %v411_v4  ;;  %v177_v4 = vld [vmem:[%s614_s4 + $0x60] sm:$0xf]  ;;  %s271_s4 = sshll.u32 %s415_s28, 4  ;;  %s272_s4 = int_to_ptr.vmem [resolvable:$true] %s271_s4 }
  0x2e   :  { %324 = vmatpush3.msk.msra.mxu1 %vm189_vm1, %v177_v4  ;;  %s387_s29 = scalar_lea.vmem %s272_s4, 32  ;;  %p392_p1 = scmp.lt.s32.totalorder %s272_s4, %s272_s4 }
  0x2f   :  { %p388_p0 = scmp.ne.s32.totalorder %s272_s4, %s387_s29  ;;  %p393_p2 = scmp.lt.s32.totalorder %s387_s29, %s387_s29 }
  0x30   :  { %363 = vmatpush1.bf16.msra.mxu0 %v362_v8 }
  0x31   :  { %142 = vmatprep.subr.mxu0 %v413_v9  ;;  %p394_p3 = por %p393_p2, %p392_p1 }
  0x33   :  { %p395_p4 = pnand %p394_p3, %p388_p0 }
  0x34   :  { %143 = vmatpush1.msra.mxu0 %v73_v10 }
  0x35   :  { %159 = vmatmul.mubr.f32.vlgmr.msra.gmra.mrb[0].mxu0 %v88_v50 }
 0x108   :  { %v160_v15 = vpop.f32.mrb[0].mxu0 }
 0x109   :  { %v161_v16 = vadd.f32 %v280_v14, %v160_v15  ;;  %v162_v17 = vpop.f32.mrb[1].mxu0 }
 0x10b   :  { %v164_v18 = vmax.f32 %v161_v16, 0.0 }
 0x10d   :  { %326 = vmatmul.mubr.msk.f32.vlgmr.msra.gmra.mrb[0].mxu1 %vm185_vm3, %v164_v18 }
 0x1e0   :  { %v259_v20 = vpop.f32.mrb[0].mxu1 }
 0x1e1   :  { %v260_v21 = vadd.f32 %v282_v19, %v259_v20  ;;  %v327_v22 = vpop.f32.mrb[1].mxu1 }
 0x1e3   :  { %264 = vst.msk [vmem:[#allocation2] sm:$0x3] %vm263_vm4, %v260_v21 }
 0x1e4   :  { %398 = shalt.err (!%p395_p4)
}
 0x1e5   :  { %s399_s7 = scalar_lea.hbm %s616_s6, 32 }
 0x1e6   :  { %p400_p5 = scmp.ne.s32.totalorder %s616_s6, %s399_s7  ;;  %p403_p6 = scmp.lt.u32.totalorder %s399_s7, %s616_s6 }
 0x1e8   :  { %p405_p7 = pnand %p403_p6, %p400_p5 }
 0x1ea   :  { %408 = shalt.err (!%p405_p7)
}
 0x1eb   :  { %274 = dma.vmem_to_hbm [thread:$0]  %s272_s4, 32, %s616_s6, [#allocation3]  }
 0x1ec   :  { %409 = dma.done.wait [#allocation3], 32  }
 0x1ed   :  { %410 = vsyncadd [#allocation3], 4294967264 }
 0x1ee   :  { %278 = vsyncpa [#allocation3], 1 }

// kernel: net_forward.2
= control target key start
LH: loop header
LB: loop body
LE: loop exit
PB: predicated region body
PF: predicated region fallthrough
CT: control target
= control target key end

     0   :  { %s15988_s9 = smov 0   ;;  %s15990_s10 = smov 0   ;;  %s18013_s0 = inlined_call_operand.vmem [shape: f32[2,48128], index: 0, kind: input, shape index: {}]   ;;  %s18014_s1 = inlined_call_operand.vmem [shape: bf16[48128,200], index: 1, kind: input, shape index: {}]   ;;  %s18015_s2 = inlined_call_operand.vmem [shape: f32[2,2,200], index: 2, kind: output, shape index: {}]  }
   0x1   :  { %s15992_s11 = smov 0   ;;  %s15994_s12 = smov 0  }
   0x2   :  { %s15996_s13 = smov 0  }
   0x3 LB: > { %s21_s14 = sadd.s32 1, %s15961_s11  ;;  %s24_s15 = sadd.s32 1, %s15965_s12  ;;  %s15969_s13 = sphi %s15996_s13, %s12_s13   ;;  %s15965_s12 = sphi %s15994_s12, %s18019_s12   ;;  %s15961_s11 = sphi %s15992_s11, %s18018_s11   ;;  %s15957_s10 = sphi %s15990_s10, %s18017_s10   ;;  %s15953_s9 = sphi %s15988_s9, %s18016_s9  }
   0x4   : > { %p22_p0 = scmp.ge.s32.totalorder %s21_s14, 2  ;;  %p11908_p1 = scmp.ge.s32.totalorder %s15969_s13, 1 }
   0x5   : > { %p153_p2 = scmp.lt.s32.totalorder %s15969_s13, 5 }
   0x6   : > { %s18021_s14 = smov (%p22_p0, %s21_s14), 0  ;;  %s18023_s15 = smov (!%p22_p0, %s24_s15), %s15965_s12 }
   0x7   : > { %p154_p3 = pnand %p11908_p1, %p153_p2  ;;  %p26_p4 = scmp.ge.s32.totalorder %s18023_s15, 2 }
   0x8   : > { %s11909_s16 = sshll.u32 (!%p154_p3), %s15957_s10, 1  ;;  %p206_p7 = scmp.lt.s32.totalorder (!%p154_p3), %s15957_s10, 1 }
   0x9   : > { %s18025_s15 = smov (%p26_p4, %s18023_s15), 0  ;;  %157 = sbr.rel (%p154_p3) target bundleno = 1786 (0x6fa), region = 28 }
   0xa   : > { %s186_s17 = sadd.s32 (!%p154_p3), %s15953_s9, %s11909_s16  ;;  %p11916_p8 = scmp.ne.s32.totalorder (!%p154_p3), %s15953_s9, 0 }
   0xb   : > { %s187_s18 = smul.u32 (!%p154_p3), 94, %s186_s17 }
   0xc   : > { %s197_s19 = smul.u32 (!%p154_p3), 1504, %s186_s17 }
   0xd   : > { %p188_p5 = scmp.lt.s32.totalorder (!%p154_p3), %s187_s18, 375 }
   0xe   : > { %p198_p6 = scmp.lt.s32.totalorder (!%p154_p3), %s197_s19, 6015 }
  0x10   : > { %s18027_s18 = smov (!%p188_p5, %s187_s18), 375  ;;  %s18029_s19 = smov (!%p198_p6, %s197_s19), 6015 }
  0x11   : > { %s11910_s20 = sshll.u32 %s18027_s18, 1  ;;  %s13424_s24 = sshll.u32 %s18029_s19, 3  ;;  %vm215_vm0 = vcmask (!%p11916_p8), 1041408   ;;  %vm216_vm1 = vcmask (!%p11916_p8), 584706   ;;  %v15971_v0 = vmov (!%p11916_p8), 0.0  }
  0x12   : > { %s16024_s23 = scalar_lea.vmem %s18013_s0, %s11910_s20  ;;  %s16029_s27 = scalar_lea.vmem %s18014_s1, %s13424_s24  ;;  %vm217_vm2 = vmor (!%p11916_p8), %vm216_vm1, %vm215_vm0 }
  0x13   : > { %s18031_s10 = smov (!%p206_p7, %s15957_s10), 1  ;;  %214 = sbr.rel (%p11916_p8) target bundleno = 26 (0x1a), region = 32 }
  0x14   : > { %s13425_s28 = sshll.u32 %s18031_s10, 2 }
  0x15   : > { %s16034_s3 = scalar_lea.vmem %s18015_s2, %s13425_s28 }
  0x16   : > { %218 = vst.msk [vmem:[%s16034_s3] sm:$0xf] (!%p11916_p8), %vm217_vm2, %v15971_v0 }
  0x1a PF: > { %v13650_v1 = vld [vmem:[%s16029_s27 + $0x4] ss:$8 sps:$4 sm:$0xff]   ;;  %v13654_v3 = vld [vmem:[%s16029_s27] ss:$8 sps:$4 sm:$0xff]   ;;  %v13656_v5 = vld [vmem:[%s16029_s27 + $0x14] ss:$8 sps:$4 sm:$0xff]   ;;  %v272_v39 = vlaneseq }
  0x1b   : > { %v13652_v2 = vld [vmem:[%s16029_s27 + $0x1704] ss:$8 sps:$4 sm:$0xff]   ;;  %9879 = vmatprep.subr.bf16.mxu1 %v13650_v1  ;;  %v13655_v4 = vld [vmem:[%s16029_s27 + $0x1700] ss:$8 sps:$4 sm:$0xff]   ;;  %v13658_v6 = vld [vmem:[%s16029_s27 + $0x1714] ss:$8 sps:$4 sm:$0xff]  }
  0x1c   : > { %10822 = vmatprep.subr.bf16.mxu0 %v13652_v2  ;;  %9880 = vmatpush1.bf16.msra.mxu1 %v13654_v3  ;;  %v13660_v7 = vld [vmem:[%s16029_s27 + $0x10] ss:$8 sps:$4 sm:$0xff]   ;;  %v13662_v9 = vld [vmem:[%s16029_s27 + $0x24] ss:$8 sps:$4 sm:$0xff]   ;;  %v13666_v11 = vld [vmem:[%s16029_s27 + $0x20] ss:$8 sps:$4 sm:$0xff]  }
  0x1d   : > { %10823 = vmatpush1.bf16.msra.mxu0 %v13655_v4  ;;  %9881 = vmatprep.subr.bf16.mxu1 %v13656_v5  ;;  %v13661_v8 = vld [vmem:[%s16029_s27 + $0x1710] ss:$8 sps:$4 sm:$0xff]   ;;  %v13664_v10 = vld [vmem:[%s16029_s27 + $0x1724] ss:$8 sps:$4 sm:$0xff]   ;;  %v13667_v12 = vld [vmem:[%s16029_s27 + $0x1720] ss:$8 sps:$4 sm:$0xff]  }
  0x1e   : > { %10824 = vmatprep.subr.bf16.mxu0 %v13658_v6  ;;  %v13668_v13 = vld [vmem:[%s16029_s27 + $0x34] ss:$8 sps:$4 sm:$0xff]   ;;  %v13672_v15 = vld [vmem:[%s16029_s27 + $0x30] ss:$8 sps:$4 sm:$0xff]   ;;  %v13674_v17 = vld [vmem:[%s16029_s27 + $0x44] ss:$8 sps:$4 sm:$0xff]  }
  0x1f   : > { %v13670_v14 = vld [vmem:[%s16029_s27 + $0x1734] ss:$8 sps:$4 sm:$0xff]   ;;  %v13673_v16 = vld [vmem:[%s16029_s27 + $0x1730] ss:$8 sps:$4 sm:$0xff]   ;;  %v13676_v18 = vld [vmem:[%s16029_s27 + $0x1744] ss:$8 sps:$4 sm:$0xff]  }
  0x20   : > { %9882 = vmatpush1.bf16.msra.mxu1 %v13660_v7  ;;  %v13678_v19 = vld [vmem:[%s16029_s27 + $0x40] ss:$8 sps:$4 sm:$0xff]   ;;  %v13680_v21 = vld [vmem:[%s16029_s27 + $0x54] ss:$8 sps:$4 sm:$0xff]   ;;  %v13684_v23 = vld [vmem:[%s16029_s27 + $0x50] ss:$8 sps:$4 sm:$0xff]  }
  0x21   : > { %10825 = vmatpush1.bf16.msra.mxu0 %v13661_v8  ;;  %9883 = vmatprep.subr.bf16.mxu1 %v13662_v9  ;;  %v13679_v20 = vld [vmem:[%s16029_s27 + $0x1740] ss:$8 sps:$4 sm:$0xff]   ;;  %v13682_v22 = vld [vmem:[%s16029_s27 + $0x1754] ss:$8 sps:$4 sm:$0xff]   ;;  %v13685_v24 = vld [vmem:[%s16029_s27 + $0x1750] ss:$8 sps:$4 sm:$0xff]  }
  0x22   : > { %10826 = vmatprep.subr.bf16.mxu0 %v13664_v10  ;;  %v13686_v25 = vld [vmem:[%s16029_s27 + $0x64] ss:$8 sps:$4 sm:$0xff]   ;;  %v13690_v27 = vld [vmem:[%s16029_s27 + $0x60] ss:$8 sps:$4 sm:$0xff]   ;;  %v13692_v29 = vld [vmem:[%s16029_s27 + $0x74] ss:$8 sps:$4 sm:$0xff]  }
  0x23   : > { %v13688_v26 = vld [vmem:[%s16029_s27 + $0x1764] ss:$8 sps:$4 sm:$0xff]   ;;  %v13691_v28 = vld [vmem:[%s16029_s27 + $0x1760] ss:$8 sps:$4 sm:$0xff]   ;;  %v13694_v30 = vld [vmem:[%s16029_s27 + $0x1774] ss:$8 sps:$4 sm:$0xff]  }
  0x24   : > { %9884 = vmatpush1.bf16.msra.mxu1 %v13666_v11  ;;  %v13696_v31 = vld [vmem:[%s16029_s27 + $0x70] ss:$8 sps:$4 sm:$0xff]   ;;  %v13698_v33 = vld [vmem:[%s16029_s27 + $0x84] ss:$8 sps:$4 sm:$0xff]   ;;  %v13702_v35 = vld [vmem:[%s16029_s27 + $0x80] ss:$8 sps:$4 sm:$0xff]  }
  0x25   : > { %10827 = vmatpush1.bf16.msra.mxu0 %v13667_v12  ;;  %9885 = vmatprep.subr.bf16.mxu1 %v13668_v13  ;;  %v13697_v32 = vld [vmem:[%s16029_s27 + $0x1770] ss:$8 sps:$4 sm:$0xff]   ;;  %v13700_v34 = vld [vmem:[%s16029_s27 + $0x1784] ss:$8 sps:$4 sm:$0xff]   ;;  %v13703_v36 = vld [vmem:[%s16029_s27 + $0x1780] ss:$8 sps:$4 sm:$0xff]  }
  0x26   : > { %10828 = vmatprep.subr.bf16.mxu0 %v13670_v14  ;;  %v15972_v37 = vmov 1983009808   ;;  %v13704_v40 = vld [vmem:[%s16029_s27 + $0x94] ss:$8 sps:$4 sm:$0xff]   ;;  %v13708_v42 = vld [vmem:[%s16029_s27 + $0x90] ss:$8 sps:$4 sm:$0xff]  }
  0x27   : > { %v270_v38 = vunpack.c.l.s4 %v15972_v37  ;;  %v13706_v41 = vld [vmem:[%s16029_s27 + $0x1794] ss:$8 sps:$4 sm:$0xff]   ;;  %v273_v44 = vshrl.u32 %v272_v39, 7  ;;  %v13709_v45 = vld [vmem:[%s16029_s27 + $0x1790] ss:$8 sps:$4 sm:$0xff]   ;;  %v220_v53 = vld [vmem:[%s16024_s23] sm:$0xff] }
  0x28   : > { %9886 = vmatpush1.bf16.msra.mxu1 %v13672_v15  ;;  %v13710_v46 = vld [vmem:[%s16029_s27 + $0xa4] ss:$8 sps:$4 sm:$0xff]   ;;  %v13714_v48 = vld [vmem:[%s16029_s27 + $0xa0] ss:$8 sps:$4 sm:$0xff]   ;;  %v13716_v51 = vld [vmem:[%s16029_s27 + $0xb4] ss:$8 sps:$4 sm:$0xff]   ;;  %v268_v10 = vcombine.high %v220_v53, %v220_v53 }
  0x29   : > { %10829 = vmatpush1.bf16.msra.mxu0 %v13673_v16  ;;  %9887 = vmatprep.subr.bf16.mxu1 %v13674_v17  ;;  %v271_v43 = vunpack.c.0.s8 %v270_v38  ;;  %v13712_v47 = vld [vmem:[%s16029_s27 + $0x17a4] ss:$8 sps:$4 sm:$0xff]   ;;  %v13715_v49 = vld [vmem:[%s16029_s27 + $0x17a0] ss:$8 sps:$4 sm:$0xff]   ;;  %v13718_v52 = vld [vmem:[%s16029_s27 + $0x17b4] ss:$8 sps:$4 sm:$0xff]  }
  0x2a   : > { %10830 = vmatprep.subr.bf16.mxu0 %v13676_v18  ;;  %v13720_v54 = vld [vmem:[%s16029_s27 + $0xb0] ss:$8 sps:$4 sm:$0xff]   ;;  %v13722_v58 = vld [vmem:[%s16029_s27 + $0xc4] ss:$8 sps:$4 sm:$0xff]   ;;  %v13726_v0 = vld [vmem:[%s16029_s27 + $0xc0] ss:$8 sps:$4 sm:$0xff]  }
  0x2b   : > { %v16082_v50 = vsub.s32 %v271_v43, %v273_v44  ;;  %v13721_v56 = vld [vmem:[%s16029_s27 + $0x17b0] ss:$8 sps:$4 sm:$0xff]   ;;  %v13724_v59 = vld [vmem:[%s16029_s27 + $0x17c4] ss:$8 sps:$4 sm:$0xff]   ;;  %v13727_v1 = vld [vmem:[%s16029_s27 + $0x17c0] ss:$8 sps:$4 sm:$0xff]  }
  0x2c   : > { %9888 = vmatpush1.bf16.msra.mxu1 %v13678_v19  ;;  %v231_v57 = vld [vmem:[%s16024_s23 + $0x58] sm:$0xff]  ;;  %v13734_v8 = vld [vmem:[%s16029_s27 + $0xe4] ss:$8 sps:$4 sm:$0xff]   ;;  %v13738_v11 = vld [vmem:[%s16029_s27 + $0xe0] ss:$8 sps:$4 sm:$0xff]   ;;  %vm11818_vm3 = vcmask 1041408  }
  0x2d   : > { %10831 = vmatpush1.bf16.msra.mxu0 %v13679_v20  ;;  %9889 = vmatprep.subr.bf16.mxu1 %v13680_v21  ;;  %v16089_v55 = vrot.slane %v220_v53, %v16082_v50  ;;  %v455_v61 = vcombine.high %v231_v57, %v231_v57  ;;  %v13728_v2 = vld [vmem:[%s16029_s27 + $0xd4] ss:$8 sps:$4 sm:$0xff]   ;;  %v13732_v6 = vld [vmem:[%s16029_s27 + $0xd0] ss:$8 sps:$4 sm:$0xff]   ;;  %v13736_v9 = vld [vmem:[%s16029_s27 + $0x17e4] ss:$8 sps:$4 sm:$0xff]   ;;  %v16111_v15 = vrot.slane %v268_v10, %v16082_v50 }
  0x2e   : > { %10832 = vmatprep.subr.bf16.mxu0 %v13682_v22  ;;  %v13730_v3 = vld [vmem:[%s16029_s27 + $0x17d4] ss:$8 sps:$4 sm:$0xff]   ;;  %v13733_v7 = vld [vmem:[%s16029_s27 + $0x17d0] ss:$8 sps:$4 sm:$0xff]   ;;  %v13739_v12 = vld [vmem:[%s16029_s27 + $0x17e0] ss:$8 sps:$4 sm:$0xff]  }
  0x2f   : > { %v283_v60 = vcombine.high %v16089_v55, %v16089_v55  ;;  %v469_v63 = vrot.slane %v455_v61, %v16082_v50  ;;  %v13740_v13 = vld [vmem:[%s16029_s27 + $0xf4] ss:$8 sps:$4 sm:$0xff]   ;;  %v13744_v16 = vld [vmem:[%s16029_s27 + $0xf0] ss:$8 sps:$4 sm:$0xff]   ;;  %v13749_v18 = vld [vmem:[%s16029_s27 + $0x104] ss:$8 sps:$4 sm:$0xff]   ;;  %v284_v20 = vcombine.high %v16111_v15, %v16111_v15  ;;  %v761_v21 = vpack.c.bf16 %v16089_v55, %v16089_v55 }
  0x30   : > { %9890 = vmatpush1.bf16.msra.mxu1 %v13684_v23  ;;  %v13742_v14 = vld [vmem:[%s16029_s27 + $0x17f4] ss:$8 sps:$4 sm:$0xff]   ;;  %v13745_v17 = vld [vmem:[%s16029_s27 + $0x17f0] ss:$8 sps:$4 sm:$0xff]   ;;  %v13753_v19 = vld [vmem:[%s16029_s27 + $0x1804] ss:$8 sps:$4 sm:$0xff]  }
  0x31   : > { %10833 = vmatpush1.bf16.msra.mxu0 %v13685_v24  ;;  %9891 = vmatprep.subr.bf16.mxu1 %v13686_v25  ;;  %v762_v62 = vpack.c.bf16 %v283_v60, %v283_v60  ;;  %v471_v4 = vcombine.high %v469_v63, %v469_v63  ;;  %v807_v22 = vpack.c.bf16 %v469_v63, %v469_v63  ;;  %v13747_v23 = vld [vmem:[%s16029_s27 + $0x100] ss:$8 sps:$4 sm:$0xff]   ;;  %v13756_v25 = vld [vmem:[%s16029_s27 + $0x114] ss:$8 sps:$4 sm:$0xff]   ;;  %v13769_v37 = vld [vmem:[%s16029_s27 + $0x1830] ss:$8 sps:$4 sm:$0xff]  }
  0x32   : > { %10834 = vmatprep.subr.bf16.mxu0 %v13688_v26  ;;  %v13751_v24 = vld [vmem:[%s16029_s27 + $0x1800] ss:$8 sps:$4 sm:$0xff]   ;;  %v13759_v26 = vld [vmem:[%s16029_s27 + $0x1814] ss:$8 sps:$4 sm:$0xff]   ;;  %v13774_v38 = vld [vmem:[%s16029_s27 + $0x144] ss:$8 sps:$4 sm:$0xff]  }
  0x33   : > { %9911 = vmatprep.mubr.bf16.mxu1 %v762_v62  ;;  %v808_v5 = vpack.c.bf16 %v471_v4, %v471_v4  ;;  %v13777_v39 = vld [vmem:[%s16029_s27 + $0x1844] ss:$8 sps:$4 sm:$0xff]   ;;  %v13783_v43 = vld [vmem:[%s16029_s27 + $0x1854] ss:$8 sps:$4 sm:$0xff]   ;;  %v13778_v44 = vld [vmem:[%s16029_s27 + $0x150] ss:$8 sps:$4 sm:$0xff]  }
  0x34   : > { %9892 = vmatpush1.bf16.msra.mxu1 %v13690_v27  ;;  %v764_v27 = vpack.c.bf16 %v284_v20, %v284_v20  ;;  %v13793_v57 = vld [vmem:[%s16029_s27 + $0x1870] ss:$8 sps:$4 sm:$0xff]   ;;  %v13801_v60 = vld [vmem:[%s16029_s27 + $0x1884] ss:$8 sps:$4 sm:$0xff]   ;;  %v13796_v61 = vld [vmem:[%s16029_s27 + $0x180] ss:$8 sps:$4 sm:$0xff]  }
  0x35   : > { %10835 = vmatpush1.bf16.msra.mxu0 %v13691_v28  ;;  %9893 = vmatprep.subr.bf16.mxu1 %v13692_v29  ;;  %v13754_v28 = vld [vmem:[%s16029_s27 + $0x110] ss:$8 sps:$4 sm:$0xff]   ;;  %v13799_v62 = vld [vmem:[%s16029_s27 + $0x1880] ss:$8 sps:$4 sm:$0xff]   ;;  %v13804_v63 = vld [vmem:[%s16029_s27 + $0x194] ss:$8 sps:$4 sm:$0xff]  }
  0x36   : > { %10836 = vmatprep.subr.bf16.mxu0 %v13694_v30  ;;  %10854 = vmatprep.mubr.bf16.mxu0 %v808_v5  ;;  %v13757_v29 = vld [vmem:[%s16029_s27 + $0x1810] ss:$8 sps:$4 sm:$0xff]   ;;  %v13762_v30 = vld [vmem:[%s16029_s27 + $0x124] ss:$8 sps:$4 sm:$0xff]   ;;  %v13808_v5 = vld [vmem:[%s16029_s27 + $0x1a0] ss:$8 sps:$4 sm:$0xff]  }
  0x37   : > { %v13813_v4 = vld [vmem:[%s16029_s27 + $0x18a4] ss:$8 sps:$4 sm:$0xff]   ;;  %v13817_v10 = vld [vmem:[%s16029_s27 + $0x18b0] ss:$8 sps:$4 sm:$0xff]   ;;  %vm11819_vm4 = vcmask 584706  }
  0x38   : > { %9894 = vmatpush1.bf16.msra.mxu1 %v13696_v31  ;;  %v13765_v31 = vld [vmem:[%s16029_s27 + $0x1824] ss:$8 sps:$4 sm:$0xff]   ;;  %vm11820_vm5 = vmor %vm11819_vm4, %vm11818_vm3 }
  0x39   : > { %10837 = vmatpush1.bf16.msra.mxu0 %v13697_v32  ;;  %9895 = vmatprep.subr.bf16.mxu1 %v13698_v33  ;;  %v13760_v32 = vld [vmem:[%s16029_s27 + $0x120] ss:$8 sps:$4 sm:$0xff]   ;;  %v13834_v20 = vld [vmem:[%s16029_s27 + $0x1e4] ss:$8 sps:$4 sm:$0xff]  }
  0x3a   : > { %10838 = vmatprep.subr.bf16.mxu0 %v13700_v34  ;;  %v13763_v33 = vld [vmem:[%s16029_s27 + $0x1820] ss:$8 sps:$4 sm:$0xff]   ;;  %v13768_v34 = vld [vmem:[%s16029_s27 + $0x134] ss:$8 sps:$4 sm:$0xff]  }
  0x3c   : > { %9896 = vmatpush1.bf16.msra.mxu1 %v13702_v35  ;;  %v13771_v35 = vld [vmem:[%s16029_s27 + $0x1834] ss:$8 sps:$4 sm:$0xff]  }
  0x3d   : > { %10839 = vmatpush1.bf16.msra.mxu0 %v13703_v36  ;;  %9897 = vmatprep.subr.bf16.mxu1 %v13704_v40  ;;  %v13766_v36 = vld [vmem:[%s16029_s27 + $0x130] ss:$8 sps:$4 sm:$0xff]   ;;  %v13772_v40 = vld [vmem:[%s16029_s27 + $0x140] ss:$8 sps:$4 sm:$0xff]  }
  0x3e   : > { %10840 = vmatprep.subr.bf16.mxu0 %v13706_v41  ;;  %v13775_v41 = vld [vmem:[%s16029_s27 + $0x1840] ss:$8 sps:$4 sm:$0xff]  }
  0x40   : > { %9898 = vmatpush1.bf16.msra.mxu1 %v13708_v42  ;;  %v13780_v42 = vld [vmem:[%s16029_s27 + $0x154] ss:$8 sps:$4 sm:$0xff]  }
  0x41   : > { %10841 = vmatpush1.bf16.msra.mxu0 %v13709_v45  ;;  %9899 = vmatprep.subr.bf16.mxu1 %v13710_v46  ;;  %v13781_v45 = vld [vmem:[%s16029_s27 + $0x1850] ss:$8 sps:$4 sm:$0xff]   ;;  %v13786_v46 = vld [vmem:[%s16029_s27 + $0x164] ss:$8 sps:$4 sm:$0xff]  }
  0x42   : > { %10842 = vmatprep.subr.bf16.mxu0 %v13712_v47  ;;  %v13789_v47 = vld [vmem:[%s16029_s27 + $0x1864] ss:$8 sps:$4 sm:$0xff]  }
  0x44   : > { %9900 = vmatpush1.bf16.msra.mxu1 %v13714_v48  ;;  %v13784_v48 = vld [vmem:[%s16029_s27 + $0x160] ss:$8 sps:$4 sm:$0xff]  }
  0x45   : > { %10843 = vmatpush1.bf16.msra.mxu0 %v13715_v49  ;;  %9901 = vmatprep.subr.bf16.mxu1 %v13716_v51  ;;  %v16147_v49 = vld [vmem:[%s16024_s23 + $0x60] sm:$0xff] }
  0x46   : > { %10844 = vmatprep.subr.bf16.mxu0 %v13718_v52  ;;  %v13787_v51 = vld [vmem:[%s16029_s27 + $0x1860] ss:$8 sps:$4 sm:$0xff]   ;;  %v13792_v52 = vld [vmem:[%s16029_s27 + $0x174] ss:$8 sps:$4 sm:$0xff]   ;;  %v16153_v53 = vrot.slane %v16147_v49, %v16082_v50 }
  0x48   : > { %9902 = vmatpush1.bf16.msra.mxu1 %v13720_v54  ;;  %v13795_v54 = vld [vmem:[%s16029_s27 + $0x1874] ss:$8 sps:$4 sm:$0xff]   ;;  %v487_v55 = vcombine.high %v16153_v53, %v16153_v53 }
  0x49   : > { %10845 = vmatpush1.bf16.msra.mxu0 %v13721_v56  ;;  %9903 = vmatprep.subr.bf16.mxu1 %v13722_v58  ;;  %v13790_v56 = vld [vmem:[%s16029_s27 + $0x170] ss:$8 sps:$4 sm:$0xff]   ;;  %v13798_v58 = vld [vmem:[%s16029_s27 + $0x184] ss:$8 sps:$4 sm:$0xff]  }
  0x4a   : > { %10846 = vmatprep.subr.bf16.mxu0 %v13724_v59  ;;  %v810_v59 = vpack.c.bf16 %v487_v55, %v487_v55  ;;  %v13873_v55 = vld [vmem:[%s16029_s27 + $0x1944] ss:$8 sps:$4 sm:$0xff]  }
  0x4c   : > { %9904 = vmatpush1.bf16.msra.mxu1 %v13726_v0  ;;  %v13807_v0 = vld [vmem:[%s16029_s27 + $0x1894] ss:$8 sps:$4 sm:$0xff]  }
  0x4d   : > { %10847 = vmatpush1.bf16.msra.mxu0 %v13727_v1  ;;  %9905 = vmatprep.subr.bf16.mxu1 %v13728_v2  ;;  %v13802_v1 = vld [vmem:[%s16029_s27 + $0x190] ss:$8 sps:$4 sm:$0xff]  }
  0x4e   : > { %10848 = vmatprep.subr.bf16.mxu0 %v13730_v3  ;;  %v13805_v2 = vld [vmem:[%s16029_s27 + $0x1890] ss:$8 sps:$4 sm:$0xff]   ;;  %v13810_v3 = vld [vmem:[%s16029_s27 + $0x1a4] ss:$8 sps:$4 sm:$0xff]  }
  0x50   : > { %9906 = vmatpush1.bf16.msra.mxu1 %v13732_v6  ;;  %v13811_v6 = vld [vmem:[%s16029_s27 + $0x18a0] ss:$8 sps:$4 sm:$0xff]  }
  0x51   : > { %10849 = vmatpush1.bf16.msra.mxu0 %v13733_v7  ;;  %9907 = vmatprep.subr.bf16.mxu1 %v13734_v8  ;;  %v13816_v7 = vld [vmem:[%s16029_s27 + $0x1b4] ss:$8 sps:$4 sm:$0xff]  }
  0x52   : > { %10850 = vmatprep.subr.bf16.mxu0 %v13736_v9  ;;  %v13819_v8 = vld [vmem:[%s16029_s27 + $0x18b4] ss:$8 sps:$4 sm:$0xff]   ;;  %v13814_v9 = vld [vmem:[%s16029_s27 + $0x1b0] ss:$8 sps:$4 sm:$0xff]  }
  0x54   : > { %9908 = vmatpush1.bf16.msra.mxu1 %v13738_v11  ;;  %v13822_v11 = vld [vmem:[%s16029_s27 + $0x1c4] ss:$8 sps:$4 sm:$0xff]  }
  0x55   : > { %10851 = vmatpush1.bf16.msra.mxu0 %v13739_v12  ;;  %9909 = vmatprep.subr.bf16.mxu1 %v13740_v13  ;;  %v13825_v12 = vld [vmem:[%s16029_s27 + $0x18c4] ss:$8 sps:$4 sm:$0xff]   ;;  %v13820_v13 = vld [vmem:[%s16029_s27 + $0x1c0] ss:$8 sps:$4 sm:$0xff]  }
  0x56   : > { %10852 = vmatprep.subr.bf16.mxu0 %v13742_v14  ;;  %v13823_v14 = vld [vmem:[%s16029_s27 + $0x18c0] ss:$8 sps:$4 sm:$0xff]  }
  0x58   : > { %9910 = vmatpush1.bf16.msra.mxu1 %v13744_v16  ;;  %v13828_v16 = vld [vmem:[%s16029_s27 + $0x1d4] ss:$8 sps:$4 sm:$0xff]  }
  0x59   : > { %10853 = vmatpush1.bf16.msra.mxu0 %v13745_v17  ;;  %9920 = vmatprep.subr.bf16.mxu1 %v13749_v18  ;;  %v13831_v17 = vld [vmem:[%s16029_s27 + $0x18d4] ss:$8 sps:$4 sm:$0xff]   ;;  %v13826_v18 = vld [vmem:[%s16029_s27 + $0x1d0] ss:$8 sps:$4 sm:$0xff]  }
  0x5a   : > { %10863 = vmatprep.subr.bf16.mxu0 %v13753_v19  ;;  %v13829_v19 = vld [vmem:[%s16029_s27 + $0x18d0] ss:$8 sps:$4 sm:$0xff]  }
  0x5b   : > { %9912 = vmatmul.mubr.bf16.vlgmr.msra.gmra.mrb[0].mxu1 %v761_v21  ;;  %v13837_v21 = vld [vmem:[%s16029_s27 + $0x18e4] ss:$8 sps:$4 sm:$0xff]  }
  0x5c   : > { %10855 = vmatmul.mubr.bf16.vlgmr.msra.gmra.mrb[0].mxu0 %v807_v22  ;;  %9921 = vmatpush1.bf16.msra.mxu1 %v13747_v23  ;;  %v472_v22 = vcombine.high %v16147_v49, %v16147_v49  ;;  %v13832_v23 = vld [vmem:[%s16029_s27 + $0x1e0] ss:$8 sps:$4 sm:$0xff]   ;;  %v13864_v49 = vld [vmem:[%s16029_s27 + $0x234] ss:$8 sps:$4 sm:$0xff]  }
  0x5d   : > { %10864 = vmatpush1.bf16.msra.mxu0 %v13751_v24  ;;  %9922 = vmatprep.subr.bf16.mxu1 %v13756_v25  ;;  %v13835_v24 = vld [vmem:[%s16029_s27 + $0x18e0] ss:$8 sps:$4 sm:$0xff]   ;;  %v13840_v25 = vld [vmem:[%s16029_s27 + $0x1f4] ss:$8 sps:$4 sm:$0xff]  }
  0x5e   : > { %10865 = vmatprep.subr.bf16.mxu0 %v13759_v26  ;;  %9952 = vmatprep.mubr.bf16.mxu1 %v764_v27  ;;  %v13843_v26 = vld [vmem:[%s16029_s27 + $0x18f4] ss:$8 sps:$4 sm:$0xff]   ;;  %v16193_v27 = vrot.slane %v472_v22, %v16082_v50  ;;  %v13913_v22 = vld [vmem:[%s16029_s27 + $0x19b0] ss:$8 sps:$4 sm:$0xff]  }
  0x5f   : > { %10895 = vmatprep.mubr.bf16.mxu0 %v810_v59  ;;  %v13879_v59 = vld [vmem:[%s16029_s27 + $0x1954] ss:$8 sps:$4 sm:$0xff]  }
  0x60   : > { %9923 = vmatpush1.bf16.msra.mxu1 %v13754_v28  ;;  %v13838_v28 = vld [vmem:[%s16029_s27 + $0x1f0] ss:$8 sps:$4 sm:$0xff]  }
  0x61   : > { %10866 = vmatpush1.bf16.msra.mxu0 %v13757_v29  ;;  %9924 = vmatprep.subr.bf16.mxu1 %v13762_v30  ;;  %v13841_v29 = vld [vmem:[%s16029_s27 + $0x18f0] ss:$8 sps:$4 sm:$0xff]   ;;  %v13846_v30 = vld [vmem:[%s16029_s27 + $0x204] ss:$8 sps:$4 sm:$0xff]  }
  0x62   : > { %10867 = vmatprep.subr.bf16.mxu0 %v13765_v31  ;;  %v13849_v31 = vld [vmem:[%s16029_s27 + $0x1904] ss:$8 sps:$4 sm:$0xff]  }
  0x64   : > { %9925 = vmatpush1.bf16.msra.mxu1 %v13760_v32  ;;  %v488_v32 = vcombine.high %v16193_v27, %v16193_v27 }
  0x65   : > { %10868 = vmatpush1.bf16.msra.mxu0 %v13763_v33  ;;  %9926 = vmatprep.subr.bf16.mxu1 %v13768_v34  ;;  %v13844_v33 = vld [vmem:[%s16029_s27 + $0x200] ss:$8 sps:$4 sm:$0xff]  }
  0x66   : > { %10869 = vmatprep.subr.bf16.mxu0 %v13771_v35  ;;  %v13847_v34 = vld [vmem:[%s16029_s27 + $0x1900] ss:$8 sps:$4 sm:$0xff]   ;;  %v763_v35 = vpack.c.bf16 %v16111_v15, %v16111_v15  ;;  %v812_v15 = vpack.c.bf16 %v488_v32, %v488_v32  ;;  %v13930_v32 = vld [vmem:[%s16029_s27 + $0x2e4] ss:$8 sps:$4 sm:$0xff]  }
  0x68   : > { %9927 = vmatpush1.bf16.msra.mxu1 %v13766_v36  ;;  %v809_v36 = vpack.c.bf16 %v16153_v53, %v16153_v53  ;;  %v13865_v53 = vld [vmem:[%s16029_s27 + $0x1930] ss:$8 sps:$4 sm:$0xff]  }
  0x69   : > { %10870 = vmatpush1.bf16.msra.mxu0 %v13769_v37  ;;  %9928 = vmatprep.subr.bf16.mxu1 %v13774_v38  ;;  %v13852_v37 = vld [vmem:[%s16029_s27 + $0x214] ss:$8 sps:$4 sm:$0xff]  }
  0x6a   : > { %10871 = vmatprep.subr.bf16.mxu0 %v13777_v39  ;;  %v13855_v38 = vld [vmem:[%s16029_s27 + $0x1914] ss:$8 sps:$4 sm:$0xff]   ;;  %v16210_v39 = vld [vmem:[%s16024_s23 + $0x8] sm:$0xff] }
  0x6c   : > { %9929 = vmatpush1.bf16.msra.mxu1 %v13772_v40  ;;  %v16214_v40 = vrot.slane %v16210_v39, %v16082_v50 }
  0x6d   : > { %10872 = vmatpush1.bf16.msra.mxu0 %v13775_v41  ;;  %9930 = vmatprep.subr.bf16.mxu1 %v13780_v42  ;;  %v13850_v41 = vld [vmem:[%s16029_s27 + $0x210] ss:$8 sps:$4 sm:$0xff]  }
  0x6e   : > { %10873 = vmatprep.subr.bf16.mxu0 %v13783_v43  ;;  %v13853_v42 = vld [vmem:[%s16029_s27 + $0x1910] ss:$8 sps:$4 sm:$0xff]   ;;  %v13858_v43 = vld [vmem:[%s16029_s27 + $0x224] ss:$8 sps:$4 sm:$0xff]  }
  0x70   : > { %9931 = vmatpush1.bf16.msra.mxu1 %v13778_v44  ;;  %v300_v44 = vcombine.high %v16214_v40, %v16214_v40 }
  0x71   : > { %10874 = vmatpush1.bf16.msra.mxu0 %v13781_v45  ;;  %9932 = vmatprep.subr.bf16.mxu1 %v13786_v46  ;;  %v13861_v45 = vld [vmem:[%s16029_s27 + $0x1924] ss:$8 sps:$4 sm:$0xff]  }
  0x72   : > { %10875 = vmatprep.subr.bf16.mxu0 %v13789_v47  ;;  %v766_v46 = vpack.c.bf16 %v300_v44, %v300_v44  ;;  %v13856_v47 = vld [vmem:[%s16029_s27 + $0x220] ss:$8 sps:$4 sm:$0xff]   ;;  %v13942_v44 = vld [vmem:[%s16029_s27 + $0x304] ss:$8 sps:$4 sm:$0xff]  }
  0x74   : > { %9933 = vmatpush1.bf16.msra.mxu1 %v13784_v48  ;;  %v13859_v48 = vld [vmem:[%s16029_s27 + $0x1920] ss:$8 sps:$4 sm:$0xff]  }
  0x75   : > { %10876 = vmatpush1.bf16.msra.mxu0 %v13787_v51  ;;  %9934 = vmatprep.subr.bf16.mxu1 %v13792_v52  ;;  %v13867_v51 = vld [vmem:[%s16029_s27 + $0x1934] ss:$8 sps:$4 sm:$0xff]   ;;  %v13862_v52 = vld [vmem:[%s16029_s27 + $0x230] ss:$8 sps:$4 sm:$0xff]  }
  0x76   : > { %10877 = vmatprep.subr.bf16.mxu0 %v13795_v54  ;;  %v13870_v54 = vld [vmem:[%s16029_s27 + $0x244] ss:$8 sps:$4 sm:$0xff]  }
  0x78   : > { %9935 = vmatpush1.bf16.msra.mxu1 %v13790_v56  ;;  %v13868_v56 = vld [vmem:[%s16029_s27 + $0x240] ss:$8 sps:$4 sm:$0xff]  }
  0x79   : > { %10878 = vmatpush1.bf16.msra.mxu0 %v13793_v57  ;;  %9936 = vmatprep.subr.bf16.mxu1 %v13798_v58  ;;  %v13871_v57 = vld [vmem:[%s16029_s27 + $0x1940] ss:$8 sps:$4 sm:$0xff]   ;;  %v13876_v58 = vld [vmem:[%s16029_s27 + $0x254] ss:$8 sps:$4 sm:$0xff]  }
  0x7a   : > { %10879 = vmatprep.subr.bf16.mxu0 %v13801_v60  ;;  %v13874_v60 = vld [vmem:[%s16029_s27 + $0x250] ss:$8 sps:$4 sm:$0xff]  }
  0x7c   : > { %9937 = vmatpush1.bf16.msra.mxu1 %v13796_v61  ;;  %v13877_v61 = vld [vmem:[%s16029_s27 + $0x1950] ss:$8 sps:$4 sm:$0xff]  }
  0x7d   : > { %10880 = vmatpush1.bf16.msra.mxu0 %v13799_v62  ;;  %9938 = vmatprep.subr.bf16.mxu1 %v13804_v63  ;;  %v13882_v62 = vld [vmem:[%s16029_s27 + $0x264] ss:$8 sps:$4 sm:$0xff]  }
  0x7e   : > { %10881 = vmatprep.subr.bf16.mxu0 %v13807_v0  ;;  %v13885_v63 = vld [vmem:[%s16029_s27 + $0x1964] ss:$8 sps:$4 sm:$0xff]   ;;  %v13880_v0 = vld [vmem:[%s16029_s27 + $0x260] ss:$8 sps:$4 sm:$0xff]  }
  0x80   : > { %9939 = vmatpush1.bf16.msra.mxu1 %v13802_v1  ;;  %v13883_v1 = vld [vmem:[%s16029_s27 + $0x1960] ss:$8 sps:$4 sm:$0xff]  }
  0x81   : > { %10882 = vmatpush1.bf16.msra.mxu0 %v13805_v2  ;;  %9940 = vmatprep.subr.bf16.mxu1 %v13810_v3  ;;  %v13888_v2 = vld [vmem:[%s16029_s27 + $0x274] ss:$8 sps:$4 sm:$0xff]  }
  0x82   : > { %10883 = vmatprep.subr.bf16.mxu0 %v13813_v4  ;;  %v13891_v3 = vld [vmem:[%s16029_s27 + $0x1974] ss:$8 sps:$4 sm:$0xff]   ;;  %v13886_v4 = vld [vmem:[%s16029_s27 + $0x270] ss:$8 sps:$4 sm:$0xff]  }
  0x84   : > { %9941 = vmatpush1.bf16.msra.mxu1 %v13808_v5  ;;  %v13889_v5 = vld [vmem:[%s16029_s27 + $0x1970] ss:$8 sps:$4 sm:$0xff]  }
  0x85   : > { %10884 = vmatpush1.bf16.msra.mxu0 %v13811_v6  ;;  %9942 = vmatprep.subr.bf16.mxu1 %v13816_v7  ;;  %v13894_v6 = vld [vmem:[%s16029_s27 + $0x284] ss:$8 sps:$4 sm:$0xff]  }
  0x86   : > { %10885 = vmatprep.subr.bf16.mxu0 %v13819_v8  ;;  %v13897_v7 = vld [vmem:[%s16029_s27 + $0x1984] ss:$8 sps:$4 sm:$0xff]   ;;  %v13892_v8 = vld [vmem:[%s16029_s27 + $0x280] ss:$8 sps:$4 sm:$0xff]  }
  0x88   : > { %9943 = vmatpush1.bf16.msra.mxu1 %v13814_v9  ;;  %v13895_v9 = vld [vmem:[%s16029_s27 + $0x1980] ss:$8 sps:$4 sm:$0xff]  }
  0x89   : > { %10886 = vmatpush1.bf16.msra.mxu0 %v13817_v10  ;;  %9944 = vmatprep.subr.bf16.mxu1 %v13822_v11  ;;  %v13900_v10 = vld [vmem:[%s16029_s27 + $0x294] ss:$8 sps:$4 sm:$0xff]  }
  0x8a   : > { %10887 = vmatprep.subr.bf16.mxu0 %v13825_v12  ;;  %v13903_v11 = vld [vmem:[%s16029_s27 + $0x1994] ss:$8 sps:$4 sm:$0xff]   ;;  %v13898_v12 = vld [vmem:[%s16029_s27 + $0x290] ss:$8 sps:$4 sm:$0xff]  }
  0x8c   : > { %9945 = vmatpush1.bf16.msra.mxu1 %v13820_v13  ;;  %v13901_v13 = vld [vmem:[%s16029_s27 + $0x1990] ss:$8 sps:$4 sm:$0xff]  }
  0x8d   : > { %10888 = vmatpush1.bf16.msra.mxu0 %v13823_v14  ;;  %9946 = vmatprep.subr.bf16.mxu1 %v13828_v16  ;;  %v13906_v14 = vld [vmem:[%s16029_s27 + $0x2a4] ss:$8 sps:$4 sm:$0xff]  }
  0x8e   : > { %10889 = vmatprep.subr.bf16.mxu0 %v13831_v17  ;;  %v13909_v16 = vld [vmem:[%s16029_s27 + $0x19a4] ss:$8 sps:$4 sm:$0xff]   ;;  %v13904_v17 = vld [vmem:[%s16029_s27 + $0x2a0] ss:$8 sps:$4 sm:$0xff]  }
  0x90   : > { %9947 = vmatpush1.bf16.msra.mxu1 %v13826_v18  ;;  %v13907_v18 = vld [vmem:[%s16029_s27 + $0x19a0] ss:$8 sps:$4 sm:$0xff]  }
  0x91   : > { %10890 = vmatpush1.bf16.msra.mxu0 %v13829_v19  ;;  %9948 = vmatprep.subr.bf16.mxu1 %v13834_v20  ;;  %v13912_v19 = vld [vmem:[%s16029_s27 + $0x2b4] ss:$8 sps:$4 sm:$0xff]  }
  0x92   : > { %10891 = vmatprep.subr.bf16.mxu0 %v13837_v21  ;;  %v13915_v20 = vld [vmem:[%s16029_s27 + $0x19b4] ss:$8 sps:$4 sm:$0xff]   ;;  %v13910_v21 = vld [vmem:[%s16029_s27 + $0x2b0] ss:$8 sps:$4 sm:$0xff]  }
  0x94   : > { %9949 = vmatpush1.bf16.msra.mxu1 %v13832_v23  ;;  %v13918_v23 = vld [vmem:[%s16029_s27 + $0x2c4] ss:$8 sps:$4 sm:$0xff]  }
  0x95   : > { %10892 = vmatpush1.bf16.msra.mxu0 %v13835_v24  ;;  %9950 = vmatprep.subr.bf16.mxu1 %v13840_v25  ;;  %v13921_v24 = vld [vmem:[%s16029_s27 + $0x19c4] ss:$8 sps:$4 sm:$0xff]   ;;  %v13916_v25 = vld [vmem:[%s16029_s27 + $0x2c0] ss:$8 sps:$4 sm:$0xff]  }
  0x96   : > { %10893 = vmatprep.subr.bf16.mxu0 %v13843_v26  ;;  %v13919_v26 = vld [vmem:[%s16029_s27 + $0x19c0] ss:$8 sps:$4 sm:$0xff]  }
  0x98   : > { %9951 = vmatpush1.bf16.msra.mxu1 %v13838_v28  ;;  %v13924_v28 = vld [vmem:[%s16029_s27 + $0x2d4] ss:$8 sps:$4 sm:$0xff]  }
  0x99   : > { %10894 = vmatpush1.bf16.msra.mxu0 %v13841_v29  ;;  %9961 = vmatprep.subr.bf16.mxu1 %v13846_v30  ;;  %v13927_v29 = vld [vmem:[%s16029_s27 + $0x19d4] ss:$8 sps:$4 sm:$0xff]   ;;  %v13922_v30 = vld [vmem:[%s16029_s27 + $0x2d0] ss:$8 sps:$4 sm:$0xff]  }
  0x9a   : > { %10904 = vmatprep.subr.bf16.mxu0 %v13849_v31  ;;  %v13925_v31 = vld [vmem:[%s16029_s27 + $0x19d0] ss:$8 sps:$4 sm:$0xff]  }
  0x9b   : > { %9953 = vmatmul.mubr.bf16.vlgmr.msra.gmra.mrb[0].mxu1 %v763_v35  ;;  %v285_v35 = vcombine.high %v16210_v39, %v16210_v39  ;;  %v13934_v39 = vld [vmem:[%s16029_s27 + $0x2f0] ss:$8 sps:$4 sm:$0xff]  }
  0x9c   : > { %10896 = vmatmul.mubr.bf16.vlgmr.msra.gmra.mrb[0].mxu0 %v809_v36  ;;  %9962 = vmatpush1.bf16.msra.mxu1 %v13844_v33  ;;  %v13933_v33 = vld [vmem:[%s16029_s27 + $0x19e4] ss:$8 sps:$4 sm:$0xff]  }
  0x9d   : > { %10905 = vmatpush1.bf16.msra.mxu0 %v13847_v34  ;;  %9963 = vmatprep.subr.bf16.mxu1 %v13852_v37  ;;  %v13928_v34 = vld [vmem:[%s16029_s27 + $0x2e0] ss:$8 sps:$4 sm:$0xff]  }
  0x9e   : > { %10906 = vmatprep.subr.bf16.mxu0 %v13855_v38  ;;  %10936 = vmatprep.mubr.bf16.mxu0 %v812_v15  ;;  %v16274_v36 = vld [vmem:[%s16024_s23 + $0x68] sm:$0xff]  ;;  %v13936_v38 = vld [vmem:[%s16029_s27 + $0x2f4] ss:$8 sps:$4 sm:$0xff]  }
  0x9f   : > { %9993 = vmatprep.mubr.bf16.mxu1 %v766_v46  ;;  %v13931_v37 = vld [vmem:[%s16029_s27 + $0x19e0] ss:$8 sps:$4 sm:$0xff]   ;;  %v13939_v15 = vld [vmem:[%s16029_s27 + $0x19f4] ss:$8 sps:$4 sm:$0xff]  }
  0xa0   : > { %9964 = vmatpush1.bf16.msra.mxu1 %v13850_v41  ;;  %v16280_v41 = vrot.slane %v285_v35, %v16082_v50  ;;  %v14015_v35 = vld [vmem:[%s16029_s27 + $0x3c4] ss:$8 sps:$4 sm:$0xff]  }
  0xa1   : > { %10907 = vmatpush1.bf16.msra.mxu0 %v13853_v42  ;;  %9965 = vmatprep.subr.bf16.mxu1 %v13858_v43  ;;  %v16284_v42 = vrot.slane %v16274_v36, %v16082_v50  ;;  %v13937_v43 = vld [vmem:[%s16029_s27 + $0x19f0] ss:$8 sps:$4 sm:$0xff]  }
  0xa2   : > { %10908 = vmatprep.subr.bf16.mxu0 %v13861_v45  ;;  %v13946_v45 = vld [vmem:[%s16029_s27 + $0x1a04] ss:$8 sps:$4 sm:$0xff]   ;;  %v301_v46 = vcombine.high %v16280_v41, %v16280_v41 }
  0xa4   : > { %9966 = vmatpush1.bf16.msra.mxu1 %v13856_v47  ;;  %v504_v47 = vcombine.high %v16284_v42, %v16284_v42 }
  0xa5   : > { %10909 = vmatpush1.bf16.msra.mxu0 %v13859_v48  ;;  %9967 = vmatprep.subr.bf16.mxu1 %v13864_v49  ;;  %v13940_v48 = vld [vmem:[%s16029_s27 + $0x300] ss:$8 sps:$4 sm:$0xff]   ;;  %v765_v49 = vpack.c.bf16 %v16214_v40, %v16214_v40  ;;  %v13947_v40 = vld [vmem:[%s16029_s27 + $0x310] ss:$8 sps:$4 sm:$0xff]  }
  0xa6   : > { %10910 = vmatprep.subr.bf16.mxu0 %v13867_v51  ;;  %v811_v51 = vpack.c.bf16 %v16193_v27, %v16193_v27  ;;  %v13950_v27 = vld [vmem:[%s16029_s27 + $0x1a10] ss:$8 sps:$4 sm:$0xff]  }
  0xa8   : > { %9968 = vmatpush1.bf16.msra.mxu1 %v13862_v52  ;;  %v13944_v52 = vld [vmem:[%s16029_s27 + $0x1a00] ss:$8 sps:$4 sm:$0xff]  }
  0xa9   : > { %10911 = vmatpush1.bf16.msra.mxu0 %v13865_v53  ;;  %9969 = vmatprep.subr.bf16.mxu1 %v13870_v54  ;;  %v13949_v53 = vld [vmem:[%s16029_s27 + $0x314] ss:$8 sps:$4 sm:$0xff]  }
  0xaa   : > { %10912 = vmatprep.subr.bf16.mxu0 %v13873_v55  ;;  %v13952_v54 = vld [vmem:[%s16029_s27 + $0x1a14] ss:$8 sps:$4 sm:$0xff]   ;;  %v768_v55 = vpack.c.bf16 %v301_v46, %v301_v46  ;;  %v14027_v46 = vld [vmem:[%s16029_s27 + $0x3e4] ss:$8 sps:$4 sm:$0xff]  }
  0xac   : > { %9970 = vmatpush1.bf16.msra.mxu1 %v13868_v56  ;;  %v814_v56 = vpack.c.bf16 %v504_v47, %v504_v47  ;;  %v14030_v47 = vld [vmem:[%s16029_s27 + $0x1ae4] ss:$8 sps:$4 sm:$0xff]  }
  0xad   : > { %10913 = vmatpush1.bf16.msra.mxu0 %v13871_v57  ;;  %9971 = vmatprep.subr.bf16.mxu1 %v13876_v58  ;;  %v13955_v57 = vld [vmem:[%s16029_s27 + $0x324] ss:$8 sps:$4 sm:$0xff]  }
  0xae   : > { %10914 = vmatprep.subr.bf16.mxu0 %v13879_v59  ;;  %v13958_v58 = vld [vmem:[%s16029_s27 + $0x1a24] ss:$8 sps:$4 sm:$0xff]   ;;  %v13953_v59 = vld [vmem:[%s16029_s27 + $0x320] ss:$8 sps:$4 sm:$0xff]  }
  0xb0   : > { %9972 = vmatpush1.bf16.msra.mxu1 %v13874_v60  ;;  %v13956_v60 = vld [vmem:[%s16029_s27 + $0x1a20] ss:$8 sps:$4 sm:$0xff]  }
  0xb1   : > { %10915 = vmatpush1.bf16.msra.mxu0 %v13877_v61  ;;  %9973 = vmatprep.subr.bf16.mxu1 %v13882_v62  ;;  %v13961_v61 = vld [vmem:[%s16029_s27 + $0x334] ss:$8 sps:$4 sm:$0xff]  }
  0xb2   : > { %10916 = vmatprep.subr.bf16.mxu0 %v13885_v63  ;;  %v13964_v62 = vld [vmem:[%s16029_s27 + $0x1a34] ss:$8 sps:$4 sm:$0xff]   ;;  %v13959_v63 = vld [vmem:[%s16029_s27 + $0x330] ss:$8 sps:$4 sm:$0xff]  }
  0xb4   : > { %9974 = vmatpush1.bf16.msra.mxu1 %v13880_v0  ;;  %v13962_v0 = vld [vmem:[%s16029_s27 + $0x1a30] ss:$8 sps:$4 sm:$0xff]  }
  0xb5   : > { %10917 = vmatpush1.bf16.msra.mxu0 %v13883_v1  ;;  %9975 = vmatprep.subr.bf16.mxu1 %v13888_v2  ;;  %v13967_v1 = vld [vmem:[%s16029_s27 + $0x344] ss:$8 sps:$4 sm:$0xff]  }
  0xb6   : > { %10918 = vmatprep.subr.bf16.mxu0 %v13891_v3  ;;  %v13970_v2 = vld [vmem:[%s16029_s27 + $0x1a44] ss:$8 sps:$4 sm:$0xff]   ;;  %v13965_v3 = vld [vmem:[%s16029_s27 + $0x340] ss:$8 sps:$4 sm:$0xff]  }
  0xb8   : > { %9976 = vmatpush1.bf16.msra.mxu1 %v13886_v4  ;;  %v13968_v4 = vld [vmem:[%s16029_s27 + $0x1a40] ss:$8 sps:$4 sm:$0xff]  }
  0xb9   : > { %10919 = vmatpush1.bf16.msra.mxu0 %v13889_v5  ;;  %9977 = vmatprep.subr.bf16.mxu1 %v13894_v6  ;;  %v13973_v5 = vld [vmem:[%s16029_s27 + $0x354] ss:$8 sps:$4 sm:$0xff]  }
  0xba   : > { %10920 = vmatprep.subr.bf16.mxu0 %v13897_v7  ;;  %v13976_v6 = vld [vmem:[%s16029_s27 + $0x1a54] ss:$8 sps:$4 sm:$0xff]   ;;  %v13971_v7 = vld [vmem:[%s16029_s27 + $0x350] ss:$8 sps:$4 sm:$0xff]  }
  0xbc   : > { %9978 = vmatpush1.bf16.msra.mxu1 %v13892_v8  ;;  %v13974_v8 = vld [vmem:[%s16029_s27 + $0x1a50] ss:$8 sps:$4 sm:$0xff]  }
  0xbd   : > { %10921 = vmatpush1.bf16.msra.mxu0 %v13895_v9  ;;  %9979 = vmatprep.subr.bf16.mxu1 %v13900_v10  ;;  %v13979_v9 = vld [vmem:[%s16029_s27 + $0x364] ss:$8 sps:$4 sm:$0xff]  }
  0xbe   : > { %10922 = vmatprep.subr.bf16.mxu0 %v13903_v11  ;;  %v13982_v10 = vld [vmem:[%s16029_s27 + $0x1a64] ss:$8 sps:$4 sm:$0xff]   ;;  %v13977_v11 = vld [vmem:[%s16029_s27 + $0x360] ss:$8 sps:$4 sm:$0xff]  }
  0xc0   : > { %9980 = vmatpush1.bf16.msra.mxu1 %v13898_v12  ;;  %v13980_v12 = vld [vmem:[%s16029_s27 + $0x1a60] ss:$8 sps:$4 sm:$0xff]  }
  0xc1   : > { %10923 = vmatpush1.bf16.msra.mxu0 %v13901_v13  ;;  %9981 = vmatprep.subr.bf16.mxu1 %v13906_v14  ;;  %v13985_v13 = vld [vmem:[%s16029_s27 + $0x374] ss:$8 sps:$4 sm:$0xff]  }
  0xc2   : > { %10924 = vmatprep.subr.bf16.mxu0 %v13909_v16  ;;  %v13988_v14 = vld [vmem:[%s16029_s27 + $0x1a74] ss:$8 sps:$4 sm:$0xff]   ;;  %v13983_v16 = vld [vmem:[%s16029_s27 + $0x370] ss:$8 sps:$4 sm:$0xff]  }
  0xc4   : > { %9982 = vmatpush1.bf16.msra.mxu1 %v13904_v17  ;;  %v13986_v17 = vld [vmem:[%s16029_s27 + $0x1a70] ss:$8 sps:$4 sm:$0xff]  }
  0xc5   : > { %10925 = vmatpush1.bf16.msra.mxu0 %v13907_v18  ;;  %9983 = vmatprep.subr.bf16.mxu1 %v13912_v19  ;;  %v13991_v18 = vld [vmem:[%s16029_s27 + $0x384] ss:$8 sps:$4 sm:$0xff]  }
  0xc6   : > { %10926 = vmatprep.subr.bf16.mxu0 %v13915_v20  ;;  %v13994_v19 = vld [vmem:[%s16029_s27 + $0x1a84] ss:$8 sps:$4 sm:$0xff]   ;;  %v13989_v20 = vld [vmem:[%s16029_s27 + $0x380] ss:$8 sps:$4 sm:$0xff]  }
  0xc8   : > { %9984 = vmatpush1.bf16.msra.mxu1 %v13910_v21  ;;  %v13992_v21 = vld [vmem:[%s16029_s27 + $0x1a80] ss:$8 sps:$4 sm:$0xff]  }
  0xc9   : > { %10927 = vmatpush1.bf16.msra.mxu0 %v13913_v22  ;;  %9985 = vmatprep.subr.bf16.mxu1 %v13918_v23  ;;  %v13997_v22 = vld [vmem:[%s16029_s27 + $0x394] ss:$8 sps:$4 sm:$0xff]  }
  0xca   : > { %10928 = vmatprep.subr.bf16.mxu0 %v13921_v24  ;;  %v14000_v23 = vld [vmem:[%s16029_s27 + $0x1a94] ss:$8 sps:$4 sm:$0xff]   ;;  %v13995_v24 = vld [vmem:[%s16029_s27 + $0x390] ss:$8 sps:$4 sm:$0xff]  }
  0xcc   : > { %9986 = vmatpush1.bf16.msra.mxu1 %v13916_v25  ;;  %v13998_v25 = vld [vmem:[%s16029_s27 + $0x1a90] ss:$8 sps:$4 sm:$0xff]  }
  0xcd   : > { %10929 = vmatpush1.bf16.msra.mxu0 %v13919_v26  ;;  %9987 = vmatprep.subr.bf16.mxu1 %v13924_v28  ;;  %v14003_v26 = vld [vmem:[%s16029_s27 + $0x3a4] ss:$8 sps:$4 sm:$0xff]  }
  0xce   : > { %10930 = vmatprep.subr.bf16.mxu0 %v13927_v29  ;;  %v14006_v28 = vld [vmem:[%s16029_s27 + $0x1aa4] ss:$8 sps:$4 sm:$0xff]   ;;  %v14001_v29 = vld [vmem:[%s16029_s27 + $0x3a0] ss:$8 sps:$4 sm:$0xff]  }
  0xd0   : > { %9988 = vmatpush1.bf16.msra.mxu1 %v13922_v30  ;;  %v14004_v30 = vld [vmem:[%s16029_s27 + $0x1aa0] ss:$8 sps:$4 sm:$0xff]  }
  0xd1   : > { %10931 = vmatpush1.bf16.msra.mxu0 %v13925_v31  ;;  %9989 = vmatprep.subr.bf16.mxu1 %v13930_v32  ;;  %v14009_v31 = vld [vmem:[%s16029_s27 + $0x3b4] ss:$8 sps:$4 sm:$0xff]  }
  0xd2   : > { %10932 = vmatprep.subr.bf16.mxu0 %v13933_v33  ;;  %v14012_v32 = vld [vmem:[%s16029_s27 + $0x1ab4] ss:$8 sps:$4 sm:$0xff]   ;;  %v14007_v33 = vld [vmem:[%s16029_s27 + $0x3b0] ss:$8 sps:$4 sm:$0xff]  }
  0xd4   : > { %9990 = vmatpush1.bf16.msra.mxu1 %v13928_v34  ;;  %v14010_v34 = vld [vmem:[%s16029_s27 + $0x1ab0] ss:$8 sps:$4 sm:$0xff]  }
  0xd5   : > { %10933 = vmatpush1.bf16.msra.mxu0 %v13931_v37  ;;  %9991 = vmatprep.subr.bf16.mxu1 %v13936_v38  ;;  %v14018_v37 = vld [vmem:[%s16029_s27 + $0x1ac4] ss:$8 sps:$4 sm:$0xff]   ;;  %v14013_v38 = vld [vmem:[%s16029_s27 + $0x3c0] ss:$8 sps:$4 sm:$0xff]  }
  0xd6   : > { %10934 = vmatprep.subr.bf16.mxu0 %v13939_v15  ;;  %v14016_v15 = vld [vmem:[%s16029_s27 + $0x1ac0] ss:$8 sps:$4 sm:$0xff]  }
  0xd8   : > { %9992 = vmatpush1.bf16.msra.mxu1 %v13934_v39  ;;  %v14021_v39 = vld [vmem:[%s16029_s27 + $0x3d4] ss:$8 sps:$4 sm:$0xff]  }
  0xd9   : > { %10935 = vmatpush1.bf16.msra.mxu0 %v13937_v43  ;;  %10002 = vmatprep.subr.bf16.mxu1 %v13942_v44  ;;  %v14024_v43 = vld [vmem:[%s16029_s27 + $0x1ad4] ss:$8 sps:$4 sm:$0xff]   ;;  %v14019_v44 = vld [vmem:[%s16029_s27 + $0x3d0] ss:$8 sps:$4 sm:$0xff]  }
  0xda   : > { %10945 = vmatprep.subr.bf16.mxu0 %v13946_v45  ;;  %v14022_v45 = vld [vmem:[%s16029_s27 + $0x1ad0] ss:$8 sps:$4 sm:$0xff]  }
  0xdb   : > { %9994 = vmatmul.mubr.bf16.vlgmr.msra.gmra.mrb[0].mxu1 %v765_v49  ;;  %v16357_v49 = vld [vmem:[%s16024_s23 + $0x10] sm:$0xff] }
  0xdc   : > { %10937 = vmatmul.mubr.bf16.vlgmr.msra.gmra.mrb[0].mxu0 %v811_v51  ;;  %10003 = vmatpush1.bf16.msra.mxu1 %v13940_v48  ;;  %v489_v48 = vcombine.high %v16274_v36, %v16274_v36  ;;  %v14025_v51 = vld [vmem:[%s16029_s27 + $0x3e0] ss:$8 sps:$4 sm:$0xff]   ;;  %v14031_v36 = vld [vmem:[%s16029_s27 + $0x3f0] ss:$8 sps:$4 sm:$0xff]  }
  0xdd   : > { %10946 = vmatpush1.bf16.msra.mxu0 %v13944_v52  ;;  %10004 = vmatprep.subr.bf16.mxu1 %v13949_v53  ;;  %v14028_v52 = vld [vmem:[%s16029_s27 + $0x1ae0] ss:$8 sps:$4 sm:$0xff]   ;;  %v14033_v53 = vld [vmem:[%s16029_s27 + $0x3f4] ss:$8 sps:$4 sm:$0xff]  }
  0xde   : > { %10947 = vmatprep.subr.bf16.mxu0 %v13952_v54  ;;  %10034 = vmatprep.mubr.bf16.mxu1 %v768_v55  ;;  %v14036_v54 = vld [vmem:[%s16029_s27 + $0x1af4] ss:$8 sps:$4 sm:$0xff]   ;;  %v16365_v55 = vrot.slane %v16357_v49, %v16082_v50 }
  0xdf   : > { %10977 = vmatprep.mubr.bf16.mxu0 %v814_v56  ;;  %v16368_v56 = vrot.slane %v489_v48, %v16082_v50  ;;  %v14107_v48 = vld [vmem:[%s16029_s27 + $0x1bb0] ss:$8 sps:$4 sm:$0xff]  }
  0xe0   : > { %10005 = vmatpush1.bf16.msra.mxu1 %v13947_v40  ;;  %v14034_v40 = vld [vmem:[%s16029_s27 + $0x1af0] ss:$8 sps:$4 sm:$0xff]  }
  0xe1   : > { %10948 = vmatpush1.bf16.msra.mxu0 %v13950_v27  ;;  %10006 = vmatprep.subr.bf16.mxu1 %v13955_v57  ;;  %v14040_v27 = vld [vmem:[%s16029_s27 + $0x404] ss:$8 sps:$4 sm:$0xff]  }
  0xe2   : > { %10949 = vmatprep.subr.bf16.mxu0 %v13958_v58  ;;  %v14043_v57 = vld [vmem:[%s16029_s27 + $0x1b04] ss:$8 sps:$4 sm:$0xff]   ;;  %v317_v58 = vcombine.high %v16365_v55, %v16365_v55 }
  0xe4   : > { %10007 = vmatpush1.bf16.msra.mxu1 %v13953_v59  ;;  %v505_v59 = vcombine.high %v16368_v56, %v16368_v56 }
  0xe5   : > { %10950 = vmatpush1.bf16.msra.mxu0 %v13956_v60  ;;  %10008 = vmatprep.subr.bf16.mxu1 %v13961_v61  ;;  %v767_v60 = vpack.c.bf16 %v16280_v41, %v16280_v41  ;;  %v813_v61 = vpack.c.bf16 %v16284_v42, %v16284_v42  ;;  %v14044_v41 = vld [vmem:[%s16029_s27 + $0x410] ss:$8 sps:$4 sm:$0xff]  }
  0xe6   : > { %10951 = vmatprep.subr.bf16.mxu0 %v13964_v62  ;;  %v14038_v62 = vld [vmem:[%s16029_s27 + $0x400] ss:$8 sps:$4 sm:$0xff]   ;;  %v14047_v42 = vld [vmem:[%s16029_s27 + $0x1b10] ss:$8 sps:$4 sm:$0xff]  }
  0xe8   : > { %10009 = vmatpush1.bf16.msra.mxu1 %v13959_v63  ;;  %v14041_v63 = vld [vmem:[%s16029_s27 + $0x1b00] ss:$8 sps:$4 sm:$0xff]  }
  0xe9   : > { %10952 = vmatpush1.bf16.msra.mxu0 %v13962_v0  ;;  %10010 = vmatprep.subr.bf16.mxu1 %v13967_v1  ;;  %v14046_v0 = vld [vmem:[%s16029_s27 + $0x414] ss:$8 sps:$4 sm:$0xff]  }
  0xea   : > { %10953 = vmatprep.subr.bf16.mxu0 %v13970_v2  ;;  %v14049_v1 = vld [vmem:[%s16029_s27 + $0x1b14] ss:$8 sps:$4 sm:$0xff]   ;;  %v770_v2 = vpack.c.bf16 %v317_v58, %v317_v58  ;;  %v14124_v58 = vld [vmem:[%s16029_s27 + $0x4e4] ss:$8 sps:$4 sm:$0xff]  }
  0xec   : > { %10011 = vmatpush1.bf16.msra.mxu1 %v13965_v3  ;;  %v816_v3 = vpack.c.bf16 %v505_v59, %v505_v59  ;;  %v14127_v59 = vld [vmem:[%s16029_s27 + $0x1be4] ss:$8 sps:$4 sm:$0xff]  }
  0xed   : > { %10954 = vmatpush1.bf16.msra.mxu0 %v13968_v4  ;;  %10012 = vmatprep.subr.bf16.mxu1 %v13973_v5  ;;  %v14052_v4 = vld [vmem:[%s16029_s27 + $0x424] ss:$8 sps:$4 sm:$0xff]  }
  0xee   : > { %10955 = vmatprep.subr.bf16.mxu0 %v13976_v6  ;;  %v14055_v5 = vld [vmem:[%s16029_s27 + $0x1b24] ss:$8 sps:$4 sm:$0xff]   ;;  %v14050_v6 = vld [vmem:[%s16029_s27 + $0x420] ss:$8 sps:$4 sm:$0xff]  }
  0xf0   : > { %10013 = vmatpush1.bf16.msra.mxu1 %v13971_v7  ;;  %v14053_v7 = vld [vmem:[%s16029_s27 + $0x1b20] ss:$8 sps:$4 sm:$0xff]  }
  0xf1   : > { %10956 = vmatpush1.bf16.msra.mxu0 %v13974_v8  ;;  %10014 = vmatprep.subr.bf16.mxu1 %v13979_v9  ;;  %v14058_v8 = vld [vmem:[%s16029_s27 + $0x434] ss:$8 sps:$4 sm:$0xff]  }
  0xf2   : > { %10957 = vmatprep.subr.bf16.mxu0 %v13982_v10  ;;  %v14061_v9 = vld [vmem:[%s16029_s27 + $0x1b34] ss:$8 sps:$4 sm:$0xff]   ;;  %v14056_v10 = vld [vmem:[%s16029_s27 + $0x430] ss:$8 sps:$4 sm:$0xff]  }
  0xf4   : > { %10015 = vmatpush1.bf16.msra.mxu1 %v13977_v11  ;;  %v14059_v11 = vld [vmem:[%s16029_s27 + $0x1b30] ss:$8 sps:$4 sm:$0xff]  }
  0xf5   : > { %10958 = vmatpush1.bf16.msra.mxu0 %v13980_v12  ;;  %10016 = vmatprep.subr.bf16.mxu1 %v13985_v13  ;;  %v14064_v12 = vld [vmem:[%s16029_s27 + $0x444] ss:$8 sps:$4 sm:$0xff]  }
  0xf6   : > { %10959 = vmatprep.subr.bf16.mxu0 %v13988_v14  ;;  %v14067_v13 = vld [vmem:[%s16029_s27 + $0x1b44] ss:$8 sps:$4 sm:$0xff]   ;;  %v14062_v14 = vld [vmem:[%s16029_s27 + $0x440] ss:$8 sps:$4 sm:$0xff]  }
  0xf8   : > { %10017 = vmatpush1.bf16.msra.mxu1 %v13983_v16  ;;  %v14065_v16 = vld [vmem:[%s16029_s27 + $0x1b40] ss:$8 sps:$4 sm:$0xff]  }
  0xf9   : > { %10960 = vmatpush1.bf16.msra.mxu0 %v13986_v17  ;;  %10018 = vmatprep.subr.bf16.mxu1 %v13991_v18  ;;  %v14070_v17 = vld [vmem:[%s16029_s27 + $0x454] ss:$8 sps:$4 sm:$0xff]  }
  0xfa   : > { %10961 = vmatprep.subr.bf16.mxu0 %v13994_v19  ;;  %v14073_v18 = vld [vmem:[%s16029_s27 + $0x1b54] ss:$8 sps:$4 sm:$0xff]   ;;  %v14068_v19 = vld [vmem:[%s16029_s27 + $0x450] ss:$8 sps:$4 sm:$0xff]  }
  0xfc   : > { %10019 = vmatpush1.bf16.msra.mxu1 %v13989_v20  ;;  %v14071_v20 = vld [vmem:[%s16029_s27 + $0x1b50] ss:$8 sps:$4 sm:$0xff]  }
  0xfd   : > { %10962 = vmatpush1.bf16.msra.mxu0 %v13992_v21  ;;  %10020 = vmatprep.subr.bf16.mxu1 %v13997_v22  ;;  %v14076_v21 = vld [vmem:[%s16029_s27 + $0x464] ss:$8 sps:$4 sm:$0xff]  }
  0xfe   : > { %10963 = vmatprep.subr.bf16.mxu0 %v14000_v23  ;;  %v14079_v22 = vld [vmem:[%s16029_s27 + $0x1b64] ss:$8 sps:$4 sm:$0xff]   ;;  %v14074_v23 = vld [vmem:[%s16029_s27 + $0x460] ss:$8 sps:$4 sm:$0xff]  }
 0x100   : > { %10021 = vmatpush1.bf16.msra.mxu1 %v13995_v24  ;;  %v14077_v24 = vld [vmem:[%s16029_s27 + $0x1b60] ss:$8 sps:$4 sm:$0xff]  }
 0x101   : > { %10964 = vmatpush1.bf16.msra.mxu0 %v13998_v25  ;;  %10022 = vmatprep.subr.bf16.mxu1 %v14003_v26  ;;  %v14082_v25 = vld [vmem:[%s16029_s27 + $0x474] ss:$8 sps:$4 sm:$0xff]  }
 0x102   : > { %10965 = vmatprep.subr.bf16.mxu0 %v14006_v28  ;;  %v14085_v26 = vld [vmem:[%s16029_s27 + $0x1b74] ss:$8 sps:$4 sm:$0xff]   ;;  %v14080_v28 = vld [vmem:[%s16029_s27 + $0x470] ss:$8 sps:$4 sm:$0xff]  }
 0x104   : > { %10023 = vmatpush1.bf16.msra.mxu1 %v14001_v29  ;;  %v14083_v29 = vld [vmem:[%s16029_s27 + $0x1b70] ss:$8 sps:$4 sm:$0xff]  }
 0x105   : > { %10966 = vmatpush1.bf16.msra.mxu0 %v14004_v30  ;;  %10024 = vmatprep.subr.bf16.mxu1 %v14009_v31  ;;  %v14088_v30 = vld [vmem:[%s16029_s27 + $0x484] ss:$8 sps:$4 sm:$0xff]  }
 0x106   : > { %10967 = vmatprep.subr.bf16.mxu0 %v14012_v32  ;;  %v14091_v31 = vld [vmem:[%s16029_s27 + $0x1b84] ss:$8 sps:$4 sm:$0xff]   ;;  %v14086_v32 = vld [vmem:[%s16029_s27 + $0x480] ss:$8 sps:$4 sm:$0xff]  }
 0x108   : > { %10025 = vmatpush1.bf16.msra.mxu1 %v14007_v33  ;;  %v14089_v33 = vld [vmem:[%s16029_s27 + $0x1b80] ss:$8 sps:$4 sm:$0xff]  }
 0x109   : > { %10968 = vmatpush1.bf16.msra.mxu0 %v14010_v34  ;;  %10026 = vmatprep.subr.bf16.mxu1 %v14015_v35  ;;  %v14094_v34 = vld [vmem:[%s16029_s27 + $0x494] ss:$8 sps:$4 sm:$0xff]  }
 0x10a   : > { %10969 = vmatprep.subr.bf16.mxu0 %v14018_v37  ;;  %v14097_v35 = vld [vmem:[%s16029_s27 + $0x1b94] ss:$8 sps:$4 sm:$0xff]   ;;  %v14092_v37 = vld [vmem:[%s16029_s27 + $0x490] ss:$8 sps:$4 sm:$0xff]  }
 0x10c   : > { %10027 = vmatpush1.bf16.msra.mxu1 %v14013_v38  ;;  %v14095_v38 = vld [vmem:[%s16029_s27 + $0x1b90] ss:$8 sps:$4 sm:$0xff]  }
 0x10d   : > { %10970 = vmatpush1.bf16.msra.mxu0 %v14016_v15  ;;  %10028 = vmatprep.subr.bf16.mxu1 %v14021_v39  ;;  %v14100_v15 = vld [vmem:[%s16029_s27 + $0x4a4] ss:$8 sps:$4 sm:$0xff]  }
 0x10e   : > { %10971 = vmatprep.subr.bf16.mxu0 %v14024_v43  ;;  %v14103_v39 = vld [vmem:[%s16029_s27 + $0x1ba4] ss:$8 sps:$4 sm:$0xff]   ;;  %v14098_v43 = vld [vmem:[%s16029_s27 + $0x4a0] ss:$8 sps:$4 sm:$0xff]  }
 0x110   : > { %10029 = vmatpush1.bf16.msra.mxu1 %v14019_v44  ;;  %v14101_v44 = vld [vmem:[%s16029_s27 + $0x1ba0] ss:$8 sps:$4 sm:$0xff]  }
 0x111   : > { %10972 = vmatpush1.bf16.msra.mxu0 %v14022_v45  ;;  %10030 = vmatprep.subr.bf16.mxu1 %v14027_v46  ;;  %v14106_v45 = vld [vmem:[%s16029_s27 + $0x4b4] ss:$8 sps:$4 sm:$0xff]  }
 0x112   : > { %10973 = vmatprep.subr.bf16.mxu0 %v14030_v47  ;;  %v14109_v46 = vld [vmem:[%s16029_s27 + $0x1bb4] ss:$8 sps:$4 sm:$0xff]   ;;  %v14104_v47 = vld [vmem:[%s16029_s27 + $0x4b0] ss:$8 sps:$4 sm:$0xff]  }
 0x114   : > { %10031 = vmatpush1.bf16.msra.mxu1 %v14025_v51  ;;  %v14112_v51 = vld [vmem:[%s16029_s27 + $0x4c4] ss:$8 sps:$4 sm:$0xff]  }
 0x115   : > { %10974 = vmatpush1.bf16.msra.mxu0 %v14028_v52  ;;  %10032 = vmatprep.subr.bf16.mxu1 %v14033_v53  ;;  %v14115_v52 = vld [vmem:[%s16029_s27 + $0x1bc4] ss:$8 sps:$4 sm:$0xff]   ;;  %v14110_v53 = vld [vmem:[%s16029_s27 + $0x4c0] ss:$8 sps:$4 sm:$0xff]  }
 0x116   : > { %10975 = vmatprep.subr.bf16.mxu0 %v14036_v54  ;;  %v14113_v54 = vld [vmem:[%s16029_s27 + $0x1bc0] ss:$8 sps:$4 sm:$0xff]  }
 0x118   : > { %10033 = vmatpush1.bf16.msra.mxu1 %v14031_v36  ;;  %v14118_v36 = vld [vmem:[%s16029_s27 + $0x4d4] ss:$8 sps:$4 sm:$0xff]  }
 0x119   : > { %10976 = vmatpush1.bf16.msra.mxu0 %v14034_v40  ;;  %10043 = vmatprep.subr.bf16.mxu1 %v14040_v27  ;;  %v14121_v40 = vld [vmem:[%s16029_s27 + $0x1bd4] ss:$8 sps:$4 sm:$0xff]   ;;  %v14116_v27 = vld [vmem:[%s16029_s27 + $0x4d0] ss:$8 sps:$4 sm:$0xff]  }
 0x11a   : > { %10986 = vmatprep.subr.bf16.mxu0 %v14043_v57  ;;  %v14119_v57 = vld [vmem:[%s16029_s27 + $0x1bd0] ss:$8 sps:$4 sm:$0xff]  }
 0x11b   : > { %10035 = vmatmul.mubr.bf16.vlgmr.msra.gmra.mrb[0].mxu1 %v767_v60  ;;  %v16439_v60 = vld [vmem:[%s16024_s23 + $0x70] sm:$0xff] }
 0x11c   : > { %10978 = vmatmul.mubr.bf16.vlgmr.msra.gmra.mrb[0].mxu0 %v813_v61  ;;  %10044 = vmatpush1.bf16.msra.mxu1 %v14038_v62  ;;  %v302_v61 = vcombine.high %v16357_v49, %v16357_v49  ;;  %v14122_v62 = vld [vmem:[%s16029_s27 + $0x4e0] ss:$8 sps:$4 sm:$0xff]   ;;  %v14128_v49 = vld [vmem:[%s16029_s27 + $0x4f0] ss:$8 sps:$4 sm:$0xff]  }
 0x11d   : > { %10987 = vmatpush1.bf16.msra.mxu0 %v14041_v63  ;;  %10045 = vmatprep.subr.bf16.mxu1 %v14046_v0  ;;  %v14125_v63 = vld [vmem:[%s16029_s27 + $0x1be0] ss:$8 sps:$4 sm:$0xff]   ;;  %v14130_v0 = vld [vmem:[%s16029_s27 + $0x4f4] ss:$8 sps:$4 sm:$0xff]  }
 0x11e   : > { %10988 = vmatprep.subr.bf16.mxu0 %v14049_v1  ;;  %10075 = vmatprep.mubr.bf16.mxu1 %v770_v2  ;;  %v14133_v1 = vld [vmem:[%s16029_s27 + $0x1bf4] ss:$8 sps:$4 sm:$0xff]   ;;  %v16448_v2 = vrot.slane %v302_v61, %v16082_v50  ;;  %v14204_v61 = vld [vmem:[%s16029_s27 + $0x1cb0] ss:$8 sps:$4 sm:$0xff]  }
 0x11f   : > { %11018 = vmatprep.mubr.bf16.mxu0 %v816_v3  ;;  %v16452_v3 = vrot.slane %v16439_v60, %v16082_v50 }
 0x120   : > { %10046 = vmatpush1.bf16.msra.mxu1 %v14044_v41  ;;  %v14131_v41 = vld [vmem:[%s16029_s27 + $0x1bf0] ss:$8 sps:$4 sm:$0xff]  }
 0x121   : > { %10989 = vmatpush1.bf16.msra.mxu0 %v14047_v42  ;;  %10047 = vmatprep.subr.bf16.mxu1 %v14052_v4  ;;  %v14136_v42 = vld [vmem:[%s16029_s27 + $0x504] ss:$8 sps:$4 sm:$0xff]  }
 0x122   : > { %10990 = vmatprep.subr.bf16.mxu0 %v14055_v5  ;;  %v14140_v4 = vld [vmem:[%s16029_s27 + $0x1c04] ss:$8 sps:$4 sm:$0xff]   ;;  %v318_v5 = vcombine.high %v16448_v2, %v16448_v2 }
 0x124   : > { %10048 = vmatpush1.bf16.msra.mxu1 %v14050_v6  ;;  %v521_v6 = vcombine.high %v16452_v3, %v16452_v3 }
 0x125   : > { %10991 = vmatpush1.bf16.msra.mxu0 %v14053_v7  ;;  %10049 = vmatprep.subr.bf16.mxu1 %v14058_v8  ;;  %v769_v7 = vpack.c.bf16 %v16365_v55, %v16365_v55  ;;  %v815_v8 = vpack.c.bf16 %v16368_v56, %v16368_v56  ;;  %v14141_v55 = vld [vmem:[%s16029_s27 + $0x510] ss:$8 sps:$4 sm:$0xff]  }
 0x126   : > { %10992 = vmatprep.subr.bf16.mxu0 %v14061_v9  ;;  %v14134_v9 = vld [vmem:[%s16029_s27 + $0x500] ss:$8 sps:$4 sm:$0xff]   ;;  %v14144_v56 = vld [vmem:[%s16029_s27 + $0x1c10] ss:$8 sps:$4 sm:$0xff]  }
 0x128   : > { %10050 = vmatpush1.bf16.msra.mxu1 %v14056_v10  ;;  %v14138_v10 = vld [vmem:[%s16029_s27 + $0x1c00] ss:$8 sps:$4 sm:$0xff]  }
 0x129   : > { %10993 = vmatpush1.bf16.msra.mxu0 %v14059_v11  ;;  %10051 = vmatprep.subr.bf16.mxu1 %v14064_v12  ;;  %v14143_v11 = vld [vmem:[%s16029_s27 + $0x514] ss:$8 sps:$4 sm:$0xff]  }
 0x12a   : > { %10994 = vmatprep.subr.bf16.mxu0 %v14067_v13  ;;  %v14146_v12 = vld [vmem:[%s16029_s27 + $0x1c14] ss:$8 sps:$4 sm:$0xff]   ;;  %v772_v13 = vpack.c.bf16 %v318_v5, %v318_v5  ;;  %v14221_v5 = vld [vmem:[%s16029_s27 + $0x5e4] ss:$8 sps:$4 sm:$0xff]  }
 0x12c   : > { %10052 = vmatpush1.bf16.msra.mxu1 %v14062_v14  ;;  %v818_v14 = vpack.c.bf16 %v521_v6, %v521_v6  ;;  %v14224_v6 = vld [vmem:[%s16029_s27 + $0x1ce4] ss:$8 sps:$4 sm:$0xff]  }
 0x12d   : > { %10995 = vmatpush1.bf16.msra.mxu0 %v14065_v16  ;;  %10053 = vmatprep.subr.bf16.mxu1 %v14070_v17  ;;  %v14149_v16 = vld [vmem:[%s16029_s27 + $0x524] ss:$8 sps:$4 sm:$0xff]  }
 0x12e   : > { %10996 = vmatprep.subr.bf16.mxu0 %v14073_v18  ;;  %v14152_v17 = vld [vmem:[%s16029_s27 + $0x1c24] ss:$8 sps:$4 sm:$0xff]   ;;  %v14147_v18 = vld [vmem:[%s16029_s27 + $0x520] ss:$8 sps:$4 sm:$0xff]  }
 0x130   : > { %10054 = vmatpush1.bf16.msra.mxu1 %v14068_v19  ;;  %v14150_v19 = vld [vmem:[%s16029_s27 + $0x1c20] ss:$8 sps:$4 sm:$0xff]  }
 0x131   : > { %10997 = vmatpush1.bf16.msra.mxu0 %v14071_v20  ;;  %10055 = vmatprep.subr.bf16.mxu1 %v14076_v21  ;;  %v14155_v20 = vld [vmem:[%s16029_s27 + $0x534] ss:$8 sps:$4 sm:$0xff]  }
 0x132   : > { %10998 = vmatprep.subr.bf16.mxu0 %v14079_v22  ;;  %v14158_v21 = vld [vmem:[%s16029_s27 + $0x1c34] ss:$8 sps:$4 sm:$0xff]   ;;  %v14153_v22 = vld [vmem:[%s16029_s27 + $0x530] ss:$8 sps:$4 sm:$0xff]  }
 0x134   : > { %10056 = vmatpush1.bf16.msra.mxu1 %v14074_v23  ;;  %v14156_v23 = vld [vmem:[%s16029_s27 + $0x1c30] ss:$8 sps:$4 sm:$0xff]  }
 0x135   : > { %10999 = vmatpush1.bf16.msra.mxu0 %v14077_v24  ;;  %10057 = vmatprep.subr.bf16.mxu1 %v14082_v25  ;;  %v14161_v24 = vld [vmem:[%s16029_s27 + $0x544] ss:$8 sps:$4 sm:$0xff]  }
 0x136   : > { %11000 = vmatprep.subr.bf16.mxu0 %v14085_v26  ;;  %v14164_v25 = vld [vmem:[%s16029_s27 + $0x1c44] ss:$8 sps:$4 sm:$0xff]   ;;  %v14159_v26 = vld [vmem:[%s16029_s27 + $0x540] ss:$8 sps:$4 sm:$0xff]  }
 0x138   : > { %10058 = vmatpush1.bf16.msra.mxu1 %v14080_v28  ;;  %v14162_v28 = vld [vmem:[%s16029_s27 + $0x1c40] ss:$8 sps:$4 sm:$0xff]  }
 0x139   : > { %11001 = vmatpush1.bf16.msra.mxu0 %v14083_v29  ;;  %10059 = vmatprep.subr.bf16.mxu1 %v14088_v30  ;;  %v14167_v29 = vld [vmem:[%s16029_s27 + $0x554] ss:$8 sps:$4 sm:$0xff]  }
 0x13a   : > { %11002 = vmatprep.subr.bf16.mxu0 %v14091_v31  ;;  %v14170_v30 = vld [vmem:[%s16029_s27 + $0x1c54] ss:$8 sps:$4 sm:$0xff]   ;;  %v14165_v31 = vld [vmem:[%s16029_s27 + $0x550] ss:$8 sps:$4 sm:$0xff]  }
 0x13c   : > { %10060 = vmatpush1.bf16.msra.mxu1 %v14086_v32  ;;  %v14168_v32 = vld [vmem:[%s16029_s27 + $0x1c50] ss:$8 sps:$4 sm:$0xff]  }
 0x13d   : > { %11003 = vmatpush1.bf16.msra.mxu0 %v14089_v33  ;;  %10061 = vmatprep.subr.bf16.mxu1 %v14094_v34  ;;  %v14173_v33 = vld [vmem:[%s16029_s27 + $0x564] ss:$8 sps:$4 sm:$0xff]  }
 0x13e   : > { %11004 = vmatprep.subr.bf16.mxu0 %v14097_v35  ;;  %v14176_v34 = vld [vmem:[%s16029_s27 + $0x1c64] ss:$8 sps:$4 sm:$0xff]   ;;  %v14171_v35 = vld [vmem:[%s16029_s27 + $0x560] ss:$8 sps:$4 sm:$0xff]  }
 0x140   : > { %10062 = vmatpush1.bf16.msra.mxu1 %v14092_v37  ;;  %v14174_v37 = vld [vmem:[%s16029_s27 + $0x1c60] ss:$8 sps:$4 sm:$0xff]  }
 0x141   : > { %11005 = vmatpush1.bf16.msra.mxu0 %v14095_v38  ;;  %10063 = vmatprep.subr.bf16.mxu1 %v14100_v15  ;;  %v14179_v38 = vld [vmem:[%s16029_s27 + $0x574] ss:$8 sps:$4 sm:$0xff]  }
 0x142   : > { %11006 = vmatprep.subr.bf16.mxu0 %v14103_v39  ;;  %v14182_v15 = vld [vmem:[%s16029_s27 + $0x1c74] ss:$8 sps:$4 sm:$0xff]   ;;  %v14177_v39 = vld [vmem:[%s16029_s27 + $0x570] ss:$8 sps:$4 sm:$0xff]  }
 0x144   : > { %10064 = vmatpush1.bf16.msra.mxu1 %v14098_v43  ;;  %v14180_v43 = vld [vmem:[%s16029_s27 + $0x1c70] ss:$8 sps:$4 sm:$0xff]  }
 0x145   : > { %11007 = vmatpush1.bf16.msra.mxu0 %v14101_v44  ;;  %10065 = vmatprep.subr.bf16.mxu1 %v14106_v45  ;;  %v14185_v44 = vld [vmem:[%s16029_s27 + $0x584] ss:$8 sps:$4 sm:$0xff]  }
 0x146   : > { %11008 = vmatprep.subr.bf16.mxu0 %v14109_v46  ;;  %v14188_v45 = vld [vmem:[%s16029_s27 + $0x1c84] ss:$8 sps:$4 sm:$0xff]   ;;  %v14183_v46 = vld [vmem:[%s16029_s27 + $0x580] ss:$8 sps:$4 sm:$0xff]  }
 0x148   : > { %10066 = vmatpush1.bf16.msra.mxu1 %v14104_v47  ;;  %v14186_v47 = vld [vmem:[%s16029_s27 + $0x1c80] ss:$8 sps:$4 sm:$0xff]  }
 0x149   : > { %11009 = vmatpush1.bf16.msra.mxu0 %v14107_v48  ;;  %10067 = vmatprep.subr.bf16.mxu1 %v14112_v51  ;;  %v14191_v48 = vld [vmem:[%s16029_s27 + $0x594] ss:$8 sps:$4 sm:$0xff]  }
 0x14a   : > { %11010 = vmatprep.subr.bf16.mxu0 %v14115_v52  ;;  %v14194_v51 = vld [vmem:[%s16029_s27 + $0x1c94] ss:$8 sps:$4 sm:$0xff]   ;;  %v14189_v52 = vld [vmem:[%s16029_s27 + $0x590] ss:$8 sps:$4 sm:$0xff]  }
 0x14c   : > { %10068 = vmatpush1.bf16.msra.mxu1 %v14110_v53  ;;  %v14192_v53 = vld [vmem:[%s16029_s27 + $0x1c90] ss:$8 sps:$4 sm:$0xff]  }
 0x14d   : > { %11011 = vmatpush1.bf16.msra.mxu0 %v14113_v54  ;;  %10069 = vmatprep.subr.bf16.mxu1 %v14118_v36  ;;  %v14197_v54 = vld [vmem:[%s16029_s27 + $0x5a4] ss:$8 sps:$4 sm:$0xff]  }
 0x14e   : > { %11012 = vmatprep.subr.bf16.mxu0 %v14121_v40  ;;  %v14200_v36 = vld [vmem:[%s16029_s27 + $0x1ca4] ss:$8 sps:$4 sm:$0xff]   ;;  %v14195_v40 = vld [vmem:[%s16029_s27 + $0x5a0] ss:$8 sps:$4 sm:$0xff]  }
 0x150   : > { %10070 = vmatpush1.bf16.msra.mxu1 %v14116_v27  ;;  %v14198_v27 = vld [vmem:[%s16029_s27 + $0x1ca0] ss:$8 sps:$4 sm:$0xff]  }
 0x151   : > { %11013 = vmatpush1.bf16.msra.mxu0 %v14119_v57  ;;  %10071 = vmatprep.subr.bf16.mxu1 %v14124_v58  ;;  %v14203_v57 = vld [vmem:[%s16029_s27 + $0x5b4] ss:$8 sps:$4 sm:$0xff]  }
 0x152   : > { %11014 = vmatprep.subr.bf16.mxu0 %v14127_v59  ;;  %v14206_v58 = vld [vmem:[%s16029_s27 + $0x1cb4] ss:$8 sps:$4 sm:$0xff]   ;;  %v14201_v59 = vld [vmem:[%s16029_s27 + $0x5b0] ss:$8 sps:$4 sm:$0xff]  }
 0x154   : > { %10072 = vmatpush1.bf16.msra.mxu1 %v14122_v62  ;;  %v14209_v62 = vld [vmem:[%s16029_s27 + $0x5c4] ss:$8 sps:$4 sm:$0xff]  }
 0x155   : > { %11015 = vmatpush1.bf16.msra.mxu0 %v14125_v63  ;;  %10073 = vmatprep.subr.bf16.mxu1 %v14130_v0  ;;  %v14212_v63 = vld [vmem:[%s16029_s27 + $0x1cc4] ss:$8 sps:$4 sm:$0xff]   ;;  %v14207_v0 = vld [vmem:[%s16029_s27 + $0x5c0] ss:$8 sps:$4 sm:$0xff]  }
 0x156   : > { %11016 = vmatprep.subr.bf16.mxu0 %v14133_v1  ;;  %v14210_v1 = vld [vmem:[%s16029_s27 + $0x1cc0] ss:$8 sps:$4 sm:$0xff]  }
 0x158   : > { %10074 = vmatpush1.bf16.msra.mxu1 %v14128_v49  ;;  %v14215_v49 = vld [vmem:[%s16029_s27 + $0x5d4] ss:$8 sps:$4 sm:$0xff]  }
 0x159   : > { %11017 = vmatpush1.bf16.msra.mxu0 %v14131_v41  ;;  %10084 = vmatprep.subr.bf16.mxu1 %v14136_v42  ;;  %v14218_v41 = vld [vmem:[%s16029_s27 + $0x1cd4] ss:$8 sps:$4 sm:$0xff]   ;;  %v14213_v42 = vld [vmem:[%s16029_s27 + $0x5d0] ss:$8 sps:$4 sm:$0xff]  }
 0x15a   : > { %11027 = vmatprep.subr.bf16.mxu0 %v14140_v4  ;;  %v14216_v4 = vld [vmem:[%s16029_s27 + $0x1cd0] ss:$8 sps:$4 sm:$0xff]  }
 0x15b   : > { %10076 = vmatmul.mubr.bf16.vlgmr.msra.gmra.mrb[0].mxu1 %v769_v7  ;;  %v16523_v7 = vld [vmem:[%s16024_s23 + $0x18] sm:$0xff] }
 0x15c   : > { %11019 = vmatmul.mubr.bf16.vlgmr.msra.gmra.mrb[0].mxu0 %v815_v8  ;;  %10085 = vmatpush1.bf16.msra.mxu1 %v14134_v9  ;;  %v506_v8 = vcombine.high %v16439_v60, %v16439_v60  ;;  %v14219_v9 = vld [vmem:[%s16029_s27 + $0x5e0] ss:$8 sps:$4 sm:$0xff]   ;;  %v14225_v60 = vld [vmem:[%s16029_s27 + $0x5f0] ss:$8 sps:$4 sm:$0xff]  }
 0x15d   : > { %11028 = vmatpush1.bf16.msra.mxu0 %v14138_v10  ;;  %10086 = vmatprep.subr.bf16.mxu1 %v14143_v11  ;;  %v14222_v10 = vld [vmem:[%s16029_s27 + $0x1ce0] ss:$8 sps:$4 sm:$0xff]   ;;  %v14227_v11 = vld [vmem:[%s16029_s27 + $0x5f4] ss:$8 sps:$4 sm:$0xff]  }
 0x15e   : > { %11029 = vmatprep.subr.bf16.mxu0 %v14146_v12  ;;  %10116 = vmatprep.mubr.bf16.mxu1 %v772_v13  ;;  %v14230_v12 = vld [vmem:[%s16029_s27 + $0x1cf4] ss:$8 sps:$4 sm:$0xff]   ;;  %v16533_v13 = vrot.slane %v16523_v7, %v16082_v50 }
 0x15f   : > { %11059 = vmatprep.mubr.bf16.mxu0 %v818_v14  ;;  %v16536_v14 = vrot.slane %v506_v8, %v16082_v50  ;;  %v14301_v8 = vld [vmem:[%s16029_s27 + $0x1db0] ss:$8 sps:$4 sm:$0xff]  }
 0x160   : > { %10087 = vmatpush1.bf16.msra.mxu1 %v14141_v55  ;;  %v14228_v55 = vld [vmem:[%s16029_s27 + $0x1cf0] ss:$8 sps:$4 sm:$0xff]  }
 0x161   : > { %11030 = vmatpush1.bf16.msra.mxu0 %v14144_v56  ;;  %10088 = vmatprep.subr.bf16.mxu1 %v14149_v16  ;;  %v14234_v56 = vld [vmem:[%s16029_s27 + $0x604] ss:$8 sps:$4 sm:$0xff]  }
 0x162   : > { %11031 = vmatprep.subr.bf16.mxu0 %v14152_v17  ;;  %v14237_v16 = vld [vmem:[%s16029_s27 + $0x1d04] ss:$8 sps:$4 sm:$0xff]   ;;  %v334_v17 = vcombine.high %v16533_v13, %v16533_v13 }
 0x164   : > { %10089 = vmatpush1.bf16.msra.mxu1 %v14147_v18  ;;  %v522_v18 = vcombine.high %v16536_v14, %v16536_v14 }
 0x165   : > { %11032 = vmatpush1.bf16.msra.mxu0 %v14150_v19  ;;  %10090 = vmatprep.subr.bf16.mxu1 %v14155_v20  ;;  %v771_v19 = vpack.c.bf16 %v16448_v2, %v16448_v2  ;;  %v817_v20 = vpack.c.bf16 %v16452_v3, %v16452_v3  ;;  %v14238_v2 = vld [vmem:[%s16029_s27 + $0x610] ss:$8 sps:$4 sm:$0xff]  }
 0x166   : > { %11033 = vmatprep.subr.bf16.mxu0 %v14158_v21  ;;  %v14232_v21 = vld [vmem:[%s16029_s27 + $0x600] ss:$8 sps:$4 sm:$0xff]   ;;  %v14241_v3 = vld [vmem:[%s16029_s27 + $0x1d10] ss:$8 sps:$4 sm:$0xff]  }
 0x168   : > { %10091 = vmatpush1.bf16.msra.mxu1 %v14153_v22  ;;  %v14235_v22 = vld [vmem:[%s16029_s27 + $0x1d00] ss:$8 sps:$4 sm:$0xff]  }
 0x169   : > { %11034 = vmatpush1.bf16.msra.mxu0 %v14156_v23  ;;  %10092 = vmatprep.subr.bf16.mxu1 %v14161_v24  ;;  %v14240_v23 = vld [vmem:[%s16029_s27 + $0x614] ss:$8 sps:$4 sm:$0xff]  }
 0x16a   : > { %11035 = vmatprep.subr.bf16.mxu0 %v14164_v25  ;;  %v14243_v24 = vld [vmem:[%s16029_s27 + $0x1d14] ss:$8 sps:$4 sm:$0xff]   ;;  %v774_v25 = vpack.c.bf16 %v334_v17, %v334_v17  ;;  %v14318_v17 = vld [vmem:[%s16029_s27 + $0x6e4] ss:$8 sps:$4 sm:$0xff]  }
 0x16c   : > { %10093 = vmatpush1.bf16.msra.mxu1 %v14159_v26  ;;  %v820_v26 = vpack.c.bf16 %v522_v18, %v522_v18  ;;  %v14321_v18 = vld [vmem:[%s16029_s27 + $0x1de4] ss:$8 sps:$4 sm:$0xff]  }
 0x16d   : > { %11036 = vmatpush1.bf16.msra.mxu0 %v14162_v28  ;;  %10094 = vmatprep.subr.bf16.mxu1 %v14167_v29  ;;  %v14246_v28 = vld [vmem:[%s16029_s27 + $0x624] ss:$8 sps:$4 sm:$0xff]  }
 0x16e   : > { %11037 = vmatprep.subr.bf16.mxu0 %v14170_v30  ;;  %v14249_v29 = vld [vmem:[%s16029_s27 + $0x1d24] ss:$8 sps:$4 sm:$0xff]   ;;  %v14244_v30 = vld [vmem:[%s16029_s27 + $0x620] ss:$8 sps:$4 sm:$0xff]  }
 0x170   : > { %10095 = vmatpush1.bf16.msra.mxu1 %v14165_v31  ;;  %v14247_v31 = vld [vmem:[%s16029_s27 + $0x1d20] ss:$8 sps:$4 sm:$0xff]  }
 0x171   : > { %11038 = vmatpush1.bf16.msra.mxu0 %v14168_v32  ;;  %10096 = vmatprep.subr.bf16.mxu1 %v14173_v33  ;;  %v14252_v32 = vld [vmem:[%s16029_s27 + $0x634] ss:$8 sps:$4 sm:$0xff]  }
 0x172   : > { %11039 = vmatprep.subr.bf16.mxu0 %v14176_v34  ;;  %v14255_v33 = vld [vmem:[%s16029_s27 + $0x1d34] ss:$8 sps:$4 sm:$0xff]   ;;  %v14250_v34 = vld [vmem:[%s16029_s27 + $0x630] ss:$8 sps:$4 sm:$0xff]  }
 0x174   : > { %10097 = vmatpush1.bf16.msra.mxu1 %v14171_v35  ;;  %v14253_v35 = vld [vmem:[%s16029_s27 + $0x1d30] ss:$8 sps:$4 sm:$0xff]  }
 0x175   : > { %11040 = vmatpush1.bf16.msra.mxu0 %v14174_v37  ;;  %10098 = vmatprep.subr.bf16.mxu1 %v14179_v38  ;;  %v14258_v37 = vld [vmem:[%s16029_s27 + $0x644] ss:$8 sps:$4 sm:$0xff]  }
 0x176   : > { %11041 = vmatprep.subr.bf16.mxu0 %v14182_v15  ;;  %v14261_v38 = vld [vmem:[%s16029_s27 + $0x1d44] ss:$8 sps:$4 sm:$0xff]   ;;  %v14256_v15 = vld [vmem:[%s16029_s27 + $0x640] ss:$8 sps:$4 sm:$0xff]  }
 0x178   : > { %10099 = vmatpush1.bf16.msra.mxu1 %v14177_v39  ;;  %v14259_v39 = vld [vmem:[%s16029_s27 + $0x1d40] ss:$8 sps:$4 sm:$0xff]  }
 0x179   : > { %11042 = vmatpush1.bf16.msra.mxu0 %v14180_v43  ;;  %10100 = vmatprep.subr.bf16.mxu1 %v14185_v44  ;;  %v14264_v43 = vld [vmem:[%s16029_s27 + $0x654] ss:$8 sps:$4 sm:$0xff]  }
 0x17a   : > { %11043 = vmatprep.subr.bf16.mxu0 %v14188_v45  ;;  %v14267_v44 = vld [vmem:[%s16029_s27 + $0x1d54] ss:$8 sps:$4 sm:$0xff]   ;;  %v14262_v45 = vld [vmem:[%s16029_s27 + $0x650] ss:$8 sps:$4 sm:$0xff]  }
 0x17c   : > { %10101 = vmatpush1.bf16.msra.mxu1 %v14183_v46  ;;  %v14265_v46 = vld [vmem:[%s16029_s27 + $0x1d50] ss:$8 sps:$4 sm:$0xff]  }
 0x17d   : > { %11044 = vmatpush1.bf16.msra.mxu0 %v14186_v47  ;;  %10102 = vmatprep.subr.bf16.mxu1 %v14191_v48  ;;  %v14270_v47 = vld [vmem:[%s16029_s27 + $0x664] ss:$8 sps:$4 sm:$0xff]  }
 0x17e   : > { %11045 = vmatprep.subr.bf16.mxu0 %v14194_v51  ;;  %v14273_v48 = vld [vmem:[%s16029_s27 + $0x1d64] ss:$8 sps:$4 sm:$0xff]   ;;  %v14268_v51 = vld [vmem:[%s16029_s27 + $0x660] ss:$8 sps:$4 sm:$0xff]  }
 0x180   : > { %10103 = vmatpush1.bf16.msra.mxu1 %v14189_v52  ;;  %v14271_v52 = vld [vmem:[%s16029_s27 + $0x1d60] ss:$8 sps:$4 sm:$0xff]  }
 0x181   : > { %11046 = vmatpush1.bf16.msra.mxu0 %v14192_v53  ;;  %10104 = vmatprep.subr.bf16.mxu1 %v14197_v54  ;;  %v14276_v53 = vld [vmem:[%s16029_s27 + $0x674] ss:$8 sps:$4 sm:$0xff]  }
 0x182   : > { %11047 = vmatprep.subr.bf16.mxu0 %v14200_v36  ;;  %v14279_v54 = vld [vmem:[%s16029_s27 + $0x1d74] ss:$8 sps:$4 sm:$0xff]   ;;  %v14274_v36 = vld [vmem:[%s16029_s27 + $0x670] ss:$8 sps:$4 sm:$0xff]  }
 0x184   : > { %10105 = vmatpush1.bf16.msra.mxu1 %v14195_v40  ;;  %v14277_v40 = vld [vmem:[%s16029_s27 + $0x1d70] ss:$8 sps:$4 sm:$0xff]  }
 0x185   : > { %11048 = vmatpush1.bf16.msra.mxu0 %v14198_v27  ;;  %10106 = vmatprep.subr.bf16.mxu1 %v14203_v57  ;;  %v14282_v27 = vld [vmem:[%s16029_s27 + $0x684] ss:$8 sps:$4 sm:$0xff]  }
 0x186   : > { %11049 = vmatprep.subr.bf16.mxu0 %v14206_v58  ;;  %v14285_v57 = vld [vmem:[%s16029_s27 + $0x1d84] ss:$8 sps:$4 sm:$0xff]   ;;  %v14280_v58 = vld [vmem:[%s16029_s27 + $0x680] ss:$8 sps:$4 sm:$0xff]  }
 0x188   : > { %10107 = vmatpush1.bf16.msra.mxu1 %v14201_v59  ;;  %v14283_v59 = vld [vmem:[%s16029_s27 + $0x1d80] ss:$8 sps:$4 sm:$0xff]  }
 0x189   : > { %11050 = vmatpush1.bf16.msra.mxu0 %v14204_v61  ;;  %10108 = vmatprep.subr.bf16.mxu1 %v14209_v62  ;;  %v14288_v61 = vld [vmem:[%s16029_s27 + $0x694] ss:$8 sps:$4 sm:$0xff]  }
 0x18a   : > { %11051 = vmatprep.subr.bf16.mxu0 %v14212_v63  ;;  %v14291_v62 = vld [vmem:[%s16029_s27 + $0x1d94] ss:$8 sps:$4 sm:$0xff]   ;;  %v14286_v63 = vld [vmem:[%s16029_s27 + $0x690] ss:$8 sps:$4 sm:$0xff]  }
 0x18c   : > { %10109 = vmatpush1.bf16.msra.mxu1 %v14207_v0  ;;  %v14289_v0 = vld [vmem:[%s16029_s27 + $0x1d90] ss:$8 sps:$4 sm:$0xff]  }
 0x18d   : > { %11052 = vmatpush1.bf16.msra.mxu0 %v14210_v1  ;;  %10110 = vmatprep.subr.bf16.mxu1 %v14215_v49  ;;  %v14294_v1 = vld [vmem:[%s16029_s27 + $0x6a4] ss:$8 sps:$4 sm:$0xff]  }
 0x18e   : > { %11053 = vmatprep.subr.bf16.mxu0 %v14218_v41  ;;  %v14297_v49 = vld [vmem:[%s16029_s27 + $0x1da4] ss:$8 sps:$4 sm:$0xff]   ;;  %v14292_v41 = vld [vmem:[%s16029_s27 + $0x6a0] ss:$8 sps:$4 sm:$0xff]  }
 0x190   : > { %10111 = vmatpush1.bf16.msra.mxu1 %v14213_v42  ;;  %v14295_v42 = vld [vmem:[%s16029_s27 + $0x1da0] ss:$8 sps:$4 sm:$0xff]  }
 0x191   : > { %11054 = vmatpush1.bf16.msra.mxu0 %v14216_v4  ;;  %10112 = vmatprep.subr.bf16.mxu1 %v14221_v5  ;;  %v14300_v4 = vld [vmem:[%s16029_s27 + $0x6b4] ss:$8 sps:$4 sm:$0xff]  }
 0x192   : > { %11055 = vmatprep.subr.bf16.mxu0 %v14224_v6  ;;  %v14303_v5 = vld [vmem:[%s16029_s27 + $0x1db4] ss:$8 sps:$4 sm:$0xff]   ;;  %v14298_v6 = vld [vmem:[%s16029_s27 + $0x6b0] ss:$8 sps:$4 sm:$0xff]  }
 0x194   : > { %10113 = vmatpush1.bf16.msra.mxu1 %v14219_v9  ;;  %v14306_v9 = vld [vmem:[%s16029_s27 + $0x6c4] ss:$8 sps:$4 sm:$0xff]  }
 0x195   : > { %11056 = vmatpush1.bf16.msra.mxu0 %v14222_v10  ;;  %10114 = vmatprep.subr.bf16.mxu1 %v14227_v11  ;;  %v14309_v10 = vld [vmem:[%s16029_s27 + $0x1dc4] ss:$8 sps:$4 sm:$0xff]   ;;  %v14304_v11 = vld [vmem:[%s16029_s27 + $0x6c0] ss:$8 sps:$4 sm:$0xff]  }
 0x196   : > { %11057 = vmatprep.subr.bf16.mxu0 %v14230_v12  ;;  %v14307_v12 = vld [vmem:[%s16029_s27 + $0x1dc0] ss:$8 sps:$4 sm:$0xff]  }
 0x198   : > { %10115 = vmatpush1.bf16.msra.mxu1 %v14225_v60  ;;  %v14312_v60 = vld [vmem:[%s16029_s27 + $0x6d4] ss:$8 sps:$4 sm:$0xff]  }
 0x199   : > { %11058 = vmatpush1.bf16.msra.mxu0 %v14228_v55  ;;  %10125 = vmatprep.subr.bf16.mxu1 %v14234_v56  ;;  %v14315_v55 = vld [vmem:[%s16029_s27 + $0x1dd4] ss:$8 sps:$4 sm:$0xff]   ;;  %v14310_v56 = vld [vmem:[%s16029_s27 + $0x6d0] ss:$8 sps:$4 sm:$0xff]  }
 0x19a   : > { %11068 = vmatprep.subr.bf16.mxu0 %v14237_v16  ;;  %v14313_v16 = vld [vmem:[%s16029_s27 + $0x1dd0] ss:$8 sps:$4 sm:$0xff]  }
 0x19b   : > { %10117 = vmatmul.mubr.bf16.vlgmr.msra.gmra.mrb[0].mxu1 %v771_v19  ;;  %v16607_v19 = vld [vmem:[%s16024_s23 + $0x78] sm:$0xff] }
 0x19c   : > { %11060 = vmatmul.mubr.bf16.vlgmr.msra.gmra.mrb[0].mxu0 %v817_v20  ;;  %10126 = vmatpush1.bf16.msra.mxu1 %v14232_v21  ;;  %v319_v20 = vcombine.high %v16523_v7, %v16523_v7  ;;  %v14316_v21 = vld [vmem:[%s16029_s27 + $0x6e0] ss:$8 sps:$4 sm:$0xff]   ;;  %v14322_v7 = vld [vmem:[%s16029_s27 + $0x6f0] ss:$8 sps:$4 sm:$0xff]  }
 0x19d   : > { %11069 = vmatpush1.bf16.msra.mxu0 %v14235_v22  ;;  %10127 = vmatprep.subr.bf16.mxu1 %v14240_v23  ;;  %v14319_v22 = vld [vmem:[%s16029_s27 + $0x1de0] ss:$8 sps:$4 sm:$0xff]   ;;  %v14324_v23 = vld [vmem:[%s16029_s27 + $0x6f4] ss:$8 sps:$4 sm:$0xff]  }
 0x19e   : > { %11070 = vmatprep.subr.bf16.mxu0 %v14243_v24  ;;  %10157 = vmatprep.mubr.bf16.mxu1 %v774_v25  ;;  %v14327_v24 = vld [vmem:[%s16029_s27 + $0x1df4] ss:$8 sps:$4 sm:$0xff]   ;;  %v16616_v25 = vrot.slane %v319_v20, %v16082_v50  ;;  %v14398_v20 = vld [vmem:[%s16029_s27 + $0x1eb0] ss:$8 sps:$4 sm:$0xff]  }
 0x19f   : > { %11100 = vmatprep.mubr.bf16.mxu0 %v820_v26  ;;  %v16620_v26 = vrot.slane %v16607_v19, %v16082_v50 }
 0x1a0   : > { %10128 = vmatpush1.bf16.msra.mxu1 %v14238_v2  ;;  %v14325_v2 = vld [vmem:[%s16029_s27 + $0x1df0] ss:$8 sps:$4 sm:$0xff]  }
 0x1a1   : > { %11071 = vmatpush1.bf16.msra.mxu0 %v14241_v3  ;;  %10129 = vmatprep.subr.bf16.mxu1 %v14246_v28  ;;  %v14330_v3 = vld [vmem:[%s16029_s27 + $0x704] ss:$8 sps:$4 sm:$0xff]  }
 0x1a2   : > { %11072 = vmatprep.subr.bf16.mxu0 %v14249_v29  ;;  %v14334_v28 = vld [vmem:[%s16029_s27 + $0x1e04] ss:$8 sps:$4 sm:$0xff]   ;;  %v335_v29 = vcombine.high %v16616_v25, %v16616_v25 }
 0x1a4   : > { %10130 = vmatpush1.bf16.msra.mxu1 %v14244_v30  ;;  %v538_v30 = vcombine.high %v16620_v26, %v16620_v26 }
 0x1a5   : > { %11073 = vmatpush1.bf16.msra.mxu0 %v14247_v31  ;;  %10131 = vmatprep.subr.bf16.mxu1 %v14252_v32  ;;  %v773_v31 = vpack.c.bf16 %v16533_v13, %v16533_v13  ;;  %v819_v32 = vpack.c.bf16 %v16536_v14, %v16536_v14  ;;  %v14335_v13 = vld [vmem:[%s16029_s27 + $0x710] ss:$8 sps:$4 sm:$0xff]  }
 0x1a6   : > { %11074 = vmatprep.subr.bf16.mxu0 %v14255_v33  ;;  %v14328_v33 = vld [vmem:[%s16029_s27 + $0x700] ss:$8 sps:$4 sm:$0xff]   ;;  %v14338_v14 = vld [vmem:[%s16029_s27 + $0x1e10] ss:$8 sps:$4 sm:$0xff]  }
 0x1a8   : > { %10132 = vmatpush1.bf16.msra.mxu1 %v14250_v34  ;;  %v14332_v34 = vld [vmem:[%s16029_s27 + $0x1e00] ss:$8 sps:$4 sm:$0xff]  }
 0x1a9   : > { %11075 = vmatpush1.bf16.msra.mxu0 %v14253_v35  ;;  %10133 = vmatprep.subr.bf16.mxu1 %v14258_v37  ;;  %v14337_v35 = vld [vmem:[%s16029_s27 + $0x714] ss:$8 sps:$4 sm:$0xff]  }
 0x1aa   : > { %11076 = vmatprep.subr.bf16.mxu0 %v14261_v38  ;;  %v14340_v37 = vld [vmem:[%s16029_s27 + $0x1e14] ss:$8 sps:$4 sm:$0xff]   ;;  %v776_v38 = vpack.c.bf16 %v335_v29, %v335_v29  ;;  %v14415_v29 = vld [vmem:[%s16029_s27 + $0x7e4] ss:$8 sps:$4 sm:$0xff]  }
 0x1ac   : > { %10134 = vmatpush1.bf16.msra.mxu1 %v14256_v15  ;;  %v822_v15 = vpack.c.bf16 %v538_v30, %v538_v30  ;;  %v14418_v30 = vld [vmem:[%s16029_s27 + $0x1ee4] ss:$8 sps:$4 sm:$0xff]  }
 0x1ad   : > { %11077 = vmatpush1.bf16.msra.mxu0 %v14259_v39  ;;  %10135 = vmatprep.subr.bf16.mxu1 %v14264_v43  ;;  %v14343_v39 = vld [vmem:[%s16029_s27 + $0x724] ss:$8 sps:$4 sm:$0xff]  }
 0x1ae   : > { %11078 = vmatprep.subr.bf16.mxu0 %v14267_v44  ;;  %v14346_v43 = vld [vmem:[%s16029_s27 + $0x1e24] ss:$8 sps:$4 sm:$0xff]   ;;  %v14341_v44 = vld [vmem:[%s16029_s27 + $0x720] ss:$8 sps:$4 sm:$0xff]  }
 0x1b0   : > { %10136 = vmatpush1.bf16.msra.mxu1 %v14262_v45  ;;  %v14344_v45 = vld [vmem:[%s16029_s27 + $0x1e20] ss:$8 sps:$4 sm:$0xff]  }
 0x1b1   : > { %11079 = vmatpush1.bf16.msra.mxu0 %v14265_v46  ;;  %10137 = vmatprep.subr.bf16.mxu1 %v14270_v47  ;;  %v14349_v46 = vld [vmem:[%s16029_s27 + $0x734] ss:$8 sps:$4 sm:$0xff]  }
 0x1b2   : > { %11080 = vmatprep.subr.bf16.mxu0 %v14273_v48  ;;  %v14352_v47 = vld [vmem:[%s16029_s27 + $0x1e34] ss:$8 sps:$4 sm:$0xff]   ;;  %v14347_v48 = vld [vmem:[%s16029_s27 + $0x730] ss:$8 sps:$4 sm:$0xff]  }
 0x1b4   : > { %10138 = vmatpush1.bf16.msra.mxu1 %v14268_v51  ;;  %v14350_v51 = vld [vmem:[%s16029_s27 + $0x1e30] ss:$8 sps:$4 sm:$0xff]  }
 0x1b5   : > { %11081 = vmatpush1.bf16.msra.mxu0 %v14271_v52  ;;  %10139 = vmatprep.subr.bf16.mxu1 %v14276_v53  ;;  %v14355_v52 = vld [vmem:[%s16029_s27 + $0x744] ss:$8 sps:$4 sm:$0xff]  }
 0x1b6   : > { %11082 = vmatprep.subr.bf16.mxu0 %v14279_v54  ;;  %v14358_v53 = vld [vmem:[%s16029_s27 + $0x1e44] ss:$8 sps:$4 sm:$0xff]   ;;  %v14353_v54 = vld [vmem:[%s16029_s27 + $0x740] ss:$8 sps:$4 sm:$0xff]  }
 0x1b8   : > { %10140 = vmatpush1.bf16.msra.mxu1 %v14274_v36  ;;  %v14356_v36 = vld [vmem:[%s16029_s27 + $0x1e40] ss:$8 sps:$4 sm:$0xff]  }
 0x1b9   : > { %11083 = vmatpush1.bf16.msra.mxu0 %v14277_v40  ;;  %10141 = vmatprep.subr.bf16.mxu1 %v14282_v27  ;;  %v14361_v40 = vld [vmem:[%s16029_s27 + $0x754] ss:$8 sps:$4 sm:$0xff]  }
 0x1ba   : > { %11084 = vmatprep.subr.bf16.mxu0 %v14285_v57  ;;  %v14364_v27 = vld [vmem:[%s16029_s27 + $0x1e54] ss:$8 sps:$4 sm:$0xff]   ;;  %v14359_v57 = vld [vmem:[%s16029_s27 + $0x750] ss:$8 sps:$4 sm:$0xff]  }
 0x1bc   : > { %10142 = vmatpush1.bf16.msra.mxu1 %v14280_v58  ;;  %v14362_v58 = vld [vmem:[%s16029_s27 + $0x1e50] ss:$8 sps:$4 sm:$0xff]  }
 0x1bd   : > { %11085 = vmatpush1.bf16.msra.mxu0 %v14283_v59  ;;  %10143 = vmatprep.subr.bf16.mxu1 %v14288_v61  ;;  %v14367_v59 = vld [vmem:[%s16029_s27 + $0x764] ss:$8 sps:$4 sm:$0xff]  }
 0x1be   : > { %11086 = vmatprep.subr.bf16.mxu0 %v14291_v62  ;;  %v14370_v61 = vld [vmem:[%s16029_s27 + $0x1e64] ss:$8 sps:$4 sm:$0xff]   ;;  %v14365_v62 = vld [vmem:[%s16029_s27 + $0x760] ss:$8 sps:$4 sm:$0xff]  }
 0x1c0   : > { %10144 = vmatpush1.bf16.msra.mxu1 %v14286_v63  ;;  %v14368_v63 = vld [vmem:[%s16029_s27 + $0x1e60] ss:$8 sps:$4 sm:$0xff]  }
 0x1c1   : > { %11087 = vmatpush1.bf16.msra.mxu0 %v14289_v0  ;;  %10145 = vmatprep.subr.bf16.mxu1 %v14294_v1  ;;  %v14373_v0 = vld [vmem:[%s16029_s27 + $0x774] ss:$8 sps:$4 sm:$0xff]  }
 0x1c2   : > { %11088 = vmatprep.subr.bf16.mxu0 %v14297_v49  ;;  %v14376_v1 = vld [vmem:[%s16029_s27 + $0x1e74] ss:$8 sps:$4 sm:$0xff]   ;;  %v14371_v49 = vld [vmem:[%s16029_s27 + $0x770] ss:$8 sps:$4 sm:$0xff]  }
 0x1c4   : > { %10146 = vmatpush1.bf16.msra.mxu1 %v14292_v41  ;;  %v14374_v41 = vld [vmem:[%s16029_s27 + $0x1e70] ss:$8 sps:$4 sm:$0xff]  }
 0x1c5   : > { %11089 = vmatpush1.bf16.msra.mxu0 %v14295_v42  ;;  %10147 = vmatprep.subr.bf16.mxu1 %v14300_v4  ;;  %v14379_v42 = vld [vmem:[%s16029_s27 + $0x784] ss:$8 sps:$4 sm:$0xff]  }
 0x1c6   : > { %11090 = vmatprep.subr.bf16.mxu0 %v14303_v5  ;;  %v14382_v4 = vld [vmem:[%s16029_s27 + $0x1e84] ss:$8 sps:$4 sm:$0xff]   ;;  %v14377_v5 = vld [vmem:[%s16029_s27 + $0x780] ss:$8 sps:$4 sm:$0xff]  }
 0x1c8   : > { %10148 = vmatpush1.bf16.msra.mxu1 %v14298_v6  ;;  %v14380_v6 = vld [vmem:[%s16029_s27 + $0x1e80] ss:$8 sps:$4 sm:$0xff]  }
 0x1c9   : > { %11091 = vmatpush1.bf16.msra.mxu0 %v14301_v8  ;;  %10149 = vmatprep.subr.bf16.mxu1 %v14306_v9  ;;  %v14385_v8 = vld [vmem:[%s16029_s27 + $0x794] ss:$8 sps:$4 sm:$0xff]  }
 0x1ca   : > { %11092 = vmatprep.subr.bf16.mxu0 %v14309_v10  ;;  %v14388_v9 = vld [vmem:[%s16029_s27 + $0x1e94] ss:$8 sps:$4 sm:$0xff]   ;;  %v14383_v10 = vld [vmem:[%s16029_s27 + $0x790] ss:$8 sps:$4 sm:$0xff]  }
 0x1cc   : > { %10150 = vmatpush1.bf16.msra.mxu1 %v14304_v11  ;;  %v14386_v11 = vld [vmem:[%s16029_s27 + $0x1e90] ss:$8 sps:$4 sm:$0xff]  }
 0x1cd   : > { %11093 = vmatpush1.bf16.msra.mxu0 %v14307_v12  ;;  %10151 = vmatprep.subr.bf16.mxu1 %v14312_v60  ;;  %v14391_v12 = vld [vmem:[%s16029_s27 + $0x7a4] ss:$8 sps:$4 sm:$0xff]  }
 0x1ce   : > { %11094 = vmatprep.subr.bf16.mxu0 %v14315_v55  ;;  %v14394_v60 = vld [vmem:[%s16029_s27 + $0x1ea4] ss:$8 sps:$4 sm:$0xff]   ;;  %v14389_v55 = vld [vmem:[%s16029_s27 + $0x7a0] ss:$8 sps:$4 sm:$0xff]  }
 0x1d0   : > { %10152 = vmatpush1.bf16.msra.mxu1 %v14310_v56  ;;  %v14392_v56 = vld [vmem:[%s16029_s27 + $0x1ea0] ss:$8 sps:$4 sm:$0xff]  }
 0x1d1   : > { %11095 = vmatpush1.bf16.msra.mxu0 %v14313_v16  ;;  %10153 = vmatprep.subr.bf16.mxu1 %v14318_v17  ;;  %v14397_v16 = vld [vmem:[%s16029_s27 + $0x7b4] ss:$8 sps:$4 sm:$0xff]  }
 0x1d2   : > { %11096 = vmatprep.subr.bf16.mxu0 %v14321_v18  ;;  %v14400_v17 = vld [vmem:[%s16029_s27 + $0x1eb4] ss:$8 sps:$4 sm:$0xff]   ;;  %v14395_v18 = vld [vmem:[%s16029_s27 + $0x7b0] ss:$8 sps:$4 sm:$0xff]  }
 0x1d4   : > { %10154 = vmatpush1.bf16.msra.mxu1 %v14316_v21  ;;  %v14403_v21 = vld [vmem:[%s16029_s27 + $0x7c4] ss:$8 sps:$4 sm:$0xff]  }
 0x1d5   : > { %11097 = vmatpush1.bf16.msra.mxu0 %v14319_v22  ;;  %10155 = vmatprep.subr.bf16.mxu1 %v14324_v23  ;;  %v14406_v22 = vld [vmem:[%s16029_s27 + $0x1ec4] ss:$8 sps:$4 sm:$0xff]   ;;  %v14401_v23 = vld [vmem:[%s16029_s27 + $0x7c0] ss:$8 sps:$4 sm:$0xff]  }
 0x1d6   : > { %11098 = vmatprep.subr.bf16.mxu0 %v14327_v24  ;;  %v14404_v24 = vld [vmem:[%s16029_s27 + $0x1ec0] ss:$8 sps:$4 sm:$0xff]  }
 0x1d8   : > { %10156 = vmatpush1.bf16.msra.mxu1 %v14322_v7  ;;  %v14409_v7 = vld [vmem:[%s16029_s27 + $0x7d4] ss:$8 sps:$4 sm:$0xff]  }
 0x1d9   : > { %11099 = vmatpush1.bf16.msra.mxu0 %v14325_v2  ;;  %10166 = vmatprep.subr.bf16.mxu1 %v14330_v3  ;;  %v14412_v2 = vld [vmem:[%s16029_s27 + $0x1ed4] ss:$8 sps:$4 sm:$0xff]   ;;  %v14407_v3 = vld [vmem:[%s16029_s27 + $0x7d0] ss:$8 sps:$4 sm:$0xff]  }
 0x1da   : > { %11109 = vmatprep.subr.bf16.mxu0 %v14334_v28  ;;  %v14410_v28 = vld [vmem:[%s16029_s27 + $0x1ed0] ss:$8 sps:$4 sm:$0xff]  }
 0x1db   : > { %10158 = vmatmul.mubr.bf16.vlgmr.msra.gmra.mrb[0].mxu1 %v773_v31  ;;  %v16691_v31 = vld [vmem:[%s16024_s23 + $0x20] sm:$0xff] }
 0x1dc   : > { %11101 = vmatmul.mubr.bf16.vlgmr.msra.gmra.mrb[0].mxu0 %v819_v32  ;;  %10167 = vmatpush1.bf16.msra.mxu1 %v14328_v33  ;;  %v523_v32 = vcombine.high %v16607_v19, %v16607_v19  ;;  %v14413_v33 = vld [vmem:[%s16029_s27 + $0x7e0] ss:$8 sps:$4 sm:$0xff]   ;;  %v14419_v19 = vld [vmem:[%s16029_s27 + $0x7f0] ss:$8 sps:$4 sm:$0xff]  }
 0x1dd   : > { %11110 = vmatpush1.bf16.msra.mxu0 %v14332_v34  ;;  %10168 = vmatprep.subr.bf16.mxu1 %v14337_v35  ;;  %v14416_v34 = vld [vmem:[%s16029_s27 + $0x1ee0] ss:$8 sps:$4 sm:$0xff]   ;;  %v14421_v35 = vld [vmem:[%s16029_s27 + $0x7f4] ss:$8 sps:$4 sm:$0xff]  }
 0x1de   : > { %11111 = vmatprep.subr.bf16.mxu0 %v14340_v37  ;;  %10198 = vmatprep.mubr.bf16.mxu1 %v776_v38  ;;  %v14424_v37 = vld [vmem:[%s16029_s27 + $0x1ef4] ss:$8 sps:$4 sm:$0xff]   ;;  %v16701_v38 = vrot.slane %v16691_v31, %v16082_v50 }
 0x1df   : > { %11141 = vmatprep.mubr.bf16.mxu0 %v822_v15  ;;  %v16704_v15 = vrot.slane %v523_v32, %v16082_v50  ;;  %v14495_v32 = vld [vmem:[%s16029_s27 + $0x1fb0] ss:$8 sps:$4 sm:$0xff]  }
 0x1e0   : > { %10169 = vmatpush1.bf16.msra.mxu1 %v14335_v13  ;;  %v14422_v13 = vld [vmem:[%s16029_s27 + $0x1ef0] ss:$8 sps:$4 sm:$0xff]  }
 0x1e1   : > { %11112 = vmatpush1.bf16.msra.mxu0 %v14338_v14  ;;  %10170 = vmatprep.subr.bf16.mxu1 %v14343_v39  ;;  %v14428_v14 = vld [vmem:[%s16029_s27 + $0x804] ss:$8 sps:$4 sm:$0xff]  }
 0x1e2   : > { %11113 = vmatprep.subr.bf16.mxu0 %v14346_v43  ;;  %v14431_v39 = vld [vmem:[%s16029_s27 + $0x1f04] ss:$8 sps:$4 sm:$0xff]   ;;  %v351_v43 = vcombine.high %v16701_v38, %v16701_v38 }
 0x1e4   : > { %10171 = vmatpush1.bf16.msra.mxu1 %v14341_v44  ;;  %v539_v44 = vcombine.high %v16704_v15, %v16704_v15 }
 0x1e5   : > { %11114 = vmatpush1.bf16.msra.mxu0 %v14344_v45  ;;  %10172 = vmatprep.subr.bf16.mxu1 %v14349_v46  ;;  %v775_v45 = vpack.c.bf16 %v16616_v25, %v16616_v25  ;;  %v821_v46 = vpack.c.bf16 %v16620_v26, %v16620_v26  ;;  %v14432_v25 = vld [vmem:[%s16029_s27 + $0x810] ss:$8 sps:$4 sm:$0xff]  }
 0x1e6   : > { %11115 = vmatprep.subr.bf16.mxu0 %v14352_v47  ;;  %v14426_v47 = vld [vmem:[%s16029_s27 + $0x800] ss:$8 sps:$4 sm:$0xff]   ;;  %v14435_v26 = vld [vmem:[%s16029_s27 + $0x1f10] ss:$8 sps:$4 sm:$0xff]  }
 0x1e8   : > { %10173 = vmatpush1.bf16.msra.mxu1 %v14347_v48  ;;  %v14429_v48 = vld [vmem:[%s16029_s27 + $0x1f00] ss:$8 sps:$4 sm:$0xff]  }
 0x1e9   : > { %11116 = vmatpush1.bf16.msra.mxu0 %v14350_v51  ;;  %10174 = vmatprep.subr.bf16.mxu1 %v14355_v52  ;;  %v14434_v51 = vld [vmem:[%s16029_s27 + $0x814] ss:$8 sps:$4 sm:$0xff]  }
 0x1ea   : > { %11117 = vmatprep.subr.bf16.mxu0 %v14358_v53  ;;  %v14437_v52 = vld [vmem:[%s16029_s27 + $0x1f14] ss:$8 sps:$4 sm:$0xff]   ;;  %v778_v53 = vpack.c.bf16 %v351_v43, %v351_v43  ;;  %v14512_v43 = vld [vmem:[%s16029_s27 + $0x8e4] ss:$8 sps:$4 sm:$0xff]  }
 0x1ec   : > { %10175 = vmatpush1.bf16.msra.mxu1 %v14353_v54  ;;  %v824_v54 = vpack.c.bf16 %v539_v44, %v539_v44  ;;  %v14515_v44 = vld [vmem:[%s16029_s27 + $0x1fe4] ss:$8 sps:$4 sm:$0xff]  }
 0x1ed   : > { %11118 = vmatpush1.bf16.msra.mxu0 %v14356_v36  ;;  %10176 = vmatprep.subr.bf16.mxu1 %v14361_v40  ;;  %v14440_v36 = vld [vmem:[%s16029_s27 + $0x824] ss:$8 sps:$4 sm:$0xff]  }
 0x1ee   : > { %11119 = vmatprep.subr.bf16.mxu0 %v14364_v27  ;;  %v14443_v40 = vld [vmem:[%s16029_s27 + $0x1f24] ss:$8 sps:$4 sm:$0xff]   ;;  %v14438_v27 = vld [vmem:[%s16029_s27 + $0x820] ss:$8 sps:$4 sm:$0xff]  }
 0x1f0   : > { %10177 = vmatpush1.bf16.msra.mxu1 %v14359_v57  ;;  %v14441_v57 = vld [vmem:[%s16029_s27 + $0x1f20] ss:$8 sps:$4 sm:$0xff]  }
 0x1f1   : > { %11120 = vmatpush1.bf16.msra.mxu0 %v14362_v58  ;;  %10178 = vmatprep.subr.bf16.mxu1 %v14367_v59  ;;  %v14446_v58 = vld [vmem:[%s16029_s27 + $0x834] ss:$8 sps:$4 sm:$0xff]  }
 0x1f2   : > { %11121 = vmatprep.subr.bf16.mxu0 %v14370_v61  ;;  %v14449_v59 = vld [vmem:[%s16029_s27 + $0x1f34] ss:$8 sps:$4 sm:$0xff]   ;;  %v14444_v61 = vld [vmem:[%s16029_s27 + $0x830] ss:$8 sps:$4 sm:$0xff]  }
 0x1f4   : > { %10179 = vmatpush1.bf16.msra.mxu1 %v14365_v62  ;;  %v14447_v62 = vld [vmem:[%s16029_s27 + $0x1f30] ss:$8 sps:$4 sm:$0xff]  }
 0x1f5   : > { %11122 = vmatpush1.bf16.msra.mxu0 %v14368_v63  ;;  %10180 = vmatprep.subr.bf16.mxu1 %v14373_v0  ;;  %v14452_v63 = vld [vmem:[%s16029_s27 + $0x844] ss:$8 sps:$4 sm:$0xff]  }
 0x1f6   : > { %11123 = vmatprep.subr.bf16.mxu0 %v14376_v1  ;;  %v14455_v0 = vld [vmem:[%s16029_s27 + $0x1f44] ss:$8 sps:$4 sm:$0xff]   ;;  %v14450_v1 = vld [vmem:[%s16029_s27 + $0x840] ss:$8 sps:$4 sm:$0xff]  }
 0x1f8   : > { %10181 = vmatpush1.bf16.msra.mxu1 %v14371_v49  ;;  %v14453_v49 = vld [vmem:[%s16029_s27 + $0x1f40] ss:$8 sps:$4 sm:$0xff]  }
 0x1f9   : > { %11124 = vmatpush1.bf16.msra.mxu0 %v14374_v41  ;;  %10182 = vmatprep.subr.bf16.mxu1 %v14379_v42  ;;  %v14458_v41 = vld [vmem:[%s16029_s27 + $0x854] ss:$8 sps:$4 sm:$0xff]  }
 0x1fa   : > { %11125 = vmatprep.subr.bf16.mxu0 %v14382_v4  ;;  %v14461_v42 = vld [vmem:[%s16029_s27 + $0x1f54] ss:$8 sps:$4 sm:$0xff]   ;;  %v14456_v4 = vld [vmem:[%s16029_s27 + $0x850] ss:$8 sps:$4 sm:$0xff]  }
 0x1fc   : > { %10183 = vmatpush1.bf16.msra.mxu1 %v14377_v5  ;;  %v14459_v5 = vld [vmem:[%s16029_s27 + $0x1f50] ss:$8 sps:$4 sm:$0xff]  }
 0x1fd   : > { %11126 = vmatpush1.bf16.msra.mxu0 %v14380_v6  ;;  %10184 = vmatprep.subr.bf16.mxu1 %v14385_v8  ;;  %v14464_v6 = vld [vmem:[%s16029_s27 + $0x864] ss:$8 sps:$4 sm:$0xff]  }
 0x1fe   : > { %11127 = vmatprep.subr.bf16.mxu0 %v14388_v9  ;;  %v14467_v8 = vld [vmem:[%s16029_s27 + $0x1f64] ss:$8 sps:$4 sm:$0xff]   ;;  %v14462_v9 = vld [vmem:[%s16029_s27 + $0x860] ss:$8 sps:$4 sm:$0xff]  }
 0x200   : > { %10185 = vmatpush1.bf16.msra.mxu1 %v14383_v10  ;;  %v14465_v10 = vld [vmem:[%s16029_s27 + $0x1f60] ss:$8 sps:$4 sm:$0xff]  }
 0x201   : > { %11128 = vmatpush1.bf16.msra.mxu0 %v14386_v11  ;;  %10186 = vmatprep.subr.bf16.mxu1 %v14391_v12  ;;  %v14470_v11 = vld [vmem:[%s16029_s27 + $0x874] ss:$8 sps:$4 sm:$0xff]  }
 0x202   : > { %11129 = vmatprep.subr.bf16.mxu0 %v14394_v60  ;;  %v14473_v12 = vld [vmem:[%s16029_s27 + $0x1f74] ss:$8 sps:$4 sm:$0xff]   ;;  %v14468_v60 = vld [vmem:[%s16029_s27 + $0x870] ss:$8 sps:$4 sm:$0xff]  }
 0x204   : > { %10187 = vmatpush1.bf16.msra.mxu1 %v14389_v55  ;;  %v14471_v55 = vld [vmem:[%s16029_s27 + $0x1f70] ss:$8 sps:$4 sm:$0xff]  }
 0x205   : > { %11130 = vmatpush1.bf16.msra.mxu0 %v14392_v56  ;;  %10188 = vmatprep.subr.bf16.mxu1 %v14397_v16  ;;  %v14476_v56 = vld [vmem:[%s16029_s27 + $0x884] ss:$8 sps:$4 sm:$0xff]  }
 0x206   : > { %11131 = vmatprep.subr.bf16.mxu0 %v14400_v17  ;;  %v14479_v16 = vld [vmem:[%s16029_s27 + $0x1f84] ss:$8 sps:$4 sm:$0xff]   ;;  %v14474_v17 = vld [vmem:[%s16029_s27 + $0x880] ss:$8 sps:$4 sm:$0xff]  }
 0x208   : > { %10189 = vmatpush1.bf16.msra.mxu1 %v14395_v18  ;;  %v14477_v18 = vld [vmem:[%s16029_s27 + $0x1f80] ss:$8 sps:$4 sm:$0xff]  }
 0x209   : > { %11132 = vmatpush1.bf16.msra.mxu0 %v14398_v20  ;;  %10190 = vmatprep.subr.bf16.mxu1 %v14403_v21  ;;  %v14482_v20 = vld [vmem:[%s16029_s27 + $0x894] ss:$8 sps:$4 sm:$0xff]  }
 0x20a   : > { %11133 = vmatprep.subr.bf16.mxu0 %v14406_v22  ;;  %v14485_v21 = vld [vmem:[%s16029_s27 + $0x1f94] ss:$8 sps:$4 sm:$0xff]   ;;  %v14480_v22 = vld [vmem:[%s16029_s27 + $0x890] ss:$8 sps:$4 sm:$0xff]  }
 0x20c   : > { %10191 = vmatpush1.bf16.msra.mxu1 %v14401_v23  ;;  %v14483_v23 = vld [vmem:[%s16029_s27 + $0x1f90] ss:$8 sps:$4 sm:$0xff]  }
 0x20d   : > { %11134 = vmatpush1.bf16.msra.mxu0 %v14404_v24  ;;  %10192 = vmatprep.subr.bf16.mxu1 %v14409_v7  ;;  %v14488_v24 = vld [vmem:[%s16029_s27 + $0x8a4] ss:$8 sps:$4 sm:$0xff]  }
 0x20e   : > { %11135 = vmatprep.subr.bf16.mxu0 %v14412_v2  ;;  %v14491_v7 = vld [vmem:[%s16029_s27 + $0x1fa4] ss:$8 sps:$4 sm:$0xff]   ;;  %v14486_v2 = vld [vmem:[%s16029_s27 + $0x8a0] ss:$8 sps:$4 sm:$0xff]  }
 0x210   : > { %10193 = vmatpush1.bf16.msra.mxu1 %v14407_v3  ;;  %v14489_v3 = vld [vmem:[%s16029_s27 + $0x1fa0] ss:$8 sps:$4 sm:$0xff]  }
 0x211   : > { %11136 = vmatpush1.bf16.msra.mxu0 %v14410_v28  ;;  %10194 = vmatprep.subr.bf16.mxu1 %v14415_v29  ;;  %v14494_v28 = vld [vmem:[%s16029_s27 + $0x8b4] ss:$8 sps:$4 sm:$0xff]  }
 0x212   : > { %11137 = vmatprep.subr.bf16.mxu0 %v14418_v30  ;;  %v14497_v29 = vld [vmem:[%s16029_s27 + $0x1fb4] ss:$8 sps:$4 sm:$0xff]   ;;  %v14492_v30 = vld [vmem:[%s16029_s27 + $0x8b0] ss:$8 sps:$4 sm:$0xff]  }
 0x214   : > { %10195 = vmatpush1.bf16.msra.mxu1 %v14413_v33  ;;  %v14500_v33 = vld [vmem:[%s16029_s27 + $0x8c4] ss:$8 sps:$4 sm:$0xff]  }
 0x215   : > { %11138 = vmatpush1.bf16.msra.mxu0 %v14416_v34  ;;  %10196 = vmatprep.subr.bf16.mxu1 %v14421_v35  ;;  %v14503_v34 = vld [vmem:[%s16029_s27 + $0x1fc4] ss:$8 sps:$4 sm:$0xff]   ;;  %v14498_v35 = vld [vmem:[%s16029_s27 + $0x8c0] ss:$8 sps:$4 sm:$0xff]  }
 0x216   : > { %11139 = vmatprep.subr.bf16.mxu0 %v14424_v37  ;;  %v14501_v37 = vld [vmem:[%s16029_s27 + $0x1fc0] ss:$8 sps:$4 sm:$0xff]  }
 0x218   : > { %10197 = vmatpush1.bf16.msra.mxu1 %v14419_v19  ;;  %v14506_v19 = vld [vmem:[%s16029_s27 + $0x8d4] ss:$8 sps:$4 sm:$0xff]  }
 0x219   : > { %11140 = vmatpush1.bf16.msra.mxu0 %v14422_v13  ;;  %10207 = vmatprep.subr.bf16.mxu1 %v14428_v14  ;;  %v14509_v13 = vld [vmem:[%s16029_s27 + $0x1fd4] ss:$8 sps:$4 sm:$0xff]   ;;  %v14504_v14 = vld [vmem:[%s16029_s27 + $0x8d0] ss:$8 sps:$4 sm:$0xff]  }
 0x21a   : > { %11150 = vmatprep.subr.bf16.mxu0 %v14431_v39  ;;  %v14507_v39 = vld [vmem:[%s16029_s27 + $0x1fd0] ss:$8 sps:$4 sm:$0xff]  }
 0x21b   : > { %10199 = vmatmul.mubr.bf16.vlgmr.msra.gmra.mrb[0].mxu1 %v775_v45  ;;  %v16775_v45 = vld [vmem:[%s16024_s23 + $0x80] sm:$0xff] }
 0x21c   : > { %11142 = vmatmul.mubr.bf16.vlgmr.msra.gmra.mrb[0].mxu0 %v821_v46  ;;  %10208 = vmatpush1.bf16.msra.mxu1 %v14426_v47  ;;  %v336_v46 = vcombine.high %v16691_v31, %v16691_v31  ;;  %v14510_v47 = vld [vmem:[%s16029_s27 + $0x8e0] ss:$8 sps:$4 sm:$0xff]   ;;  %v14516_v31 = vld [vmem:[%s16029_s27 + $0x8f0] ss:$8 sps:$4 sm:$0xff]  }
 0x21d   : > { %11151 = vmatpush1.bf16.msra.mxu0 %v14429_v48  ;;  %10209 = vmatprep.subr.bf16.mxu1 %v14434_v51  ;;  %v14513_v48 = vld [vmem:[%s16029_s27 + $0x1fe0] ss:$8 sps:$4 sm:$0xff]   ;;  %v14518_v51 = vld [vmem:[%s16029_s27 + $0x8f4] ss:$8 sps:$4 sm:$0xff]  }
 0x21e   : > { %11152 = vmatprep.subr.bf16.mxu0 %v14437_v52  ;;  %10239 = vmatprep.mubr.bf16.mxu1 %v778_v53  ;;  %v14521_v52 = vld [vmem:[%s16029_s27 + $0x1ff4] ss:$8 sps:$4 sm:$0xff]   ;;  %v16784_v53 = vrot.slane %v336_v46, %v16082_v50  ;;  %v14592_v46 = vld [vmem:[%s16029_s27 + $0x20b0] ss:$8 sps:$4 sm:$0xff]  }
 0x21f   : > { %11182 = vmatprep.mubr.bf16.mxu0 %v824_v54  ;;  %v16788_v54 = vrot.slane %v16775_v45, %v16082_v50 }
 0x220   : > { %10210 = vmatpush1.bf16.msra.mxu1 %v14432_v25  ;;  %v14519_v25 = vld [vmem:[%s16029_s27 + $0x1ff0] ss:$8 sps:$4 sm:$0xff]  }
 0x221   : > { %11153 = vmatpush1.bf16.msra.mxu0 %v14435_v26  ;;  %10211 = vmatprep.subr.bf16.mxu1 %v14440_v36  ;;  %v14524_v26 = vld [vmem:[%s16029_s27 + $0x904] ss:$8 sps:$4 sm:$0xff]  }
 0x222   : > { %11154 = vmatprep.subr.bf16.mxu0 %v14443_v40  ;;  %v14528_v36 = vld [vmem:[%s16029_s27 + $0x2004] ss:$8 sps:$4 sm:$0xff]   ;;  %v352_v40 = vcombine.high %v16784_v53, %v16784_v53 }
 0x224   : > { %10212 = vmatpush1.bf16.msra.mxu1 %v14438_v27  ;;  %v555_v27 = vcombine.high %v16788_v54, %v16788_v54 }
 0x225   : > { %11155 = vmatpush1.bf16.msra.mxu0 %v14441_v57  ;;  %10213 = vmatprep.subr.bf16.mxu1 %v14446_v58  ;;  %v777_v57 = vpack.c.bf16 %v16701_v38, %v16701_v38  ;;  %v823_v58 = vpack.c.bf16 %v16704_v15, %v16704_v15  ;;  %v14529_v38 = vld [vmem:[%s16029_s27 + $0x910] ss:$8 sps:$4 sm:$0xff]  }
 0x226   : > { %11156 = vmatprep.subr.bf16.mxu0 %v14449_v59  ;;  %v14522_v59 = vld [vmem:[%s16029_s27 + $0x900] ss:$8 sps:$4 sm:$0xff]   ;;  %v14532_v15 = vld [vmem:[%s16029_s27 + $0x2010] ss:$8 sps:$4 sm:$0xff]  }
 0x228   : > { %10214 = vmatpush1.bf16.msra.mxu1 %v14444_v61  ;;  %v14526_v61 = vld [vmem:[%s16029_s27 + $0x2000] ss:$8 sps:$4 sm:$0xff]  }
 0x229   : > { %11157 = vmatpush1.bf16.msra.mxu0 %v14447_v62  ;;  %10215 = vmatprep.subr.bf16.mxu1 %v14452_v63  ;;  %v14531_v62 = vld [vmem:[%s16029_s27 + $0x914] ss:$8 sps:$4 sm:$0xff]  }
 0x22a   : > { %11158 = vmatprep.subr.bf16.mxu0 %v14455_v0  ;;  %v14534_v63 = vld [vmem:[%s16029_s27 + $0x2014] ss:$8 sps:$4 sm:$0xff]   ;;  %v780_v0 = vpack.c.bf16 %v352_v40, %v352_v40  ;;  %v14609_v40 = vld [vmem:[%s16029_s27 + $0x9e4] ss:$8 sps:$4 sm:$0xff]  }
 0x22c   : > { %10216 = vmatpush1.bf16.msra.mxu1 %v14450_v1  ;;  %v826_v1 = vpack.c.bf16 %v555_v27, %v555_v27  ;;  %v14612_v27 = vld [vmem:[%s16029_s27 + $0x20e4] ss:$8 sps:$4 sm:$0xff]  }
 0x22d   : > { %11159 = vmatpush1.bf16.msra.mxu0 %v14453_v49  ;;  %10217 = vmatprep.subr.bf16.mxu1 %v14458_v41  ;;  %v14537_v49 = vld [vmem:[%s16029_s27 + $0x924] ss:$8 sps:$4 sm:$0xff]  }
 0x22e   : > { %11160 = vmatprep.subr.bf16.mxu0 %v14461_v42  ;;  %v14540_v41 = vld [vmem:[%s16029_s27 + $0x2024] ss:$8 sps:$4 sm:$0xff]   ;;  %v14535_v42 = vld [vmem:[%s16029_s27 + $0x920] ss:$8 sps:$4 sm:$0xff]  }
 0x230   : > { %10218 = vmatpush1.bf16.msra.mxu1 %v14456_v4  ;;  %v14538_v4 = vld [vmem:[%s16029_s27 + $0x2020] ss:$8 sps:$4 sm:$0xff]  }
 0x231   : > { %11161 = vmatpush1.bf16.msra.mxu0 %v14459_v5  ;;  %10219 = vmatprep.subr.bf16.mxu1 %v14464_v6  ;;  %v14543_v5 = vld [vmem:[%s16029_s27 + $0x934] ss:$8 sps:$4 sm:$0xff]  }
 0x232   : > { %11162 = vmatprep.subr.bf16.mxu0 %v14467_v8  ;;  %v14546_v6 = vld [vmem:[%s16029_s27 + $0x2034] ss:$8 sps:$4 sm:$0xff]   ;;  %v14541_v8 = vld [vmem:[%s16029_s27 + $0x930] ss:$8 sps:$4 sm:$0xff]  }
 0x234   : > { %10220 = vmatpush1.bf16.msra.mxu1 %v14462_v9  ;;  %v14544_v9 = vld [vmem:[%s16029_s27 + $0x2030] ss:$8 sps:$4 sm:$0xff]  }
 0x235   : > { %11163 = vmatpush1.bf16.msra.mxu0 %v14465_v10  ;;  %10221 = vmatprep.subr.bf16.mxu1 %v14470_v11  ;;  %v14549_v10 = vld [vmem:[%s16029_s27 + $0x944] ss:$8 sps:$4 sm:$0xff]  }
 0x236   : > { %11164 = vmatprep.subr.bf16.mxu0 %v14473_v12  ;;  %v14552_v11 = vld [vmem:[%s16029_s27 + $0x2044] ss:$8 sps:$4 sm:$0xff]   ;;  %v14547_v12 = vld [vmem:[%s16029_s27 + $0x940] ss:$8 sps:$4 sm:$0xff]  }
 0x238   : > { %10222 = vmatpush1.bf16.msra.mxu1 %v14468_v60  ;;  %v14550_v60 = vld [vmem:[%s16029_s27 + $0x2040] ss:$8 sps:$4 sm:$0xff]  }
 0x239   : > { %11165 = vmatpush1.bf16.msra.mxu0 %v14471_v55  ;;  %10223 = vmatprep.subr.bf16.mxu1 %v14476_v56  ;;  %v14555_v55 = vld [vmem:[%s16029_s27 + $0x954] ss:$8 sps:$4 sm:$0xff]  }
 0x23a   : > { %11166 = vmatprep.subr.bf16.mxu0 %v14479_v16  ;;  %v14558_v56 = vld [vmem:[%s16029_s27 + $0x2054] ss:$8 sps:$4 sm:$0xff]   ;;  %v14553_v16 = vld [vmem:[%s16029_s27 + $0x950] ss:$8 sps:$4 sm:$0xff]  }
 0x23c   : > { %10224 = vmatpush1.bf16.msra.mxu1 %v14474_v17  ;;  %v14556_v17 = vld [vmem:[%s16029_s27 + $0x2050] ss:$8 sps:$4 sm:$0xff]  }
 0x23d   : > { %11167 = vmatpush1.bf16.msra.mxu0 %v14477_v18  ;;  %10225 = vmatprep.subr.bf16.mxu1 %v14482_v20  ;;  %v14561_v18 = vld [vmem:[%s16029_s27 + $0x964] ss:$8 sps:$4 sm:$0xff]  }
 0x23e   : > { %11168 = vmatprep.subr.bf16.mxu0 %v14485_v21  ;;  %v14564_v20 = vld [vmem:[%s16029_s27 + $0x2064] ss:$8 sps:$4 sm:$0xff]   ;;  %v14559_v21 = vld [vmem:[%s16029_s27 + $0x960] ss:$8 sps:$4 sm:$0xff]  }
 0x240   : > { %10226 = vmatpush1.bf16.msra.mxu1 %v14480_v22  ;;  %v14562_v22 = vld [vmem:[%s16029_s27 + $0x2060] ss:$8 sps:$4 sm:$0xff]  }
 0x241   : > { %11169 = vmatpush1.bf16.msra.mxu0 %v14483_v23  ;;  %10227 = vmatprep.subr.bf16.mxu1 %v14488_v24  ;;  %v14567_v23 = vld [vmem:[%s16029_s27 + $0x974] ss:$8 sps:$4 sm:$0xff]  }
 0x242   : > { %11170 = vmatprep.subr.bf16.mxu0 %v14491_v7  ;;  %v14570_v24 = vld [vmem:[%s16029_s27 + $0x2074] ss:$8 sps:$4 sm:$0xff]   ;;  %v14565_v7 = vld [vmem:[%s16029_s27 + $0x970] ss:$8 sps:$4 sm:$0xff]  }
 0x244   : > { %10228 = vmatpush1.bf16.msra.mxu1 %v14486_v2  ;;  %v14568_v2 = vld [vmem:[%s16029_s27 + $0x2070] ss:$8 sps:$4 sm:$0xff]  }
 0x245   : > { %11171 = vmatpush1.bf16.msra.mxu0 %v14489_v3  ;;  %10229 = vmatprep.subr.bf16.mxu1 %v14494_v28  ;;  %v14573_v3 = vld [vmem:[%s16029_s27 + $0x984] ss:$8 sps:$4 sm:$0xff]  }
 0x246   : > { %11172 = vmatprep.subr.bf16.mxu0 %v14497_v29  ;;  %v14576_v28 = vld [vmem:[%s16029_s27 + $0x2084] ss:$8 sps:$4 sm:$0xff]   ;;  %v14571_v29 = vld [vmem:[%s16029_s27 + $0x980] ss:$8 sps:$4 sm:$0xff]  }
 0x248   : > { %10230 = vmatpush1.bf16.msra.mxu1 %v14492_v30  ;;  %v14574_v30 = vld [vmem:[%s16029_s27 + $0x2080] ss:$8 sps:$4 sm:$0xff]  }
 0x249   : > { %11173 = vmatpush1.bf16.msra.mxu0 %v14495_v32  ;;  %10231 = vmatprep.subr.bf16.mxu1 %v14500_v33  ;;  %v14579_v32 = vld [vmem:[%s16029_s27 + $0x994] ss:$8 sps:$4 sm:$0xff]  }
 0x24a   : > { %11174 = vmatprep.subr.bf16.mxu0 %v14503_v34  ;;  %v14582_v33 = vld [vmem:[%s16029_s27 + $0x2094] ss:$8 sps:$4 sm:$0xff]   ;;  %v14577_v34 = vld [vmem:[%s16029_s27 + $0x990] ss:$8 sps:$4 sm:$0xff]  }
 0x24c   : > { %10232 = vmatpush1.bf16.msra.mxu1 %v14498_v35  ;;  %v14580_v35 = vld [vmem:[%s16029_s27 + $0x2090] ss:$8 sps:$4 sm:$0xff]  }
 0x24d   : > { %11175 = vmatpush1.bf16.msra.mxu0 %v14501_v37  ;;  %10233 = vmatprep.subr.bf16.mxu1 %v14506_v19  ;;  %v14585_v37 = vld [vmem:[%s16029_s27 + $0x9a4] ss:$8 sps:$4 sm:$0xff]  }
 0x24e   : > { %11176 = vmatprep.subr.bf16.mxu0 %v14509_v13  ;;  %v14588_v19 = vld [vmem:[%s16029_s27 + $0x20a4] ss:$8 sps:$4 sm:$0xff]   ;;  %v14583_v13 = vld [vmem:[%s16029_s27 + $0x9a0] ss:$8 sps:$4 sm:$0xff]  }
 0x250   : > { %10234 = vmatpush1.bf16.msra.mxu1 %v14504_v14  ;;  %v14586_v14 = vld [vmem:[%s16029_s27 + $0x20a0] ss:$8 sps:$4 sm:$0xff]  }
 0x251   : > { %11177 = vmatpush1.bf16.msra.mxu0 %v14507_v39  ;;  %10235 = vmatprep.subr.bf16.mxu1 %v14512_v43  ;;  %v14591_v39 = vld [vmem:[%s16029_s27 + $0x9b4] ss:$8 sps:$4 sm:$0xff]  }
 0x252   : > { %11178 = vmatprep.subr.bf16.mxu0 %v14515_v44  ;;  %v14594_v43 = vld [vmem:[%s16029_s27 + $0x20b4] ss:$8 sps:$4 sm:$0xff]   ;;  %v14589_v44 = vld [vmem:[%s16029_s27 + $0x9b0] ss:$8 sps:$4 sm:$0xff]  }
 0x254   : > { %10236 = vmatpush1.bf16.msra.mxu1 %v14510_v47  ;;  %v14597_v47 = vld [vmem:[%s16029_s27 + $0x9c4] ss:$8 sps:$4 sm:$0xff]  }
 0x255   : > { %11179 = vmatpush1.bf16.msra.mxu0 %v14513_v48  ;;  %10237 = vmatprep.subr.bf16.mxu1 %v14518_v51  ;;  %v14600_v48 = vld [vmem:[%s16029_s27 + $0x20c4] ss:$8 sps:$4 sm:$0xff]   ;;  %v14595_v51 = vld [vmem:[%s16029_s27 + $0x9c0] ss:$8 sps:$4 sm:$0xff]  }
 0x256   : > { %11180 = vmatprep.subr.bf16.mxu0 %v14521_v52  ;;  %v14598_v52 = vld [vmem:[%s16029_s27 + $0x20c0] ss:$8 sps:$4 sm:$0xff]  }
 0x258   : > { %10238 = vmatpush1.bf16.msra.mxu1 %v14516_v31  ;;  %v14603_v31 = vld [vmem:[%s16029_s27 + $0x9d4] ss:$8 sps:$4 sm:$0xff]  }
 0x259   : > { %11181 = vmatpush1.bf16.msra.mxu0 %v14519_v25  ;;  %10248 = vmatprep.subr.bf16.mxu1 %v14524_v26  ;;  %v14606_v25 = vld [vmem:[%s16029_s27 + $0x20d4] ss:$8 sps:$4 sm:$0xff]   ;;  %v14601_v26 = vld [vmem:[%s16029_s27 + $0x9d0] ss:$8 sps:$4 sm:$0xff]  }
 0x25a   : > { %11191 = vmatprep.subr.bf16.mxu0 %v14528_v36  ;;  %v14604_v36 = vld [vmem:[%s16029_s27 + $0x20d0] ss:$8 sps:$4 sm:$0xff]  }
 0x25b   : > { %10240 = vmatmul.mubr.bf16.vlgmr.msra.gmra.mrb[0].mxu1 %v777_v57  ;;  %v16859_v57 = vld [vmem:[%s16024_s23 + $0x28] sm:$0xff] }
 0x25c   : > { %11183 = vmatmul.mubr.bf16.vlgmr.msra.gmra.mrb[0].mxu0 %v823_v58  ;;  %10249 = vmatpush1.bf16.msra.mxu1 %v14522_v59  ;;  %v540_v58 = vcombine.high %v16775_v45, %v16775_v45  ;;  %v14607_v59 = vld [vmem:[%s16029_s27 + $0x9e0] ss:$8 sps:$4 sm:$0xff]   ;;  %v14613_v45 = vld [vmem:[%s16029_s27 + $0x9f0] ss:$8 sps:$4 sm:$0xff]  }
 0x25d   : > { %11192 = vmatpush1.bf16.msra.mxu0 %v14526_v61  ;;  %10250 = vmatprep.subr.bf16.mxu1 %v14531_v62  ;;  %v14610_v61 = vld [vmem:[%s16029_s27 + $0x20e0] ss:$8 sps:$4 sm:$0xff]   ;;  %v14615_v62 = vld [vmem:[%s16029_s27 + $0x9f4] ss:$8 sps:$4 sm:$0xff]  }
 0x25e   : > { %11193 = vmatprep.subr.bf16.mxu0 %v14534_v63  ;;  %10280 = vmatprep.mubr.bf16.mxu1 %v780_v0  ;;  %v14618_v63 = vld [vmem:[%s16029_s27 + $0x20f4] ss:$8 sps:$4 sm:$0xff]   ;;  %v16869_v0 = vrot.slane %v16859_v57, %v16082_v50 }
 0x25f   : > { %11223 = vmatprep.mubr.bf16.mxu0 %v826_v1  ;;  %v16872_v1 = vrot.slane %v540_v58, %v16082_v50  ;;  %v14689_v58 = vld [vmem:[%s16029_s27 + $0x21b0] ss:$8 sps:$4 sm:$0xff]  }
 0x260   : > { %10251 = vmatpush1.bf16.msra.mxu1 %v14529_v38  ;;  %v14616_v38 = vld [vmem:[%s16029_s27 + $0x20f0] ss:$8 sps:$4 sm:$0xff]  }
 0x261   : > { %11194 = vmatpush1.bf16.msra.mxu0 %v14532_v15  ;;  %10252 = vmatprep.subr.bf16.mxu1 %v14537_v49  ;;  %v14622_v15 = vld [vmem:[%s16029_s27 + $0xa04] ss:$8 sps:$4 sm:$0xff]  }
 0x262   : > { %11195 = vmatprep.subr.bf16.mxu0 %v14540_v41  ;;  %v14625_v49 = vld [vmem:[%s16029_s27 + $0x2104] ss:$8 sps:$4 sm:$0xff]   ;;  %v368_v41 = vcombine.high %v16869_v0, %v16869_v0 }
 0x264   : > { %10253 = vmatpush1.bf16.msra.mxu1 %v14535_v42  ;;  %v556_v42 = vcombine.high %v16872_v1, %v16872_v1 }
 0x265   : > { %11196 = vmatpush1.bf16.msra.mxu0 %v14538_v4  ;;  %10254 = vmatprep.subr.bf16.mxu1 %v14543_v5  ;;  %v779_v4 = vpack.c.bf16 %v16784_v53, %v16784_v53  ;;  %v825_v5 = vpack.c.bf16 %v16788_v54, %v16788_v54  ;;  %v14626_v53 = vld [vmem:[%s16029_s27 + $0xa10] ss:$8 sps:$4 sm:$0xff]  }
 0x266   : > { %11197 = vmatprep.subr.bf16.mxu0 %v14546_v6  ;;  %v14620_v6 = vld [vmem:[%s16029_s27 + $0xa00] ss:$8 sps:$4 sm:$0xff]   ;;  %v14629_v54 = vld [vmem:[%s16029_s27 + $0x2110] ss:$8 sps:$4 sm:$0xff]  }
 0x268   : > { %10255 = vmatpush1.bf16.msra.mxu1 %v14541_v8  ;;  %v14623_v8 = vld [vmem:[%s16029_s27 + $0x2100] ss:$8 sps:$4 sm:$0xff]  }
 0x269   : > { %11198 = vmatpush1.bf16.msra.mxu0 %v14544_v9  ;;  %10256 = vmatprep.subr.bf16.mxu1 %v14549_v10  ;;  %v14628_v9 = vld [vmem:[%s16029_s27 + $0xa14] ss:$8 sps:$4 sm:$0xff]  }
 0x26a   : > { %11199 = vmatprep.subr.bf16.mxu0 %v14552_v11  ;;  %v14631_v10 = vld [vmem:[%s16029_s27 + $0x2114] ss:$8 sps:$4 sm:$0xff]   ;;  %v782_v11 = vpack.c.bf16 %v368_v41, %v368_v41  ;;  %v14706_v41 = vld [vmem:[%s16029_s27 + $0xae4] ss:$8 sps:$4 sm:$0xff]  }
 0x26c   : > { %10257 = vmatpush1.bf16.msra.mxu1 %v14547_v12  ;;  %v828_v12 = vpack.c.bf16 %v556_v42, %v556_v42  ;;  %v14709_v42 = vld [vmem:[%s16029_s27 + $0x21e4] ss:$8 sps:$4 sm:$0xff]  }
 0x26d   : > { %11200 = vmatpush1.bf16.msra.mxu0 %v14550_v60  ;;  %10258 = vmatprep.subr.bf16.mxu1 %v14555_v55  ;;  %v14634_v60 = vld [vmem:[%s16029_s27 + $0xa24] ss:$8 sps:$4 sm:$0xff]  }
 0x26e   : > { %11201 = vmatprep.subr.bf16.mxu0 %v14558_v56  ;;  %v14637_v55 = vld [vmem:[%s16029_s27 + $0x2124] ss:$8 sps:$4 sm:$0xff]   ;;  %v14632_v56 = vld [vmem:[%s16029_s27 + $0xa20] ss:$8 sps:$4 sm:$0xff]  }
 0x270   : > { %10259 = vmatpush1.bf16.msra.mxu1 %v14553_v16  ;;  %v14635_v16 = vld [vmem:[%s16029_s27 + $0x2120] ss:$8 sps:$4 sm:$0xff]  }
 0x271   : > { %11202 = vmatpush1.bf16.msra.mxu0 %v14556_v17  ;;  %10260 = vmatprep.subr.bf16.mxu1 %v14561_v18  ;;  %v14640_v17 = vld [vmem:[%s16029_s27 + $0xa34] ss:$8 sps:$4 sm:$0xff]  }
 0x272   : > { %11203 = vmatprep.subr.bf16.mxu0 %v14564_v20  ;;  %v14643_v18 = vld [vmem:[%s16029_s27 + $0x2134] ss:$8 sps:$4 sm:$0xff]   ;;  %v14638_v20 = vld [vmem:[%s16029_s27 + $0xa30] ss:$8 sps:$4 sm:$0xff]  }
 0x274   : > { %10261 = vmatpush1.bf16.msra.mxu1 %v14559_v21  ;;  %v14641_v21 = vld [vmem:[%s16029_s27 + $0x2130] ss:$8 sps:$4 sm:$0xff]  }
 0x275   : > { %11204 = vmatpush1.bf16.msra.mxu0 %v14562_v22  ;;  %10262 = vmatprep.subr.bf16.mxu1 %v14567_v23  ;;  %v14646_v22 = vld [vmem:[%s16029_s27 + $0xa44] ss:$8 sps:$4 sm:$0xff]  }
 0x276   : > { %11205 = vmatprep.subr.bf16.mxu0 %v14570_v24  ;;  %v14649_v23 = vld [vmem:[%s16029_s27 + $0x2144] ss:$8 sps:$4 sm:$0xff]   ;;  %v14644_v24 = vld [vmem:[%s16029_s27 + $0xa40] ss:$8 sps:$4 sm:$0xff]  }
 0x278   : > { %10263 = vmatpush1.bf16.msra.mxu1 %v14565_v7  ;;  %v14647_v7 = vld [vmem:[%s16029_s27 + $0x2140] ss:$8 sps:$4 sm:$0xff]  }
 0x279   : > { %11206 = vmatpush1.bf16.msra.mxu0 %v14568_v2  ;;  %10264 = vmatprep.subr.bf16.mxu1 %v14573_v3  ;;  %v14652_v2 = vld [vmem:[%s16029_s27 + $0xa54] ss:$8 sps:$4 sm:$0xff]  }
 0x27a   : > { %11207 = vmatprep.subr.bf16.mxu0 %v14576_v28  ;;  %v14655_v3 = vld [vmem:[%s16029_s27 + $0x2154] ss:$8 sps:$4 sm:$0xff]   ;;  %v14650_v28 = vld [vmem:[%s16029_s27 + $0xa50] ss:$8 sps:$4 sm:$0xff]  }
 0x27c   : > { %10265 = vmatpush1.bf16.msra.mxu1 %v14571_v29  ;;  %v14653_v29 = vld [vmem:[%s16029_s27 + $0x2150] ss:$8 sps:$4 sm:$0xff]  }
 0x27d   : > { %11208 = vmatpush1.bf16.msra.mxu0 %v14574_v30  ;;  %10266 = vmatprep.subr.bf16.mxu1 %v14579_v32  ;;  %v14658_v30 = vld [vmem:[%s16029_s27 + $0xa64] ss:$8 sps:$4 sm:$0xff]  }
 0x27e   : > { %11209 = vmatprep.subr.bf16.mxu0 %v14582_v33  ;;  %v14661_v32 = vld [vmem:[%s16029_s27 + $0x2164] ss:$8 sps:$4 sm:$0xff]   ;;  %v14656_v33 = vld [vmem:[%s16029_s27 + $0xa60] ss:$8 sps:$4 sm:$0xff]  }
 0x280   : > { %10267 = vmatpush1.bf16.msra.mxu1 %v14577_v34  ;;  %v14659_v34 = vld [vmem:[%s16029_s27 + $0x2160] ss:$8 sps:$4 sm:$0xff]  }
 0x281   : > { %11210 = vmatpush1.bf16.msra.mxu0 %v14580_v35  ;;  %10268 = vmatprep.subr.bf16.mxu1 %v14585_v37  ;;  %v14664_v35 = vld [vmem:[%s16029_s27 + $0xa74] ss:$8 sps:$4 sm:$0xff]  }
 0x282   : > { %11211 = vmatprep.subr.bf16.mxu0 %v14588_v19  ;;  %v14667_v37 = vld [vmem:[%s16029_s27 + $0x2174] ss:$8 sps:$4 sm:$0xff]   ;;  %v14662_v19 = vld [vmem:[%s16029_s27 + $0xa70] ss:$8 sps:$4 sm:$0xff]  }
 0x284   : > { %10269 = vmatpush1.bf16.msra.mxu1 %v14583_v13  ;;  %v14665_v13 = vld [vmem:[%s16029_s27 + $0x2170] ss:$8 sps:$4 sm:$0xff]  }
 0x285   : > { %11212 = vmatpush1.bf16.msra.mxu0 %v14586_v14  ;;  %10270 = vmatprep.subr.bf16.mxu1 %v14591_v39  ;;  %v14670_v14 = vld [vmem:[%s16029_s27 + $0xa84] ss:$8 sps:$4 sm:$0xff]  }
 0x286   : > { %11213 = vmatprep.subr.bf16.mxu0 %v14594_v43  ;;  %v14673_v39 = vld [vmem:[%s16029_s27 + $0x2184] ss:$8 sps:$4 sm:$0xff]   ;;  %v14668_v43 = vld [vmem:[%s16029_s27 + $0xa80] ss:$8 sps:$4 sm:$0xff]  }
 0x288   : > { %10271 = vmatpush1.bf16.msra.mxu1 %v14589_v44  ;;  %v14671_v44 = vld [vmem:[%s16029_s27 + $0x2180] ss:$8 sps:$4 sm:$0xff]  }
 0x289   : > { %11214 = vmatpush1.bf16.msra.mxu0 %v14592_v46  ;;  %10272 = vmatprep.subr.bf16.mxu1 %v14597_v47  ;;  %v14676_v46 = vld [vmem:[%s16029_s27 + $0xa94] ss:$8 sps:$4 sm:$0xff]  }
 0x28a   : > { %11215 = vmatprep.subr.bf16.mxu0 %v14600_v48  ;;  %v14679_v47 = vld [vmem:[%s16029_s27 + $0x2194] ss:$8 sps:$4 sm:$0xff]   ;;  %v14674_v48 = vld [vmem:[%s16029_s27 + $0xa90] ss:$8 sps:$4 sm:$0xff]  }
 0x28c   : > { %10273 = vmatpush1.bf16.msra.mxu1 %v14595_v51  ;;  %v14677_v51 = vld [vmem:[%s16029_s27 + $0x2190] ss:$8 sps:$4 sm:$0xff]  }
 0x28d   : > { %11216 = vmatpush1.bf16.msra.mxu0 %v14598_v52  ;;  %10274 = vmatprep.subr.bf16.mxu1 %v14603_v31  ;;  %v14682_v52 = vld [vmem:[%s16029_s27 + $0xaa4] ss:$8 sps:$4 sm:$0xff]  }
 0x28e   : > { %11217 = vmatprep.subr.bf16.mxu0 %v14606_v25  ;;  %v14685_v31 = vld [vmem:[%s16029_s27 + $0x21a4] ss:$8 sps:$4 sm:$0xff]   ;;  %v14680_v25 = vld [vmem:[%s16029_s27 + $0xaa0] ss:$8 sps:$4 sm:$0xff]  }
 0x290   : > { %10275 = vmatpush1.bf16.msra.mxu1 %v14601_v26  ;;  %v14683_v26 = vld [vmem:[%s16029_s27 + $0x21a0] ss:$8 sps:$4 sm:$0xff]  }
 0x291   : > { %11218 = vmatpush1.bf16.msra.mxu0 %v14604_v36  ;;  %10276 = vmatprep.subr.bf16.mxu1 %v14609_v40  ;;  %v14688_v36 = vld [vmem:[%s16029_s27 + $0xab4] ss:$8 sps:$4 sm:$0xff]  }
 0x292   : > { %11219 = vmatprep.subr.bf16.mxu0 %v14612_v27  ;;  %v14691_v40 = vld [vmem:[%s16029_s27 + $0x21b4] ss:$8 sps:$4 sm:$0xff]   ;;  %v14686_v27 = vld [vmem:[%s16029_s27 + $0xab0] ss:$8 sps:$4 sm:$0xff]  }
 0x294   : > { %10277 = vmatpush1.bf16.msra.mxu1 %v14607_v59  ;;  %v14694_v59 = vld [vmem:[%s16029_s27 + $0xac4] ss:$8 sps:$4 sm:$0xff]  }
 0x295   : > { %11220 = vmatpush1.bf16.msra.mxu0 %v14610_v61  ;;  %10278 = vmatprep.subr.bf16.mxu1 %v14615_v62  ;;  %v14697_v61 = vld [vmem:[%s16029_s27 + $0x21c4] ss:$8 sps:$4 sm:$0xff]   ;;  %v14692_v62 = vld [vmem:[%s16029_s27 + $0xac0] ss:$8 sps:$4 sm:$0xff]  }
 0x296   : > { %11221 = vmatprep.subr.bf16.mxu0 %v14618_v63  ;;  %v14695_v63 = vld [vmem:[%s16029_s27 + $0x21c0] ss:$8 sps:$4 sm:$0xff]  }
 0x298   : > { %10279 = vmatpush1.bf16.msra.mxu1 %v14613_v45  ;;  %v14700_v45 = vld [vmem:[%s16029_s27 + $0xad4] ss:$8 sps:$4 sm:$0xff]  }
 0x299   : > { %11222 = vmatpush1.bf16.msra.mxu0 %v14616_v38  ;;  %10289 = vmatprep.subr.bf16.mxu1 %v14622_v15  ;;  %v14703_v38 = vld [vmem:[%s16029_s27 + $0x21d4] ss:$8 sps:$4 sm:$0xff]   ;;  %v14698_v15 = vld [vmem:[%s16029_s27 + $0xad0] ss:$8 sps:$4 sm:$0xff]  }
 0x29a   : > { %11232 = vmatprep.subr.bf16.mxu0 %v14625_v49  ;;  %v14701_v49 = vld [vmem:[%s16029_s27 + $0x21d0] ss:$8 sps:$4 sm:$0xff]  }
 0x29b   : > { %10281 = vmatmul.mubr.bf16.vlgmr.msra.gmra.mrb[0].mxu1 %v779_v4  ;;  %v16943_v4 = vld [vmem:[%s16024_s23 + $0x88] sm:$0xff] }
 0x29c   : > { %11224 = vmatmul.mubr.bf16.vlgmr.msra.gmra.mrb[0].mxu0 %v825_v5  ;;  %10290 = vmatpush1.bf16.msra.mxu1 %v14620_v6  ;;  %v353_v5 = vcombine.high %v16859_v57, %v16859_v57  ;;  %v14704_v6 = vld [vmem:[%s16029_s27 + $0xae0] ss:$8 sps:$4 sm:$0xff]   ;;  %v14710_v57 = vld [vmem:[%s16029_s27 + $0xaf0] ss:$8 sps:$4 sm:$0xff]  }
 0x29d   : > { %11233 = vmatpush1.bf16.msra.mxu0 %v14623_v8  ;;  %10291 = vmatprep.subr.bf16.mxu1 %v14628_v9  ;;  %v14707_v8 = vld [vmem:[%s16029_s27 + $0x21e0] ss:$8 sps:$4 sm:$0xff]   ;;  %v14712_v9 = vld [vmem:[%s16029_s27 + $0xaf4] ss:$8 sps:$4 sm:$0xff]  }
 0x29e   : > { %11234 = vmatprep.subr.bf16.mxu0 %v14631_v10  ;;  %10321 = vmatprep.mubr.bf16.mxu1 %v782_v11  ;;  %v14715_v10 = vld [vmem:[%s16029_s27 + $0x21f4] ss:$8 sps:$4 sm:$0xff]   ;;  %v16952_v11 = vrot.slane %v353_v5, %v16082_v50  ;;  %v14786_v5 = vld [vmem:[%s16029_s27 + $0x22b0] ss:$8 sps:$4 sm:$0xff]  }
 0x29f   : > { %11264 = vmatprep.mubr.bf16.mxu0 %v828_v12  ;;  %v16956_v12 = vrot.slane %v16943_v4, %v16082_v50 }
 0x2a0   : > { %10292 = vmatpush1.bf16.msra.mxu1 %v14626_v53  ;;  %v14713_v53 = vld [vmem:[%s16029_s27 + $0x21f0] ss:$8 sps:$4 sm:$0xff]  }
 0x2a1   : > { %11235 = vmatpush1.bf16.msra.mxu0 %v14629_v54  ;;  %10293 = vmatprep.subr.bf16.mxu1 %v14634_v60  ;;  %v14718_v54 = vld [vmem:[%s16029_s27 + $0xb04] ss:$8 sps:$4 sm:$0xff]  }
 0x2a2   : > { %11236 = vmatprep.subr.bf16.mxu0 %v14637_v55  ;;  %v14722_v60 = vld [vmem:[%s16029_s27 + $0x2204] ss:$8 sps:$4 sm:$0xff]   ;;  %v369_v55 = vcombine.high %v16952_v11, %v16952_v11 }
 0x2a4   : > { %10294 = vmatpush1.bf16.msra.mxu1 %v14632_v56  ;;  %v572_v56 = vcombine.high %v16956_v12, %v16956_v12 }
 0x2a5   : > { %11237 = vmatpush1.bf16.msra.mxu0 %v14635_v16  ;;  %10295 = vmatprep.subr.bf16.mxu1 %v14640_v17  ;;  %v781_v16 = vpack.c.bf16 %v16869_v0, %v16869_v0  ;;  %v827_v17 = vpack.c.bf16 %v16872_v1, %v16872_v1  ;;  %v14723_v0 = vld [vmem:[%s16029_s27 + $0xb10] ss:$8 sps:$4 sm:$0xff]  }
 0x2a6   : > { %11238 = vmatprep.subr.bf16.mxu0 %v14643_v18  ;;  %v14716_v18 = vld [vmem:[%s16029_s27 + $0xb00] ss:$8 sps:$4 sm:$0xff]   ;;  %v14726_v1 = vld [vmem:[%s16029_s27 + $0x2210] ss:$8 sps:$4 sm:$0xff]  }
 0x2a8   : > { %10296 = vmatpush1.bf16.msra.mxu1 %v14638_v20  ;;  %v14720_v20 = vld [vmem:[%s16029_s27 + $0x2200] ss:$8 sps:$4 sm:$0xff]  }
 0x2a9   : > { %11239 = vmatpush1.bf16.msra.mxu0 %v14641_v21  ;;  %10297 = vmatprep.subr.bf16.mxu1 %v14646_v22  ;;  %v14725_v21 = vld [vmem:[%s16029_s27 + $0xb14] ss:$8 sps:$4 sm:$0xff]  }
 0x2aa   : > { %11240 = vmatprep.subr.bf16.mxu0 %v14649_v23  ;;  %v14728_v22 = vld [vmem:[%s16029_s27 + $0x2214] ss:$8 sps:$4 sm:$0xff]   ;;  %v784_v23 = vpack.c.bf16 %v369_v55, %v369_v55  ;;  %v14803_v55 = vld [vmem:[%s16029_s27 + $0xbe4] ss:$8 sps:$4 sm:$0xff]  }
 0x2ac   : > { %10298 = vmatpush1.bf16.msra.mxu1 %v14644_v24  ;;  %v830_v24 = vpack.c.bf16 %v572_v56, %v572_v56  ;;  %v14806_v56 = vld [vmem:[%s16029_s27 + $0x22e4] ss:$8 sps:$4 sm:$0xff]  }
 0x2ad   : > { %11241 = vmatpush1.bf16.msra.mxu0 %v14647_v7  ;;  %10299 = vmatprep.subr.bf16.mxu1 %v14652_v2  ;;  %v14731_v7 = vld [vmem:[%s16029_s27 + $0xb24] ss:$8 sps:$4 sm:$0xff]  }
 0x2ae   : > { %11242 = vmatprep.subr.bf16.mxu0 %v14655_v3  ;;  %v14734_v2 = vld [vmem:[%s16029_s27 + $0x2224] ss:$8 sps:$4 sm:$0xff]   ;;  %v14729_v3 = vld [vmem:[%s16029_s27 + $0xb20] ss:$8 sps:$4 sm:$0xff]  }
 0x2b0   : > { %10300 = vmatpush1.bf16.msra.mxu1 %v14650_v28  ;;  %v14732_v28 = vld [vmem:[%s16029_s27 + $0x2220] ss:$8 sps:$4 sm:$0xff]  }
 0x2b1   : > { %11243 = vmatpush1.bf16.msra.mxu0 %v14653_v29  ;;  %10301 = vmatprep.subr.bf16.mxu1 %v14658_v30  ;;  %v14737_v29 = vld [vmem:[%s16029_s27 + $0xb34] ss:$8 sps:$4 sm:$0xff]  }
 0x2b2   : > { %11244 = vmatprep.subr.bf16.mxu0 %v14661_v32  ;;  %v14740_v30 = vld [vmem:[%s16029_s27 + $0x2234] ss:$8 sps:$4 sm:$0xff]   ;;  %v14735_v32 = vld [vmem:[%s16029_s27 + $0xb30] ss:$8 sps:$4 sm:$0xff]  }
 0x2b4   : > { %10302 = vmatpush1.bf16.msra.mxu1 %v14656_v33  ;;  %v14738_v33 = vld [vmem:[%s16029_s27 + $0x2230] ss:$8 sps:$4 sm:$0xff]  }
 0x2b5   : > { %11245 = vmatpush1.bf16.msra.mxu0 %v14659_v34  ;;  %10303 = vmatprep.subr.bf16.mxu1 %v14664_v35  ;;  %v14743_v34 = vld [vmem:[%s16029_s27 + $0xb44] ss:$8 sps:$4 sm:$0xff]  }
 0x2b6   : > { %11246 = vmatprep.subr.bf16.mxu0 %v14667_v37  ;;  %v14746_v35 = vld [vmem:[%s16029_s27 + $0x2244] ss:$8 sps:$4 sm:$0xff]   ;;  %v14741_v37 = vld [vmem:[%s16029_s27 + $0xb40] ss:$8 sps:$4 sm:$0xff]  }
 0x2b8   : > { %10304 = vmatpush1.bf16.msra.mxu1 %v14662_v19  ;;  %v14744_v19 = vld [vmem:[%s16029_s27 + $0x2240] ss:$8 sps:$4 sm:$0xff]  }
 0x2b9   : > { %11247 = vmatpush1.bf16.msra.mxu0 %v14665_v13  ;;  %10305 = vmatprep.subr.bf16.mxu1 %v14670_v14  ;;  %v14749_v13 = vld [vmem:[%s16029_s27 + $0xb54] ss:$8 sps:$4 sm:$0xff]  }
 0x2ba   : > { %11248 = vmatprep.subr.bf16.mxu0 %v14673_v39  ;;  %v14752_v14 = vld [vmem:[%s16029_s27 + $0x2254] ss:$8 sps:$4 sm:$0xff]   ;;  %v14747_v39 = vld [vmem:[%s16029_s27 + $0xb50] ss:$8 sps:$4 sm:$0xff]  }
 0x2bc   : > { %10306 = vmatpush1.bf16.msra.mxu1 %v14668_v43  ;;  %v14750_v43 = vld [vmem:[%s16029_s27 + $0x2250] ss:$8 sps:$4 sm:$0xff]  }
 0x2bd   : > { %11249 = vmatpush1.bf16.msra.mxu0 %v14671_v44  ;;  %10307 = vmatprep.subr.bf16.mxu1 %v14676_v46  ;;  %v14755_v44 = vld [vmem:[%s16029_s27 + $0xb64] ss:$8 sps:$4 sm:$0xff]  }
 0x2be   : > { %11250 = vmatprep.subr.bf16.mxu0 %v14679_v47  ;;  %v14758_v46 = vld [vmem:[%s16029_s27 + $0x2264] ss:$8 sps:$4 sm:$0xff]   ;;  %v14753_v47 = vld [vmem:[%s16029_s27 + $0xb60] ss:$8 sps:$4 sm:$0xff]  }
 0x2c0   : > { %10308 = vmatpush1.bf16.msra.mxu1 %v14674_v48  ;;  %v14756_v48 = vld [vmem:[%s16029_s27 + $0x2260] ss:$8 sps:$4 sm:$0xff]  }
 0x2c1   : > { %11251 = vmatpush1.bf16.msra.mxu0 %v14677_v51  ;;  %10309 = vmatprep.subr.bf16.mxu1 %v14682_v52  ;;  %v14761_v51 = vld [vmem:[%s16029_s27 + $0xb74] ss:$8 sps:$4 sm:$0xff]  }
 0x2c2   : > { %11252 = vmatprep.subr.bf16.mxu0 %v14685_v31  ;;  %v14764_v52 = vld [vmem:[%s16029_s27 + $0x2274] ss:$8 sps:$4 sm:$0xff]   ;;  %v14759_v31 = vld [vmem:[%s16029_s27 + $0xb70] ss:$8 sps:$4 sm:$0xff]  }
 0x2c4   : > { %10310 = vmatpush1.bf16.msra.mxu1 %v14680_v25  ;;  %v14762_v25 = vld [vmem:[%s16029_s27 + $0x2270] ss:$8 sps:$4 sm:$0xff]  }
 0x2c5   : > { %11253 = vmatpush1.bf16.msra.mxu0 %v14683_v26  ;;  %10311 = vmatprep.subr.bf16.mxu1 %v14688_v36  ;;  %v14767_v26 = vld [vmem:[%s16029_s27 + $0xb84] ss:$8 sps:$4 sm:$0xff]  }
 0x2c6   : > { %11254 = vmatprep.subr.bf16.mxu0 %v14691_v40  ;;  %v14770_v36 = vld [vmem:[%s16029_s27 + $0x2284] ss:$8 sps:$4 sm:$0xff]   ;;  %v14765_v40 = vld [vmem:[%s16029_s27 + $0xb80] ss:$8 sps:$4 sm:$0xff]  }
 0x2c8   : > { %10312 = vmatpush1.bf16.msra.mxu1 %v14686_v27  ;;  %v14768_v27 = vld [vmem:[%s16029_s27 + $0x2280] ss:$8 sps:$4 sm:$0xff]  }
 0x2c9   : > { %11255 = vmatpush1.bf16.msra.mxu0 %v14689_v58  ;;  %10313 = vmatprep.subr.bf16.mxu1 %v14694_v59  ;;  %v14773_v58 = vld [vmem:[%s16029_s27 + $0xb94] ss:$8 sps:$4 sm:$0xff]  }
 0x2ca   : > { %11256 = vmatprep.subr.bf16.mxu0 %v14697_v61  ;;  %v14776_v59 = vld [vmem:[%s16029_s27 + $0x2294] ss:$8 sps:$4 sm:$0xff]   ;;  %v14771_v61 = vld [vmem:[%s16029_s27 + $0xb90] ss:$8 sps:$4 sm:$0xff]  }
 0x2cc   : > { %10314 = vmatpush1.bf16.msra.mxu1 %v14692_v62  ;;  %v14774_v62 = vld [vmem:[%s16029_s27 + $0x2290] ss:$8 sps:$4 sm:$0xff]  }
 0x2cd   : > { %11257 = vmatpush1.bf16.msra.mxu0 %v14695_v63  ;;  %10315 = vmatprep.subr.bf16.mxu1 %v14700_v45  ;;  %v14779_v63 = vld [vmem:[%s16029_s27 + $0xba4] ss:$8 sps:$4 sm:$0xff]  }
 0x2ce   : > { %11258 = vmatprep.subr.bf16.mxu0 %v14703_v38  ;;  %v14782_v45 = vld [vmem:[%s16029_s27 + $0x22a4] ss:$8 sps:$4 sm:$0xff]   ;;  %v14777_v38 = vld [vmem:[%s16029_s27 + $0xba0] ss:$8 sps:$4 sm:$0xff]  }
 0x2d0   : > { %10316 = vmatpush1.bf16.msra.mxu1 %v14698_v15  ;;  %v14780_v15 = vld [vmem:[%s16029_s27 + $0x22a0] ss:$8 sps:$4 sm:$0xff]  }
 0x2d1   : > { %11259 = vmatpush1.bf16.msra.mxu0 %v14701_v49  ;;  %10317 = vmatprep.subr.bf16.mxu1 %v14706_v41  ;;  %v14785_v49 = vld [vmem:[%s16029_s27 + $0xbb4] ss:$8 sps:$4 sm:$0xff]  }
 0x2d2   : > { %11260 = vmatprep.subr.bf16.mxu0 %v14709_v42  ;;  %v14788_v41 = vld [vmem:[%s16029_s27 + $0x22b4] ss:$8 sps:$4 sm:$0xff]   ;;  %v14783_v42 = vld [vmem:[%s16029_s27 + $0xbb0] ss:$8 sps:$4 sm:$0xff]  }
 0x2d4   : > { %10318 = vmatpush1.bf16.msra.mxu1 %v14704_v6  ;;  %v14791_v6 = vld [vmem:[%s16029_s27 + $0xbc4] ss:$8 sps:$4 sm:$0xff]  }
 0x2d5   : > { %11261 = vmatpush1.bf16.msra.mxu0 %v14707_v8  ;;  %10319 = vmatprep.subr.bf16.mxu1 %v14712_v9  ;;  %v14794_v8 = vld [vmem:[%s16029_s27 + $0x22c4] ss:$8 sps:$4 sm:$0xff]   ;;  %v14789_v9 = vld [vmem:[%s16029_s27 + $0xbc0] ss:$8 sps:$4 sm:$0xff]  }
 0x2d6   : > { %11262 = vmatprep.subr.bf16.mxu0 %v14715_v10  ;;  %v14792_v10 = vld [vmem:[%s16029_s27 + $0x22c0] ss:$8 sps:$4 sm:$0xff]  }
 0x2d8   : > { %10320 = vmatpush1.bf16.msra.mxu1 %v14710_v57  ;;  %v14797_v57 = vld [vmem:[%s16029_s27 + $0xbd4] ss:$8 sps:$4 sm:$0xff]  }
 0x2d9   : > { %11263 = vmatpush1.bf16.msra.mxu0 %v14713_v53  ;;  %10330 = vmatprep.subr.bf16.mxu1 %v14718_v54  ;;  %v14800_v53 = vld [vmem:[%s16029_s27 + $0x22d4] ss:$8 sps:$4 sm:$0xff]   ;;  %v14795_v54 = vld [vmem:[%s16029_s27 + $0xbd0] ss:$8 sps:$4 sm:$0xff]  }
 0x2da   : > { %11273 = vmatprep.subr.bf16.mxu0 %v14722_v60  ;;  %v14798_v60 = vld [vmem:[%s16029_s27 + $0x22d0] ss:$8 sps:$4 sm:$0xff]  }
 0x2db   : > { %10322 = vmatmul.mubr.bf16.vlgmr.msra.gmra.mrb[0].mxu1 %v781_v16  ;;  %v17027_v16 = vld [vmem:[%s16024_s23 + $0x30] sm:$0xff] }
 0x2dc   : > { %11265 = vmatmul.mubr.bf16.vlgmr.msra.gmra.mrb[0].mxu0 %v827_v17  ;;  %10331 = vmatpush1.bf16.msra.mxu1 %v14716_v18  ;;  %v557_v17 = vcombine.high %v16943_v4, %v16943_v4  ;;  %v14801_v18 = vld [vmem:[%s16029_s27 + $0xbe0] ss:$8 sps:$4 sm:$0xff]   ;;  %v14807_v4 = vld [vmem:[%s16029_s27 + $0xbf0] ss:$8 sps:$4 sm:$0xff]  }
 0x2dd   : > { %11274 = vmatpush1.bf16.msra.mxu0 %v14720_v20  ;;  %10332 = vmatprep.subr.bf16.mxu1 %v14725_v21  ;;  %v14804_v20 = vld [vmem:[%s16029_s27 + $0x22e0] ss:$8 sps:$4 sm:$0xff]   ;;  %v14809_v21 = vld [vmem:[%s16029_s27 + $0xbf4] ss:$8 sps:$4 sm:$0xff]  }
 0x2de   : > { %11275 = vmatprep.subr.bf16.mxu0 %v14728_v22  ;;  %10362 = vmatprep.mubr.bf16.mxu1 %v784_v23  ;;  %v14812_v22 = vld [vmem:[%s16029_s27 + $0x22f4] ss:$8 sps:$4 sm:$0xff]   ;;  %v17037_v23 = vrot.slane %v17027_v16, %v16082_v50 }
 0x2df   : > { %11305 = vmatprep.mubr.bf16.mxu0 %v830_v24  ;;  %v17040_v24 = vrot.slane %v557_v17, %v16082_v50  ;;  %v14883_v17 = vld [vmem:[%s16029_s27 + $0x23b0] ss:$8 sps:$4 sm:$0xff]  }
 0x2e0   : > { %10333 = vmatpush1.bf16.msra.mxu1 %v14723_v0  ;;  %v14810_v0 = vld [vmem:[%s16029_s27 + $0x22f0] ss:$8 sps:$4 sm:$0xff]  }
 0x2e1   : > { %11276 = vmatpush1.bf16.msra.mxu0 %v14726_v1  ;;  %10334 = vmatprep.subr.bf16.mxu1 %v14731_v7  ;;  %v14816_v1 = vld [vmem:[%s16029_s27 + $0xc04] ss:$8 sps:$4 sm:$0xff]  }
 0x2e2   : > { %11277 = vmatprep.subr.bf16.mxu0 %v14734_v2  ;;  %v14819_v7 = vld [vmem:[%s16029_s27 + $0x2304] ss:$8 sps:$4 sm:$0xff]   ;;  %v385_v2 = vcombine.high %v17037_v23, %v17037_v23 }
 0x2e4   : > { %10335 = vmatpush1.bf16.msra.mxu1 %v14729_v3  ;;  %v573_v3 = vcombine.high %v17040_v24, %v17040_v24 }
 0x2e5   : > { %11278 = vmatpush1.bf16.msra.mxu0 %v14732_v28  ;;  %10336 = vmatprep.subr.bf16.mxu1 %v14737_v29  ;;  %v783_v28 = vpack.c.bf16 %v16952_v11, %v16952_v11  ;;  %v829_v29 = vpack.c.bf16 %v16956_v12, %v16956_v12  ;;  %v14820_v11 = vld [vmem:[%s16029_s27 + $0xc10] ss:$8 sps:$4 sm:$0xff]  }
 0x2e6   : > { %11279 = vmatprep.subr.bf16.mxu0 %v14740_v30  ;;  %v14814_v30 = vld [vmem:[%s16029_s27 + $0xc00] ss:$8 sps:$4 sm:$0xff]   ;;  %v14823_v12 = vld [vmem:[%s16029_s27 + $0x2310] ss:$8 sps:$4 sm:$0xff]  }
 0x2e8   : > { %10337 = vmatpush1.bf16.msra.mxu1 %v14735_v32  ;;  %v14817_v32 = vld [vmem:[%s16029_s27 + $0x2300] ss:$8 sps:$4 sm:$0xff]  }
 0x2e9   : > { %11280 = vmatpush1.bf16.msra.mxu0 %v14738_v33  ;;  %10338 = vmatprep.subr.bf16.mxu1 %v14743_v34  ;;  %v14822_v33 = vld [vmem:[%s16029_s27 + $0xc14] ss:$8 sps:$4 sm:$0xff]  }
 0x2ea   : > { %11281 = vmatprep.subr.bf16.mxu0 %v14746_v35  ;;  %v14825_v34 = vld [vmem:[%s16029_s27 + $0x2314] ss:$8 sps:$4 sm:$0xff]   ;;  %v786_v35 = vpack.c.bf16 %v385_v2, %v385_v2  ;;  %v14900_v2 = vld [vmem:[%s16029_s27 + $0xce4] ss:$8 sps:$4 sm:$0xff]  }
 0x2ec   : > { %10339 = vmatpush1.bf16.msra.mxu1 %v14741_v37  ;;  %v832_v37 = vpack.c.bf16 %v573_v3, %v573_v3  ;;  %v14903_v3 = vld [vmem:[%s16029_s27 + $0x23e4] ss:$8 sps:$4 sm:$0xff]  }
 0x2ed   : > { %11282 = vmatpush1.bf16.msra.mxu0 %v14744_v19  ;;  %10340 = vmatprep.subr.bf16.mxu1 %v14749_v13  ;;  %v14828_v19 = vld [vmem:[%s16029_s27 + $0xc24] ss:$8 sps:$4 sm:$0xff]  }
 0x2ee   : > { %11283 = vmatprep.subr.bf16.mxu0 %v14752_v14  ;;  %v14831_v13 = vld [vmem:[%s16029_s27 + $0x2324] ss:$8 sps:$4 sm:$0xff]   ;;  %v14826_v14 = vld [vmem:[%s16029_s27 + $0xc20] ss:$8 sps:$4 sm:$0xff]  }
 0x2f0   : > { %10341 = vmatpush1.bf16.msra.mxu1 %v14747_v39  ;;  %v14829_v39 = vld [vmem:[%s16029_s27 + $0x2320] ss:$8 sps:$4 sm:$0xff]  }
 0x2f1   : > { %11284 = vmatpush1.bf16.msra.mxu0 %v14750_v43  ;;  %10342 = vmatprep.subr.bf16.mxu1 %v14755_v44  ;;  %v14834_v43 = vld [vmem:[%s16029_s27 + $0xc34] ss:$8 sps:$4 sm:$0xff]  }
 0x2f2   : > { %11285 = vmatprep.subr.bf16.mxu0 %v14758_v46  ;;  %v14837_v44 = vld [vmem:[%s16029_s27 + $0x2334] ss:$8 sps:$4 sm:$0xff]   ;;  %v14832_v46 = vld [vmem:[%s16029_s27 + $0xc30] ss:$8 sps:$4 sm:$0xff]  }
 0x2f4   : > { %10343 = vmatpush1.bf16.msra.mxu1 %v14753_v47  ;;  %v14835_v47 = vld [vmem:[%s16029_s27 + $0x2330] ss:$8 sps:$4 sm:$0xff]  }
 0x2f5   : > { %11286 = vmatpush1.bf16.msra.mxu0 %v14756_v48  ;;  %10344 = vmatprep.subr.bf16.mxu1 %v14761_v51  ;;  %v14840_v48 = vld [vmem:[%s16029_s27 + $0xc44] ss:$8 sps:$4 sm:$0xff]  }
 0x2f6   : > { %11287 = vmatprep.subr.bf16.mxu0 %v14764_v52  ;;  %v14843_v51 = vld [vmem:[%s16029_s27 + $0x2344] ss:$8 sps:$4 sm:$0xff]   ;;  %v14838_v52 = vld [vmem:[%s16029_s27 + $0xc40] ss:$8 sps:$4 sm:$0xff]  }
 0x2f8   : > { %10345 = vmatpush1.bf16.msra.mxu1 %v14759_v31  ;;  %v14841_v31 = vld [vmem:[%s16029_s27 + $0x2340] ss:$8 sps:$4 sm:$0xff]  }
 0x2f9   : > { %11288 = vmatpush1.bf16.msra.mxu0 %v14762_v25  ;;  %10346 = vmatprep.subr.bf16.mxu1 %v14767_v26  ;;  %v14846_v25 = vld [vmem:[%s16029_s27 + $0xc54] ss:$8 sps:$4 sm:$0xff]  }
 0x2fa   : > { %11289 = vmatprep.subr.bf16.mxu0 %v14770_v36  ;;  %v14849_v26 = vld [vmem:[%s16029_s27 + $0x2354] ss:$8 sps:$4 sm:$0xff]   ;;  %v14844_v36 = vld [vmem:[%s16029_s27 + $0xc50] ss:$8 sps:$4 sm:$0xff]  }
 0x2fc   : > { %10347 = vmatpush1.bf16.msra.mxu1 %v14765_v40  ;;  %v14847_v40 = vld [vmem:[%s16029_s27 + $0x2350] ss:$8 sps:$4 sm:$0xff]  }
 0x2fd   : > { %11290 = vmatpush1.bf16.msra.mxu0 %v14768_v27  ;;  %10348 = vmatprep.subr.bf16.mxu1 %v14773_v58  ;;  %v14852_v27 = vld [vmem:[%s16029_s27 + $0xc64] ss:$8 sps:$4 sm:$0xff]  }
 0x2fe   : > { %11291 = vmatprep.subr.bf16.mxu0 %v14776_v59  ;;  %v14855_v58 = vld [vmem:[%s16029_s27 + $0x2364] ss:$8 sps:$4 sm:$0xff]   ;;  %v14850_v59 = vld [vmem:[%s16029_s27 + $0xc60] ss:$8 sps:$4 sm:$0xff]  }
 0x300   : > { %10349 = vmatpush1.bf16.msra.mxu1 %v14771_v61  ;;  %v14853_v61 = vld [vmem:[%s16029_s27 + $0x2360] ss:$8 sps:$4 sm:$0xff]  }
 0x301   : > { %11292 = vmatpush1.bf16.msra.mxu0 %v14774_v62  ;;  %10350 = vmatprep.subr.bf16.mxu1 %v14779_v63  ;;  %v14858_v62 = vld [vmem:[%s16029_s27 + $0xc74] ss:$8 sps:$4 sm:$0xff]  }
 0x302   : > { %11293 = vmatprep.subr.bf16.mxu0 %v14782_v45  ;;  %v14861_v63 = vld [vmem:[%s16029_s27 + $0x2374] ss:$8 sps:$4 sm:$0xff]   ;;  %v14856_v45 = vld [vmem:[%s16029_s27 + $0xc70] ss:$8 sps:$4 sm:$0xff]  }
 0x304   : > { %10351 = vmatpush1.bf16.msra.mxu1 %v14777_v38  ;;  %v14859_v38 = vld [vmem:[%s16029_s27 + $0x2370] ss:$8 sps:$4 sm:$0xff]  }
 0x305   : > { %11294 = vmatpush1.bf16.msra.mxu0 %v14780_v15  ;;  %10352 = vmatprep.subr.bf16.mxu1 %v14785_v49  ;;  %v14864_v15 = vld [vmem:[%s16029_s27 + $0xc84] ss:$8 sps:$4 sm:$0xff]  }
 0x306   : > { %11295 = vmatprep.subr.bf16.mxu0 %v14788_v41  ;;  %v14867_v49 = vld [vmem:[%s16029_s27 + $0x2384] ss:$8 sps:$4 sm:$0xff]   ;;  %v14862_v41 = vld [vmem:[%s16029_s27 + $0xc80] ss:$8 sps:$4 sm:$0xff]  }
 0x308   : > { %10353 = vmatpush1.bf16.msra.mxu1 %v14783_v42  ;;  %v14865_v42 = vld [vmem:[%s16029_s27 + $0x2380] ss:$8 sps:$4 sm:$0xff]  }
 0x309   : > { %11296 = vmatpush1.bf16.msra.mxu0 %v14786_v5  ;;  %10354 = vmatprep.subr.bf16.mxu1 %v14791_v6  ;;  %v14870_v5 = vld [vmem:[%s16029_s27 + $0xc94] ss:$8 sps:$4 sm:$0xff]  }
 0x30a   : > { %11297 = vmatprep.subr.bf16.mxu0 %v14794_v8  ;;  %v14873_v6 = vld [vmem:[%s16029_s27 + $0x2394] ss:$8 sps:$4 sm:$0xff]   ;;  %v14868_v8 = vld [vmem:[%s16029_s27 + $0xc90] ss:$8 sps:$4 sm:$0xff]  }
 0x30c   : > { %10355 = vmatpush1.bf16.msra.mxu1 %v14789_v9  ;;  %v14871_v9 = vld [vmem:[%s16029_s27 + $0x2390] ss:$8 sps:$4 sm:$0xff]  }
 0x30d   : > { %11298 = vmatpush1.bf16.msra.mxu0 %v14792_v10  ;;  %10356 = vmatprep.subr.bf16.mxu1 %v14797_v57  ;;  %v14876_v10 = vld [vmem:[%s16029_s27 + $0xca4] ss:$8 sps:$4 sm:$0xff]  }
 0x30e   : > { %11299 = vmatprep.subr.bf16.mxu0 %v14800_v53  ;;  %v14879_v57 = vld [vmem:[%s16029_s27 + $0x23a4] ss:$8 sps:$4 sm:$0xff]   ;;  %v14874_v53 = vld [vmem:[%s16029_s27 + $0xca0] ss:$8 sps:$4 sm:$0xff]  }
 0x310   : > { %10357 = vmatpush1.bf16.msra.mxu1 %v14795_v54  ;;  %v14877_v54 = vld [vmem:[%s16029_s27 + $0x23a0] ss:$8 sps:$4 sm:$0xff]  }
 0x311   : > { %11300 = vmatpush1.bf16.msra.mxu0 %v14798_v60  ;;  %10358 = vmatprep.subr.bf16.mxu1 %v14803_v55  ;;  %v14882_v60 = vld [vmem:[%s16029_s27 + $0xcb4] ss:$8 sps:$4 sm:$0xff]  }
 0x312   : > { %11301 = vmatprep.subr.bf16.mxu0 %v14806_v56  ;;  %v14885_v55 = vld [vmem:[%s16029_s27 + $0x23b4] ss:$8 sps:$4 sm:$0xff]   ;;  %v14880_v56 = vld [vmem:[%s16029_s27 + $0xcb0] ss:$8 sps:$4 sm:$0xff]  }
 0x314   : > { %10359 = vmatpush1.bf16.msra.mxu1 %v14801_v18  ;;  %v14888_v18 = vld [vmem:[%s16029_s27 + $0xcc4] ss:$8 sps:$4 sm:$0xff]  }
 0x315   : > { %11302 = vmatpush1.bf16.msra.mxu0 %v14804_v20  ;;  %10360 = vmatprep.subr.bf16.mxu1 %v14809_v21  ;;  %v14891_v20 = vld [vmem:[%s16029_s27 + $0x23c4] ss:$8 sps:$4 sm:$0xff]   ;;  %v14886_v21 = vld [vmem:[%s16029_s27 + $0xcc0] ss:$8 sps:$4 sm:$0xff]  }
 0x316   : > { %11303 = vmatprep.subr.bf16.mxu0 %v14812_v22  ;;  %v14889_v22 = vld [vmem:[%s16029_s27 + $0x23c0] ss:$8 sps:$4 sm:$0xff]  }
 0x318   : > { %10361 = vmatpush1.bf16.msra.mxu1 %v14807_v4  ;;  %v14894_v4 = vld [vmem:[%s16029_s27 + $0xcd4] ss:$8 sps:$4 sm:$0xff]  }
 0x319   : > { %11304 = vmatpush1.bf16.msra.mxu0 %v14810_v0  ;;  %10371 = vmatprep.subr.bf16.mxu1 %v14816_v1  ;;  %v14897_v0 = vld [vmem:[%s16029_s27 + $0x23d4] ss:$8 sps:$4 sm:$0xff]   ;;  %v14892_v1 = vld [vmem:[%s16029_s27 + $0xcd0] ss:$8 sps:$4 sm:$0xff]  }
 0x31a   : > { %11314 = vmatprep.subr.bf16.mxu0 %v14819_v7  ;;  %v14895_v7 = vld [vmem:[%s16029_s27 + $0x23d0] ss:$8 sps:$4 sm:$0xff]  }
 0x31b   : > { %10363 = vmatmul.mubr.bf16.vlgmr.msra.gmra.mrb[0].mxu1 %v783_v28  ;;  %v370_v28 = vcombine.high %v17027_v16, %v17027_v16  ;;  %v14904_v16 = vld [vmem:[%s16029_s27 + $0xcf0] ss:$8 sps:$4 sm:$0xff]  }
 0x31c   : > { %11306 = vmatmul.mubr.bf16.vlgmr.msra.gmra.mrb[0].mxu0 %v829_v29  ;;  %10372 = vmatpush1.bf16.msra.mxu1 %v14814_v30  ;;  %v17113_v29 = vld [vmem:[%s16024_s23 + $0x90] sm:$0xff]  ;;  %v14898_v30 = vld [vmem:[%s16029_s27 + $0xce0] ss:$8 sps:$4 sm:$0xff]  }
 0x31d   : > { %11315 = vmatpush1.bf16.msra.mxu0 %v14817_v32  ;;  %10373 = vmatprep.subr.bf16.mxu1 %v14822_v33  ;;  %v14901_v32 = vld [vmem:[%s16029_s27 + $0x23e0] ss:$8 sps:$4 sm:$0xff]   ;;  %v14906_v33 = vld [vmem:[%s16029_s27 + $0xcf4] ss:$8 sps:$4 sm:$0xff]  }
 0x31e   : > { %11316 = vmatprep.subr.bf16.mxu0 %v14825_v34  ;;  %10403 = vmatprep.mubr.bf16.mxu1 %v786_v35  ;;  %v14909_v34 = vld [vmem:[%s16029_s27 + $0x23f4] ss:$8 sps:$4 sm:$0xff]   ;;  %v17120_v35 = vrot.slane %v370_v28, %v16082_v50  ;;  %v14980_v28 = vld [vmem:[%s16029_s27 + $0x24b0] ss:$8 sps:$4 sm:$0xff]  }
 0x31f   : > { %11346 = vmatprep.mubr.bf16.mxu0 %v832_v37  ;;  %v17124_v37 = vrot.slane %v17113_v29, %v16082_v50 }
 0x320   : > { %10374 = vmatpush1.bf16.msra.mxu1 %v14820_v11  ;;  %v14907_v11 = vld [vmem:[%s16029_s27 + $0x23f0] ss:$8 sps:$4 sm:$0xff]  }
 0x321   : > { %11317 = vmatpush1.bf16.msra.mxu0 %v14823_v12  ;;  %10375 = vmatprep.subr.bf16.mxu1 %v14828_v19  ;;  %v14912_v12 = vld [vmem:[%s16029_s27 + $0xd04] ss:$8 sps:$4 sm:$0xff]  }
 0x322   : > { %11318 = vmatprep.subr.bf16.mxu0 %v14831_v13  ;;  %v14916_v19 = vld [vmem:[%s16029_s27 + $0x2404] ss:$8 sps:$4 sm:$0xff]   ;;  %v386_v13 = vcombine.high %v17120_v35, %v17120_v35 }
 0x324   : > { %10376 = vmatpush1.bf16.msra.mxu1 %v14826_v14  ;;  %v589_v14 = vcombine.high %v17124_v37, %v17124_v37 }
 0x325   : > { %11319 = vmatpush1.bf16.msra.mxu0 %v14829_v39  ;;  %10377 = vmatprep.subr.bf16.mxu1 %v14834_v43  ;;  %v785_v39 = vpack.c.bf16 %v17037_v23, %v17037_v23  ;;  %v831_v43 = vpack.c.bf16 %v17040_v24, %v17040_v24  ;;  %v14917_v23 = vld [vmem:[%s16029_s27 + $0xd10] ss:$8 sps:$4 sm:$0xff]  }
 0x326   : > { %11320 = vmatprep.subr.bf16.mxu0 %v14837_v44  ;;  %v14910_v44 = vld [vmem:[%s16029_s27 + $0xd00] ss:$8 sps:$4 sm:$0xff]   ;;  %v14920_v24 = vld [vmem:[%s16029_s27 + $0x2410] ss:$8 sps:$4 sm:$0xff]  }
 0x328   : > { %10378 = vmatpush1.bf16.msra.mxu1 %v14832_v46  ;;  %v14914_v46 = vld [vmem:[%s16029_s27 + $0x2400] ss:$8 sps:$4 sm:$0xff]  }
 0x329   : > { %11321 = vmatpush1.bf16.msra.mxu0 %v14835_v47  ;;  %10379 = vmatprep.subr.bf16.mxu1 %v14840_v48  ;;  %v14919_v47 = vld [vmem:[%s16029_s27 + $0xd14] ss:$8 sps:$4 sm:$0xff]  }
 0x32a   : > { %11322 = vmatprep.subr.bf16.mxu0 %v14843_v51  ;;  %v14922_v48 = vld [vmem:[%s16029_s27 + $0x2414] ss:$8 sps:$4 sm:$0xff]   ;;  %v788_v51 = vpack.c.bf16 %v386_v13, %v386_v13  ;;  %v14997_v13 = vld [vmem:[%s16029_s27 + $0xde4] ss:$8 sps:$4 sm:$0xff]  }
 0x32c   : > { %10380 = vmatpush1.bf16.msra.mxu1 %v14838_v52  ;;  %v834_v52 = vpack.c.bf16 %v589_v14, %v589_v14  ;;  %v15000_v14 = vld [vmem:[%s16029_s27 + $0x24e4] ss:$8 sps:$4 sm:$0xff]  }
 0x32d   : > { %11323 = vmatpush1.bf16.msra.mxu0 %v14841_v31  ;;  %10381 = vmatprep.subr.bf16.mxu1 %v14846_v25  ;;  %v14925_v31 = vld [vmem:[%s16029_s27 + $0xd24] ss:$8 sps:$4 sm:$0xff]  }
 0x32e   : > { %11324 = vmatprep.subr.bf16.mxu0 %v14849_v26  ;;  %v14928_v25 = vld [vmem:[%s16029_s27 + $0x2424] ss:$8 sps:$4 sm:$0xff]   ;;  %v14923_v26 = vld [vmem:[%s16029_s27 + $0xd20] ss:$8 sps:$4 sm:$0xff]  }
 0x330   : > { %10382 = vmatpush1.bf16.msra.mxu1 %v14844_v36  ;;  %v14926_v36 = vld [vmem:[%s16029_s27 + $0x2420] ss:$8 sps:$4 sm:$0xff]  }
 0x331   : > { %11325 = vmatpush1.bf16.msra.mxu0 %v14847_v40  ;;  %10383 = vmatprep.subr.bf16.mxu1 %v14852_v27  ;;  %v14931_v40 = vld [vmem:[%s16029_s27 + $0xd34] ss:$8 sps:$4 sm:$0xff]  }
 0x332   : > { %11326 = vmatprep.subr.bf16.mxu0 %v14855_v58  ;;  %v14934_v27 = vld [vmem:[%s16029_s27 + $0x2434] ss:$8 sps:$4 sm:$0xff]   ;;  %v14929_v58 = vld [vmem:[%s16029_s27 + $0xd30] ss:$8 sps:$4 sm:$0xff]  }
 0x334   : > { %10384 = vmatpush1.bf16.msra.mxu1 %v14850_v59  ;;  %v14932_v59 = vld [vmem:[%s16029_s27 + $0x2430] ss:$8 sps:$4 sm:$0xff]  }
 0x335   : > { %11327 = vmatpush1.bf16.msra.mxu0 %v14853_v61  ;;  %10385 = vmatprep.subr.bf16.mxu1 %v14858_v62  ;;  %v14937_v61 = vld [vmem:[%s16029_s27 + $0xd44] ss:$8 sps:$4 sm:$0xff]  }
 0x336   : > { %11328 = vmatprep.subr.bf16.mxu0 %v14861_v63  ;;  %v14940_v62 = vld [vmem:[%s16029_s27 + $0x2444] ss:$8 sps:$4 sm:$0xff]   ;;  %v14935_v63 = vld [vmem:[%s16029_s27 + $0xd40] ss:$8 sps:$4 sm:$0xff]  }
 0x338   : > { %10386 = vmatpush1.bf16.msra.mxu1 %v14856_v45  ;;  %v14938_v45 = vld [vmem:[%s16029_s27 + $0x2440] ss:$8 sps:$4 sm:$0xff]  }
 0x339   : > { %11329 = vmatpush1.bf16.msra.mxu0 %v14859_v38  ;;  %10387 = vmatprep.subr.bf16.mxu1 %v14864_v15  ;;  %v14943_v38 = vld [vmem:[%s16029_s27 + $0xd54] ss:$8 sps:$4 sm:$0xff]  }
 0x33a   : > { %11330 = vmatprep.subr.bf16.mxu0 %v14867_v49  ;;  %v14946_v15 = vld [vmem:[%s16029_s27 + $0x2454] ss:$8 sps:$4 sm:$0xff]   ;;  %v14941_v49 = vld [vmem:[%s16029_s27 + $0xd50] ss:$8 sps:$4 sm:$0xff]  }
 0x33c   : > { %10388 = vmatpush1.bf16.msra.mxu1 %v14862_v41  ;;  %v14944_v41 = vld [vmem:[%s16029_s27 + $0x2450] ss:$8 sps:$4 sm:$0xff]  }
 0x33d   : > { %11331 = vmatpush1.bf16.msra.mxu0 %v14865_v42  ;;  %10389 = vmatprep.subr.bf16.mxu1 %v14870_v5  ;;  %v14949_v42 = vld [vmem:[%s16029_s27 + $0xd64] ss:$8 sps:$4 sm:$0xff]  }
 0x33e   : > { %11332 = vmatprep.subr.bf16.mxu0 %v14873_v6  ;;  %v14952_v5 = vld [vmem:[%s16029_s27 + $0x2464] ss:$8 sps:$4 sm:$0xff]   ;;  %v14947_v6 = vld [vmem:[%s16029_s27 + $0xd60] ss:$8 sps:$4 sm:$0xff]  }
 0x340   : > { %10390 = vmatpush1.bf16.msra.mxu1 %v14868_v8  ;;  %v14950_v8 = vld [vmem:[%s16029_s27 + $0x2460] ss:$8 sps:$4 sm:$0xff]  }
 0x341   : > { %11333 = vmatpush1.bf16.msra.mxu0 %v14871_v9  ;;  %10391 = vmatprep.subr.bf16.mxu1 %v14876_v10  ;;  %v14955_v9 = vld [vmem:[%s16029_s27 + $0xd74] ss:$8 sps:$4 sm:$0xff]  }
 0x342   : > { %11334 = vmatprep.subr.bf16.mxu0 %v14879_v57  ;;  %v14958_v10 = vld [vmem:[%s16029_s27 + $0x2474] ss:$8 sps:$4 sm:$0xff]   ;;  %v14953_v57 = vld [vmem:[%s16029_s27 + $0xd70] ss:$8 sps:$4 sm:$0xff]  }
 0x344   : > { %10392 = vmatpush1.bf16.msra.mxu1 %v14874_v53  ;;  %v14956_v53 = vld [vmem:[%s16029_s27 + $0x2470] ss:$8 sps:$4 sm:$0xff]  }
 0x345   : > { %11335 = vmatpush1.bf16.msra.mxu0 %v14877_v54  ;;  %10393 = vmatprep.subr.bf16.mxu1 %v14882_v60  ;;  %v14961_v54 = vld [vmem:[%s16029_s27 + $0xd84] ss:$8 sps:$4 sm:$0xff]  }
 0x346   : > { %11336 = vmatprep.subr.bf16.mxu0 %v14885_v55  ;;  %v14964_v60 = vld [vmem:[%s16029_s27 + $0x2484] ss:$8 sps:$4 sm:$0xff]   ;;  %v14959_v55 = vld [vmem:[%s16029_s27 + $0xd80] ss:$8 sps:$4 sm:$0xff]  }
 0x348   : > { %10394 = vmatpush1.bf16.msra.mxu1 %v14880_v56  ;;  %v14962_v56 = vld [vmem:[%s16029_s27 + $0x2480] ss:$8 sps:$4 sm:$0xff]  }
 0x349   : > { %11337 = vmatpush1.bf16.msra.mxu0 %v14883_v17  ;;  %10395 = vmatprep.subr.bf16.mxu1 %v14888_v18  ;;  %v14967_v17 = vld [vmem:[%s16029_s27 + $0xd94] ss:$8 sps:$4 sm:$0xff]  }
 0x34a   : > { %11338 = vmatprep.subr.bf16.mxu0 %v14891_v20  ;;  %v14970_v18 = vld [vmem:[%s16029_s27 + $0x2494] ss:$8 sps:$4 sm:$0xff]   ;;  %v14965_v20 = vld [vmem:[%s16029_s27 + $0xd90] ss:$8 sps:$4 sm:$0xff]  }
 0x34c   : > { %10396 = vmatpush1.bf16.msra.mxu1 %v14886_v21  ;;  %v14968_v21 = vld [vmem:[%s16029_s27 + $0x2490] ss:$8 sps:$4 sm:$0xff]  }
 0x34d   : > { %11339 = vmatpush1.bf16.msra.mxu0 %v14889_v22  ;;  %10397 = vmatprep.subr.bf16.mxu1 %v14894_v4  ;;  %v14973_v22 = vld [vmem:[%s16029_s27 + $0xda4] ss:$8 sps:$4 sm:$0xff]  }
 0x34e   : > { %11340 = vmatprep.subr.bf16.mxu0 %v14897_v0  ;;  %v14976_v4 = vld [vmem:[%s16029_s27 + $0x24a4] ss:$8 sps:$4 sm:$0xff]   ;;  %v14971_v0 = vld [vmem:[%s16029_s27 + $0xda0] ss:$8 sps:$4 sm:$0xff]  }
 0x350   : > { %10398 = vmatpush1.bf16.msra.mxu1 %v14892_v1  ;;  %v14974_v1 = vld [vmem:[%s16029_s27 + $0x24a0] ss:$8 sps:$4 sm:$0xff]  }
 0x351   : > { %11341 = vmatpush1.bf16.msra.mxu0 %v14895_v7  ;;  %10399 = vmatprep.subr.bf16.mxu1 %v14900_v2  ;;  %v14979_v7 = vld [vmem:[%s16029_s27 + $0xdb4] ss:$8 sps:$4 sm:$0xff]  }
 0x352   : > { %11342 = vmatprep.subr.bf16.mxu0 %v14903_v3  ;;  %v14982_v2 = vld [vmem:[%s16029_s27 + $0x24b4] ss:$8 sps:$4 sm:$0xff]   ;;  %v14977_v3 = vld [vmem:[%s16029_s27 + $0xdb0] ss:$8 sps:$4 sm:$0xff]  }
 0x354   : > { %10400 = vmatpush1.bf16.msra.mxu1 %v14898_v30  ;;  %v14985_v30 = vld [vmem:[%s16029_s27 + $0xdc4] ss:$8 sps:$4 sm:$0xff]  }
 0x355   : > { %11343 = vmatpush1.bf16.msra.mxu0 %v14901_v32  ;;  %10401 = vmatprep.subr.bf16.mxu1 %v14906_v33  ;;  %v14988_v32 = vld [vmem:[%s16029_s27 + $0x24c4] ss:$8 sps:$4 sm:$0xff]   ;;  %v14983_v33 = vld [vmem:[%s16029_s27 + $0xdc0] ss:$8 sps:$4 sm:$0xff]  }
 0x356   : > { %11344 = vmatprep.subr.bf16.mxu0 %v14909_v34  ;;  %v14986_v34 = vld [vmem:[%s16029_s27 + $0x24c0] ss:$8 sps:$4 sm:$0xff]  }
 0x358   : > { %10402 = vmatpush1.bf16.msra.mxu1 %v14904_v16  ;;  %v14991_v16 = vld [vmem:[%s16029_s27 + $0xdd4] ss:$8 sps:$4 sm:$0xff]  }
 0x359   : > { %11345 = vmatpush1.bf16.msra.mxu0 %v14907_v11  ;;  %10412 = vmatprep.subr.bf16.mxu1 %v14912_v12  ;;  %v14994_v11 = vld [vmem:[%s16029_s27 + $0x24d4] ss:$8 sps:$4 sm:$0xff]   ;;  %v14989_v12 = vld [vmem:[%s16029_s27 + $0xdd0] ss:$8 sps:$4 sm:$0xff]  }
 0x35a   : > { %11355 = vmatprep.subr.bf16.mxu0 %v14916_v19  ;;  %v14992_v19 = vld [vmem:[%s16029_s27 + $0x24d0] ss:$8 sps:$4 sm:$0xff]  }
 0x35b   : > { %10404 = vmatmul.mubr.bf16.vlgmr.msra.gmra.mrb[0].mxu1 %v785_v39  ;;  %v574_v39 = vcombine.high %v17113_v29, %v17113_v29  ;;  %v15001_v29 = vld [vmem:[%s16029_s27 + $0xdf0] ss:$8 sps:$4 sm:$0xff]  }
 0x35c   : > { %11347 = vmatmul.mubr.bf16.vlgmr.msra.gmra.mrb[0].mxu0 %v831_v43  ;;  %10413 = vmatpush1.bf16.msra.mxu1 %v14910_v44  ;;  %v17197_v43 = vld [vmem:[%s16024_s23 + $0x38] sm:$0xff]  ;;  %v14995_v44 = vld [vmem:[%s16029_s27 + $0xde0] ss:$8 sps:$4 sm:$0xff]  }
 0x35d   : > { %11356 = vmatpush1.bf16.msra.mxu0 %v14914_v46  ;;  %10414 = vmatprep.subr.bf16.mxu1 %v14919_v47  ;;  %v14998_v46 = vld [vmem:[%s16029_s27 + $0x24e0] ss:$8 sps:$4 sm:$0xff]   ;;  %v15003_v47 = vld [vmem:[%s16029_s27 + $0xdf4] ss:$8 sps:$4 sm:$0xff]  }
 0x35e   : > { %11357 = vmatprep.subr.bf16.mxu0 %v14922_v48  ;;  %10444 = vmatprep.mubr.bf16.mxu1 %v788_v51  ;;  %v15006_v48 = vld [vmem:[%s16029_s27 + $0x24f4] ss:$8 sps:$4 sm:$0xff]   ;;  %v17205_v51 = vrot.slane %v17197_v43, %v16082_v50 }
 0x35f   : > { %11387 = vmatprep.mubr.bf16.mxu0 %v834_v52  ;;  %v17208_v52 = vrot.slane %v574_v39, %v16082_v50  ;;  %v15077_v39 = vld [vmem:[%s16029_s27 + $0x25b0] ss:$8 sps:$4 sm:$0xff]  }
 0x360   : > { %10415 = vmatpush1.bf16.msra.mxu1 %v14917_v23  ;;  %v15004_v23 = vld [vmem:[%s16029_s27 + $0x24f0] ss:$8 sps:$4 sm:$0xff]  }
 0x361   : > { %11358 = vmatpush1.bf16.msra.mxu0 %v14920_v24  ;;  %10416 = vmatprep.subr.bf16.mxu1 %v14925_v31  ;;  %v15010_v24 = vld [vmem:[%s16029_s27 + $0xe04] ss:$8 sps:$4 sm:$0xff]  }
 0x362   : > { %11359 = vmatprep.subr.bf16.mxu0 %v14928_v25  ;;  %v15013_v31 = vld [vmem:[%s16029_s27 + $0x2504] ss:$8 sps:$4 sm:$0xff]   ;;  %v402_v25 = vcombine.high %v17205_v51, %v17205_v51 }
 0x364   : > { %10417 = vmatpush1.bf16.msra.mxu1 %v14923_v26  ;;  %v590_v26 = vcombine.high %v17208_v52, %v17208_v52 }
 0x365   : > { %11360 = vmatpush1.bf16.msra.mxu0 %v14926_v36  ;;  %10418 = vmatprep.subr.bf16.mxu1 %v14931_v40  ;;  %v787_v36 = vpack.c.bf16 %v17120_v35, %v17120_v35  ;;  %v833_v40 = vpack.c.bf16 %v17124_v37, %v17124_v37  ;;  %v15014_v35 = vld [vmem:[%s16029_s27 + $0xe10] ss:$8 sps:$4 sm:$0xff]  }
 0x366   : > { %11361 = vmatprep.subr.bf16.mxu0 %v14934_v27  ;;  %v15008_v27 = vld [vmem:[%s16029_s27 + $0xe00] ss:$8 sps:$4 sm:$0xff]   ;;  %v15017_v37 = vld [vmem:[%s16029_s27 + $0x2510] ss:$8 sps:$4 sm:$0xff]  }
 0x368   : > { %10419 = vmatpush1.bf16.msra.mxu1 %v14929_v58  ;;  %v15011_v58 = vld [vmem:[%s16029_s27 + $0x2500] ss:$8 sps:$4 sm:$0xff]  }
 0x369   : > { %11362 = vmatpush1.bf16.msra.mxu0 %v14932_v59  ;;  %10420 = vmatprep.subr.bf16.mxu1 %v14937_v61  ;;  %v15016_v59 = vld [vmem:[%s16029_s27 + $0xe14] ss:$8 sps:$4 sm:$0xff]  }
 0x36a   : > { %11363 = vmatprep.subr.bf16.mxu0 %v14940_v62  ;;  %v15019_v61 = vld [vmem:[%s16029_s27 + $0x2514] ss:$8 sps:$4 sm:$0xff]   ;;  %v790_v62 = vpack.c.bf16 %v402_v25, %v402_v25  ;;  %v15094_v25 = vld [vmem:[%s16029_s27 + $0xee4] ss:$8 sps:$4 sm:$0xff]  }
 0x36c   : > { %10421 = vmatpush1.bf16.msra.mxu1 %v14935_v63  ;;  %v836_v63 = vpack.c.bf16 %v590_v26, %v590_v26  ;;  %v15097_v26 = vld [vmem:[%s16029_s27 + $0x25e4] ss:$8 sps:$4 sm:$0xff]  }
 0x36d   : > { %11364 = vmatpush1.bf16.msra.mxu0 %v14938_v45  ;;  %10422 = vmatprep.subr.bf16.mxu1 %v14943_v38  ;;  %v15022_v45 = vld [vmem:[%s16029_s27 + $0xe24] ss:$8 sps:$4 sm:$0xff]  }
 0x36e   : > { %11365 = vmatprep.subr.bf16.mxu0 %v14946_v15  ;;  %v15025_v38 = vld [vmem:[%s16029_s27 + $0x2524] ss:$8 sps:$4 sm:$0xff]   ;;  %v15020_v15 = vld [vmem:[%s16029_s27 + $0xe20] ss:$8 sps:$4 sm:$0xff]  }
 0x370   : > { %10423 = vmatpush1.bf16.msra.mxu1 %v14941_v49  ;;  %v15023_v49 = vld [vmem:[%s16029_s27 + $0x2520] ss:$8 sps:$4 sm:$0xff]  }
 0x371   : > { %11366 = vmatpush1.bf16.msra.mxu0 %v14944_v41  ;;  %10424 = vmatprep.subr.bf16.mxu1 %v14949_v42  ;;  %v15028_v41 = vld [vmem:[%s16029_s27 + $0xe34] ss:$8 sps:$4 sm:$0xff]  }
 0x372   : > { %11367 = vmatprep.subr.bf16.mxu0 %v14952_v5  ;;  %v15031_v42 = vld [vmem:[%s16029_s27 + $0x2534] ss:$8 sps:$4 sm:$0xff]   ;;  %v15026_v5 = vld [vmem:[%s16029_s27 + $0xe30] ss:$8 sps:$4 sm:$0xff]  }
 0x374   : > { %10425 = vmatpush1.bf16.msra.mxu1 %v14947_v6  ;;  %v15029_v6 = vld [vmem:[%s16029_s27 + $0x2530] ss:$8 sps:$4 sm:$0xff]  }
 0x375   : > { %11368 = vmatpush1.bf16.msra.mxu0 %v14950_v8  ;;  %10426 = vmatprep.subr.bf16.mxu1 %v14955_v9  ;;  %v15034_v8 = vld [vmem:[%s16029_s27 + $0xe44] ss:$8 sps:$4 sm:$0xff]  }
 0x376   : > { %11369 = vmatprep.subr.bf16.mxu0 %v14958_v10  ;;  %v15037_v9 = vld [vmem:[%s16029_s27 + $0x2544] ss:$8 sps:$4 sm:$0xff]   ;;  %v15032_v10 = vld [vmem:[%s16029_s27 + $0xe40] ss:$8 sps:$4 sm:$0xff]  }
 0x378   : > { %10427 = vmatpush1.bf16.msra.mxu1 %v14953_v57  ;;  %v15035_v57 = vld [vmem:[%s16029_s27 + $0x2540] ss:$8 sps:$4 sm:$0xff]  }
 0x379   : > { %11370 = vmatpush1.bf16.msra.mxu0 %v14956_v53  ;;  %10428 = vmatprep.subr.bf16.mxu1 %v14961_v54  ;;  %v15040_v53 = vld [vmem:[%s16029_s27 + $0xe54] ss:$8 sps:$4 sm:$0xff]  }
 0x37a   : > { %11371 = vmatprep.subr.bf16.mxu0 %v14964_v60  ;;  %v15043_v54 = vld [vmem:[%s16029_s27 + $0x2554] ss:$8 sps:$4 sm:$0xff]   ;;  %v15038_v60 = vld [vmem:[%s16029_s27 + $0xe50] ss:$8 sps:$4 sm:$0xff]  }
 0x37c   : > { %10429 = vmatpush1.bf16.msra.mxu1 %v14959_v55  ;;  %v15041_v55 = vld [vmem:[%s16029_s27 + $0x2550] ss:$8 sps:$4 sm:$0xff]  }
 0x37d   : > { %11372 = vmatpush1.bf16.msra.mxu0 %v14962_v56  ;;  %10430 = vmatprep.subr.bf16.mxu1 %v14967_v17  ;;  %v15046_v56 = vld [vmem:[%s16029_s27 + $0xe64] ss:$8 sps:$4 sm:$0xff]  }
 0x37e   : > { %11373 = vmatprep.subr.bf16.mxu0 %v14970_v18  ;;  %v15049_v17 = vld [vmem:[%s16029_s27 + $0x2564] ss:$8 sps:$4 sm:$0xff]   ;;  %v15044_v18 = vld [vmem:[%s16029_s27 + $0xe60] ss:$8 sps:$4 sm:$0xff]  }
 0x380   : > { %10431 = vmatpush1.bf16.msra.mxu1 %v14965_v20  ;;  %v15047_v20 = vld [vmem:[%s16029_s27 + $0x2560] ss:$8 sps:$4 sm:$0xff]  }
 0x381   : > { %11374 = vmatpush1.bf16.msra.mxu0 %v14968_v21  ;;  %10432 = vmatprep.subr.bf16.mxu1 %v14973_v22  ;;  %v15052_v21 = vld [vmem:[%s16029_s27 + $0xe74] ss:$8 sps:$4 sm:$0xff]  }
 0x382   : > { %11375 = vmatprep.subr.bf16.mxu0 %v14976_v4  ;;  %v15055_v22 = vld [vmem:[%s16029_s27 + $0x2574] ss:$8 sps:$4 sm:$0xff]   ;;  %v15050_v4 = vld [vmem:[%s16029_s27 + $0xe70] ss:$8 sps:$4 sm:$0xff]  }
 0x384   : > { %10433 = vmatpush1.bf16.msra.mxu1 %v14971_v0  ;;  %v15053_v0 = vld [vmem:[%s16029_s27 + $0x2570] ss:$8 sps:$4 sm:$0xff]  }
 0x385   : > { %11376 = vmatpush1.bf16.msra.mxu0 %v14974_v1  ;;  %10434 = vmatprep.subr.bf16.mxu1 %v14979_v7  ;;  %v15058_v1 = vld [vmem:[%s16029_s27 + $0xe84] ss:$8 sps:$4 sm:$0xff]  }
 0x386   : > { %11377 = vmatprep.subr.bf16.mxu0 %v14982_v2  ;;  %v15061_v7 = vld [vmem:[%s16029_s27 + $0x2584] ss:$8 sps:$4 sm:$0xff]   ;;  %v15056_v2 = vld [vmem:[%s16029_s27 + $0xe80] ss:$8 sps:$4 sm:$0xff]  }
 0x388   : > { %10435 = vmatpush1.bf16.msra.mxu1 %v14977_v3  ;;  %v15059_v3 = vld [vmem:[%s16029_s27 + $0x2580] ss:$8 sps:$4 sm:$0xff]  }
 0x389   : > { %11378 = vmatpush1.bf16.msra.mxu0 %v14980_v28  ;;  %10436 = vmatprep.subr.bf16.mxu1 %v14985_v30  ;;  %v15064_v28 = vld [vmem:[%s16029_s27 + $0xe94] ss:$8 sps:$4 sm:$0xff]  }
 0x38a   : > { %11379 = vmatprep.subr.bf16.mxu0 %v14988_v32  ;;  %v15067_v30 = vld [vmem:[%s16029_s27 + $0x2594] ss:$8 sps:$4 sm:$0xff]   ;;  %v15062_v32 = vld [vmem:[%s16029_s27 + $0xe90] ss:$8 sps:$4 sm:$0xff]  }
 0x38c   : > { %10437 = vmatpush1.bf16.msra.mxu1 %v14983_v33  ;;  %v15065_v33 = vld [vmem:[%s16029_s27 + $0x2590] ss:$8 sps:$4 sm:$0xff]  }
 0x38d   : > { %11380 = vmatpush1.bf16.msra.mxu0 %v14986_v34  ;;  %10438 = vmatprep.subr.bf16.mxu1 %v14991_v16  ;;  %v15070_v34 = vld [vmem:[%s16029_s27 + $0xea4] ss:$8 sps:$4 sm:$0xff]  }
 0x38e   : > { %11381 = vmatprep.subr.bf16.mxu0 %v14994_v11  ;;  %v15073_v16 = vld [vmem:[%s16029_s27 + $0x25a4] ss:$8 sps:$4 sm:$0xff]   ;;  %v15068_v11 = vld [vmem:[%s16029_s27 + $0xea0] ss:$8 sps:$4 sm:$0xff]  }
 0x390   : > { %10439 = vmatpush1.bf16.msra.mxu1 %v14989_v12  ;;  %v15071_v12 = vld [vmem:[%s16029_s27 + $0x25a0] ss:$8 sps:$4 sm:$0xff]  }
 0x391   : > { %11382 = vmatpush1.bf16.msra.mxu0 %v14992_v19  ;;  %10440 = vmatprep.subr.bf16.mxu1 %v14997_v13  ;;  %v15076_v19 = vld [vmem:[%s16029_s27 + $0xeb4] ss:$8 sps:$4 sm:$0xff]  }
 0x392   : > { %11383 = vmatprep.subr.bf16.mxu0 %v15000_v14  ;;  %v15079_v13 = vld [vmem:[%s16029_s27 + $0x25b4] ss:$8 sps:$4 sm:$0xff]   ;;  %v15074_v14 = vld [vmem:[%s16029_s27 + $0xeb0] ss:$8 sps:$4 sm:$0xff]  }
 0x394   : > { %10441 = vmatpush1.bf16.msra.mxu1 %v14995_v44  ;;  %v15082_v44 = vld [vmem:[%s16029_s27 + $0xec4] ss:$8 sps:$4 sm:$0xff]  }
 0x395   : > { %11384 = vmatpush1.bf16.msra.mxu0 %v14998_v46  ;;  %10442 = vmatprep.subr.bf16.mxu1 %v15003_v47  ;;  %v15085_v46 = vld [vmem:[%s16029_s27 + $0x25c4] ss:$8 sps:$4 sm:$0xff]   ;;  %v15080_v47 = vld [vmem:[%s16029_s27 + $0xec0] ss:$8 sps:$4 sm:$0xff]  }
 0x396   : > { %11385 = vmatprep.subr.bf16.mxu0 %v15006_v48  ;;  %v15083_v48 = vld [vmem:[%s16029_s27 + $0x25c0] ss:$8 sps:$4 sm:$0xff]  }
 0x398   : > { %10443 = vmatpush1.bf16.msra.mxu1 %v15001_v29  ;;  %v15088_v29 = vld [vmem:[%s16029_s27 + $0xed4] ss:$8 sps:$4 sm:$0xff]  }
 0x399   : > { %11386 = vmatpush1.bf16.msra.mxu0 %v15004_v23  ;;  %10453 = vmatprep.subr.bf16.mxu1 %v15010_v24  ;;  %v15091_v23 = vld [vmem:[%s16029_s27 + $0x25d4] ss:$8 sps:$4 sm:$0xff]   ;;  %v15086_v24 = vld [vmem:[%s16029_s27 + $0xed0] ss:$8 sps:$4 sm:$0xff]  }
 0x39a   : > { %11396 = vmatprep.subr.bf16.mxu0 %v15013_v31  ;;  %v15089_v31 = vld [vmem:[%s16029_s27 + $0x25d0] ss:$8 sps:$4 sm:$0xff]  }
 0x39b   : > { %10445 = vmatmul.mubr.bf16.vlgmr.msra.gmra.mrb[0].mxu1 %v787_v36  ;;  %v387_v36 = vcombine.high %v17197_v43, %v17197_v43  ;;  %v15098_v43 = vld [vmem:[%s16029_s27 + $0xef0] ss:$8 sps:$4 sm:$0xff]  }
 0x39c   : > { %11388 = vmatmul.mubr.bf16.vlgmr.msra.gmra.mrb[0].mxu0 %v833_v40  ;;  %10454 = vmatpush1.bf16.msra.mxu1 %v15008_v27  ;;  %v17281_v40 = vld [vmem:[%s16024_s23 + $0x98] sm:$0xff]  ;;  %v15092_v27 = vld [vmem:[%s16029_s27 + $0xee0] ss:$8 sps:$4 sm:$0xff]  }
 0x39d   : > { %11397 = vmatpush1.bf16.msra.mxu0 %v15011_v58  ;;  %10455 = vmatprep.subr.bf16.mxu1 %v15016_v59  ;;  %v15095_v58 = vld [vmem:[%s16029_s27 + $0x25e0] ss:$8 sps:$4 sm:$0xff]   ;;  %v15100_v59 = vld [vmem:[%s16029_s27 + $0xef4] ss:$8 sps:$4 sm:$0xff]  }
 0x39e   : > { %11398 = vmatprep.subr.bf16.mxu0 %v15019_v61  ;;  %10485 = vmatprep.mubr.bf16.mxu1 %v790_v62  ;;  %v15103_v61 = vld [vmem:[%s16029_s27 + $0x25f4] ss:$8 sps:$4 sm:$0xff]   ;;  %v17288_v62 = vrot.slane %v387_v36, %v16082_v50  ;;  %v15174_v36 = vld [vmem:[%s16029_s27 + $0x26b0] ss:$8 sps:$4 sm:$0xff]  }
 0x39f   : > { %11428 = vmatprep.mubr.bf16.mxu0 %v836_v63  ;;  %v17292_v63 = vrot.slane %v17281_v40, %v16082_v50 }
 0x3a0   : > { %10456 = vmatpush1.bf16.msra.mxu1 %v15014_v35  ;;  %v15101_v35 = vld [vmem:[%s16029_s27 + $0x25f0] ss:$8 sps:$4 sm:$0xff]  }
 0x3a1   : > { %11399 = vmatpush1.bf16.msra.mxu0 %v15017_v37  ;;  %10457 = vmatprep.subr.bf16.mxu1 %v15022_v45  ;;  %v15106_v37 = vld [vmem:[%s16029_s27 + $0xf04] ss:$8 sps:$4 sm:$0xff]  }
 0x3a2   : > { %11400 = vmatprep.subr.bf16.mxu0 %v15025_v38  ;;  %v15110_v45 = vld [vmem:[%s16029_s27 + $0x2604] ss:$8 sps:$4 sm:$0xff]   ;;  %v403_v38 = vcombine.high %v17288_v62, %v17288_v62 }
 0x3a4   : > { %10458 = vmatpush1.bf16.msra.mxu1 %v15020_v15  ;;  %v606_v15 = vcombine.high %v17292_v63, %v17292_v63 }
 0x3a5   : > { %11401 = vmatpush1.bf16.msra.mxu0 %v15023_v49  ;;  %10459 = vmatprep.subr.bf16.mxu1 %v15028_v41  ;;  %v789_v49 = vpack.c.bf16 %v17205_v51, %v17205_v51  ;;  %v835_v41 = vpack.c.bf16 %v17208_v52, %v17208_v52  ;;  %v15111_v51 = vld [vmem:[%s16029_s27 + $0xf10] ss:$8 sps:$4 sm:$0xff]  }
 0x3a6   : > { %11402 = vmatprep.subr.bf16.mxu0 %v15031_v42  ;;  %v15104_v42 = vld [vmem:[%s16029_s27 + $0xf00] ss:$8 sps:$4 sm:$0xff]   ;;  %v15114_v52 = vld [vmem:[%s16029_s27 + $0x2610] ss:$8 sps:$4 sm:$0xff]  }
 0x3a8   : > { %10460 = vmatpush1.bf16.msra.mxu1 %v15026_v5  ;;  %v15108_v5 = vld [vmem:[%s16029_s27 + $0x2600] ss:$8 sps:$4 sm:$0xff]  }
 0x3a9   : > { %11403 = vmatpush1.bf16.msra.mxu0 %v15029_v6  ;;  %10461 = vmatprep.subr.bf16.mxu1 %v15034_v8  ;;  %v15113_v6 = vld [vmem:[%s16029_s27 + $0xf14] ss:$8 sps:$4 sm:$0xff]  }
 0x3aa   : > { %11404 = vmatprep.subr.bf16.mxu0 %v15037_v9  ;;  %v15116_v8 = vld [vmem:[%s16029_s27 + $0x2614] ss:$8 sps:$4 sm:$0xff]   ;;  %v792_v9 = vpack.c.bf16 %v403_v38, %v403_v38  ;;  %v15191_v38 = vld [vmem:[%s16029_s27 + $0xfe4] ss:$8 sps:$4 sm:$0xff]  }
 0x3ac   : > { %10462 = vmatpush1.bf16.msra.mxu1 %v15032_v10  ;;  %v838_v10 = vpack.c.bf16 %v606_v15, %v606_v15  ;;  %v15194_v15 = vld [vmem:[%s16029_s27 + $0x26e4] ss:$8 sps:$4 sm:$0xff]  }
 0x3ad   : > { %11405 = vmatpush1.bf16.msra.mxu0 %v15035_v57  ;;  %10463 = vmatprep.subr.bf16.mxu1 %v15040_v53  ;;  %v15119_v57 = vld [vmem:[%s16029_s27 + $0xf24] ss:$8 sps:$4 sm:$0xff]  }
 0x3ae   : > { %11406 = vmatprep.subr.bf16.mxu0 %v15043_v54  ;;  %v15122_v53 = vld [vmem:[%s16029_s27 + $0x2624] ss:$8 sps:$4 sm:$0xff]   ;;  %v15117_v54 = vld [vmem:[%s16029_s27 + $0xf20] ss:$8 sps:$4 sm:$0xff]  }
 0x3b0   : > { %10464 = vmatpush1.bf16.msra.mxu1 %v15038_v60  ;;  %v15120_v60 = vld [vmem:[%s16029_s27 + $0x2620] ss:$8 sps:$4 sm:$0xff]  }
 0x3b1   : > { %11407 = vmatpush1.bf16.msra.mxu0 %v15041_v55  ;;  %10465 = vmatprep.subr.bf16.mxu1 %v15046_v56  ;;  %v15125_v55 = vld [vmem:[%s16029_s27 + $0xf34] ss:$8 sps:$4 sm:$0xff]  }
 0x3b2   : > { %11408 = vmatprep.subr.bf16.mxu0 %v15049_v17  ;;  %v15128_v56 = vld [vmem:[%s16029_s27 + $0x2634] ss:$8 sps:$4 sm:$0xff]   ;;  %v15123_v17 = vld [vmem:[%s16029_s27 + $0xf30] ss:$8 sps:$4 sm:$0xff]  }
 0x3b4   : > { %10466 = vmatpush1.bf16.msra.mxu1 %v15044_v18  ;;  %v15126_v18 = vld [vmem:[%s16029_s27 + $0x2630] ss:$8 sps:$4 sm:$0xff]  }
 0x3b5   : > { %11409 = vmatpush1.bf16.msra.mxu0 %v15047_v20  ;;  %10467 = vmatprep.subr.bf16.mxu1 %v15052_v21  ;;  %v15131_v20 = vld [vmem:[%s16029_s27 + $0xf44] ss:$8 sps:$4 sm:$0xff]  }
 0x3b6   : > { %11410 = vmatprep.subr.bf16.mxu0 %v15055_v22  ;;  %v15134_v21 = vld [vmem:[%s16029_s27 + $0x2644] ss:$8 sps:$4 sm:$0xff]   ;;  %v15129_v22 = vld [vmem:[%s16029_s27 + $0xf40] ss:$8 sps:$4 sm:$0xff]  }
 0x3b8   : > { %10468 = vmatpush1.bf16.msra.mxu1 %v15050_v4  ;;  %v15132_v4 = vld [vmem:[%s16029_s27 + $0x2640] ss:$8 sps:$4 sm:$0xff]  }
 0x3b9   : > { %11411 = vmatpush1.bf16.msra.mxu0 %v15053_v0  ;;  %10469 = vmatprep.subr.bf16.mxu1 %v15058_v1  ;;  %v15137_v0 = vld [vmem:[%s16029_s27 + $0xf54] ss:$8 sps:$4 sm:$0xff]  }
 0x3ba   : > { %11412 = vmatprep.subr.bf16.mxu0 %v15061_v7  ;;  %v15140_v1 = vld [vmem:[%s16029_s27 + $0x2654] ss:$8 sps:$4 sm:$0xff]   ;;  %v15135_v7 = vld [vmem:[%s16029_s27 + $0xf50] ss:$8 sps:$4 sm:$0xff]  }
 0x3bc   : > { %10470 = vmatpush1.bf16.msra.mxu1 %v15056_v2  ;;  %v15138_v2 = vld [vmem:[%s16029_s27 + $0x2650] ss:$8 sps:$4 sm:$0xff]  }
 0x3bd   : > { %11413 = vmatpush1.bf16.msra.mxu0 %v15059_v3  ;;  %10471 = vmatprep.subr.bf16.mxu1 %v15064_v28  ;;  %v15143_v3 = vld [vmem:[%s16029_s27 + $0xf64] ss:$8 sps:$4 sm:$0xff]  }
 0x3be   : > { %11414 = vmatprep.subr.bf16.mxu0 %v15067_v30  ;;  %v15146_v28 = vld [vmem:[%s16029_s27 + $0x2664] ss:$8 sps:$4 sm:$0xff]   ;;  %v15141_v30 = vld [vmem:[%s16029_s27 + $0xf60] ss:$8 sps:$4 sm:$0xff]  }
 0x3c0   : > { %10472 = vmatpush1.bf16.msra.mxu1 %v15062_v32  ;;  %v15144_v32 = vld [vmem:[%s16029_s27 + $0x2660] ss:$8 sps:$4 sm:$0xff]  }
 0x3c1   : > { %11415 = vmatpush1.bf16.msra.mxu0 %v15065_v33  ;;  %10473 = vmatprep.subr.bf16.mxu1 %v15070_v34  ;;  %v15149_v33 = vld [vmem:[%s16029_s27 + $0xf74] ss:$8 sps:$4 sm:$0xff]  }
 0x3c2   : > { %11416 = vmatprep.subr.bf16.mxu0 %v15073_v16  ;;  %v15152_v34 = vld [vmem:[%s16029_s27 + $0x2674] ss:$8 sps:$4 sm:$0xff]   ;;  %v15147_v16 = vld [vmem:[%s16029_s27 + $0xf70] ss:$8 sps:$4 sm:$0xff]  }
 0x3c4   : > { %10474 = vmatpush1.bf16.msra.mxu1 %v15068_v11  ;;  %v15150_v11 = vld [vmem:[%s16029_s27 + $0x2670] ss:$8 sps:$4 sm:$0xff]  }
 0x3c5   : > { %11417 = vmatpush1.bf16.msra.mxu0 %v15071_v12  ;;  %10475 = vmatprep.subr.bf16.mxu1 %v15076_v19  ;;  %v15155_v12 = vld [vmem:[%s16029_s27 + $0xf84] ss:$8 sps:$4 sm:$0xff]  }
 0x3c6   : > { %11418 = vmatprep.subr.bf16.mxu0 %v15079_v13  ;;  %v15158_v19 = vld [vmem:[%s16029_s27 + $0x2684] ss:$8 sps:$4 sm:$0xff]   ;;  %v15153_v13 = vld [vmem:[%s16029_s27 + $0xf80] ss:$8 sps:$4 sm:$0xff]  }
 0x3c8   : > { %10476 = vmatpush1.bf16.msra.mxu1 %v15074_v14  ;;  %v15156_v14 = vld [vmem:[%s16029_s27 + $0x2680] ss:$8 sps:$4 sm:$0xff]  }
 0x3c9   : > { %11419 = vmatpush1.bf16.msra.mxu0 %v15077_v39  ;;  %10477 = vmatprep.subr.bf16.mxu1 %v15082_v44  ;;  %v15161_v39 = vld [vmem:[%s16029_s27 + $0xf94] ss:$8 sps:$4 sm:$0xff]  }
 0x3ca   : > { %11420 = vmatprep.subr.bf16.mxu0 %v15085_v46  ;;  %v15164_v44 = vld [vmem:[%s16029_s27 + $0x2694] ss:$8 sps:$4 sm:$0xff]   ;;  %v15159_v46 = vld [vmem:[%s16029_s27 + $0xf90] ss:$8 sps:$4 sm:$0xff]  }
 0x3cc   : > { %10478 = vmatpush1.bf16.msra.mxu1 %v15080_v47  ;;  %v15162_v47 = vld [vmem:[%s16029_s27 + $0x2690] ss:$8 sps:$4 sm:$0xff]  }
 0x3cd   : > { %11421 = vmatpush1.bf16.msra.mxu0 %v15083_v48  ;;  %10479 = vmatprep.subr.bf16.mxu1 %v15088_v29  ;;  %v15167_v48 = vld [vmem:[%s16029_s27 + $0xfa4] ss:$8 sps:$4 sm:$0xff]  }
 0x3ce   : > { %11422 = vmatprep.subr.bf16.mxu0 %v15091_v23  ;;  %v15170_v29 = vld [vmem:[%s16029_s27 + $0x26a4] ss:$8 sps:$4 sm:$0xff]   ;;  %v15165_v23 = vld [vmem:[%s16029_s27 + $0xfa0] ss:$8 sps:$4 sm:$0xff]  }
 0x3d0   : > { %10480 = vmatpush1.bf16.msra.mxu1 %v15086_v24  ;;  %v15168_v24 = vld [vmem:[%s16029_s27 + $0x26a0] ss:$8 sps:$4 sm:$0xff]  }
 0x3d1   : > { %11423 = vmatpush1.bf16.msra.mxu0 %v15089_v31  ;;  %10481 = vmatprep.subr.bf16.mxu1 %v15094_v25  ;;  %v15173_v31 = vld [vmem:[%s16029_s27 + $0xfb4] ss:$8 sps:$4 sm:$0xff]  }
 0x3d2   : > { %11424 = vmatprep.subr.bf16.mxu0 %v15097_v26  ;;  %v15176_v25 = vld [vmem:[%s16029_s27 + $0x26b4] ss:$8 sps:$4 sm:$0xff]   ;;  %v15171_v26 = vld [vmem:[%s16029_s27 + $0xfb0] ss:$8 sps:$4 sm:$0xff]  }
 0x3d4   : > { %10482 = vmatpush1.bf16.msra.mxu1 %v15092_v27  ;;  %v15179_v27 = vld [vmem:[%s16029_s27 + $0xfc4] ss:$8 sps:$4 sm:$0xff]  }
 0x3d5   : > { %11425 = vmatpush1.bf16.msra.mxu0 %v15095_v58  ;;  %10483 = vmatprep.subr.bf16.mxu1 %v15100_v59  ;;  %v15182_v58 = vld [vmem:[%s16029_s27 + $0x26c4] ss:$8 sps:$4 sm:$0xff]   ;;  %v15177_v59 = vld [vmem:[%s16029_s27 + $0xfc0] ss:$8 sps:$4 sm:$0xff]  }
 0x3d6   : > { %11426 = vmatprep.subr.bf16.mxu0 %v15103_v61  ;;  %v15180_v61 = vld [vmem:[%s16029_s27 + $0x26c0] ss:$8 sps:$4 sm:$0xff]  }
 0x3d8   : > { %10484 = vmatpush1.bf16.msra.mxu1 %v15098_v43  ;;  %v15185_v43 = vld [vmem:[%s16029_s27 + $0xfd4] ss:$8 sps:$4 sm:$0xff]  }
 0x3d9   : > { %11427 = vmatpush1.bf16.msra.mxu0 %v15101_v35  ;;  %10494 = vmatprep.subr.bf16.mxu1 %v15106_v37  ;;  %v15188_v35 = vld [vmem:[%s16029_s27 + $0x26d4] ss:$8 sps:$4 sm:$0xff]   ;;  %v15183_v37 = vld [vmem:[%s16029_s27 + $0xfd0] ss:$8 sps:$4 sm:$0xff]  }
 0x3da   : > { %11437 = vmatprep.subr.bf16.mxu0 %v15110_v45  ;;  %v15186_v45 = vld [vmem:[%s16029_s27 + $0x26d0] ss:$8 sps:$4 sm:$0xff]  }
 0x3db   : > { %10486 = vmatmul.mubr.bf16.vlgmr.msra.gmra.mrb[0].mxu1 %v789_v49  ;;  %v591_v49 = vcombine.high %v17281_v40, %v17281_v40  ;;  %v15195_v40 = vld [vmem:[%s16029_s27 + $0xff0] ss:$8 sps:$4 sm:$0xff]  }
 0x3dc   : > { %11429 = vmatmul.mubr.bf16.vlgmr.msra.gmra.mrb[0].mxu0 %v835_v41  ;;  %10495 = vmatpush1.bf16.msra.mxu1 %v15104_v42  ;;  %v17365_v41 = vld [vmem:[%s16024_s23 + $0x40] sm:$0xff] }
 0x3dd   : > { %11438 = vmatpush1.bf16.msra.mxu0 %v15108_v5  ;;  %10496 = vmatprep.subr.bf16.mxu1 %v15113_v6  ;;  %v15189_v42 = vld [vmem:[%s16029_s27 + $0xfe0] ss:$8 sps:$4 sm:$0xff]   ;;  %v15197_v6 = vld [vmem:[%s16029_s27 + $0xff4] ss:$8 sps:$4 sm:$0xff]  }
 0x3de   : > { %11439 = vmatprep.subr.bf16.mxu0 %v15116_v8  ;;  %10526 = vmatprep.mubr.bf16.mxu1 %v792_v9  ;;  %v15192_v5 = vld [vmem:[%s16029_s27 + $0x26e0] ss:$8 sps:$4 sm:$0xff]   ;;  %v15200_v8 = vld [vmem:[%s16029_s27 + $0x26f4] ss:$8 sps:$4 sm:$0xff]   ;;  %v17373_v9 = vrot.slane %v17365_v41, %v16082_v50 }
 0x3df   : > { %11469 = vmatprep.mubr.bf16.mxu0 %v838_v10  ;;  %v17376_v10 = vrot.slane %v591_v49, %v16082_v50  ;;  %v15271_v49 = vld [vmem:[%s16029_s27 + $0x27b0] ss:$8 sps:$4 sm:$0xff]  }
 0x3e0   : > { %10497 = vmatpush1.bf16.msra.mxu1 %v15111_v51  ;;  %v15198_v51 = vld [vmem:[%s16029_s27 + $0x26f0] ss:$8 sps:$4 sm:$0xff]  }
 0x3e1   : > { %11440 = vmatpush1.bf16.msra.mxu0 %v15114_v52  ;;  %10498 = vmatprep.subr.bf16.mxu1 %v15119_v57  ;;  %v15204_v52 = vld [vmem:[%s16029_s27 + $0x1004] ss:$8 sps:$4 sm:$0xff]  }
 0x3e2   : > { %11441 = vmatprep.subr.bf16.mxu0 %v15122_v53  ;;  %v15207_v57 = vld [vmem:[%s16029_s27 + $0x2704] ss:$8 sps:$4 sm:$0xff]   ;;  %v419_v53 = vcombine.high %v17373_v9, %v17373_v9 }
 0x3e4   : > { %10499 = vmatpush1.bf16.msra.mxu1 %v15117_v54  ;;  %v607_v54 = vcombine.high %v17376_v10, %v17376_v10 }
 0x3e5   : > { %11442 = vmatpush1.bf16.msra.mxu0 %v15120_v60  ;;  %10500 = vmatprep.subr.bf16.mxu1 %v15125_v55  ;;  %v791_v60 = vpack.c.bf16 %v17288_v62, %v17288_v62  ;;  %v837_v55 = vpack.c.bf16 %v17292_v63, %v17292_v63  ;;  %v15208_v62 = vld [vmem:[%s16029_s27 + $0x1010] ss:$8 sps:$4 sm:$0xff]  }
 0x3e6   : > { %11443 = vmatprep.subr.bf16.mxu0 %v15128_v56  ;;  %v15202_v56 = vld [vmem:[%s16029_s27 + $0x1000] ss:$8 sps:$4 sm:$0xff]   ;;  %v15211_v63 = vld [vmem:[%s16029_s27 + $0x2710] ss:$8 sps:$4 sm:$0xff]  }
 0x3e8   : > { %10501 = vmatpush1.bf16.msra.mxu1 %v15123_v17  ;;  %v15205_v17 = vld [vmem:[%s16029_s27 + $0x2700] ss:$8 sps:$4 sm:$0xff]  }
 0x3e9   : > { %11444 = vmatpush1.bf16.msra.mxu0 %v15126_v18  ;;  %10502 = vmatprep.subr.bf16.mxu1 %v15131_v20  ;;  %v15210_v18 = vld [vmem:[%s16029_s27 + $0x1014] ss:$8 sps:$4 sm:$0xff]  }
 0x3ea   : > { %11445 = vmatprep.subr.bf16.mxu0 %v15134_v21  ;;  %v15213_v20 = vld [vmem:[%s16029_s27 + $0x2714] ss:$8 sps:$4 sm:$0xff]   ;;  %v794_v21 = vpack.c.bf16 %v419_v53, %v419_v53  ;;  %v15288_v53 = vld [vmem:[%s16029_s27 + $0x10e4] ss:$8 sps:$4 sm:$0xff]  }
 0x3ec   : > { %10503 = vmatpush1.bf16.msra.mxu1 %v15129_v22  ;;  %v840_v22 = vpack.c.bf16 %v607_v54, %v607_v54  ;;  %v15291_v54 = vld [vmem:[%s16029_s27 + $0x27e4] ss:$8 sps:$4 sm:$0xff]  }
 0x3ed   : > { %11446 = vmatpush1.bf16.msra.mxu0 %v15132_v4  ;;  %10504 = vmatprep.subr.bf16.mxu1 %v15137_v0  ;;  %v15216_v4 = vld [vmem:[%s16029_s27 + $0x1024] ss:$8 sps:$4 sm:$0xff]  }
 0x3ee   : > { %11447 = vmatprep.subr.bf16.mxu0 %v15140_v1  ;;  %v15219_v0 = vld [vmem:[%s16029_s27 + $0x2724] ss:$8 sps:$4 sm:$0xff]   ;;  %v15214_v1 = vld [vmem:[%s16029_s27 + $0x1020] ss:$8 sps:$4 sm:$0xff]  }
 0x3f0   : > { %10505 = vmatpush1.bf16.msra.mxu1 %v15135_v7  ;;  %v15217_v7 = vld [vmem:[%s16029_s27 + $0x2720] ss:$8 sps:$4 sm:$0xff]  }
 0x3f1   : > { %11448 = vmatpush1.bf16.msra.mxu0 %v15138_v2  ;;  %10506 = vmatprep.subr.bf16.mxu1 %v15143_v3  ;;  %v15222_v2 = vld [vmem:[%s16029_s27 + $0x1034] ss:$8 sps:$4 sm:$0xff]  }
 0x3f2   : > { %11449 = vmatprep.subr.bf16.mxu0 %v15146_v28  ;;  %v15225_v3 = vld [vmem:[%s16029_s27 + $0x2734] ss:$8 sps:$4 sm:$0xff]   ;;  %v15220_v28 = vld [vmem:[%s16029_s27 + $0x1030] ss:$8 sps:$4 sm:$0xff]  }
 0x3f4   : > { %10507 = vmatpush1.bf16.msra.mxu1 %v15141_v30  ;;  %v15223_v30 = vld [vmem:[%s16029_s27 + $0x2730] ss:$8 sps:$4 sm:$0xff]  }
 0x3f5   : > { %11450 = vmatpush1.bf16.msra.mxu0 %v15144_v32  ;;  %10508 = vmatprep.subr.bf16.mxu1 %v15149_v33  ;;  %v15228_v32 = vld [vmem:[%s16029_s27 + $0x1044] ss:$8 sps:$4 sm:$0xff]  }
 0x3f6   : > { %11451 = vmatprep.subr.bf16.mxu0 %v15152_v34  ;;  %v15231_v33 = vld [vmem:[%s16029_s27 + $0x2744] ss:$8 sps:$4 sm:$0xff]   ;;  %v15226_v34 = vld [vmem:[%s16029_s27 + $0x1040] ss:$8 sps:$4 sm:$0xff]  }
 0x3f8   : > { %10509 = vmatpush1.bf16.msra.mxu1 %v15147_v16  ;;  %v15229_v16 = vld [vmem:[%s16029_s27 + $0x2740] ss:$8 sps:$4 sm:$0xff]  }
 0x3f9   : > { %11452 = vmatpush1.bf16.msra.mxu0 %v15150_v11  ;;  %10510 = vmatprep.subr.bf16.mxu1 %v15155_v12  ;;  %v15234_v11 = vld [vmem:[%s16029_s27 + $0x1054] ss:$8 sps:$4 sm:$0xff]  }
 0x3fa   : > { %11453 = vmatprep.subr.bf16.mxu0 %v15158_v19  ;;  %v15237_v12 = vld [vmem:[%s16029_s27 + $0x2754] ss:$8 sps:$4 sm:$0xff]   ;;  %v15232_v19 = vld [vmem:[%s16029_s27 + $0x1050] ss:$8 sps:$4 sm:$0xff]  }
 0x3fc   : > { %10511 = vmatpush1.bf16.msra.mxu1 %v15153_v13  ;;  %v15235_v13 = vld [vmem:[%s16029_s27 + $0x2750] ss:$8 sps:$4 sm:$0xff]  }
 0x3fd   : > { %11454 = vmatpush1.bf16.msra.mxu0 %v15156_v14  ;;  %10512 = vmatprep.subr.bf16.mxu1 %v15161_v39  ;;  %v15240_v14 = vld [vmem:[%s16029_s27 + $0x1064] ss:$8 sps:$4 sm:$0xff]  }
 0x3fe   : > { %11455 = vmatprep.subr.bf16.mxu0 %v15164_v44  ;;  %v15243_v39 = vld [vmem:[%s16029_s27 + $0x2764] ss:$8 sps:$4 sm:$0xff]   ;;  %v15238_v44 = vld [vmem:[%s16029_s27 + $0x1060] ss:$8 sps:$4 sm:$0xff]  }
 0x400   : > { %10513 = vmatpush1.bf16.msra.mxu1 %v15159_v46  ;;  %v15241_v46 = vld [vmem:[%s16029_s27 + $0x2760] ss:$8 sps:$4 sm:$0xff]  }
 0x401   : > { %11456 = vmatpush1.bf16.msra.mxu0 %v15162_v47  ;;  %10514 = vmatprep.subr.bf16.mxu1 %v15167_v48  ;;  %v15246_v47 = vld [vmem:[%s16029_s27 + $0x1074] ss:$8 sps:$4 sm:$0xff]  }
 0x402   : > { %11457 = vmatprep.subr.bf16.mxu0 %v15170_v29  ;;  %v15249_v48 = vld [vmem:[%s16029_s27 + $0x2774] ss:$8 sps:$4 sm:$0xff]   ;;  %v15244_v29 = vld [vmem:[%s16029_s27 + $0x1070] ss:$8 sps:$4 sm:$0xff]  }
 0x404   : > { %10515 = vmatpush1.bf16.msra.mxu1 %v15165_v23  ;;  %v15247_v23 = vld [vmem:[%s16029_s27 + $0x2770] ss:$8 sps:$4 sm:$0xff]  }
 0x405   : > { %11458 = vmatpush1.bf16.msra.mxu0 %v15168_v24  ;;  %10516 = vmatprep.subr.bf16.mxu1 %v15173_v31  ;;  %v15252_v24 = vld [vmem:[%s16029_s27 + $0x1084] ss:$8 sps:$4 sm:$0xff]  }
 0x406   : > { %11459 = vmatprep.subr.bf16.mxu0 %v15176_v25  ;;  %v15255_v31 = vld [vmem:[%s16029_s27 + $0x2784] ss:$8 sps:$4 sm:$0xff]   ;;  %v15250_v25 = vld [vmem:[%s16029_s27 + $0x1080] ss:$8 sps:$4 sm:$0xff]  }
 0x408   : > { %10517 = vmatpush1.bf16.msra.mxu1 %v15171_v26  ;;  %v15253_v26 = vld [vmem:[%s16029_s27 + $0x2780] ss:$8 sps:$4 sm:$0xff]  }
 0x409   : > { %11460 = vmatpush1.bf16.msra.mxu0 %v15174_v36  ;;  %10518 = vmatprep.subr.bf16.mxu1 %v15179_v27  ;;  %v15258_v36 = vld [vmem:[%s16029_s27 + $0x1094] ss:$8 sps:$4 sm:$0xff]  }
 0x40a   : > { %11461 = vmatprep.subr.bf16.mxu0 %v15182_v58  ;;  %v15261_v27 = vld [vmem:[%s16029_s27 + $0x2794] ss:$8 sps:$4 sm:$0xff]   ;;  %v15256_v58 = vld [vmem:[%s16029_s27 + $0x1090] ss:$8 sps:$4 sm:$0xff]  }
 0x40c   : > { %10519 = vmatpush1.bf16.msra.mxu1 %v15177_v59  ;;  %v15259_v59 = vld [vmem:[%s16029_s27 + $0x2790] ss:$8 sps:$4 sm:$0xff]  }
 0x40d   : > { %11462 = vmatpush1.bf16.msra.mxu0 %v15180_v61  ;;  %10520 = vmatprep.subr.bf16.mxu1 %v15185_v43  ;;  %v15264_v61 = vld [vmem:[%s16029_s27 + $0x10a4] ss:$8 sps:$4 sm:$0xff]  }
 0x40e   : > { %11463 = vmatprep.subr.bf16.mxu0 %v15188_v35  ;;  %v15267_v43 = vld [vmem:[%s16029_s27 + $0x27a4] ss:$8 sps:$4 sm:$0xff]   ;;  %v15262_v35 = vld [vmem:[%s16029_s27 + $0x10a0] ss:$8 sps:$4 sm:$0xff]  }
 0x410   : > { %10521 = vmatpush1.bf16.msra.mxu1 %v15183_v37  ;;  %v15265_v37 = vld [vmem:[%s16029_s27 + $0x27a0] ss:$8 sps:$4 sm:$0xff]  }
 0x411   : > { %11464 = vmatpush1.bf16.msra.mxu0 %v15186_v45  ;;  %10522 = vmatprep.subr.bf16.mxu1 %v15191_v38  ;;  %v15270_v45 = vld [vmem:[%s16029_s27 + $0x10b4] ss:$8 sps:$4 sm:$0xff]  }
 0x412   : > { %11465 = vmatprep.subr.bf16.mxu0 %v15194_v15  ;;  %v15273_v38 = vld [vmem:[%s16029_s27 + $0x27b4] ss:$8 sps:$4 sm:$0xff]   ;;  %v15268_v15 = vld [vmem:[%s16029_s27 + $0x10b0] ss:$8 sps:$4 sm:$0xff]  }
 0x414   : > { %10523 = vmatpush1.bf16.msra.mxu1 %v15189_v42  ;;  %v15276_v42 = vld [vmem:[%s16029_s27 + $0x10c4] ss:$8 sps:$4 sm:$0xff]  }
 0x415   : > { %11466 = vmatpush1.bf16.msra.mxu0 %v15192_v5  ;;  %10524 = vmatprep.subr.bf16.mxu1 %v15197_v6  ;;  %v15279_v5 = vld [vmem:[%s16029_s27 + $0x27c4] ss:$8 sps:$4 sm:$0xff]   ;;  %v15274_v6 = vld [vmem:[%s16029_s27 + $0x10c0] ss:$8 sps:$4 sm:$0xff]  }
 0x416   : > { %11467 = vmatprep.subr.bf16.mxu0 %v15200_v8  ;;  %v15277_v8 = vld [vmem:[%s16029_s27 + $0x27c0] ss:$8 sps:$4 sm:$0xff]  }
 0x418   : > { %10525 = vmatpush1.bf16.msra.mxu1 %v15195_v40  ;;  %v15282_v40 = vld [vmem:[%s16029_s27 + $0x10d4] ss:$8 sps:$4 sm:$0xff]  }
 0x419   : > { %11468 = vmatpush1.bf16.msra.mxu0 %v15198_v51  ;;  %10535 = vmatprep.subr.bf16.mxu1 %v15204_v52  ;;  %v15285_v51 = vld [vmem:[%s16029_s27 + $0x27d4] ss:$8 sps:$4 sm:$0xff]   ;;  %v15280_v52 = vld [vmem:[%s16029_s27 + $0x10d0] ss:$8 sps:$4 sm:$0xff]  }
 0x41a   : > { %11478 = vmatprep.subr.bf16.mxu0 %v15207_v57  ;;  %v15283_v57 = vld [vmem:[%s16029_s27 + $0x27d0] ss:$8 sps:$4 sm:$0xff]  }
 0x41b   : > { %10527 = vmatmul.mubr.bf16.vlgmr.msra.gmra.mrb[0].mxu1 %v791_v60  ;;  %v404_v60 = vcombine.high %v17365_v41, %v17365_v41  ;;  %v15292_v41 = vld [vmem:[%s16029_s27 + $0x10f0] ss:$8 sps:$4 sm:$0xff]  }
 0x41c   : > { %11470 = vmatmul.mubr.bf16.vlgmr.msra.gmra.mrb[0].mxu0 %v837_v55  ;;  %10536 = vmatpush1.bf16.msra.mxu1 %v15202_v56  ;;  %v17449_v55 = vld [vmem:[%s16024_s23 + $0xa0] sm:$0xff] }
 0x41d   : > { %11479 = vmatpush1.bf16.msra.mxu0 %v15205_v17  ;;  %10537 = vmatprep.subr.bf16.mxu1 %v15210_v18  ;;  %v15286_v56 = vld [vmem:[%s16029_s27 + $0x10e0] ss:$8 sps:$4 sm:$0xff]   ;;  %v15294_v18 = vld [vmem:[%s16029_s27 + $0x10f4] ss:$8 sps:$4 sm:$0xff]  }
 0x41e   : > { %11480 = vmatprep.subr.bf16.mxu0 %v15213_v20  ;;  %10567 = vmatprep.mubr.bf16.mxu1 %v794_v21  ;;  %v15289_v17 = vld [vmem:[%s16029_s27 + $0x27e0] ss:$8 sps:$4 sm:$0xff]   ;;  %v15297_v20 = vld [vmem:[%s16029_s27 + $0x27f4] ss:$8 sps:$4 sm:$0xff]   ;;  %v17456_v21 = vrot.slane %v404_v60, %v16082_v50  ;;  %v15368_v60 = vld [vmem:[%s16029_s27 + $0x28b0] ss:$8 sps:$4 sm:$0xff]  }
 0x41f   : > { %11510 = vmatprep.mubr.bf16.mxu0 %v840_v22  ;;  %v17460_v22 = vrot.slane %v17449_v55, %v16082_v50 }
 0x420   : > { %10538 = vmatpush1.bf16.msra.mxu1 %v15208_v62  ;;  %v15295_v62 = vld [vmem:[%s16029_s27 + $0x27f0] ss:$8 sps:$4 sm:$0xff]  }
 0x421   : > { %11481 = vmatpush1.bf16.msra.mxu0 %v15211_v63  ;;  %10539 = vmatprep.subr.bf16.mxu1 %v15216_v4  ;;  %v15300_v63 = vld [vmem:[%s16029_s27 + $0x1104] ss:$8 sps:$4 sm:$0xff]  }
 0x422   : > { %11482 = vmatprep.subr.bf16.mxu0 %v15219_v0  ;;  %v15304_v4 = vld [vmem:[%s16029_s27 + $0x2804] ss:$8 sps:$4 sm:$0xff]   ;;  %v420_v0 = vcombine.high %v17456_v21, %v17456_v21 }
 0x424   : > { %10540 = vmatpush1.bf16.msra.mxu1 %v15214_v1  ;;  %v623_v1 = vcombine.high %v17460_v22, %v17460_v22 }
 0x425   : > { %11483 = vmatpush1.bf16.msra.mxu0 %v15217_v7  ;;  %10541 = vmatprep.subr.bf16.mxu1 %v15222_v2  ;;  %v793_v7 = vpack.c.bf16 %v17373_v9, %v17373_v9  ;;  %v839_v2 = vpack.c.bf16 %v17376_v10, %v17376_v10  ;;  %v15305_v9 = vld [vmem:[%s16029_s27 + $0x1110] ss:$8 sps:$4 sm:$0xff]  }
 0x426   : > { %11484 = vmatprep.subr.bf16.mxu0 %v15225_v3  ;;  %v15298_v3 = vld [vmem:[%s16029_s27 + $0x1100] ss:$8 sps:$4 sm:$0xff]   ;;  %v15308_v10 = vld [vmem:[%s16029_s27 + $0x2810] ss:$8 sps:$4 sm:$0xff]  }
 0x428   : > { %10542 = vmatpush1.bf16.msra.mxu1 %v15220_v28  ;;  %v15302_v28 = vld [vmem:[%s16029_s27 + $0x2800] ss:$8 sps:$4 sm:$0xff]  }
 0x429   : > { %11485 = vmatpush1.bf16.msra.mxu0 %v15223_v30  ;;  %10543 = vmatprep.subr.bf16.mxu1 %v15228_v32  ;;  %v15307_v30 = vld [vmem:[%s16029_s27 + $0x1114] ss:$8 sps:$4 sm:$0xff]  }
 0x42a   : > { %11486 = vmatprep.subr.bf16.mxu0 %v15231_v33  ;;  %v15310_v32 = vld [vmem:[%s16029_s27 + $0x2814] ss:$8 sps:$4 sm:$0xff]   ;;  %v796_v33 = vpack.c.bf16 %v420_v0, %v420_v0  ;;  %v15385_v0 = vld [vmem:[%s16029_s27 + $0x11e4] ss:$8 sps:$4 sm:$0xff]  }
 0x42c   : > { %10544 = vmatpush1.bf16.msra.mxu1 %v15226_v34  ;;  %v842_v34 = vpack.c.bf16 %v623_v1, %v623_v1  ;;  %v15388_v1 = vld [vmem:[%s16029_s27 + $0x28e4] ss:$8 sps:$4 sm:$0xff]  }
 0x42d   : > { %11487 = vmatpush1.bf16.msra.mxu0 %v15229_v16  ;;  %10545 = vmatprep.subr.bf16.mxu1 %v15234_v11  ;;  %v15313_v16 = vld [vmem:[%s16029_s27 + $0x1124] ss:$8 sps:$4 sm:$0xff]  }
 0x42e   : > { %11488 = vmatprep.subr.bf16.mxu0 %v15237_v12  ;;  %v15316_v11 = vld [vmem:[%s16029_s27 + $0x2824] ss:$8 sps:$4 sm:$0xff]   ;;  %v15311_v12 = vld [vmem:[%s16029_s27 + $0x1120] ss:$8 sps:$4 sm:$0xff]  }
 0x430   : > { %10546 = vmatpush1.bf16.msra.mxu1 %v15232_v19  ;;  %v15314_v19 = vld [vmem:[%s16029_s27 + $0x2820] ss:$8 sps:$4 sm:$0xff]  }
 0x431   : > { %11489 = vmatpush1.bf16.msra.mxu0 %v15235_v13  ;;  %10547 = vmatprep.subr.bf16.mxu1 %v15240_v14  ;;  %v15319_v13 = vld [vmem:[%s16029_s27 + $0x1134] ss:$8 sps:$4 sm:$0xff]  }
 0x432   : > { %11490 = vmatprep.subr.bf16.mxu0 %v15243_v39  ;;  %v15322_v14 = vld [vmem:[%s16029_s27 + $0x2834] ss:$8 sps:$4 sm:$0xff]   ;;  %v15317_v39 = vld [vmem:[%s16029_s27 + $0x1130] ss:$8 sps:$4 sm:$0xff]  }
 0x434   : > { %10548 = vmatpush1.bf16.msra.mxu1 %v15238_v44  ;;  %v15320_v44 = vld [vmem:[%s16029_s27 + $0x2830] ss:$8 sps:$4 sm:$0xff]  }
 0x435   : > { %11491 = vmatpush1.bf16.msra.mxu0 %v15241_v46  ;;  %10549 = vmatprep.subr.bf16.mxu1 %v15246_v47  ;;  %v15325_v46 = vld [vmem:[%s16029_s27 + $0x1144] ss:$8 sps:$4 sm:$0xff]  }
 0x436   : > { %11492 = vmatprep.subr.bf16.mxu0 %v15249_v48  ;;  %v15328_v47 = vld [vmem:[%s16029_s27 + $0x2844] ss:$8 sps:$4 sm:$0xff]   ;;  %v15323_v48 = vld [vmem:[%s16029_s27 + $0x1140] ss:$8 sps:$4 sm:$0xff]  }
 0x438   : > { %10550 = vmatpush1.bf16.msra.mxu1 %v15244_v29  ;;  %v15326_v29 = vld [vmem:[%s16029_s27 + $0x2840] ss:$8 sps:$4 sm:$0xff]  }
 0x439   : > { %11493 = vmatpush1.bf16.msra.mxu0 %v15247_v23  ;;  %10551 = vmatprep.subr.bf16.mxu1 %v15252_v24  ;;  %v15331_v23 = vld [vmem:[%s16029_s27 + $0x1154] ss:$8 sps:$4 sm:$0xff]  }
 0x43a   : > { %11494 = vmatprep.subr.bf16.mxu0 %v15255_v31  ;;  %v15334_v24 = vld [vmem:[%s16029_s27 + $0x2854] ss:$8 sps:$4 sm:$0xff]   ;;  %v15329_v31 = vld [vmem:[%s16029_s27 + $0x1150] ss:$8 sps:$4 sm:$0xff]  }
 0x43c   : > { %10552 = vmatpush1.bf16.msra.mxu1 %v15250_v25  ;;  %v15332_v25 = vld [vmem:[%s16029_s27 + $0x2850] ss:$8 sps:$4 sm:$0xff]  }
 0x43d   : > { %11495 = vmatpush1.bf16.msra.mxu0 %v15253_v26  ;;  %10553 = vmatprep.subr.bf16.mxu1 %v15258_v36  ;;  %v15337_v26 = vld [vmem:[%s16029_s27 + $0x1164] ss:$8 sps:$4 sm:$0xff]  }
 0x43e   : > { %11496 = vmatprep.subr.bf16.mxu0 %v15261_v27  ;;  %v15340_v36 = vld [vmem:[%s16029_s27 + $0x2864] ss:$8 sps:$4 sm:$0xff]   ;;  %v15335_v27 = vld [vmem:[%s16029_s27 + $0x1160] ss:$8 sps:$4 sm:$0xff]  }
 0x440   : > { %10554 = vmatpush1.bf16.msra.mxu1 %v15256_v58  ;;  %v15338_v58 = vld [vmem:[%s16029_s27 + $0x2860] ss:$8 sps:$4 sm:$0xff]  }
 0x441   : > { %11497 = vmatpush1.bf16.msra.mxu0 %v15259_v59  ;;  %10555 = vmatprep.subr.bf16.mxu1 %v15264_v61  ;;  %v15343_v59 = vld [vmem:[%s16029_s27 + $0x1174] ss:$8 sps:$4 sm:$0xff]  }
 0x442   : > { %11498 = vmatprep.subr.bf16.mxu0 %v15267_v43  ;;  %v15346_v61 = vld [vmem:[%s16029_s27 + $0x2874] ss:$8 sps:$4 sm:$0xff]   ;;  %v15341_v43 = vld [vmem:[%s16029_s27 + $0x1170] ss:$8 sps:$4 sm:$0xff]  }
 0x444   : > { %10556 = vmatpush1.bf16.msra.mxu1 %v15262_v35  ;;  %v15344_v35 = vld [vmem:[%s16029_s27 + $0x2870] ss:$8 sps:$4 sm:$0xff]  }
 0x445   : > { %11499 = vmatpush1.bf16.msra.mxu0 %v15265_v37  ;;  %10557 = vmatprep.subr.bf16.mxu1 %v15270_v45  ;;  %v15349_v37 = vld [vmem:[%s16029_s27 + $0x1184] ss:$8 sps:$4 sm:$0xff]  }
 0x446   : > { %11500 = vmatprep.subr.bf16.mxu0 %v15273_v38  ;;  %v15352_v45 = vld [vmem:[%s16029_s27 + $0x2884] ss:$8 sps:$4 sm:$0xff]   ;;  %v15347_v38 = vld [vmem:[%s16029_s27 + $0x1180] ss:$8 sps:$4 sm:$0xff]  }
 0x448   : > { %10558 = vmatpush1.bf16.msra.mxu1 %v15268_v15  ;;  %v15350_v15 = vld [vmem:[%s16029_s27 + $0x2880] ss:$8 sps:$4 sm:$0xff]  }
 0x449   : > { %11501 = vmatpush1.bf16.msra.mxu0 %v15271_v49  ;;  %10559 = vmatprep.subr.bf16.mxu1 %v15276_v42  ;;  %v15355_v49 = vld [vmem:[%s16029_s27 + $0x1194] ss:$8 sps:$4 sm:$0xff]  }
 0x44a   : > { %11502 = vmatprep.subr.bf16.mxu0 %v15279_v5  ;;  %v15358_v42 = vld [vmem:[%s16029_s27 + $0x2894] ss:$8 sps:$4 sm:$0xff]   ;;  %v15353_v5 = vld [vmem:[%s16029_s27 + $0x1190] ss:$8 sps:$4 sm:$0xff]  }
 0x44c   : > { %10560 = vmatpush1.bf16.msra.mxu1 %v15274_v6  ;;  %v15356_v6 = vld [vmem:[%s16029_s27 + $0x2890] ss:$8 sps:$4 sm:$0xff]  }
 0x44d   : > { %11503 = vmatpush1.bf16.msra.mxu0 %v15277_v8  ;;  %10561 = vmatprep.subr.bf16.mxu1 %v15282_v40  ;;  %v15361_v8 = vld [vmem:[%s16029_s27 + $0x11a4] ss:$8 sps:$4 sm:$0xff]  }
 0x44e   : > { %11504 = vmatprep.subr.bf16.mxu0 %v15285_v51  ;;  %v15364_v40 = vld [vmem:[%s16029_s27 + $0x28a4] ss:$8 sps:$4 sm:$0xff]   ;;  %v15359_v51 = vld [vmem:[%s16029_s27 + $0x11a0] ss:$8 sps:$4 sm:$0xff]  }
 0x450   : > { %10562 = vmatpush1.bf16.msra.mxu1 %v15280_v52  ;;  %v15362_v52 = vld [vmem:[%s16029_s27 + $0x28a0] ss:$8 sps:$4 sm:$0xff]  }
 0x451   : > { %11505 = vmatpush1.bf16.msra.mxu0 %v15283_v57  ;;  %10563 = vmatprep.subr.bf16.mxu1 %v15288_v53  ;;  %v15367_v57 = vld [vmem:[%s16029_s27 + $0x11b4] ss:$8 sps:$4 sm:$0xff]  }
 0x452   : > { %11506 = vmatprep.subr.bf16.mxu0 %v15291_v54  ;;  %v15370_v53 = vld [vmem:[%s16029_s27 + $0x28b4] ss:$8 sps:$4 sm:$0xff]   ;;  %v15365_v54 = vld [vmem:[%s16029_s27 + $0x11b0] ss:$8 sps:$4 sm:$0xff]  }
 0x454   : > { %10564 = vmatpush1.bf16.msra.mxu1 %v15286_v56  ;;  %v15373_v56 = vld [vmem:[%s16029_s27 + $0x11c4] ss:$8 sps:$4 sm:$0xff]  }
 0x455   : > { %11507 = vmatpush1.bf16.msra.mxu0 %v15289_v17  ;;  %10565 = vmatprep.subr.bf16.mxu1 %v15294_v18  ;;  %v15376_v17 = vld [vmem:[%s16029_s27 + $0x28c4] ss:$8 sps:$4 sm:$0xff]   ;;  %v15371_v18 = vld [vmem:[%s16029_s27 + $0x11c0] ss:$8 sps:$4 sm:$0xff]  }
 0x456   : > { %11508 = vmatprep.subr.bf16.mxu0 %v15297_v20  ;;  %v15374_v20 = vld [vmem:[%s16029_s27 + $0x28c0] ss:$8 sps:$4 sm:$0xff]  }
 0x458   : > { %10566 = vmatpush1.bf16.msra.mxu1 %v15292_v41  ;;  %v15379_v41 = vld [vmem:[%s16029_s27 + $0x11d4] ss:$8 sps:$4 sm:$0xff]  }
 0x459   : > { %11509 = vmatpush1.bf16.msra.mxu0 %v15295_v62  ;;  %10576 = vmatprep.subr.bf16.mxu1 %v15300_v63  ;;  %v15382_v62 = vld [vmem:[%s16029_s27 + $0x28d4] ss:$8 sps:$4 sm:$0xff]   ;;  %v15377_v63 = vld [vmem:[%s16029_s27 + $0x11d0] ss:$8 sps:$4 sm:$0xff]  }
 0x45a   : > { %11519 = vmatprep.subr.bf16.mxu0 %v15304_v4  ;;  %v15380_v4 = vld [vmem:[%s16029_s27 + $0x28d0] ss:$8 sps:$4 sm:$0xff]  }
 0x45b   : > { %10568 = vmatmul.mubr.bf16.vlgmr.msra.gmra.mrb[0].mxu1 %v793_v7  ;;  %v608_v7 = vcombine.high %v17449_v55, %v17449_v55  ;;  %v15389_v55 = vld [vmem:[%s16029_s27 + $0x11f0] ss:$8 sps:$4 sm:$0xff]  }
 0x45c   : > { %11511 = vmatmul.mubr.bf16.vlgmr.msra.gmra.mrb[0].mxu0 %v839_v2  ;;  %10577 = vmatpush1.bf16.msra.mxu1 %v15298_v3  ;;  %v17533_v2 = vld [vmem:[%s16024_s23 + $0x48] sm:$0xff] }
 0x45d   : > { %11520 = vmatpush1.bf16.msra.mxu0 %v15302_v28  ;;  %10578 = vmatprep.subr.bf16.mxu1 %v15307_v30  ;;  %v15383_v3 = vld [vmem:[%s16029_s27 + $0x11e0] ss:$8 sps:$4 sm:$0xff]   ;;  %v15391_v30 = vld [vmem:[%s16029_s27 + $0x11f4] ss:$8 sps:$4 sm:$0xff]  }
 0x45e   : > { %11521 = vmatprep.subr.bf16.mxu0 %v15310_v32  ;;  %10608 = vmatprep.mubr.bf16.mxu1 %v796_v33  ;;  %v15386_v28 = vld [vmem:[%s16029_s27 + $0x28e0] ss:$8 sps:$4 sm:$0xff]   ;;  %v15394_v32 = vld [vmem:[%s16029_s27 + $0x28f4] ss:$8 sps:$4 sm:$0xff]   ;;  %v17541_v33 = vrot.slane %v17533_v2, %v16082_v50 }
 0x45f   : > { %11551 = vmatprep.mubr.bf16.mxu0 %v842_v34  ;;  %v17544_v34 = vrot.slane %v608_v7, %v16082_v50  ;;  %v15465_v7 = vld [vmem:[%s16029_s27 + $0x29b0] ss:$8 sps:$4 sm:$0xff]  }
 0x460   : > { %10579 = vmatpush1.bf16.msra.mxu1 %v15305_v9  ;;  %v15392_v9 = vld [vmem:[%s16029_s27 + $0x28f0] ss:$8 sps:$4 sm:$0xff]  }
 0x461   : > { %11522 = vmatpush1.bf16.msra.mxu0 %v15308_v10  ;;  %10580 = vmatprep.subr.bf16.mxu1 %v15313_v16  ;;  %v15398_v10 = vld [vmem:[%s16029_s27 + $0x1204] ss:$8 sps:$4 sm:$0xff]  }
 0x462   : > { %11523 = vmatprep.subr.bf16.mxu0 %v15316_v11  ;;  %v15401_v16 = vld [vmem:[%s16029_s27 + $0x2904] ss:$8 sps:$4 sm:$0xff]   ;;  %v436_v11 = vcombine.high %v17541_v33, %v17541_v33 }
 0x464   : > { %10581 = vmatpush1.bf16.msra.mxu1 %v15311_v12  ;;  %v624_v12 = vcombine.high %v17544_v34, %v17544_v34 }
 0x465   : > { %11524 = vmatpush1.bf16.msra.mxu0 %v15314_v19  ;;  %10582 = vmatprep.subr.bf16.mxu1 %v15319_v13  ;;  %v795_v19 = vpack.c.bf16 %v17456_v21, %v17456_v21  ;;  %v841_v13 = vpack.c.bf16 %v17460_v22, %v17460_v22  ;;  %v15402_v21 = vld [vmem:[%s16029_s27 + $0x1210] ss:$8 sps:$4 sm:$0xff]  }
 0x466   : > { %11525 = vmatprep.subr.bf16.mxu0 %v15322_v14  ;;  %v15396_v14 = vld [vmem:[%s16029_s27 + $0x1200] ss:$8 sps:$4 sm:$0xff]   ;;  %v15405_v22 = vld [vmem:[%s16029_s27 + $0x2910] ss:$8 sps:$4 sm:$0xff]  }
 0x468   : > { %10583 = vmatpush1.bf16.msra.mxu1 %v15317_v39  ;;  %v15399_v39 = vld [vmem:[%s16029_s27 + $0x2900] ss:$8 sps:$4 sm:$0xff]  }
 0x469   : > { %11526 = vmatpush1.bf16.msra.mxu0 %v15320_v44  ;;  %10584 = vmatprep.subr.bf16.mxu1 %v15325_v46  ;;  %v15404_v44 = vld [vmem:[%s16029_s27 + $0x1214] ss:$8 sps:$4 sm:$0xff]  }
 0x46a   : > { %11527 = vmatprep.subr.bf16.mxu0 %v15328_v47  ;;  %v15407_v46 = vld [vmem:[%s16029_s27 + $0x2914] ss:$8 sps:$4 sm:$0xff]   ;;  %v798_v47 = vpack.c.bf16 %v436_v11, %v436_v11  ;;  %v15482_v11 = vld [vmem:[%s16029_s27 + $0x12e4] ss:$8 sps:$4 sm:$0xff]  }
 0x46c   : > { %10585 = vmatpush1.bf16.msra.mxu1 %v15323_v48  ;;  %v844_v48 = vpack.c.bf16 %v624_v12, %v624_v12  ;;  %v15485_v12 = vld [vmem:[%s16029_s27 + $0x29e4] ss:$8 sps:$4 sm:$0xff]  }
 0x46d   : > { %11528 = vmatpush1.bf16.msra.mxu0 %v15326_v29  ;;  %10586 = vmatprep.subr.bf16.mxu1 %v15331_v23  ;;  %v15410_v29 = vld [vmem:[%s16029_s27 + $0x1224] ss:$8 sps:$4 sm:$0xff]  }
 0x46e   : > { %11529 = vmatprep.subr.bf16.mxu0 %v15334_v24  ;;  %v15413_v23 = vld [vmem:[%s16029_s27 + $0x2924] ss:$8 sps:$4 sm:$0xff]   ;;  %v15408_v24 = vld [vmem:[%s16029_s27 + $0x1220] ss:$8 sps:$4 sm:$0xff]  }
 0x470   : > { %10587 = vmatpush1.bf16.msra.mxu1 %v15329_v31  ;;  %v15411_v31 = vld [vmem:[%s16029_s27 + $0x2920] ss:$8 sps:$4 sm:$0xff]  }
 0x471   : > { %11530 = vmatpush1.bf16.msra.mxu0 %v15332_v25  ;;  %10588 = vmatprep.subr.bf16.mxu1 %v15337_v26  ;;  %v15416_v25 = vld [vmem:[%s16029_s27 + $0x1234] ss:$8 sps:$4 sm:$0xff]  }
 0x472   : > { %11531 = vmatprep.subr.bf16.mxu0 %v15340_v36  ;;  %v15419_v26 = vld [vmem:[%s16029_s27 + $0x2934] ss:$8 sps:$4 sm:$0xff]   ;;  %v15414_v36 = vld [vmem:[%s16029_s27 + $0x1230] ss:$8 sps:$4 sm:$0xff]  }
 0x474   : > { %10589 = vmatpush1.bf16.msra.mxu1 %v15335_v27  ;;  %v15417_v27 = vld [vmem:[%s16029_s27 + $0x2930] ss:$8 sps:$4 sm:$0xff]  }
 0x475   : > { %11532 = vmatpush1.bf16.msra.mxu0 %v15338_v58  ;;  %10590 = vmatprep.subr.bf16.mxu1 %v15343_v59  ;;  %v15422_v58 = vld [vmem:[%s16029_s27 + $0x1244] ss:$8 sps:$4 sm:$0xff]  }
 0x476   : > { %11533 = vmatprep.subr.bf16.mxu0 %v15346_v61  ;;  %v15425_v59 = vld [vmem:[%s16029_s27 + $0x2944] ss:$8 sps:$4 sm:$0xff]   ;;  %v15420_v61 = vld [vmem:[%s16029_s27 + $0x1240] ss:$8 sps:$4 sm:$0xff]  }
 0x478   : > { %10591 = vmatpush1.bf16.msra.mxu1 %v15341_v43  ;;  %v15423_v43 = vld [vmem:[%s16029_s27 + $0x2940] ss:$8 sps:$4 sm:$0xff]  }
 0x479   : > { %11534 = vmatpush1.bf16.msra.mxu0 %v15344_v35  ;;  %10592 = vmatprep.subr.bf16.mxu1 %v15349_v37  ;;  %v15428_v35 = vld [vmem:[%s16029_s27 + $0x1254] ss:$8 sps:$4 sm:$0xff]  }
 0x47a   : > { %11535 = vmatprep.subr.bf16.mxu0 %v15352_v45  ;;  %v15431_v37 = vld [vmem:[%s16029_s27 + $0x2954] ss:$8 sps:$4 sm:$0xff]   ;;  %v15426_v45 = vld [vmem:[%s16029_s27 + $0x1250] ss:$8 sps:$4 sm:$0xff]  }
 0x47c   : > { %10593 = vmatpush1.bf16.msra.mxu1 %v15347_v38  ;;  %v15429_v38 = vld [vmem:[%s16029_s27 + $0x2950] ss:$8 sps:$4 sm:$0xff]  }
 0x47d   : > { %11536 = vmatpush1.bf16.msra.mxu0 %v15350_v15  ;;  %10594 = vmatprep.subr.bf16.mxu1 %v15355_v49  ;;  %v15434_v15 = vld [vmem:[%s16029_s27 + $0x1264] ss:$8 sps:$4 sm:$0xff]  }
 0x47e   : > { %11537 = vmatprep.subr.bf16.mxu0 %v15358_v42  ;;  %v15437_v49 = vld [vmem:[%s16029_s27 + $0x2964] ss:$8 sps:$4 sm:$0xff]   ;;  %v15432_v42 = vld [vmem:[%s16029_s27 + $0x1260] ss:$8 sps:$4 sm:$0xff]  }
 0x480   : > { %10595 = vmatpush1.bf16.msra.mxu1 %v15353_v5  ;;  %v15435_v5 = vld [vmem:[%s16029_s27 + $0x2960] ss:$8 sps:$4 sm:$0xff]  }
 0x481   : > { %11538 = vmatpush1.bf16.msra.mxu0 %v15356_v6  ;;  %10596 = vmatprep.subr.bf16.mxu1 %v15361_v8  ;;  %v15440_v6 = vld [vmem:[%s16029_s27 + $0x1274] ss:$8 sps:$4 sm:$0xff]  }
 0x482   : > { %11539 = vmatprep.subr.bf16.mxu0 %v15364_v40  ;;  %v15443_v8 = vld [vmem:[%s16029_s27 + $0x2974] ss:$8 sps:$4 sm:$0xff]   ;;  %v15438_v40 = vld [vmem:[%s16029_s27 + $0x1270] ss:$8 sps:$4 sm:$0xff]  }
 0x484   : > { %10597 = vmatpush1.bf16.msra.mxu1 %v15359_v51  ;;  %v15441_v51 = vld [vmem:[%s16029_s27 + $0x2970] ss:$8 sps:$4 sm:$0xff]  }
 0x485   : > { %11540 = vmatpush1.bf16.msra.mxu0 %v15362_v52  ;;  %10598 = vmatprep.subr.bf16.mxu1 %v15367_v57  ;;  %v15446_v52 = vld [vmem:[%s16029_s27 + $0x1284] ss:$8 sps:$4 sm:$0xff]  }
 0x486   : > { %11541 = vmatprep.subr.bf16.mxu0 %v15370_v53  ;;  %v15449_v57 = vld [vmem:[%s16029_s27 + $0x2984] ss:$8 sps:$4 sm:$0xff]   ;;  %v15444_v53 = vld [vmem:[%s16029_s27 + $0x1280] ss:$8 sps:$4 sm:$0xff]  }
 0x488   : > { %10599 = vmatpush1.bf16.msra.mxu1 %v15365_v54  ;;  %v15447_v54 = vld [vmem:[%s16029_s27 + $0x2980] ss:$8 sps:$4 sm:$0xff]  }
 0x489   : > { %11542 = vmatpush1.bf16.msra.mxu0 %v15368_v60  ;;  %10600 = vmatprep.subr.bf16.mxu1 %v15373_v56  ;;  %v15452_v60 = vld [vmem:[%s16029_s27 + $0x1294] ss:$8 sps:$4 sm:$0xff]  }
 0x48a   : > { %11543 = vmatprep.subr.bf16.mxu0 %v15376_v17  ;;  %v15455_v56 = vld [vmem:[%s16029_s27 + $0x2994] ss:$8 sps:$4 sm:$0xff]   ;;  %v15450_v17 = vld [vmem:[%s16029_s27 + $0x1290] ss:$8 sps:$4 sm:$0xff]  }
 0x48c   : > { %10601 = vmatpush1.bf16.msra.mxu1 %v15371_v18  ;;  %v15453_v18 = vld [vmem:[%s16029_s27 + $0x2990] ss:$8 sps:$4 sm:$0xff]  }
 0x48d   : > { %11544 = vmatpush1.bf16.msra.mxu0 %v15374_v20  ;;  %10602 = vmatprep.subr.bf16.mxu1 %v15379_v41  ;;  %v15458_v20 = vld [vmem:[%s16029_s27 + $0x12a4] ss:$8 sps:$4 sm:$0xff]  }
 0x48e   : > { %11545 = vmatprep.subr.bf16.mxu0 %v15382_v62  ;;  %v15461_v41 = vld [vmem:[%s16029_s27 + $0x29a4] ss:$8 sps:$4 sm:$0xff]   ;;  %v15456_v62 = vld [vmem:[%s16029_s27 + $0x12a0] ss:$8 sps:$4 sm:$0xff]  }
 0x490   : > { %10603 = vmatpush1.bf16.msra.mxu1 %v15377_v63  ;;  %v15459_v63 = vld [vmem:[%s16029_s27 + $0x29a0] ss:$8 sps:$4 sm:$0xff]  }
 0x491   : > { %11546 = vmatpush1.bf16.msra.mxu0 %v15380_v4  ;;  %10604 = vmatprep.subr.bf16.mxu1 %v15385_v0  ;;  %v15464_v4 = vld [vmem:[%s16029_s27 + $0x12b4] ss:$8 sps:$4 sm:$0xff]  }
 0x492   : > { %11547 = vmatprep.subr.bf16.mxu0 %v15388_v1  ;;  %v15467_v0 = vld [vmem:[%s16029_s27 + $0x29b4] ss:$8 sps:$4 sm:$0xff]   ;;  %v15462_v1 = vld [vmem:[%s16029_s27 + $0x12b0] ss:$8 sps:$4 sm:$0xff]  }
 0x494   : > { %10605 = vmatpush1.bf16.msra.mxu1 %v15383_v3  ;;  %v15470_v3 = vld [vmem:[%s16029_s27 + $0x12c4] ss:$8 sps:$4 sm:$0xff]  }
 0x495   : > { %11548 = vmatpush1.bf16.msra.mxu0 %v15386_v28  ;;  %10606 = vmatprep.subr.bf16.mxu1 %v15391_v30  ;;  %v15473_v28 = vld [vmem:[%s16029_s27 + $0x29c4] ss:$8 sps:$4 sm:$0xff]   ;;  %v15468_v30 = vld [vmem:[%s16029_s27 + $0x12c0] ss:$8 sps:$4 sm:$0xff]  }
 0x496   : > { %11549 = vmatprep.subr.bf16.mxu0 %v15394_v32  ;;  %v15471_v32 = vld [vmem:[%s16029_s27 + $0x29c0] ss:$8 sps:$4 sm:$0xff]  }
 0x498   : > { %10607 = vmatpush1.bf16.msra.mxu1 %v15389_v55  ;;  %v15476_v55 = vld [vmem:[%s16029_s27 + $0x12d4] ss:$8 sps:$4 sm:$0xff]  }
 0x499   : > { %11550 = vmatpush1.bf16.msra.mxu0 %v15392_v9  ;;  %10617 = vmatprep.subr.bf16.mxu1 %v15398_v10  ;;  %v15479_v9 = vld [vmem:[%s16029_s27 + $0x29d4] ss:$8 sps:$4 sm:$0xff]   ;;  %v15474_v10 = vld [vmem:[%s16029_s27 + $0x12d0] ss:$8 sps:$4 sm:$0xff]  }
 0x49a   : > { %11560 = vmatprep.subr.bf16.mxu0 %v15401_v16  ;;  %v15477_v16 = vld [vmem:[%s16029_s27 + $0x29d0] ss:$8 sps:$4 sm:$0xff]  }
 0x49b   : > { %10609 = vmatmul.mubr.bf16.vlgmr.msra.gmra.mrb[0].mxu1 %v795_v19  ;;  %v421_v19 = vcombine.high %v17533_v2, %v17533_v2  ;;  %v15486_v2 = vld [vmem:[%s16029_s27 + $0x12f0] ss:$8 sps:$4 sm:$0xff]  }
 0x49c   : > { %11552 = vmatmul.mubr.bf16.vlgmr.msra.gmra.mrb[0].mxu0 %v841_v13  ;;  %10618 = vmatpush1.bf16.msra.mxu1 %v15396_v14  ;;  %v17617_v13 = vld [vmem:[%s16024_s23 + $0xa8] sm:$0xff] }
 0x49d   : > { %11561 = vmatpush1.bf16.msra.mxu0 %v15399_v39  ;;  %10619 = vmatprep.subr.bf16.mxu1 %v15404_v44  ;;  %v15480_v14 = vld [vmem:[%s16029_s27 + $0x12e0] ss:$8 sps:$4 sm:$0xff]   ;;  %v15488_v44 = vld [vmem:[%s16029_s27 + $0x12f4] ss:$8 sps:$4 sm:$0xff]  }
 0x49e   : > { %11562 = vmatprep.subr.bf16.mxu0 %v15407_v46  ;;  %10649 = vmatprep.mubr.bf16.mxu1 %v798_v47  ;;  %v15483_v39 = vld [vmem:[%s16029_s27 + $0x29e0] ss:$8 sps:$4 sm:$0xff]   ;;  %v15491_v46 = vld [vmem:[%s16029_s27 + $0x29f4] ss:$8 sps:$4 sm:$0xff]   ;;  %v17624_v47 = vrot.slane %v421_v19, %v16082_v50  ;;  %v15562_v19 = vld [vmem:[%s16029_s27 + $0x2ab0] ss:$8 sps:$4 sm:$0xff]  }
 0x49f   : > { %11592 = vmatprep.mubr.bf16.mxu0 %v844_v48  ;;  %v17628_v48 = vrot.slane %v17617_v13, %v16082_v50 }
 0x4a0   : > { %10620 = vmatpush1.bf16.msra.mxu1 %v15402_v21  ;;  %v15489_v21 = vld [vmem:[%s16029_s27 + $0x29f0] ss:$8 sps:$4 sm:$0xff]  }
 0x4a1   : > { %11563 = vmatpush1.bf16.msra.mxu0 %v15405_v22  ;;  %10621 = vmatprep.subr.bf16.mxu1 %v15410_v29  ;;  %v15494_v22 = vld [vmem:[%s16029_s27 + $0x1304] ss:$8 sps:$4 sm:$0xff]  }
 0x4a2   : > { %11564 = vmatprep.subr.bf16.mxu0 %v15413_v23  ;;  %v15498_v29 = vld [vmem:[%s16029_s27 + $0x2a04] ss:$8 sps:$4 sm:$0xff]   ;;  %v437_v23 = vcombine.high %v17624_v47, %v17624_v47 }
 0x4a4   : > { %10622 = vmatpush1.bf16.msra.mxu1 %v15408_v24  ;;  %v640_v24 = vcombine.high %v17628_v48, %v17628_v48 }
 0x4a5   : > { %11565 = vmatpush1.bf16.msra.mxu0 %v15411_v31  ;;  %10623 = vmatprep.subr.bf16.mxu1 %v15416_v25  ;;  %v797_v31 = vpack.c.bf16 %v17541_v33, %v17541_v33  ;;  %v843_v25 = vpack.c.bf16 %v17544_v34, %v17544_v34  ;;  %v15499_v33 = vld [vmem:[%s16029_s27 + $0x1310] ss:$8 sps:$4 sm:$0xff]  }
 0x4a6   : > { %11566 = vmatprep.subr.bf16.mxu0 %v15419_v26  ;;  %v15492_v26 = vld [vmem:[%s16029_s27 + $0x1300] ss:$8 sps:$4 sm:$0xff]   ;;  %v15502_v34 = vld [vmem:[%s16029_s27 + $0x2a10] ss:$8 sps:$4 sm:$0xff]  }
 0x4a8   : > { %10624 = vmatpush1.bf16.msra.mxu1 %v15414_v36  ;;  %v15496_v36 = vld [vmem:[%s16029_s27 + $0x2a00] ss:$8 sps:$4 sm:$0xff]  }
 0x4a9   : > { %11567 = vmatpush1.bf16.msra.mxu0 %v15417_v27  ;;  %10625 = vmatprep.subr.bf16.mxu1 %v15422_v58  ;;  %v15501_v27 = vld [vmem:[%s16029_s27 + $0x1314] ss:$8 sps:$4 sm:$0xff]  }
 0x4aa   : > { %11568 = vmatprep.subr.bf16.mxu0 %v15425_v59  ;;  %v15504_v58 = vld [vmem:[%s16029_s27 + $0x2a14] ss:$8 sps:$4 sm:$0xff]   ;;  %v800_v59 = vpack.c.bf16 %v437_v23, %v437_v23  ;;  %v15579_v23 = vld [vmem:[%s16029_s27 + $0x13e4] ss:$8 sps:$4 sm:$0xff]  }
 0x4ac   : > { %10626 = vmatpush1.bf16.msra.mxu1 %v15420_v61  ;;  %v846_v61 = vpack.c.bf16 %v640_v24, %v640_v24  ;;  %v15582_v24 = vld [vmem:[%s16029_s27 + $0x2ae4] ss:$8 sps:$4 sm:$0xff]  }
 0x4ad   : > { %11569 = vmatpush1.bf16.msra.mxu0 %v15423_v43  ;;  %10627 = vmatprep.subr.bf16.mxu1 %v15428_v35  ;;  %v15507_v43 = vld [vmem:[%s16029_s27 + $0x1324] ss:$8 sps:$4 sm:$0xff]  }
 0x4ae   : > { %11570 = vmatprep.subr.bf16.mxu0 %v15431_v37  ;;  %v15510_v35 = vld [vmem:[%s16029_s27 + $0x2a24] ss:$8 sps:$4 sm:$0xff]   ;;  %v15505_v37 = vld [vmem:[%s16029_s27 + $0x1320] ss:$8 sps:$4 sm:$0xff]  }
 0x4b0   : > { %10628 = vmatpush1.bf16.msra.mxu1 %v15426_v45  ;;  %v15508_v45 = vld [vmem:[%s16029_s27 + $0x2a20] ss:$8 sps:$4 sm:$0xff]  }
 0x4b1   : > { %11571 = vmatpush1.bf16.msra.mxu0 %v15429_v38  ;;  %10629 = vmatprep.subr.bf16.mxu1 %v15434_v15  ;;  %v15513_v38 = vld [vmem:[%s16029_s27 + $0x1334] ss:$8 sps:$4 sm:$0xff]  }
 0x4b2   : > { %11572 = vmatprep.subr.bf16.mxu0 %v15437_v49  ;;  %v15516_v15 = vld [vmem:[%s16029_s27 + $0x2a34] ss:$8 sps:$4 sm:$0xff]   ;;  %v15511_v49 = vld [vmem:[%s16029_s27 + $0x1330] ss:$8 sps:$4 sm:$0xff]  }
 0x4b4   : > { %10630 = vmatpush1.bf16.msra.mxu1 %v15432_v42  ;;  %v15514_v42 = vld [vmem:[%s16029_s27 + $0x2a30] ss:$8 sps:$4 sm:$0xff]  }
 0x4b5   : > { %11573 = vmatpush1.bf16.msra.mxu0 %v15435_v5  ;;  %10631 = vmatprep.subr.bf16.mxu1 %v15440_v6  ;;  %v15519_v5 = vld [vmem:[%s16029_s27 + $0x1344] ss:$8 sps:$4 sm:$0xff]  }
 0x4b6   : > { %11574 = vmatprep.subr.bf16.mxu0 %v15443_v8  ;;  %v15522_v6 = vld [vmem:[%s16029_s27 + $0x2a44] ss:$8 sps:$4 sm:$0xff]   ;;  %v15517_v8 = vld [vmem:[%s16029_s27 + $0x1340] ss:$8 sps:$4 sm:$0xff]  }
 0x4b8   : > { %10632 = vmatpush1.bf16.msra.mxu1 %v15438_v40  ;;  %v15520_v40 = vld [vmem:[%s16029_s27 + $0x2a40] ss:$8 sps:$4 sm:$0xff]  }
 0x4b9   : > { %11575 = vmatpush1.bf16.msra.mxu0 %v15441_v51  ;;  %10633 = vmatprep.subr.bf16.mxu1 %v15446_v52  ;;  %v15525_v51 = vld [vmem:[%s16029_s27 + $0x1354] ss:$8 sps:$4 sm:$0xff]  }
 0x4ba   : > { %11576 = vmatprep.subr.bf16.mxu0 %v15449_v57  ;;  %v15528_v52 = vld [vmem:[%s16029_s27 + $0x2a54] ss:$8 sps:$4 sm:$0xff]   ;;  %v15523_v57 = vld [vmem:[%s16029_s27 + $0x1350] ss:$8 sps:$4 sm:$0xff]  }
 0x4bc   : > { %10634 = vmatpush1.bf16.msra.mxu1 %v15444_v53  ;;  %v15526_v53 = vld [vmem:[%s16029_s27 + $0x2a50] ss:$8 sps:$4 sm:$0xff]  }
 0x4bd   : > { %11577 = vmatpush1.bf16.msra.mxu0 %v15447_v54  ;;  %10635 = vmatprep.subr.bf16.mxu1 %v15452_v60  ;;  %v15531_v54 = vld [vmem:[%s16029_s27 + $0x1364] ss:$8 sps:$4 sm:$0xff]  }
 0x4be   : > { %11578 = vmatprep.subr.bf16.mxu0 %v15455_v56  ;;  %v15534_v60 = vld [vmem:[%s16029_s27 + $0x2a64] ss:$8 sps:$4 sm:$0xff]   ;;  %v15529_v56 = vld [vmem:[%s16029_s27 + $0x1360] ss:$8 sps:$4 sm:$0xff]  }
 0x4c0   : > { %10636 = vmatpush1.bf16.msra.mxu1 %v15450_v17  ;;  %v15532_v17 = vld [vmem:[%s16029_s27 + $0x2a60] ss:$8 sps:$4 sm:$0xff]  }
 0x4c1   : > { %11579 = vmatpush1.bf16.msra.mxu0 %v15453_v18  ;;  %10637 = vmatprep.subr.bf16.mxu1 %v15458_v20  ;;  %v15537_v18 = vld [vmem:[%s16029_s27 + $0x1374] ss:$8 sps:$4 sm:$0xff]  }
 0x4c2   : > { %11580 = vmatprep.subr.bf16.mxu0 %v15461_v41  ;;  %v15540_v20 = vld [vmem:[%s16029_s27 + $0x2a74] ss:$8 sps:$4 sm:$0xff]   ;;  %v15535_v41 = vld [vmem:[%s16029_s27 + $0x1370] ss:$8 sps:$4 sm:$0xff]  }
 0x4c4   : > { %10638 = vmatpush1.bf16.msra.mxu1 %v15456_v62  ;;  %v15538_v62 = vld [vmem:[%s16029_s27 + $0x2a70] ss:$8 sps:$4 sm:$0xff]  }
 0x4c5   : > { %11581 = vmatpush1.bf16.msra.mxu0 %v15459_v63  ;;  %10639 = vmatprep.subr.bf16.mxu1 %v15464_v4  ;;  %v15543_v63 = vld [vmem:[%s16029_s27 + $0x1384] ss:$8 sps:$4 sm:$0xff]  }
 0x4c6   : > { %11582 = vmatprep.subr.bf16.mxu0 %v15467_v0  ;;  %v15546_v4 = vld [vmem:[%s16029_s27 + $0x2a84] ss:$8 sps:$4 sm:$0xff]   ;;  %v15541_v0 = vld [vmem:[%s16029_s27 + $0x1380] ss:$8 sps:$4 sm:$0xff]  }
 0x4c8   : > { %10640 = vmatpush1.bf16.msra.mxu1 %v15462_v1  ;;  %v15544_v1 = vld [vmem:[%s16029_s27 + $0x2a80] ss:$8 sps:$4 sm:$0xff]  }
 0x4c9   : > { %11583 = vmatpush1.bf16.msra.mxu0 %v15465_v7  ;;  %10641 = vmatprep.subr.bf16.mxu1 %v15470_v3  ;;  %v15549_v7 = vld [vmem:[%s16029_s27 + $0x1394] ss:$8 sps:$4 sm:$0xff]  }
 0x4ca   : > { %11584 = vmatprep.subr.bf16.mxu0 %v15473_v28  ;;  %v15552_v3 = vld [vmem:[%s16029_s27 + $0x2a94] ss:$8 sps:$4 sm:$0xff]   ;;  %v15547_v28 = vld [vmem:[%s16029_s27 + $0x1390] ss:$8 sps:$4 sm:$0xff]  }
 0x4cc   : > { %10642 = vmatpush1.bf16.msra.mxu1 %v15468_v30  ;;  %v15550_v30 = vld [vmem:[%s16029_s27 + $0x2a90] ss:$8 sps:$4 sm:$0xff]  }
 0x4cd   : > { %11585 = vmatpush1.bf16.msra.mxu0 %v15471_v32  ;;  %10643 = vmatprep.subr.bf16.mxu1 %v15476_v55  ;;  %v15555_v32 = vld [vmem:[%s16029_s27 + $0x13a4] ss:$8 sps:$4 sm:$0xff]  }
 0x4ce   : > { %11586 = vmatprep.subr.bf16.mxu0 %v15479_v9  ;;  %v15558_v55 = vld [vmem:[%s16029_s27 + $0x2aa4] ss:$8 sps:$4 sm:$0xff]   ;;  %v15553_v9 = vld [vmem:[%s16029_s27 + $0x13a0] ss:$8 sps:$4 sm:$0xff]  }
 0x4d0   : > { %10644 = vmatpush1.bf16.msra.mxu1 %v15474_v10  ;;  %v15556_v10 = vld [vmem:[%s16029_s27 + $0x2aa0] ss:$8 sps:$4 sm:$0xff]  }
 0x4d1   : > { %11587 = vmatpush1.bf16.msra.mxu0 %v15477_v16  ;;  %10645 = vmatprep.subr.bf16.mxu1 %v15482_v11  ;;  %v15561_v16 = vld [vmem:[%s16029_s27 + $0x13b4] ss:$8 sps:$4 sm:$0xff]  }
 0x4d2   : > { %11588 = vmatprep.subr.bf16.mxu0 %v15485_v12  ;;  %v15564_v11 = vld [vmem:[%s16029_s27 + $0x2ab4] ss:$8 sps:$4 sm:$0xff]   ;;  %v15559_v12 = vld [vmem:[%s16029_s27 + $0x13b0] ss:$8 sps:$4 sm:$0xff]  }
 0x4d4   : > { %10646 = vmatpush1.bf16.msra.mxu1 %v15480_v14  ;;  %v15567_v14 = vld [vmem:[%s16029_s27 + $0x13c4] ss:$8 sps:$4 sm:$0xff]  }
 0x4d5   : > { %11589 = vmatpush1.bf16.msra.mxu0 %v15483_v39  ;;  %10647 = vmatprep.subr.bf16.mxu1 %v15488_v44  ;;  %v15570_v39 = vld [vmem:[%s16029_s27 + $0x2ac4] ss:$8 sps:$4 sm:$0xff]   ;;  %v15565_v44 = vld [vmem:[%s16029_s27 + $0x13c0] ss:$8 sps:$4 sm:$0xff]  }
 0x4d6   : > { %11590 = vmatprep.subr.bf16.mxu0 %v15491_v46  ;;  %v15568_v46 = vld [vmem:[%s16029_s27 + $0x2ac0] ss:$8 sps:$4 sm:$0xff]  }
 0x4d8   : > { %10648 = vmatpush1.bf16.msra.mxu1 %v15486_v2  ;;  %v15573_v2 = vld [vmem:[%s16029_s27 + $0x13d4] ss:$8 sps:$4 sm:$0xff]  }
 0x4d9   : > { %11591 = vmatpush1.bf16.msra.mxu0 %v15489_v21  ;;  %10658 = vmatprep.subr.bf16.mxu1 %v15494_v22  ;;  %v15576_v21 = vld [vmem:[%s16029_s27 + $0x2ad4] ss:$8 sps:$4 sm:$0xff]   ;;  %v15571_v22 = vld [vmem:[%s16029_s27 + $0x13d0] ss:$8 sps:$4 sm:$0xff]  }
 0x4da   : > { %11601 = vmatprep.subr.bf16.mxu0 %v15498_v29  ;;  %v15574_v29 = vld [vmem:[%s16029_s27 + $0x2ad0] ss:$8 sps:$4 sm:$0xff]  }
 0x4db   : > { %10650 = vmatmul.mubr.bf16.vlgmr.msra.gmra.mrb[0].mxu1 %v797_v31  ;;  %v625_v31 = vcombine.high %v17617_v13, %v17617_v13  ;;  %v15583_v13 = vld [vmem:[%s16029_s27 + $0x13f0] ss:$8 sps:$4 sm:$0xff]  }
 0x4dc   : > { %11593 = vmatmul.mubr.bf16.vlgmr.msra.gmra.mrb[0].mxu0 %v843_v25  ;;  %10659 = vmatpush1.bf16.msra.mxu1 %v15492_v26  ;;  %v17701_v25 = vld [vmem:[%s16024_s23 + $0x50] sm:$0xff]  ;;  %v15577_v26 = vld [vmem:[%s16029_s27 + $0x13e0] ss:$8 sps:$4 sm:$0xff]  }
 0x4dd   : > { %11602 = vmatpush1.bf16.msra.mxu0 %v15496_v36  ;;  %10660 = vmatprep.subr.bf16.mxu1 %v15501_v27  ;;  %v15580_v36 = vld [vmem:[%s16029_s27 + $0x2ae0] ss:$8 sps:$4 sm:$0xff]   ;;  %v15585_v27 = vld [vmem:[%s16029_s27 + $0x13f4] ss:$8 sps:$4 sm:$0xff]  }
 0x4de   : > { %11603 = vmatprep.subr.bf16.mxu0 %v15504_v58  ;;  %10690 = vmatprep.mubr.bf16.mxu1 %v800_v59  ;;  %v15588_v58 = vld [vmem:[%s16029_s27 + $0x2af4] ss:$8 sps:$4 sm:$0xff]   ;;  %v17709_v59 = vrot.slane %v17701_v25, %v16082_v50 }
 0x4df   : > { %11633 = vmatprep.mubr.bf16.mxu0 %v846_v61  ;;  %v17712_v61 = vrot.slane %v625_v31, %v16082_v50  ;;  %v15659_v31 = vld [vmem:[%s16029_s27 + $0x2bb0] ss:$8 sps:$4 sm:$0xff]  }
 0x4e0   : > { %10661 = vmatpush1.bf16.msra.mxu1 %v15499_v33  ;;  %v15586_v33 = vld [vmem:[%s16029_s27 + $0x2af0] ss:$8 sps:$4 sm:$0xff]  }
 0x4e1   : > { %11604 = vmatpush1.bf16.msra.mxu0 %v15502_v34  ;;  %10662 = vmatprep.subr.bf16.mxu1 %v15507_v43  ;;  %v15592_v34 = vld [vmem:[%s16029_s27 + $0x1404] ss:$8 sps:$4 sm:$0xff]  }
 0x4e2   : > { %11605 = vmatprep.subr.bf16.mxu0 %v15510_v35  ;;  %v15595_v43 = vld [vmem:[%s16029_s27 + $0x2b04] ss:$8 sps:$4 sm:$0xff]   ;;  %v453_v35 = vcombine.high %v17709_v59, %v17709_v59 }
 0x4e4   : > { %10663 = vmatpush1.bf16.msra.mxu1 %v15505_v37  ;;  %v641_v37 = vcombine.high %v17712_v61, %v17712_v61 }
 0x4e5   : > { %11606 = vmatpush1.bf16.msra.mxu0 %v15508_v45  ;;  %10664 = vmatprep.subr.bf16.mxu1 %v15513_v38  ;;  %v799_v45 = vpack.c.bf16 %v17624_v47, %v17624_v47  ;;  %v845_v38 = vpack.c.bf16 %v17628_v48, %v17628_v48  ;;  %v15596_v47 = vld [vmem:[%s16029_s27 + $0x1410] ss:$8 sps:$4 sm:$0xff]  }
 0x4e6   : > { %11607 = vmatprep.subr.bf16.mxu0 %v15516_v15  ;;  %v15590_v15 = vld [vmem:[%s16029_s27 + $0x1400] ss:$8 sps:$4 sm:$0xff]   ;;  %v15599_v48 = vld [vmem:[%s16029_s27 + $0x2b10] ss:$8 sps:$4 sm:$0xff]  }
 0x4e8   : > { %10665 = vmatpush1.bf16.msra.mxu1 %v15511_v49  ;;  %v15593_v49 = vld [vmem:[%s16029_s27 + $0x2b00] ss:$8 sps:$4 sm:$0xff]  }
 0x4e9   : > { %11608 = vmatpush1.bf16.msra.mxu0 %v15514_v42  ;;  %10666 = vmatprep.subr.bf16.mxu1 %v15519_v5  ;;  %v15598_v42 = vld [vmem:[%s16029_s27 + $0x1414] ss:$8 sps:$4 sm:$0xff]  }
 0x4ea   : > { %11609 = vmatprep.subr.bf16.mxu0 %v15522_v6  ;;  %v15601_v5 = vld [vmem:[%s16029_s27 + $0x2b14] ss:$8 sps:$4 sm:$0xff]   ;;  %v802_v6 = vpack.c.bf16 %v453_v35, %v453_v35  ;;  %v15676_v35 = vld [vmem:[%s16029_s27 + $0x14e4] ss:$8 sps:$4 sm:$0xff]  }
 0x4ec   : > { %10667 = vmatpush1.bf16.msra.mxu1 %v15517_v8  ;;  %v848_v8 = vpack.c.bf16 %v641_v37, %v641_v37  ;;  %v15679_v37 = vld [vmem:[%s16029_s27 + $0x2be4] ss:$8 sps:$4 sm:$0xff]  }
 0x4ed   : > { %11610 = vmatpush1.bf16.msra.mxu0 %v15520_v40  ;;  %10668 = vmatprep.subr.bf16.mxu1 %v15525_v51  ;;  %v15604_v40 = vld [vmem:[%s16029_s27 + $0x1424] ss:$8 sps:$4 sm:$0xff]  }
 0x4ee   : > { %11611 = vmatprep.subr.bf16.mxu0 %v15528_v52  ;;  %v15607_v51 = vld [vmem:[%s16029_s27 + $0x2b24] ss:$8 sps:$4 sm:$0xff]   ;;  %v15602_v52 = vld [vmem:[%s16029_s27 + $0x1420] ss:$8 sps:$4 sm:$0xff]  }
 0x4f0   : > { %10669 = vmatpush1.bf16.msra.mxu1 %v15523_v57  ;;  %v15605_v57 = vld [vmem:[%s16029_s27 + $0x2b20] ss:$8 sps:$4 sm:$0xff]  }
 0x4f1   : > { %11612 = vmatpush1.bf16.msra.mxu0 %v15526_v53  ;;  %10670 = vmatprep.subr.bf16.mxu1 %v15531_v54  ;;  %v15610_v53 = vld [vmem:[%s16029_s27 + $0x1434] ss:$8 sps:$4 sm:$0xff]  }
 0x4f2   : > { %11613 = vmatprep.subr.bf16.mxu0 %v15534_v60  ;;  %v15613_v54 = vld [vmem:[%s16029_s27 + $0x2b34] ss:$8 sps:$4 sm:$0xff]   ;;  %v15608_v60 = vld [vmem:[%s16029_s27 + $0x1430] ss:$8 sps:$4 sm:$0xff]  }
 0x4f4   : > { %10671 = vmatpush1.bf16.msra.mxu1 %v15529_v56  ;;  %v15611_v56 = vld [vmem:[%s16029_s27 + $0x2b30] ss:$8 sps:$4 sm:$0xff]  }
 0x4f5   : > { %11614 = vmatpush1.bf16.msra.mxu0 %v15532_v17  ;;  %10672 = vmatprep.subr.bf16.mxu1 %v15537_v18  ;;  %v15616_v17 = vld [vmem:[%s16029_s27 + $0x1444] ss:$8 sps:$4 sm:$0xff]  }
 0x4f6   : > { %11615 = vmatprep.subr.bf16.mxu0 %v15540_v20  ;;  %v15619_v18 = vld [vmem:[%s16029_s27 + $0x2b44] ss:$8 sps:$4 sm:$0xff]   ;;  %v15614_v20 = vld [vmem:[%s16029_s27 + $0x1440] ss:$8 sps:$4 sm:$0xff]  }
 0x4f8   : > { %10673 = vmatpush1.bf16.msra.mxu1 %v15535_v41  ;;  %v15617_v41 = vld [vmem:[%s16029_s27 + $0x2b40] ss:$8 sps:$4 sm:$0xff]  }
 0x4f9   : > { %11616 = vmatpush1.bf16.msra.mxu0 %v15538_v62  ;;  %10674 = vmatprep.subr.bf16.mxu1 %v15543_v63  ;;  %v15622_v62 = vld [vmem:[%s16029_s27 + $0x1454] ss:$8 sps:$4 sm:$0xff]  }
 0x4fa   : > { %11617 = vmatprep.subr.bf16.mxu0 %v15546_v4  ;;  %v15625_v63 = vld [vmem:[%s16029_s27 + $0x2b54] ss:$8 sps:$4 sm:$0xff]   ;;  %v15620_v4 = vld [vmem:[%s16029_s27 + $0x1450] ss:$8 sps:$4 sm:$0xff]  }
 0x4fc   : > { %10675 = vmatpush1.bf16.msra.mxu1 %v15541_v0  ;;  %v15623_v0 = vld [vmem:[%s16029_s27 + $0x2b50] ss:$8 sps:$4 sm:$0xff]  }
 0x4fd   : > { %11618 = vmatpush1.bf16.msra.mxu0 %v15544_v1  ;;  %10676 = vmatprep.subr.bf16.mxu1 %v15549_v7  ;;  %v15628_v1 = vld [vmem:[%s16029_s27 + $0x1464] ss:$8 sps:$4 sm:$0xff]  }
 0x4fe   : > { %11619 = vmatprep.subr.bf16.mxu0 %v15552_v3  ;;  %v15631_v7 = vld [vmem:[%s16029_s27 + $0x2b64] ss:$8 sps:$4 sm:$0xff]   ;;  %v15626_v3 = vld [vmem:[%s16029_s27 + $0x1460] ss:$8 sps:$4 sm:$0xff]  }
 0x500   : > { %10677 = vmatpush1.bf16.msra.mxu1 %v15547_v28  ;;  %v15629_v28 = vld [vmem:[%s16029_s27 + $0x2b60] ss:$8 sps:$4 sm:$0xff]  }
 0x501   : > { %11620 = vmatpush1.bf16.msra.mxu0 %v15550_v30  ;;  %10678 = vmatprep.subr.bf16.mxu1 %v15555_v32  ;;  %v15634_v30 = vld [vmem:[%s16029_s27 + $0x1474] ss:$8 sps:$4 sm:$0xff]  }
 0x502   : > { %11621 = vmatprep.subr.bf16.mxu0 %v15558_v55  ;;  %v15637_v32 = vld [vmem:[%s16029_s27 + $0x2b74] ss:$8 sps:$4 sm:$0xff]   ;;  %v15632_v55 = vld [vmem:[%s16029_s27 + $0x1470] ss:$8 sps:$4 sm:$0xff]  }
 0x504   : > { %10679 = vmatpush1.bf16.msra.mxu1 %v15553_v9  ;;  %v15635_v9 = vld [vmem:[%s16029_s27 + $0x2b70] ss:$8 sps:$4 sm:$0xff]  }
 0x505   : > { %11622 = vmatpush1.bf16.msra.mxu0 %v15556_v10  ;;  %10680 = vmatprep.subr.bf16.mxu1 %v15561_v16  ;;  %v15640_v10 = vld [vmem:[%s16029_s27 + $0x1484] ss:$8 sps:$4 sm:$0xff]  }
 0x506   : > { %11623 = vmatprep.subr.bf16.mxu0 %v15564_v11  ;;  %v15643_v16 = vld [vmem:[%s16029_s27 + $0x2b84] ss:$8 sps:$4 sm:$0xff]   ;;  %v15638_v11 = vld [vmem:[%s16029_s27 + $0x1480] ss:$8 sps:$4 sm:$0xff]  }
 0x508   : > { %10681 = vmatpush1.bf16.msra.mxu1 %v15559_v12  ;;  %v15641_v12 = vld [vmem:[%s16029_s27 + $0x2b80] ss:$8 sps:$4 sm:$0xff]  }
 0x509   : > { %11624 = vmatpush1.bf16.msra.mxu0 %v15562_v19  ;;  %10682 = vmatprep.subr.bf16.mxu1 %v15567_v14  ;;  %v15646_v19 = vld [vmem:[%s16029_s27 + $0x1494] ss:$8 sps:$4 sm:$0xff]  }
 0x50a   : > { %11625 = vmatprep.subr.bf16.mxu0 %v15570_v39  ;;  %v15649_v14 = vld [vmem:[%s16029_s27 + $0x2b94] ss:$8 sps:$4 sm:$0xff]   ;;  %v15644_v39 = vld [vmem:[%s16029_s27 + $0x1490] ss:$8 sps:$4 sm:$0xff]  }
 0x50c   : > { %10683 = vmatpush1.bf16.msra.mxu1 %v15565_v44  ;;  %v15647_v44 = vld [vmem:[%s16029_s27 + $0x2b90] ss:$8 sps:$4 sm:$0xff]  }
 0x50d   : > { %11626 = vmatpush1.bf16.msra.mxu0 %v15568_v46  ;;  %10684 = vmatprep.subr.bf16.mxu1 %v15573_v2  ;;  %v15652_v46 = vld [vmem:[%s16029_s27 + $0x14a4] ss:$8 sps:$4 sm:$0xff]  }
 0x50e   : > { %11627 = vmatprep.subr.bf16.mxu0 %v15576_v21  ;;  %v15655_v2 = vld [vmem:[%s16029_s27 + $0x2ba4] ss:$8 sps:$4 sm:$0xff]   ;;  %v15650_v21 = vld [vmem:[%s16029_s27 + $0x14a0] ss:$8 sps:$4 sm:$0xff]  }
 0x510   : > { %10685 = vmatpush1.bf16.msra.mxu1 %v15571_v22  ;;  %v15653_v22 = vld [vmem:[%s16029_s27 + $0x2ba0] ss:$8 sps:$4 sm:$0xff]  }
 0x511   : > { %11628 = vmatpush1.bf16.msra.mxu0 %v15574_v29  ;;  %10686 = vmatprep.subr.bf16.mxu1 %v15579_v23  ;;  %v15658_v29 = vld [vmem:[%s16029_s27 + $0x14b4] ss:$8 sps:$4 sm:$0xff]  }
 0x512   : > { %11629 = vmatprep.subr.bf16.mxu0 %v15582_v24  ;;  %v15661_v23 = vld [vmem:[%s16029_s27 + $0x2bb4] ss:$8 sps:$4 sm:$0xff]   ;;  %v15656_v24 = vld [vmem:[%s16029_s27 + $0x14b0] ss:$8 sps:$4 sm:$0xff]  }
 0x514   : > { %10687 = vmatpush1.bf16.msra.mxu1 %v15577_v26  ;;  %v15664_v26 = vld [vmem:[%s16029_s27 + $0x14c4] ss:$8 sps:$4 sm:$0xff]  }
 0x515   : > { %11630 = vmatpush1.bf16.msra.mxu0 %v15580_v36  ;;  %10688 = vmatprep.subr.bf16.mxu1 %v15585_v27  ;;  %v15667_v36 = vld [vmem:[%s16029_s27 + $0x2bc4] ss:$8 sps:$4 sm:$0xff]   ;;  %v15662_v27 = vld [vmem:[%s16029_s27 + $0x14c0] ss:$8 sps:$4 sm:$0xff]  }
 0x516   : > { %11631 = vmatprep.subr.bf16.mxu0 %v15588_v58  ;;  %v15665_v58 = vld [vmem:[%s16029_s27 + $0x2bc0] ss:$8 sps:$4 sm:$0xff]  }
 0x518   : > { %10689 = vmatpush1.bf16.msra.mxu1 %v15583_v13  ;;  %v15670_v13 = vld [vmem:[%s16029_s27 + $0x14d4] ss:$8 sps:$4 sm:$0xff]  }
 0x519   : > { %11632 = vmatpush1.bf16.msra.mxu0 %v15586_v33  ;;  %10699 = vmatprep.subr.bf16.mxu1 %v15592_v34  ;;  %v15673_v33 = vld [vmem:[%s16029_s27 + $0x2bd4] ss:$8 sps:$4 sm:$0xff]   ;;  %v15668_v34 = vld [vmem:[%s16029_s27 + $0x14d0] ss:$8 sps:$4 sm:$0xff]  }
 0x51a   : > { %11642 = vmatprep.subr.bf16.mxu0 %v15595_v43  ;;  %v15671_v43 = vld [vmem:[%s16029_s27 + $0x2bd0] ss:$8 sps:$4 sm:$0xff]  }
 0x51b   : > { %10691 = vmatmul.mubr.bf16.vlgmr.msra.gmra.mrb[0].mxu1 %v799_v45  ;;  %v438_v45 = vcombine.high %v17701_v25, %v17701_v25  ;;  %v15680_v25 = vld [vmem:[%s16029_s27 + $0x14f0] ss:$8 sps:$4 sm:$0xff]  }
 0x51c   : > { %11634 = vmatmul.mubr.bf16.vlgmr.msra.gmra.mrb[0].mxu0 %v845_v38  ;;  %10700 = vmatpush1.bf16.msra.mxu1 %v15590_v15  ;;  %v17785_v38 = vld [vmem:[%s16024_s23 + $0xb0] sm:$0xff]  ;;  %v15674_v15 = vld [vmem:[%s16029_s27 + $0x14e0] ss:$8 sps:$4 sm:$0xff]  }
 0x51d   : > { %11643 = vmatpush1.bf16.msra.mxu0 %v15593_v49  ;;  %10701 = vmatprep.subr.bf16.mxu1 %v15598_v42  ;;  %v15677_v49 = vld [vmem:[%s16029_s27 + $0x2be0] ss:$8 sps:$4 sm:$0xff]   ;;  %v15682_v42 = vld [vmem:[%s16029_s27 + $0x14f4] ss:$8 sps:$4 sm:$0xff]  }
 0x51e   : > { %11644 = vmatprep.subr.bf16.mxu0 %v15601_v5  ;;  %10731 = vmatprep.mubr.bf16.mxu1 %v802_v6  ;;  %v15685_v5 = vld [vmem:[%s16029_s27 + $0x2bf4] ss:$8 sps:$4 sm:$0xff]   ;;  %v17792_v6 = vrot.slane %v438_v45, %v16082_v50  ;;  %v15756_v45 = vld [vmem:[%s16029_s27 + $0x2cb0] ss:$8 sps:$4 sm:$0xff]  }
 0x51f   : > { %11674 = vmatprep.mubr.bf16.mxu0 %v848_v8  ;;  %v17796_v8 = vrot.slane %v17785_v38, %v16082_v50 }
 0x520   : > { %10702 = vmatpush1.bf16.msra.mxu1 %v15596_v47  ;;  %v15683_v47 = vld [vmem:[%s16029_s27 + $0x2bf0] ss:$8 sps:$4 sm:$0xff]  }
 0x521   : > { %11645 = vmatpush1.bf16.msra.mxu0 %v15599_v48  ;;  %10703 = vmatprep.subr.bf16.mxu1 %v15604_v40  ;;  %v15688_v48 = vld [vmem:[%s16029_s27 + $0x1504] ss:$8 sps:$4 sm:$0xff]  }
 0x522   : > { %11646 = vmatprep.subr.bf16.mxu0 %v15607_v51  ;;  %v15692_v40 = vld [vmem:[%s16029_s27 + $0x2c04] ss:$8 sps:$4 sm:$0xff]   ;;  %v454_v51 = vcombine.high %v17792_v6, %v17792_v6 }
 0x524   : > { %10704 = vmatpush1.bf16.msra.mxu1 %v15602_v52  ;;  %v657_v52 = vcombine.high %v17796_v8, %v17796_v8 }
 0x525   : > { %11647 = vmatpush1.bf16.msra.mxu0 %v15605_v57  ;;  %10705 = vmatprep.subr.bf16.mxu1 %v15610_v53  ;;  %v801_v57 = vpack.c.bf16 %v17709_v59, %v17709_v59  ;;  %v847_v53 = vpack.c.bf16 %v17712_v61, %v17712_v61  ;;  %v15693_v59 = vld [vmem:[%s16029_s27 + $0x1510] ss:$8 sps:$4 sm:$0xff]  }
 0x526   : > { %11648 = vmatprep.subr.bf16.mxu0 %v15613_v54  ;;  %v15686_v54 = vld [vmem:[%s16029_s27 + $0x1500] ss:$8 sps:$4 sm:$0xff]   ;;  %v15696_v61 = vld [vmem:[%s16029_s27 + $0x2c10] ss:$8 sps:$4 sm:$0xff]  }
 0x528   : > { %10706 = vmatpush1.bf16.msra.mxu1 %v15608_v60  ;;  %v15690_v60 = vld [vmem:[%s16029_s27 + $0x2c00] ss:$8 sps:$4 sm:$0xff]  }
 0x529   : > { %11649 = vmatpush1.bf16.msra.mxu0 %v15611_v56  ;;  %10707 = vmatprep.subr.bf16.mxu1 %v15616_v17  ;;  %v15695_v56 = vld [vmem:[%s16029_s27 + $0x1514] ss:$8 sps:$4 sm:$0xff]  }
 0x52a   : > { %11650 = vmatprep.subr.bf16.mxu0 %v15619_v18  ;;  %v15698_v17 = vld [vmem:[%s16029_s27 + $0x2c14] ss:$8 sps:$4 sm:$0xff]   ;;  %v804_v18 = vpack.c.bf16 %v454_v51, %v454_v51  ;;  %v15773_v51 = vld [vmem:[%s16029_s27 + $0x15e4] ss:$8 sps:$4 sm:$0xff]  }
 0x52c   : > { %10708 = vmatpush1.bf16.msra.mxu1 %v15614_v20  ;;  %v850_v20 = vpack.c.bf16 %v657_v52, %v657_v52  ;;  %v15776_v52 = vld [vmem:[%s16029_s27 + $0x2ce4] ss:$8 sps:$4 sm:$0xff]  }
 0x52d   : > { %11651 = vmatpush1.bf16.msra.mxu0 %v15617_v41  ;;  %10709 = vmatprep.subr.bf16.mxu1 %v15622_v62  ;;  %v15701_v41 = vld [vmem:[%s16029_s27 + $0x1524] ss:$8 sps:$4 sm:$0xff]  }
 0x52e   : > { %11652 = vmatprep.subr.bf16.mxu0 %v15625_v63  ;;  %v15704_v62 = vld [vmem:[%s16029_s27 + $0x2c24] ss:$8 sps:$4 sm:$0xff]   ;;  %v15699_v63 = vld [vmem:[%s16029_s27 + $0x1520] ss:$8 sps:$4 sm:$0xff]  }
 0x530   : > { %10710 = vmatpush1.bf16.msra.mxu1 %v15620_v4  ;;  %v15702_v4 = vld [vmem:[%s16029_s27 + $0x2c20] ss:$8 sps:$4 sm:$0xff]  }
 0x531   : > { %11653 = vmatpush1.bf16.msra.mxu0 %v15623_v0  ;;  %10711 = vmatprep.subr.bf16.mxu1 %v15628_v1  ;;  %v15707_v0 = vld [vmem:[%s16029_s27 + $0x1534] ss:$8 sps:$4 sm:$0xff]  }
 0x532   : > { %11654 = vmatprep.subr.bf16.mxu0 %v15631_v7  ;;  %v15710_v1 = vld [vmem:[%s16029_s27 + $0x2c34] ss:$8 sps:$4 sm:$0xff]   ;;  %v15705_v7 = vld [vmem:[%s16029_s27 + $0x1530] ss:$8 sps:$4 sm:$0xff]  }
 0x534   : > { %10712 = vmatpush1.bf16.msra.mxu1 %v15626_v3  ;;  %v15708_v3 = vld [vmem:[%s16029_s27 + $0x2c30] ss:$8 sps:$4 sm:$0xff]  }
 0x535   : > { %11655 = vmatpush1.bf16.msra.mxu0 %v15629_v28  ;;  %10713 = vmatprep.subr.bf16.mxu1 %v15634_v30  ;;  %v15713_v28 = vld [vmem:[%s16029_s27 + $0x1544] ss:$8 sps:$4 sm:$0xff]  }
 0x536   : > { %11656 = vmatprep.subr.bf16.mxu0 %v15637_v32  ;;  %v15716_v30 = vld [vmem:[%s16029_s27 + $0x2c44] ss:$8 sps:$4 sm:$0xff]   ;;  %v15711_v32 = vld [vmem:[%s16029_s27 + $0x1540] ss:$8 sps:$4 sm:$0xff]  }
 0x538   : > { %10714 = vmatpush1.bf16.msra.mxu1 %v15632_v55  ;;  %v15714_v55 = vld [vmem:[%s16029_s27 + $0x2c40] ss:$8 sps:$4 sm:$0xff]  }
 0x539   : > { %11657 = vmatpush1.bf16.msra.mxu0 %v15635_v9  ;;  %10715 = vmatprep.subr.bf16.mxu1 %v15640_v10  ;;  %v15719_v9 = vld [vmem:[%s16029_s27 + $0x1554] ss:$8 sps:$4 sm:$0xff]  }
 0x53a   : > { %11658 = vmatprep.subr.bf16.mxu0 %v15643_v16  ;;  %v15722_v10 = vld [vmem:[%s16029_s27 + $0x2c54] ss:$8 sps:$4 sm:$0xff]   ;;  %v15717_v16 = vld [vmem:[%s16029_s27 + $0x1550] ss:$8 sps:$4 sm:$0xff]  }
 0x53c   : > { %10716 = vmatpush1.bf16.msra.mxu1 %v15638_v11  ;;  %v15720_v11 = vld [vmem:[%s16029_s27 + $0x2c50] ss:$8 sps:$4 sm:$0xff]  }
 0x53d   : > { %11659 = vmatpush1.bf16.msra.mxu0 %v15641_v12  ;;  %10717 = vmatprep.subr.bf16.mxu1 %v15646_v19  ;;  %v15725_v12 = vld [vmem:[%s16029_s27 + $0x1564] ss:$8 sps:$4 sm:$0xff]  }
 0x53e   : > { %11660 = vmatprep.subr.bf16.mxu0 %v15649_v14  ;;  %v15728_v19 = vld [vmem:[%s16029_s27 + $0x2c64] ss:$8 sps:$4 sm:$0xff]   ;;  %v15723_v14 = vld [vmem:[%s16029_s27 + $0x1560] ss:$8 sps:$4 sm:$0xff]  }
 0x540   : > { %10718 = vmatpush1.bf16.msra.mxu1 %v15644_v39  ;;  %v15726_v39 = vld [vmem:[%s16029_s27 + $0x2c60] ss:$8 sps:$4 sm:$0xff]  }
 0x541   : > { %11661 = vmatpush1.bf16.msra.mxu0 %v15647_v44  ;;  %10719 = vmatprep.subr.bf16.mxu1 %v15652_v46  ;;  %v15731_v44 = vld [vmem:[%s16029_s27 + $0x1574] ss:$8 sps:$4 sm:$0xff]  }
 0x542   : > { %11662 = vmatprep.subr.bf16.mxu0 %v15655_v2  ;;  %v15734_v46 = vld [vmem:[%s16029_s27 + $0x2c74] ss:$8 sps:$4 sm:$0xff]   ;;  %v15729_v2 = vld [vmem:[%s16029_s27 + $0x1570] ss:$8 sps:$4 sm:$0xff]  }
 0x544   : > { %10720 = vmatpush1.bf16.msra.mxu1 %v15650_v21  ;;  %v15732_v21 = vld [vmem:[%s16029_s27 + $0x2c70] ss:$8 sps:$4 sm:$0xff]  }
 0x545   : > { %11663 = vmatpush1.bf16.msra.mxu0 %v15653_v22  ;;  %10721 = vmatprep.subr.bf16.mxu1 %v15658_v29  ;;  %v15737_v22 = vld [vmem:[%s16029_s27 + $0x1584] ss:$8 sps:$4 sm:$0xff]  }
 0x546   : > { %11664 = vmatprep.subr.bf16.mxu0 %v15661_v23  ;;  %v15740_v29 = vld [vmem:[%s16029_s27 + $0x2c84] ss:$8 sps:$4 sm:$0xff]   ;;  %v15735_v23 = vld [vmem:[%s16029_s27 + $0x1580] ss:$8 sps:$4 sm:$0xff]  }
 0x548   : > { %10722 = vmatpush1.bf16.msra.mxu1 %v15656_v24  ;;  %v15738_v24 = vld [vmem:[%s16029_s27 + $0x2c80] ss:$8 sps:$4 sm:$0xff]  }
 0x549   : > { %11665 = vmatpush1.bf16.msra.mxu0 %v15659_v31  ;;  %10723 = vmatprep.subr.bf16.mxu1 %v15664_v26  ;;  %v15743_v31 = vld [vmem:[%s16029_s27 + $0x1594] ss:$8 sps:$4 sm:$0xff]  }
 0x54a   : > { %11666 = vmatprep.subr.bf16.mxu0 %v15667_v36  ;;  %v15746_v26 = vld [vmem:[%s16029_s27 + $0x2c94] ss:$8 sps:$4 sm:$0xff]   ;;  %v15741_v36 = vld [vmem:[%s16029_s27 + $0x1590] ss:$8 sps:$4 sm:$0xff]  }
 0x54c   : > { %10724 = vmatpush1.bf16.msra.mxu1 %v15662_v27  ;;  %v15744_v27 = vld [vmem:[%s16029_s27 + $0x2c90] ss:$8 sps:$4 sm:$0xff]  }
 0x54d   : > { %11667 = vmatpush1.bf16.msra.mxu0 %v15665_v58  ;;  %10725 = vmatprep.subr.bf16.mxu1 %v15670_v13  ;;  %v15749_v58 = vld [vmem:[%s16029_s27 + $0x15a4] ss:$8 sps:$4 sm:$0xff]  }
 0x54e   : > { %11668 = vmatprep.subr.bf16.mxu0 %v15673_v33  ;;  %v15752_v13 = vld [vmem:[%s16029_s27 + $0x2ca4] ss:$8 sps:$4 sm:$0xff]   ;;  %v15747_v33 = vld [vmem:[%s16029_s27 + $0x15a0] ss:$8 sps:$4 sm:$0xff]  }
 0x550   : > { %10726 = vmatpush1.bf16.msra.mxu1 %v15668_v34  ;;  %v15750_v34 = vld [vmem:[%s16029_s27 + $0x2ca0] ss:$8 sps:$4 sm:$0xff]  }
 0x551   : > { %11669 = vmatpush1.bf16.msra.mxu0 %v15671_v43  ;;  %10727 = vmatprep.subr.bf16.mxu1 %v15676_v35  ;;  %v15755_v43 = vld [vmem:[%s16029_s27 + $0x15b4] ss:$8 sps:$4 sm:$0xff]  }
 0x552   : > { %11670 = vmatprep.subr.bf16.mxu0 %v15679_v37  ;;  %v15758_v35 = vld [vmem:[%s16029_s27 + $0x2cb4] ss:$8 sps:$4 sm:$0xff]   ;;  %v15753_v37 = vld [vmem:[%s16029_s27 + $0x15b0] ss:$8 sps:$4 sm:$0xff]  }
 0x554   : > { %10728 = vmatpush1.bf16.msra.mxu1 %v15674_v15  ;;  %v15761_v15 = vld [vmem:[%s16029_s27 + $0x15c4] ss:$8 sps:$4 sm:$0xff]  }
 0x555   : > { %11671 = vmatpush1.bf16.msra.mxu0 %v15677_v49  ;;  %10729 = vmatprep.subr.bf16.mxu1 %v15682_v42  ;;  %v15764_v49 = vld [vmem:[%s16029_s27 + $0x2cc4] ss:$8 sps:$4 sm:$0xff]   ;;  %v15759_v42 = vld [vmem:[%s16029_s27 + $0x15c0] ss:$8 sps:$4 sm:$0xff]  }
 0x556   : > { %11672 = vmatprep.subr.bf16.mxu0 %v15685_v5  ;;  %v15762_v5 = vld [vmem:[%s16029_s27 + $0x2cc0] ss:$8 sps:$4 sm:$0xff]  }
 0x558   : > { %10730 = vmatpush1.bf16.msra.mxu1 %v15680_v25  ;;  %v15767_v25 = vld [vmem:[%s16029_s27 + $0x15d4] ss:$8 sps:$4 sm:$0xff]  }
 0x559   : > { %11673 = vmatpush1.bf16.msra.mxu0 %v15683_v47  ;;  %10740 = vmatprep.subr.bf16.mxu1 %v15688_v48  ;;  %v15770_v47 = vld [vmem:[%s16029_s27 + $0x2cd4] ss:$8 sps:$4 sm:$0xff]   ;;  %v15765_v48 = vld [vmem:[%s16029_s27 + $0x15d0] ss:$8 sps:$4 sm:$0xff]  }
 0x55a   : > { %11683 = vmatprep.subr.bf16.mxu0 %v15692_v40  ;;  %v15768_v40 = vld [vmem:[%s16029_s27 + $0x2cd0] ss:$8 sps:$4 sm:$0xff]  }
 0x55b   : > { %10732 = vmatmul.mubr.bf16.vlgmr.msra.gmra.mrb[0].mxu1 %v801_v57  ;;  %v642_v57 = vcombine.high %v17785_v38, %v17785_v38  ;;  %v15777_v38 = vld [vmem:[%s16029_s27 + $0x15f0] ss:$8 sps:$4 sm:$0xff]  }
 0x55c   : > { %11675 = vmatmul.mubr.bf16.vlgmr.msra.gmra.mrb[0].mxu0 %v847_v53  ;;  %10741 = vmatpush1.bf16.msra.mxu1 %v15686_v54  ;;  %v15771_v53 = vld [vmem:[%s16029_s27 + $0x15e0] ss:$8 sps:$4 sm:$0xff]  }
 0x55d   : > { %11684 = vmatpush1.bf16.msra.mxu0 %v15690_v60  ;;  %10742 = vmatprep.subr.bf16.mxu1 %v15695_v56  ;;  %v15774_v54 = vld [vmem:[%s16029_s27 + $0x2ce0] ss:$8 sps:$4 sm:$0xff]   ;;  %v15779_v60 = vld [vmem:[%s16029_s27 + $0x15f4] ss:$8 sps:$4 sm:$0xff]  }
 0x55e   : > { %11685 = vmatprep.subr.bf16.mxu0 %v15698_v17  ;;  %10772 = vmatprep.mubr.bf16.mxu1 %v804_v18  ;;  %v15782_v56 = vld [vmem:[%s16029_s27 + $0x2cf4] ss:$8 sps:$4 sm:$0xff]   ;;  %v17876_v18 = vrot.slane %v642_v57, %v16082_v50  ;;  %v15858_v57 = vld [vmem:[%s16029_s27 + $0x16c4] ss:$8 sps:$4 sm:$0xff]  }
 0x55f   : > { %11715 = vmatprep.mubr.bf16.mxu0 %v850_v20  ;;  %v17873_v17 = vld.sshfl [vmem:[%s16024_s23 + $0x58] sm:$0xff pattern:$0x76325410] }
 0x560   : > { %10743 = vmatpush1.bf16.msra.mxu1 %v15693_v59  ;;  %v15780_v20 = vld [vmem:[%s16029_s27 + $0x2cf0] ss:$8 sps:$4 sm:$0xff]   ;;  %v15786_v59 = vld [vmem:[%s16029_s27 + $0x1604] ss:$8 sps:$4 sm:$0xff]  }
 0x561   : > { %11686 = vmatpush1.bf16.msra.mxu0 %v15696_v61  ;;  %10744 = vmatprep.subr.bf16.mxu1 %v15701_v41  ;;  %v15789_v61 = vld [vmem:[%s16029_s27 + $0x2d04] ss:$8 sps:$4 sm:$0xff]   ;;  %v470_v41 = vcombine.high %v17873_v17, %v17873_v17 }
 0x562   : > { %11687 = vmatprep.subr.bf16.mxu0 %v15704_v62  ;;  %v658_v62 = vcombine.high %v17876_v18, %v17876_v18 }
 0x564   : > { %10745 = vmatpush1.bf16.msra.mxu1 %v15699_v63  ;;  %v803_v63 = vpack.c.bf16 %v17792_v6, %v17792_v6  ;;  %v15790_v6 = vld [vmem:[%s16029_s27 + $0x1610] ss:$8 sps:$4 sm:$0xff]  }
 0x565   : > { %11688 = vmatpush1.bf16.msra.mxu0 %v15702_v4  ;;  %10746 = vmatprep.subr.bf16.mxu1 %v15707_v0  ;;  %v849_v4 = vpack.c.bf16 %v17796_v8, %v17796_v8  ;;  %v15784_v0 = vld [vmem:[%s16029_s27 + $0x1600] ss:$8 sps:$4 sm:$0xff]   ;;  %v15793_v8 = vld [vmem:[%s16029_s27 + $0x2d10] ss:$8 sps:$4 sm:$0xff]  }
 0x566   : > { %11689 = vmatprep.subr.bf16.mxu0 %v15710_v1  ;;  %v15787_v1 = vld [vmem:[%s16029_s27 + $0x2d00] ss:$8 sps:$4 sm:$0xff]  }
 0x568   : > { %10747 = vmatpush1.bf16.msra.mxu1 %v15705_v7  ;;  %v15792_v7 = vld [vmem:[%s16029_s27 + $0x1614] ss:$8 sps:$4 sm:$0xff]  }
 0x569   : > { %11690 = vmatpush1.bf16.msra.mxu0 %v15708_v3  ;;  %10748 = vmatprep.subr.bf16.mxu1 %v15713_v28  ;;  %v15795_v3 = vld [vmem:[%s16029_s27 + $0x2d14] ss:$8 sps:$4 sm:$0xff]   ;;  %v806_v28 = vpack.c.bf16 %v470_v41, %v470_v41  ;;  %v15873_v41 = vld [vmem:[%s16029_s27 + $0x2de4] ss:$8 sps:$4 sm:$0xff]  }
 0x56a   : > { %11691 = vmatprep.subr.bf16.mxu0 %v15716_v30  ;;  %v852_v30 = vpack.c.bf16 %v658_v62, %v658_v62  ;;  %v15868_v62 = vld [vmem:[%s16029_s27 + $0x16e0] ss:$8 sps:$4 sm:$0xff]  }
 0x56c   : > { %10749 = vmatpush1.bf16.msra.mxu1 %v15711_v32  ;;  %v15798_v32 = vld [vmem:[%s16029_s27 + $0x1624] ss:$8 sps:$4 sm:$0xff]  }
 0x56d   : > { %11692 = vmatpush1.bf16.msra.mxu0 %v15714_v55  ;;  %10750 = vmatprep.subr.bf16.mxu1 %v15719_v9  ;;  %v15801_v55 = vld [vmem:[%s16029_s27 + $0x2d24] ss:$8 sps:$4 sm:$0xff]   ;;  %v15796_v9 = vld [vmem:[%s16029_s27 + $0x1620] ss:$8 sps:$4 sm:$0xff]  }
 0x56e   : > { %11693 = vmatprep.subr.bf16.mxu0 %v15722_v10  ;;  %v15799_v10 = vld [vmem:[%s16029_s27 + $0x2d20] ss:$8 sps:$4 sm:$0xff]  }
 0x570   : > { %10751 = vmatpush1.bf16.msra.mxu1 %v15717_v16  ;;  %v15804_v16 = vld [vmem:[%s16029_s27 + $0x1634] ss:$8 sps:$4 sm:$0xff]  }
 0x571   : > { %11694 = vmatpush1.bf16.msra.mxu0 %v15720_v11  ;;  %10752 = vmatprep.subr.bf16.mxu1 %v15725_v12  ;;  %v15807_v11 = vld [vmem:[%s16029_s27 + $0x2d34] ss:$8 sps:$4 sm:$0xff]   ;;  %v15802_v12 = vld [vmem:[%s16029_s27 + $0x1630] ss:$8 sps:$4 sm:$0xff]  }
 0x572   : > { %11695 = vmatprep.subr.bf16.mxu0 %v15728_v19  ;;  %v15805_v19 = vld [vmem:[%s16029_s27 + $0x2d30] ss:$8 sps:$4 sm:$0xff]  }
 0x574   : > { %10753 = vmatpush1.bf16.msra.mxu1 %v15723_v14  ;;  %v15810_v14 = vld [vmem:[%s16029_s27 + $0x1644] ss:$8 sps:$4 sm:$0xff]  }
 0x575   : > { %11696 = vmatpush1.bf16.msra.mxu0 %v15726_v39  ;;  %10754 = vmatprep.subr.bf16.mxu1 %v15731_v44  ;;  %v15813_v39 = vld [vmem:[%s16029_s27 + $0x2d44] ss:$8 sps:$4 sm:$0xff]   ;;  %v15808_v44 = vld [vmem:[%s16029_s27 + $0x1640] ss:$8 sps:$4 sm:$0xff]  }
 0x576   : > { %11697 = vmatprep.subr.bf16.mxu0 %v15734_v46  ;;  %v15811_v46 = vld [vmem:[%s16029_s27 + $0x2d40] ss:$8 sps:$4 sm:$0xff]  }
 0x578   : > { %10755 = vmatpush1.bf16.msra.mxu1 %v15729_v2  ;;  %v15816_v2 = vld [vmem:[%s16029_s27 + $0x1654] ss:$8 sps:$4 sm:$0xff]  }
 0x579   : > { %11698 = vmatpush1.bf16.msra.mxu0 %v15732_v21  ;;  %10756 = vmatprep.subr.bf16.mxu1 %v15737_v22  ;;  %v15819_v21 = vld [vmem:[%s16029_s27 + $0x2d54] ss:$8 sps:$4 sm:$0xff]   ;;  %v15814_v22 = vld [vmem:[%s16029_s27 + $0x1650] ss:$8 sps:$4 sm:$0xff]  }
 0x57a   : > { %11699 = vmatprep.subr.bf16.mxu0 %v15740_v29  ;;  %v15817_v29 = vld [vmem:[%s16029_s27 + $0x2d50] ss:$8 sps:$4 sm:$0xff]  }
 0x57c   : > { %10757 = vmatpush1.bf16.msra.mxu1 %v15735_v23  ;;  %v15822_v23 = vld [vmem:[%s16029_s27 + $0x1664] ss:$8 sps:$4 sm:$0xff]  }
 0x57d   : > { %11700 = vmatpush1.bf16.msra.mxu0 %v15738_v24  ;;  %10758 = vmatprep.subr.bf16.mxu1 %v15743_v31  ;;  %v15825_v24 = vld [vmem:[%s16029_s27 + $0x2d64] ss:$8 sps:$4 sm:$0xff]   ;;  %v15820_v31 = vld [vmem:[%s16029_s27 + $0x1660] ss:$8 sps:$4 sm:$0xff]  }
 0x57e   : > { %11701 = vmatprep.subr.bf16.mxu0 %v15746_v26  ;;  %v15823_v26 = vld [vmem:[%s16029_s27 + $0x2d60] ss:$8 sps:$4 sm:$0xff]  }
 0x580   : > { %10759 = vmatpush1.bf16.msra.mxu1 %v15741_v36  ;;  %v15828_v36 = vld [vmem:[%s16029_s27 + $0x1674] ss:$8 sps:$4 sm:$0xff]  }
 0x581   : > { %11702 = vmatpush1.bf16.msra.mxu0 %v15744_v27  ;;  %10760 = vmatprep.subr.bf16.mxu1 %v15749_v58  ;;  %v15831_v27 = vld [vmem:[%s16029_s27 + $0x2d74] ss:$8 sps:$4 sm:$0xff]   ;;  %v15826_v58 = vld [vmem:[%s16029_s27 + $0x1670] ss:$8 sps:$4 sm:$0xff]  }
 0x582   : > { %11703 = vmatprep.subr.bf16.mxu0 %v15752_v13  ;;  %v15829_v13 = vld [vmem:[%s16029_s27 + $0x2d70] ss:$8 sps:$4 sm:$0xff]  }
 0x584   : > { %10761 = vmatpush1.bf16.msra.mxu1 %v15747_v33  ;;  %v15834_v33 = vld [vmem:[%s16029_s27 + $0x1684] ss:$8 sps:$4 sm:$0xff]  }
 0x585   : > { %11704 = vmatpush1.bf16.msra.mxu0 %v15750_v34  ;;  %10762 = vmatprep.subr.bf16.mxu1 %v15755_v43  ;;  %v15837_v34 = vld [vmem:[%s16029_s27 + $0x2d84] ss:$8 sps:$4 sm:$0xff]   ;;  %v15832_v43 = vld [vmem:[%s16029_s27 + $0x1680] ss:$8 sps:$4 sm:$0xff]  }
 0x586   : > { %11705 = vmatprep.subr.bf16.mxu0 %v15758_v35  ;;  %v15835_v35 = vld [vmem:[%s16029_s27 + $0x2d80] ss:$8 sps:$4 sm:$0xff]  }
 0x588   : > { %10763 = vmatpush1.bf16.msra.mxu1 %v15753_v37  ;;  %v15840_v37 = vld [vmem:[%s16029_s27 + $0x1694] ss:$8 sps:$4 sm:$0xff]  }
 0x589   : > { %11706 = vmatpush1.bf16.msra.mxu0 %v15756_v45  ;;  %10764 = vmatprep.subr.bf16.mxu1 %v15761_v15  ;;  %v15843_v45 = vld [vmem:[%s16029_s27 + $0x2d94] ss:$8 sps:$4 sm:$0xff]   ;;  %v15838_v15 = vld [vmem:[%s16029_s27 + $0x1690] ss:$8 sps:$4 sm:$0xff]  }
 0x58a   : > { %11707 = vmatprep.subr.bf16.mxu0 %v15764_v49  ;;  %v15841_v49 = vld [vmem:[%s16029_s27 + $0x2d90] ss:$8 sps:$4 sm:$0xff]  }
 0x58c   : > { %10765 = vmatpush1.bf16.msra.mxu1 %v15759_v42  ;;  %v15846_v42 = vld [vmem:[%s16029_s27 + $0x16a4] ss:$8 sps:$4 sm:$0xff]  }
 0x58d   : > { %11708 = vmatpush1.bf16.msra.mxu0 %v15762_v5  ;;  %10766 = vmatprep.subr.bf16.mxu1 %v15767_v25  ;;  %v15849_v5 = vld [vmem:[%s16029_s27 + $0x2da4] ss:$8 sps:$4 sm:$0xff]   ;;  %v15844_v25 = vld [vmem:[%s16029_s27 + $0x16a0] ss:$8 sps:$4 sm:$0xff]  }
 0x58e   : > { %11709 = vmatprep.subr.bf16.mxu0 %v15770_v47  ;;  %v15847_v47 = vld [vmem:[%s16029_s27 + $0x2da0] ss:$8 sps:$4 sm:$0xff]  }
 0x590   : > { %10767 = vmatpush1.bf16.msra.mxu1 %v15765_v48  ;;  %v15852_v48 = vld [vmem:[%s16029_s27 + $0x16b4] ss:$8 sps:$4 sm:$0xff]  }
 0x591   : > { %11710 = vmatpush1.bf16.msra.mxu0 %v15768_v40  ;;  %10768 = vmatprep.subr.bf16.mxu1 %v15773_v51  ;;  %v15855_v40 = vld [vmem:[%s16029_s27 + $0x2db4] ss:$8 sps:$4 sm:$0xff]   ;;  %v15850_v51 = vld [vmem:[%s16029_s27 + $0x16b0] ss:$8 sps:$4 sm:$0xff]  }
 0x592   : > { %11711 = vmatprep.subr.bf16.mxu0 %v15776_v52  ;;  %v15853_v52 = vld [vmem:[%s16029_s27 + $0x2db0] ss:$8 sps:$4 sm:$0xff]  }
 0x594   : > { %10769 = vmatpush1.bf16.msra.mxu1 %v15771_v53  ;;  %v15861_v53 = vld [vmem:[%s16029_s27 + $0x2dc4] ss:$8 sps:$4 sm:$0xff]  }
 0x595   : > { %11712 = vmatpush1.bf16.msra.mxu0 %v15774_v54  ;;  %10770 = vmatprep.subr.bf16.mxu1 %v15779_v60  ;;  %v15856_v54 = vld [vmem:[%s16029_s27 + $0x16c0] ss:$8 sps:$4 sm:$0xff]  }
 0x596   : > { %11713 = vmatprep.subr.bf16.mxu0 %v15782_v56  ;;  %v15859_v60 = vld [vmem:[%s16029_s27 + $0x2dc0] ss:$8 sps:$4 sm:$0xff]   ;;  %v15864_v56 = vld [vmem:[%s16029_s27 + $0x16d4] ss:$8 sps:$4 sm:$0xff]  }
 0x598   : > { %10771 = vmatpush1.bf16.msra.mxu1 %v15777_v38  ;;  %v15867_v38 = vld [vmem:[%s16029_s27 + $0x2dd4] ss:$8 sps:$4 sm:$0xff]  }
 0x599   : > { %11714 = vmatpush1.bf16.msra.mxu0 %v15780_v20  ;;  %10781 = vmatprep.subr.bf16.mxu1 %v15786_v59  ;;  %v15862_v20 = vld [vmem:[%s16029_s27 + $0x16d0] ss:$8 sps:$4 sm:$0xff]  }
 0x59a   : > { %11724 = vmatprep.subr.bf16.mxu0 %v15789_v61  ;;  %v15865_v59 = vld [vmem:[%s16029_s27 + $0x2dd0] ss:$8 sps:$4 sm:$0xff]   ;;  %v15870_v61 = vld [vmem:[%s16029_s27 + $0x16e4] ss:$8 sps:$4 sm:$0xff]  }
 0x59b   : > { %10773 = vmatmul.mubr.bf16.vlgmr.msra.gmra.mrb[0].mxu1 %v803_v63  ;;  %v15871_v63 = vld [vmem:[%s16029_s27 + $0x2de0] ss:$8 sps:$4 sm:$0xff]  }
 0x59c   : > { %11716 = vmatmul.mubr.bf16.vlgmr.msra.gmra.mrb[0].mxu0 %v849_v4  ;;  %10782 = vmatpush1.bf16.msra.mxu1 %v15784_v0  ;;  %v15876_v4 = vld [vmem:[%s16029_s27 + $0x16f4] ss:$8 sps:$4 sm:$0xff]  }
 0x59d   : > { %11725 = vmatpush1.bf16.msra.mxu0 %v15787_v1  ;;  %10783 = vmatprep.subr.bf16.mxu1 %v15792_v7  ;;  %v15879_v0 = vld [vmem:[%s16029_s27 + $0x2df4] ss:$8 sps:$4 sm:$0xff]   ;;  %v17951_v1 = vld.sshfl [vmem:[%s16024_s23 + $0xb8] sm:$0x33 pattern:$0x76325410] }
 0x59e   : > { %11726 = vmatprep.subr.bf16.mxu0 %v15795_v3  ;;  %10813 = vmatprep.mubr.bf16.mxu1 %v806_v28  ;;  %v15874_v7 = vld [vmem:[%s16029_s27 + $0x16f0] ss:$8 sps:$4 sm:$0xff]   ;;  %v666_v28 = vcombine.high %v17951_v1, %v17951_v1 }
 0x59f   : > { %11756 = vmatprep.mubr.bf16.mxu0 %v852_v30  ;;  %v15877_v3 = vld [vmem:[%s16029_s27 + $0x2df0] ss:$8 sps:$4 sm:$0xff]   ;;  %v15883_v30 = vld [vmem:[%s16029_s27 + $0x2e04] ss:$8 sps:$4 sm:$0xff]  }
 0x5a0   : > { %10784 = vmatpush1.bf16.msra.mxu1 %v15790_v6  ;;  %v805_v6 = vpack.c.bf16 %v17873_v17, %v17873_v17  ;;  %v15889_v17 = vld [vmem:[%s16029_s27 + $0x2e24] ss:$8 sps:$4 sm:$0xff]  }
 0x5a1   : > { %11727 = vmatpush1.bf16.msra.mxu0 %v15793_v8  ;;  %10785 = vmatprep.subr.bf16.mxu1 %v15798_v32  ;;  %v851_v8 = vpack.c.bf16 %v17876_v18, %v17876_v18  ;;  %v15881_v32 = vld [vmem:[%s16029_s27 + $0x2e00] ss:$8 sps:$4 sm:$0xff]  }
 0x5a2   : > { %11728 = vmatprep.subr.bf16.mxu0 %v15801_v55  ;;  %v854_v55 = vpack.c.bf16 %v666_v28, %v666_v28  ;;  %v15887_v18 = vld [vmem:[%s16029_s27 + $0x2e20] ss:$8 sps:$4 sm:$0xff]  }
 0x5a4   : > { %10786 = vmatpush1.bf16.msra.mxu1 %v15796_v9  ;;  %v15886_v9 = vld [vmem:[%s16029_s27 + $0x2e14] ss:$8 sps:$4 sm:$0xff]  }
 0x5a5   : > { %11729 = vmatpush1.bf16.msra.mxu0 %v15799_v10  ;;  %10787 = vmatprep.subr.bf16.mxu1 %v15804_v16  ;;  %v15884_v10 = vld [vmem:[%s16029_s27 + $0x2e10] ss:$8 sps:$4 sm:$0xff]   ;;  %v15892_v16 = vld [vmem:[%s16029_s27 + $0x2e34] ss:$8 sps:$4 sm:$0xff]  }
 0x5a6   : > { %11730 = vmatprep.subr.bf16.mxu0 %v15807_v11  ;;  %v15890_v11 = vld [vmem:[%s16029_s27 + $0x2e30] ss:$8 sps:$4 sm:$0xff]  }
 0x5a8   : > { %10788 = vmatpush1.bf16.msra.mxu1 %v15802_v12  ;;  %v15895_v12 = vld [vmem:[%s16029_s27 + $0x2e44] ss:$8 sps:$4 sm:$0xff]  }
 0x5a9   : > { %11731 = vmatpush1.bf16.msra.mxu0 %v15805_v19  ;;  %10789 = vmatprep.subr.bf16.mxu1 %v15810_v14  ;;  %v15893_v19 = vld [vmem:[%s16029_s27 + $0x2e40] ss:$8 sps:$4 sm:$0xff]   ;;  %v15898_v14 = vld [vmem:[%s16029_s27 + $0x2e54] ss:$8 sps:$4 sm:$0xff]  }
 0x5aa   : > { %11732 = vmatprep.subr.bf16.mxu0 %v15813_v39  ;;  %v15896_v39 = vld [vmem:[%s16029_s27 + $0x2e50] ss:$8 sps:$4 sm:$0xff]  }
 0x5ac   : > { %10790 = vmatpush1.bf16.msra.mxu1 %v15808_v44  ;;  %v15901_v44 = vld [vmem:[%s16029_s27 + $0x2e64] ss:$8 sps:$4 sm:$0xff]  }
 0x5ad   : > { %11733 = vmatpush1.bf16.msra.mxu0 %v15811_v46  ;;  %10791 = vmatprep.subr.bf16.mxu1 %v15816_v2  ;;  %v15899_v46 = vld [vmem:[%s16029_s27 + $0x2e60] ss:$8 sps:$4 sm:$0xff]   ;;  %v15904_v2 = vld [vmem:[%s16029_s27 + $0x2e74] ss:$8 sps:$4 sm:$0xff]  }
 0x5ae   : > { %11734 = vmatprep.subr.bf16.mxu0 %v15819_v21  ;;  %v15902_v21 = vld [vmem:[%s16029_s27 + $0x2e70] ss:$8 sps:$4 sm:$0xff]  }
 0x5b0   : > { %10792 = vmatpush1.bf16.msra.mxu1 %v15814_v22  ;;  %v15907_v22 = vld [vmem:[%s16029_s27 + $0x2e84] ss:$8 sps:$4 sm:$0xff]  }
 0x5b1   : > { %11735 = vmatpush1.bf16.msra.mxu0 %v15817_v29  ;;  %10793 = vmatprep.subr.bf16.mxu1 %v15822_v23  ;;  %v15905_v29 = vld [vmem:[%s16029_s27 + $0x2e80] ss:$8 sps:$4 sm:$0xff]   ;;  %v15910_v23 = vld [vmem:[%s16029_s27 + $0x2e94] ss:$8 sps:$4 sm:$0xff]  }
 0x5b2   : > { %11736 = vmatprep.subr.bf16.mxu0 %v15825_v24  ;;  %v15908_v24 = vld [vmem:[%s16029_s27 + $0x2e90] ss:$8 sps:$4 sm:$0xff]  }
 0x5b4   : > { %10794 = vmatpush1.bf16.msra.mxu1 %v15820_v31  ;;  %v15913_v31 = vld [vmem:[%s16029_s27 + $0x2ea4] ss:$8 sps:$4 sm:$0xff]  }
 0x5b5   : > { %11737 = vmatpush1.bf16.msra.mxu0 %v15823_v26  ;;  %10795 = vmatprep.subr.bf16.mxu1 %v15828_v36  ;;  %v15911_v26 = vld [vmem:[%s16029_s27 + $0x2ea0] ss:$8 sps:$4 sm:$0xff]   ;;  %v15916_v36 = vld [vmem:[%s16029_s27 + $0x2eb4] ss:$8 sps:$4 sm:$0xff]  }
 0x5b6   : > { %11738 = vmatprep.subr.bf16.mxu0 %v15831_v27  ;;  %v15914_v27 = vld [vmem:[%s16029_s27 + $0x2eb0] ss:$8 sps:$4 sm:$0xff]  }
 0x5b8   : > { %10796 = vmatpush1.bf16.msra.mxu1 %v15826_v58  ;;  %v15919_v58 = vld [vmem:[%s16029_s27 + $0x2ec4] ss:$8 sps:$4 sm:$0xff]  }
 0x5b9   : > { %11739 = vmatpush1.bf16.msra.mxu0 %v15829_v13  ;;  %10797 = vmatprep.subr.bf16.mxu1 %v15834_v33  ;;  %v15917_v13 = vld [vmem:[%s16029_s27 + $0x2ec0] ss:$8 sps:$4 sm:$0xff]   ;;  %v15922_v33 = vld [vmem:[%s16029_s27 + $0x2ed4] ss:$8 sps:$4 sm:$0xff]  }
 0x5ba   : > { %11740 = vmatprep.subr.bf16.mxu0 %v15837_v34  ;;  %v15920_v34 = vld [vmem:[%s16029_s27 + $0x2ed0] ss:$8 sps:$4 sm:$0xff]  }
 0x5bc   : > { %10798 = vmatpush1.bf16.msra.mxu1 %v15832_v43  ;;  %v15925_v43 = vld [vmem:[%s16029_s27 + $0x2ee4] ss:$8 sps:$4 sm:$0xff]  }
 0x5bd   : > { %11741 = vmatpush1.bf16.msra.mxu0 %v15835_v35  ;;  %10799 = vmatprep.subr.bf16.mxu1 %v15840_v37  ;;  %v15923_v35 = vld [vmem:[%s16029_s27 + $0x2ee0] ss:$8 sps:$4 sm:$0xff]   ;;  %v15928_v37 = vld [vmem:[%s16029_s27 + $0x2ef4] ss:$8 sps:$4 sm:$0xff]  }
 0x5be   : > { %11742 = vmatprep.subr.bf16.mxu0 %v15843_v45  ;;  %v15926_v45 = vld [vmem:[%s16029_s27 + $0x2ef0] ss:$8 sps:$4 sm:$0xff]  }
 0x5c0   : > { %10800 = vmatpush1.bf16.msra.mxu1 %v15838_v15  ;;  %v853_v15 = vpack.c.bf16 %v17951_v1, %v17951_v1 }
 0x5c1   : > { %11743 = vmatpush1.bf16.msra.mxu0 %v15841_v49  ;;  %10801 = vmatprep.subr.bf16.mxu1 %v15846_v42 }
 0x5c2   : > { %11744 = vmatprep.subr.bf16.mxu0 %v15849_v5 }
 0x5c4   : > { %10802 = vmatpush1.bf16.msra.mxu1 %v15844_v25 }
 0x5c5   : > { %11745 = vmatpush1.bf16.msra.mxu0 %v15847_v47  ;;  %10803 = vmatprep.subr.bf16.mxu1 %v15852_v48 }
 0x5c6   : > { %11746 = vmatprep.subr.bf16.mxu0 %v15855_v40 }
 0x5c8   : > { %10804 = vmatpush1.bf16.msra.mxu1 %v15850_v51 }
 0x5c9   : > { %11747 = vmatpush1.bf16.msra.mxu0 %v15853_v52  ;;  %10805 = vmatprep.subr.bf16.mxu1 %v15858_v57 }
 0x5ca   : > { %11748 = vmatprep.subr.bf16.mxu0 %v15861_v53 }
 0x5cc   : > { %10806 = vmatpush1.bf16.msra.mxu1 %v15856_v54  ;;  %v219_v54 = vld [vmem:[%s16034_s3] sm:$0xf] }
 0x5cd   : > { %11749 = vmatpush1.bf16.msra.mxu0 %v15859_v60  ;;  %10807 = vmatprep.subr.bf16.mxu1 %v15864_v56 }
 0x5ce   : > { %11750 = vmatprep.subr.bf16.mxu0 %v15867_v38 }
 0x5d0   : > { %10808 = vmatpush1.bf16.msra.mxu1 %v15862_v20 }
 0x5d1   : > { %11751 = vmatpush1.bf16.msra.mxu0 %v15865_v59  ;;  %10809 = vmatprep.subr.bf16.mxu1 %v15870_v61 }
 0x5d2   : > { %11752 = vmatprep.subr.bf16.mxu0 %v15873_v41 }
 0x5d4   : > { %10810 = vmatpush1.bf16.msra.mxu1 %v15868_v62 }
 0x5d5   : > { %11753 = vmatpush1.bf16.msra.mxu0 %v15871_v63  ;;  %10811 = vmatprep.subr.bf16.mxu1 %v15876_v4 }
 0x5d6   : > { %11754 = vmatprep.subr.bf16.mxu0 %v15879_v0 }
 0x5d8   : > { %10812 = vmatpush1.bf16.msra.mxu1 %v15874_v7 }
 0x5d9   : > { %11755 = vmatpush1.bf16.msra.mxu0 %v15877_v3 }
 0x5da   : > { %11765 = vmatprep.subr.bf16.mxu0 %v15883_v30 }
 0x5db   : > { %10814 = vmatmul.mubr.bf16.vlgmr.msra.gmra.mrb[0].mxu1 %v805_v6 }
 0x5dc   : > { %11757 = vmatmul.mubr.bf16.vlgmr.msra.gmra.mrb[0].mxu0 %v851_v8 }
 0x5dd   : > { %11766 = vmatpush1.bf16.msra.mxu0 %v15881_v32  ;;  %11797 = vmatprep.mubr.bf16.mxu0 %v854_v55 }
 0x5de   : > { %11767 = vmatprep.subr.bf16.mxu0 %v15886_v9 }
 0x5e1   : > { %11768 = vmatpush1.bf16.msra.mxu0 %v15884_v10 }
 0x5e2   : > { %11769 = vmatprep.subr.bf16.mxu0 %v15889_v17 }
 0x5e5   : > { %11770 = vmatpush1.bf16.msra.mxu0 %v15887_v18 }
 0x5e6   : > { %11771 = vmatprep.subr.bf16.mxu0 %v15892_v16 }
 0x5e9   : > { %11772 = vmatpush1.bf16.msra.mxu0 %v15890_v11 }
 0x5ea   : > { %11773 = vmatprep.subr.bf16.mxu0 %v15895_v12 }
 0x5ed   : > { %11774 = vmatpush1.bf16.msra.mxu0 %v15893_v19 }
 0x5ee   : > { %11775 = vmatprep.subr.bf16.mxu0 %v15898_v14 }
 0x5f1   : > { %11776 = vmatpush1.bf16.msra.mxu0 %v15896_v39 }
 0x5f2   : > { %11777 = vmatprep.subr.bf16.mxu0 %v15901_v44 }
 0x5f5   : > { %11778 = vmatpush1.bf16.msra.mxu0 %v15899_v46 }
 0x5f6   : > { %11779 = vmatprep.subr.bf16.mxu0 %v15904_v2 }
 0x5f9   : > { %11780 = vmatpush1.bf16.msra.mxu0 %v15902_v21 }
 0x5fa   : > { %11781 = vmatprep.subr.bf16.mxu0 %v15907_v22 }
 0x5fd   : > { %11782 = vmatpush1.bf16.msra.mxu0 %v15905_v29 }
 0x5fe   : > { %11783 = vmatprep.subr.bf16.mxu0 %v15910_v23 }
 0x601   : > { %11784 = vmatpush1.bf16.msra.mxu0 %v15908_v24 }
 0x602   : > { %11785 = vmatprep.subr.bf16.mxu0 %v15913_v31 }
 0x605   : > { %11786 = vmatpush1.bf16.msra.mxu0 %v15911_v26 }
 0x606   : > { %11787 = vmatprep.subr.bf16.mxu0 %v15916_v36 }
 0x609   : > { %11788 = vmatpush1.bf16.msra.mxu0 %v15914_v27 }
 0x60a   : > { %11789 = vmatprep.subr.bf16.mxu0 %v15919_v58 }
 0x60d   : > { %11790 = vmatpush1.bf16.msra.mxu0 %v15917_v13 }
 0x60e   : > { %11791 = vmatprep.subr.bf16.mxu0 %v15922_v33 }
 0x611   : > { %11792 = vmatpush1.bf16.msra.mxu0 %v15920_v34 }
 0x612   : > { %11793 = vmatprep.subr.bf16.mxu0 %v15925_v43 }
 0x615   : > { %11794 = vmatpush1.bf16.msra.mxu0 %v15923_v35 }
 0x616   : > { %11795 = vmatprep.subr.bf16.mxu0 %v15928_v37 }
 0x619   : > { %11796 = vmatpush1.bf16.msra.mxu0 %v15926_v45 }
 0x61c   : > { %11798 = vmatmul.mubr.bf16.vlgmr.msra.gmra.mrb[0].mxu0 %v853_v15 }
 0x6ae   : > { %v10815_v49 = vpop.f32.mrb[0].mxu1 }
 0x6af   : > { %v10817_v42 = vpop.f32.mrb[1].mxu1 }
 0x6b0   : > { %v10819_v5 = vpop.f32.mrb[2].mxu1 }
 0x6b1   : > { %v10820_v25 = vpop.f32.mrb[3].mxu1 }
 0x6ef   : > { %v11799_v47 = vpop.f32.mrb[0].mxu0 }
 0x6f0   : > { %v13426_v48 = vadd.f32 %v11799_v47, %v10815_v49  ;;  %v11801_v40 = vpop.f32.mrb[1].mxu0 }
 0x6f1   : > { %v13427_v51 = vadd.f32 %v11801_v40, %v10817_v42  ;;  %v11803_v52 = vpop.f32.mrb[2].mxu0 }
 0x6f2   : > { %v11804_v57 = vpop.f32.mrb[3].mxu0 }
 0x6f3   : > { %v11808_v53 = vcombine.low %v13426_v48, %v13427_v51 }
 0x6f5   : > { %v11815_v60 = vrot.slane %v11808_v53, %v16082_v50 }
 0x6f7   : > { %v11817_v56 = vadd.f32 %v11815_v60, %v219_v54 }
 0x6f9   : > { %11821 = vst.msk [vmem:[%s16034_s3] sm:$0xf] %vm11820_vm5, %v11817_v56 }
 0x6fa PF: > { %s12_s13 = sadd.s32 1, %s15969_s13   ;;  %s18016_s9 = smov %s15961_s11 }
 0x6fb   : > { %p9_p9 = scmp.ge.s32.totalorder %s12_s13, 6   ;;  %s18017_s10 = smov %s15965_s12 }
 0x6fc   : > { %s18018_s11 = smov %s18021_s14  ;;  %s18019_s12 = smov %s18025_s15 }
 0x6fd   :  { %11 = sbr.rel (!%p9_p9) target bundleno = 3 (0x3), region = 65 }

</bundles_post_ra>
